<compile_context>
chip_gen: v6e
topology: v6e:2x2x1
jax: 0.10.0
libtpu: 0.0.40
codegen_flags: <defaults>
</compile_context>

<pallas_src>
import functools

import jax
import jax.numpy as jnp
from jax.experimental import pallas as pl
from jax.experimental.pallas import tpu as pltpu


# 48 MiB: <= v7x's 64 MiB physical VMEM per TensorCore, well above the largest
# double-buffered tile footprint used here (~17 MiB for the fused FC kernel).
_VMEM_LIMIT_BYTES = 48 * 1024 * 1024


# ----------------------------------------------------------------------------
# Fused conv (im2col GEMM) + bias + ReLU + 2x2 max-pool kernel
# ----------------------------------------------------------------------------
def _conv_relu_pool_kernel(p_ref, w_ref, b_ref, o_ref, *, quarter):
    # p_ref: (4*quarter, Kp) im2col patches for one image.  Rows are grouped as
    #        the four 2x2-pool corners (jh, jw), each a contiguous (quarter, Kp)
    #        block in (hp, wp) order.
    # w_ref: (Kp, Cout); b_ref: (1, Cout); o_ref: (quarter, Cout).
    y = jnp.dot(p_ref[...], w_ref[...], preferred_element_type=jnp.float32)
    y = jnp.maximum(y + b_ref[...], 0.0)                     # bias + ReLU
    q = quarter                                              # static slices -> 4-way max pool
    o_ref[...] = jnp.maximum(
        jnp.maximum(y[0 * q:1 * q, :], y[1 * q:2 * q, :]),
        jnp.maximum(y[2 * q:3 * q, :], y[3 * q:4 * q, :]),
    )


def conv_relu_pool(x_nhwc, w_oihw, b, *, ksize=5, pad=2):
    """relu(conv5x5(x)+b) followed by 2x2 max-pool; x NHWC, w OIHW. Returns NHWC."""
    B, H, W, C = x_nhwc.shape
    Cout = w_oihw.shape[0]
    assert w_oihw.shape[1] == C and H % 2 == 0 and W % 2 == 0
    Hp, Wp = H // 2, W // 2
    K = C * ksize * ksize
    Kp = ((K + 7) // 8) * 8                                  # pad K to sublane multiple of 8

    # im2col; feature order (ci, kh, kw) matches PyTorch OIHW weight flattening.
    xpad = jnp.pad(x_nhwc, ((0, 0), (pad, pad), (pad, pad), (0, 0)))
    cols = []
    for kh in range(ksize):
        for kw in range(ksize):
            cols.append(xpad[:, kh:kh + H, kw:kw + W, :])    # (B,H,W,C)
    patches = jnp.stack(cols, axis=-1).reshape(B, H, W, K)   # (B,H,W,C*k*k)

    # Group the four 2x2-pool corners contiguously: (B, jh, jw, Hp, Wp, K).
    patches = patches.reshape(B, Hp, 2, Wp, 2, K)
    patches = jnp.transpose(patches, (0, 2, 4, 1, 3, 5))
    patches = patches.reshape(B * 4 * Hp * Wp, K)
    if Kp != K:
        patches = jnp.pad(patches, ((0, 0), (0, Kp - K)))

    w = w_oihw.reshape(Cout, K).T                            # (K, Cout)
    if Kp != K:
        w = jnp.pad(w, ((0, Kp - K), (0, 0)))
    b2 = b.reshape(1, Cout)

    quarter = Hp * Wp
    kernel = functools.partial(_conv_relu_pool_kernel, quarter=quarter)
    out = pl.pallas_call(
        kernel,
        out_shape=jax.ShapeDtypeStruct((B * Hp * Wp, Cout), jnp.float32),
        grid=(B,),                                            # exact grid: one image per step
        in_specs=[
            pl.BlockSpec((4 * quarter, Kp), lambda i: (i, 0)),
            pl.BlockSpec((Kp, Cout), lambda i: (0, 0)),
            pl.BlockSpec((1, Cout), lambda i: (0, 0)),
        ],
        out_specs=pl.BlockSpec((quarter, Cout), lambda i: (i, 0)),
        compiler_params=pltpu.CompilerParams(
            dimension_semantics=("parallel",),
            vmem_limit_bytes=_VMEM_LIMIT_BYTES,
        ),
    )(patches, w, b2)
    return out.reshape(B, Hp, Wp, Cout)


# ----------------------------------------------------------------------------
# Fused fc1 (+ReLU) + fc2 kernel: the (B, 512) intermediate stays in VMEM
# ----------------------------------------------------------------------------
def _fc1_fc2_kernel(x_ref, w1_ref, b1_ref, w2_ref, b2_ref, o_ref):
    h = jnp.dot(x_ref[...], w1_ref[...], preferred_element_type=jnp.float32)
    h = jnp.maximum(h + b1_ref[...], 0.0)
    o = jnp.dot(h, w2_ref[...], preferred_element_type=jnp.float32) + b2_ref[...]
    o_ref[...] = o.astype(o_ref.dtype)


def fc1_fc2(x, w1, b1, w2, b2):
    """relu(x @ w1 + b1) @ w2 + b2 as one kernel; w2 padded to 128 lanes."""
    B, K1 = x.shape
    K1w, N1 = w1.shape
    assert K1 == K1w
    N2 = w2.shape[1]
    N2p = ((N2 + 127) // 128) * 128                          # 10 -> 128: lane-dense store
    w2p = jnp.pad(w2, ((0, 0), (0, N2p - N2)))
    b2p = jnp.pad(b2, (0, N2p - N2)).reshape(1, N2p)
    b1r = b1.reshape(1, N1)

    out = pl.pallas_call(
        _fc1_fc2_kernel,
        out_shape=jax.ShapeDtypeStruct((B, N2p), jnp.float32),
        grid=(1,),
        in_specs=[
            pl.BlockSpec((B, K1), lambda i: (0, 0)),
            pl.BlockSpec((K1, N1), lambda i: (0, 0)),
            pl.BlockSpec((1, N1), lambda i: (0, 0)),
            pl.BlockSpec((N1, N2p), lambda i: (0, 0)),
            pl.BlockSpec((1, N2p), lambda i: (0, 0)),
        ],
        out_specs=pl.BlockSpec((B, N2p), lambda i: (0, 0)),
        compiler_params=pltpu.CompilerParams(
            dimension_semantics=("arbitrary",),
            vmem_limit_bytes=_VMEM_LIMIT_BYTES,
        ),
    )(x, w1, b1r, w2p, b2p)
    return out[:, :N2]


# ----------------------------------------------------------------------------
# Parameters and forward pass
# ----------------------------------------------------------------------------
def init_params(key):
    ks = jax.random.split(key, 8)
    s = 0.05
    return {
        "conv1_w": s * jax.random.normal(ks[0], (32, 3, 5, 5), jnp.float32),   # OIHW
        "conv1_b": s * jax.random.normal(ks[1], (32,), jnp.float32),
        "conv2_w": s * jax.random.normal(ks[2], (64, 32, 5, 5), jnp.float32),  # OIHW
        "conv2_b": s * jax.random.normal(ks[3], (64,), jnp.float32),
        "fc1_w":   s * jax.random.normal(ks[4], (64 * 8 * 8, 512), jnp.float32),  # (in,out)
        "fc1_b":   s * jax.random.normal(ks[5], (512,), jnp.float32),
        "fc2_w":   s * jax.random.normal(ks[6], (512, 10), jnp.float32),          # (in,out)
        "fc2_b":   s * jax.random.normal(ks[7], (10,), jnp.float32),
    }


def _flnet_forward(x_nchw, params):
    B = x_nchw.shape[0]
    x = jnp.transpose(x_nchw, (0, 2, 3, 1)).astype(jnp.float32)        # NCHW -> NHWC

    # conv1 (3->32, 5x5, pad 2) + relu + 2x2 pool, fused
    y = conv_relu_pool(x, params["conv1_w"], params["conv1_b"])        # (B,16,16,32)
    # conv2 (32->64, 5x5, pad 2) + relu + 2x2 pool, fused
    z = conv_relu_pool(y, params["conv2_w"], params["conv2_b"])        # (B,8,8,64)

    # flatten in NCHW order to match PyTorch's x.view(-1, C*H*W)
    feat = jnp.transpose(z, (0, 3, 1, 2)).reshape(B, -1)               # (B, 4096)

    # fc1 + relu + fc2, fused (intermediate stays in VMEM)
    return fc1_fc2(feat, params["fc1_w"], params["fc1_b"],
                   params["fc2_w"], params["fc2_b"])


flnet_forward = jax.jit(_flnet_forward)

# TODO(synk): im2col patch construction still materializes in HBM (wrapper-side);
# building patches fully inside the kernel via shifted accumulations is a further
# optimization for large batch sizes.


# ----------------------------------------------------------------------------
# Pure-JAX reference (for correctness check)
# ----------------------------------------------------------------------------
def flnet_reference(x_nchw, params):
    def conv(x, w, b):
        y = jax.lax.conv_general_dilated(
            x, w, window_strides=(1, 1), padding=((2, 2), (2, 2)),
            dimension_numbers=("NCHW", "OIHW", "NCHW"))
        return y + b[None, :, None, None]

    def pool(x):
        return jax.lax.reduce_window(
            x, -jnp.inf, jax.lax.max, (1, 1, 2, 2), (1, 1, 2, 2), "VALID")

    x = x_nchw.astype(jnp.float32)
    x = pool(jnp.maximum(conv(x, params["conv1_w"], params["conv1_b"]), 0.0))
    x = pool(jnp.maximum(conv(x, params["conv2_w"], params["conv2_b"]), 0.0))
    x = x.reshape(x.shape[0], -1)
    x = jnp.maximum(x @ params["fc1_w"] + params["fc1_b"], 0.0)
    return x @ params["fc2_w"] + params["fc2_b"]


if __name__ == "__main__":
    key = jax.random.PRNGKey(0)
    k_x, k_p = jax.random.split(key)
    # CIFAR-shaped input: fc1 expects 64*8*8 features -> 3x32x32 input.
    x = jax.random.normal(k_x, (2, 3, 32, 32), jnp.float32)
    params = init_params(k_p)

    out = jax.block_until_ready(flnet_forward(x, params))
    ref = jax.block_until_ready(flnet_reference(x, params))

    assert out.shape == (2, 10), out.shape
    assert jnp.allclose(out, ref, rtol=2e-3, atol=2e-3), float(jnp.abs(out - ref).max())
    print("KERNEL_OK")
</pallas_src>

<mosaic_0001>
module attributes {stable_mosaic.version = 11 : i64} {
  func.func @_conv_relu_pool_kernel(%arg0: i32, %arg1: memref<1024x80xf32, #tpu.memory_space<vmem>>, %arg2: memref<80x32xf32, #tpu.memory_space<vmem>>, %arg3: memref<1x32xf32, #tpu.memory_space<vmem>>, %arg4: memref<256x32xf32, #tpu.memory_space<vmem>>) attributes {dimension_semantics = [#tpu.dimension_semantics<parallel>], iteration_bounds = array<i64: 2>, scalar_prefetch = 0 : i64, scratch_operands = 0 : i64, tpu.core_type = #tpu.core_type<tc>, window_params = [{transform_indices = @transform_0, window_bounds = array<i64: 1024, 80>}, {pipeline_mode = #tpu.pipeline_mode<synchronous>, transform_indices = @transform_1, window_bounds = array<i64: 80, 32>}, {pipeline_mode = #tpu.pipeline_mode<synchronous>, transform_indices = @transform_2, window_bounds = array<i64: 1, 32>}, {transform_indices = @transform_3, window_bounds = array<i64: 256, 32>}]} {
    %c0 = arith.constant 0 : index
    %c0_0 = arith.constant 0 : index
    %0 = vector.load %arg1[%c0, %c0_0] : memref<1024x80xf32, #tpu.memory_space<vmem>>, vector<1024x80xf32>
    %c0_1 = arith.constant 0 : index
    %c0_2 = arith.constant 0 : index
    %1 = vector.load %arg2[%c0_1, %c0_2] : memref<80x32xf32, #tpu.memory_space<vmem>>, vector<80x32xf32>
    %cst = arith.constant dense<0.000000e+00> : vector<1024x32xf32>
    %2 = tpu.matmul %0, %1, %cst {dimension_numbers = #tpu.dot_dimension_numbers<[1], [0], [0], [1], [0, 0, 1, 1], [], []>} : vector<1024x80xf32>, vector<80x32xf32>, vector<1024x32xf32> -> vector<1024x32xf32>
    %c0_3 = arith.constant 0 : index
    %c0_4 = arith.constant 0 : index
    %3 = vector.load %arg3[%c0_3, %c0_4] : memref<1x32xf32, #tpu.memory_space<vmem>>, vector<1x32xf32>
    %4 = vector.broadcast %3 : vector<1x32xf32> to vector<1024x32xf32>
    %5 = arith.addf %2, %4 : vector<1024x32xf32>
    %cst_5 = arith.constant 0.000000e+00 : f32
    %6 = vector.broadcast %cst_5 : f32 to vector<1024x32xf32>
    %7 = arith.maximumf %5, %6 : vector<1024x32xf32>
    %8 = vector.extract_strided_slice %7 {offsets = [0, 0], sizes = [256, 32], strides = [1, 1]} : vector<1024x32xf32> to vector<256x32xf32>
    %9 = vector.extract_strided_slice %7 {offsets = [256, 0], sizes = [256, 32], strides = [1, 1]} : vector<1024x32xf32> to vector<256x32xf32>
    %10 = arith.maximumf %8, %9 : vector<256x32xf32>
    %11 = vector.extract_strided_slice %7 {offsets = [512, 0], sizes = [256, 32], strides = [1, 1]} : vector<1024x32xf32> to vector<256x32xf32>
    %12 = vector.extract_strided_slice %7 {offsets = [768, 0], sizes = [256, 32], strides = [1, 1]} : vector<1024x32xf32> to vector<256x32xf32>
    %13 = arith.maximumf %11, %12 : vector<256x32xf32>
    %14 = arith.maximumf %10, %13 : vector<256x32xf32>
    %c0_6 = arith.constant 0 : index
    %c0_7 = arith.constant 0 : index
    %15 = vector.load %arg4[%c0_6, %c0_7] : memref<256x32xf32, #tpu.memory_space<vmem>>, vector<256x32xf32>
    tpu.vector_store %arg4[%c0_6, %c0_7], %14 {strides = array<i32>} : memref<256x32xf32, #tpu.memory_space<vmem>>, vector<256x32xf32>,
    return
  }
  func.func @transform_0(%arg0: i32) -> (i32, i32) {
    %c0_i32 = arith.constant 0 : i32
    %c0_i32_0 = arith.constant 0 : i32
    return %arg0, %c0_i32 : i32, i32
  }
  func.func @transform_1(%arg0: i32) -> (i32, i32) {
    %c0_i32 = arith.constant 0 : i32
    %c0_i32_0 = arith.constant 0 : i32
    %c0_i32_1 = arith.constant 0 : i32
    return %c0_i32, %c0_i32_0 : i32, i32
  }
  func.func @transform_2(%arg0: i32) -> (i32, i32) {
    %c0_i32 = arith.constant 0 : i32
    %c0_i32_0 = arith.constant 0 : i32
    %c0_i32_1 = arith.constant 0 : i32
    return %c0_i32, %c0_i32_0 : i32, i32
  }
  func.func @transform_3(%arg0: i32) -> (i32, i32) {
    %c0_i32 = arith.constant 0 : i32
    %c0_i32_0 = arith.constant 0 : i32
    return %arg0, %c0_i32 : i32, i32
  }
}

module attributes {stable_mosaic.version = 11 : i64} {
  func.func @_conv_relu_pool_kernel(%arg0: i32, %arg1: memref<256x800xf32, #tpu.memory_space<vmem>>, %arg2: memref<800x64xf32, #tpu.memory_space<vmem>>, %arg3: memref<1x64xf32, #tpu.memory_space<vmem>>, %arg4: memref<64x64xf32, #tpu.memory_space<vmem>>) attributes {dimension_semantics = [#tpu.dimension_semantics<parallel>], iteration_bounds = array<i64: 2>, scalar_prefetch = 0 : i64, scratch_operands = 0 : i64, tpu.core_type = #tpu.core_type<tc>, window_params = [{transform_indices = @transform_0, window_bounds = array<i64: 256, 800>}, {pipeline_mode = #tpu.pipeline_mode<synchronous>, transform_indices = @transform_1, window_bounds = array<i64: 800, 64>}, {pipeline_mode = #tpu.pipeline_mode<synchronous>, transform_indices = @transform_2, window_bounds = array<i64: 1, 64>}, {transform_indices = @transform_3, window_bounds = array<i64: 64, 64>}]} {
    %c0 = arith.constant 0 : index
    %c0_0 = arith.constant 0 : index
    %0 = vector.load %arg1[%c0, %c0_0] : memref<256x800xf32, #tpu.memory_space<vmem>>, vector<256x800xf32>
    %c0_1 = arith.constant 0 : index
    %c0_2 = arith.constant 0 : index
    %1 = vector.load %arg2[%c0_1, %c0_2] : memref<800x64xf32, #tpu.memory_space<vmem>>, vector<800x64xf32>
    %cst = arith.constant dense<0.000000e+00> : vector<256x64xf32>
    %2 = tpu.matmul %0, %1, %cst {dimension_numbers = #tpu.dot_dimension_numbers<[1], [0], [0], [1], [0, 0, 1, 1], [], []>} : vector<256x800xf32>, vector<800x64xf32>, vector<256x64xf32> -> vector<256x64xf32>
    %c0_3 = arith.constant 0 : index
    %c0_4 = arith.constant 0 : index
    %3 = vector.load %arg3[%c0_3, %c0_4] : memref<1x64xf32, #tpu.memory_space<vmem>>, vector<1x64xf32>
    %4 = vector.broadcast %3 : vector<1x64xf32> to vector<256x64xf32>
    %5 = arith.addf %2, %4 : vector<256x64xf32>
    %cst_5 = arith.constant 0.000000e+00 : f32
    %6 = vector.broadcast %cst_5 : f32 to vector<256x64xf32>
    %7 = arith.maximumf %5, %6 : vector<256x64xf32>
    %8 = vector.extract_strided_slice %7 {offsets = [0, 0], sizes = [64, 64], strides = [1, 1]} : vector<256x64xf32> to vector<64x64xf32>
    %9 = vector.extract_strided_slice %7 {offsets = [64, 0], sizes = [64, 64], strides = [1, 1]} : vector<256x64xf32> to vector<64x64xf32>
    %10 = arith.maximumf %8, %9 : vector<64x64xf32>
    %11 = vector.extract_strided_slice %7 {offsets = [128, 0], sizes = [64, 64], strides = [1, 1]} : vector<256x64xf32> to vector<64x64xf32>
    %12 = vector.extract_strided_slice %7 {offsets = [192, 0], sizes = [64, 64], strides = [1, 1]} : vector<256x64xf32> to vector<64x64xf32>
    %13 = arith.maximumf %11, %12 : vector<64x64xf32>
    %14 = arith.maximumf %10, %13 : vector<64x64xf32>
    %c0_6 = arith.constant 0 : index
    %c0_7 = arith.constant 0 : index
    %15 = vector.load %arg4[%c0_6, %c0_7] : memref<64x64xf32, #tpu.memory_space<vmem>>, vector<64x64xf32>
    tpu.vector_store %arg4[%c0_6, %c0_7], %14 {strides = array<i32>} : memref<64x64xf32, #tpu.memory_space<vmem>>, vector<64x64xf32>,
    return
  }
  func.func @transform_0(%arg0: i32) -> (i32, i32) {
    %c0_i32 = arith.constant 0 : i32
    %c0_i32_0 = arith.constant 0 : i32
    return %arg0, %c0_i32 : i32, i32
  }
  func.func @transform_1(%arg0: i32) -> (i32, i32) {
    %c0_i32 = arith.constant 0 : i32
    %c0_i32_0 = arith.constant 0 : i32
    %c0_i32_1 = arith.constant 0 : i32
    return %c0_i32, %c0_i32_0 : i32, i32
  }
  func.func @transform_2(%arg0: i32) -> (i32, i32) {
    %c0_i32 = arith.constant 0 : i32
    %c0_i32_0 = arith.constant 0 : i32
    %c0_i32_1 = arith.constant 0 : i32
    return %c0_i32, %c0_i32_0 : i32, i32
  }
  func.func @transform_3(%arg0: i32) -> (i32, i32) {
    %c0_i32 = arith.constant 0 : i32
    %c0_i32_0 = arith.constant 0 : i32
    return %arg0, %c0_i32 : i32, i32
  }
}

module attributes {stable_mosaic.version = 11 : i64} {
  func.func @_fc1_fc2_kernel(%arg0: i32, %arg1: memref<2x4096xf32, #tpu.memory_space<vmem>>, %arg2: memref<4096x512xf32, #tpu.memory_space<vmem>>, %arg3: memref<1x512xf32, #tpu.memory_space<vmem>>, %arg4: memref<512x128xf32, #tpu.memory_space<vmem>>, %arg5: memref<1x128xf32, #tpu.memory_space<vmem>>, %arg6: memref<2x128xf32, #tpu.memory_space<vmem>>) attributes {dimension_semantics = [#tpu.dimension_semantics<arbitrary>], iteration_bounds = array<i64: 1>, scalar_prefetch = 0 : i64, scratch_operands = 0 : i64, tpu.core_type = #tpu.core_type<tc>, window_params = [{pipeline_mode = #tpu.pipeline_mode<synchronous>, transform_indices = @transform_0, window_bounds = array<i64: 2, 4096>}, {pipeline_mode = #tpu.pipeline_mode<synchronous>, transform_indices = @transform_1, window_bounds = array<i64: 4096, 512>}, {pipeline_mode = #tpu.pipeline_mode<synchronous>, transform_indices = @transform_2, window_bounds = array<i64: 1, 512>}, {pipeline_mode = #tpu.pipeline_mode<synchronous>, transform_indices = @transform_3, window_bounds = array<i64: 512, 128>}, {pipeline_mode = #tpu.pipeline_mode<synchronous>, transform_indices = @transform_4, window_bounds = array<i64: 1, 128>}, {pipeline_mode = #tpu.pipeline_mode<synchronous>, transform_indices = @transform_5, window_bounds = array<i64: 2, 128>}]} {
    %c0 = arith.constant 0 : index
    %c0_0 = arith.constant 0 : index
    %0 = vector.load %arg1[%c0, %c0_0] : memref<2x4096xf32, #tpu.memory_space<vmem>>, vector<2x4096xf32>
    %c0_1 = arith.constant 0 : index
    %c0_2 = arith.constant 0 : index
    %1 = vector.load %arg2[%c0_1, %c0_2] : memref<4096x512xf32, #tpu.memory_space<vmem>>, vector<4096x512xf32>
    %cst = arith.constant dense<0.000000e+00> : vector<2x512xf32>
    %2 = tpu.matmul %0, %1, %cst {dimension_numbers = #tpu.dot_dimension_numbers<[1], [0], [0], [1], [0, 0, 1, 1], [], []>} : vector<2x4096xf32>, vector<4096x512xf32>, vector<2x512xf32> -> vector<2x512xf32>
    %c0_3 = arith.constant 0 : index
    %c0_4 = arith.constant 0 : index
    %3 = vector.load %arg3[%c0_3, %c0_4] : memref<1x512xf32, #tpu.memory_space<vmem>>, vector<1x512xf32>
    %4 = vector.broadcast %3 : vector<1x512xf32> to vector<2x512xf32>
    %5 = arith.addf %2, %4 : vector<2x512xf32>
    %cst_5 = arith.constant 0.000000e+00 : f32
    %6 = vector.broadcast %cst_5 : f32 to vector<2x512xf32>
    %7 = arith.maximumf %5, %6 : vector<2x512xf32>
    %c0_6 = arith.constant 0 : index
    %c0_7 = arith.constant 0 : index
    %8 = vector.load %arg4[%c0_6, %c0_7] : memref<512x128xf32, #tpu.memory_space<vmem>>, vector<512x128xf32>
    %cst_8 = arith.constant dense<0.000000e+00> : vector<2x128xf32>
    %9 = tpu.matmul %7, %8, %cst_8 {dimension_numbers = #tpu.dot_dimension_numbers<[1], [0], [0], [1], [0, 0, 1, 1], [], []>} : vector<2x512xf32>, vector<512x128xf32>, vector<2x128xf32> -> vector<2x128xf32>
    %c0_9 = arith.constant 0 : index
    %c0_10 = arith.constant 0 : index
    %10 = vector.load %arg5[%c0_9, %c0_10] : memref<1x128xf32, #tpu.memory_space<vmem>>, vector<1x128xf32>
    %11 = vector.broadcast %10 : vector<1x128xf32> to vector<2x128xf32>
    %12 = arith.addf %9, %11 : vector<2x128xf32>
    %c0_11 = arith.constant 0 : index
    %c0_12 = arith.constant 0 : index
    %13 = vector.load %arg6[%c0_11, %c0_12] : memref<2x128xf32, #tpu.memory_space<vmem>>, vector<2x128xf32>
    tpu.vector_store %arg6[%c0_11, %c0_12], %12 {strides = array<i32>} : memref<2x128xf32, #tpu.memory_space<vmem>>, vector<2x128xf32>,
    return
  }
  func.func @transform_0(%arg0: i32) -> (i32, i32) {
    %c0_i32 = arith.constant 0 : i32
    %c0_i32_0 = arith.constant 0 : i32
    %c0_i32_1 = arith.constant 0 : i32
    return %c0_i32, %c0_i32_0 : i32, i32
  }
  func.func @transform_1(%arg0: i32) -> (i32, i32) {
    %c0_i32 = arith.constant 0 : i32
    %c0_i32_0 = arith.constant 0 : i32
    %c0_i32_1 = arith.constant 0 : i32
    return %c0_i32, %c0_i32_0 : i32, i32
  }
  func.func @transform_2(%arg0: i32) -> (i32, i32) {
    %c0_i32 = arith.constant 0 : i32
    %c0_i32_0 = arith.constant 0 : i32
    %c0_i32_1 = arith.constant 0 : i32
    return %c0_i32, %c0_i32_0 : i32, i32
  }
  func.func @transform_3(%arg0: i32) -> (i32, i32) {
    %c0_i32 = arith.constant 0 : i32
    %c0_i32_0 = arith.constant 0 : i32
    %c0_i32_1 = arith.constant 0 : i32
    return %c0_i32, %c0_i32_0 : i32, i32
  }
  func.func @transform_4(%arg0: i32) -> (i32, i32) {
    %c0_i32 = arith.constant 0 : i32
    %c0_i32_0 = arith.constant 0 : i32
    %c0_i32_1 = arith.constant 0 : i32
    return %c0_i32, %c0_i32_0 : i32, i32
  }
  func.func @transform_5(%arg0: i32) -> (i32, i32) {
    %c0_i32 = arith.constant 0 : i32
    %c0_i32_0 = arith.constant 0 : i32
    %c0_i32_1 = arith.constant 0 : i32
    return %c0_i32, %c0_i32_0 : i32, i32
  }
}

</mosaic_0001>

<bundles_post_ra>
// kernel: _flnet_forward.3
= control target key start
LH: loop header
LB: loop body
LE: loop exit
PB: predicated region body
PF: predicated region fallthrough
CT: control target
= control target key end

     0   :  { %s2268_s12 = smov 0   ;;  %s3226_s0 = inlined_call_operand.vmem [shape: f32[2048,80], index: 0, kind: input, shape index: {}]   ;;  %s3227_s1 = inlined_call_operand.vmem [shape: f32[80,32], index: 1, kind: input, shape index: {}]   ;;  %s3228_s2 = inlined_call_operand.vmem [shape: f32[1,32], index: 2, kind: input, shape index: {}]   ;;  %s3229_s3 = inlined_call_operand.vmem [shape: f32[512,32], index: 3, kind: output, shape index: {}]  }
   0x1 LB: > { %s1722_s13 = sadd.s32 4294967295, %s2246_s12   ;;  %p1726_p0 = scmp.ge.s32.totalorder %s2246_s12, 1  ;;  %s2246_s12 = sphi %s2268_s12, %s13_s12  }
   0x2   : > { %p138_p1 = scmp.lt.s32.totalorder %s2246_s12, 3 }
   0x4   : > { %p139_p2 = pnand %p1726_p0, %p138_p1 }
   0x6   : > { %142 = sbr.rel (%p139_p2) target bundleno = 373 (0x175), region = 32 }
   0xb   : > { %v311_v0 = vld [vmem:[%s3227_s1 + $0x48] sm:$0xff]  ;;  %v310_v1 = vld [vmem:[%s3227_s1 + $0x40] sm:$0xff]  ;;  %s1727_s18 = sshll.u32 %s1722_s13, 7  ;;  %v309_v2 = vld [vmem:[%s3227_s1 + $0x38] sm:$0xff]  ;;  %vm319_vm0 = vcmask 654336   ;;  %s2784_s16 = sshll.u32 %s1722_s13, 5 }
   0xc   : > { %2000 = vmatprep.subr.mxu0 %v311_v0  ;;  %2212 = vmatprep.subr.mxu1 %v311_v0  ;;  %v308_v3 = vld [vmem:[%s3227_s1 + $0x30] sm:$0xff]  ;;  %p163_p3 = scmp.lt.s32.totalorder %s1727_s18, 255  ;;  %v307_v4 = vld [vmem:[%s3227_s1 + $0x28] sm:$0xff]  ;;  %v306_v5 = vld [vmem:[%s3227_s1 + $0x20] sm:$0xff]  ;;  %p169_p4 = scmp.lt.s32.totalorder %s2784_s16, 63  ;;  %vm1633_vm1 = vcmask 261120  }
   0xd   : > { %2001 = vmatpush3.msra.mxu0 %v311_v0  ;;  %2222 = vmatpush3.msra.mxu1 %v311_v0  ;;  %v305_v6 = vld [vmem:[%s3227_s1 + $0x18] sm:$0xff]  ;;  %v304_v7 = vld [vmem:[%s3227_s1 + $0x10] sm:$0xff]  ;;  %v303_v8 = vld [vmem:[%s3227_s1 + $0x8] sm:$0xff] }
   0xe   : > { %2002 = vmatprep.subr.mxu0 %v310_v1  ;;  %2213 = vmatprep.subr.mxu1 %v310_v1  ;;  %s3327_s18 = smov (!%p163_p3, %s1727_s18), 255  ;;  %v302_v9 = vld [vmem:[%s3227_s1] sm:$0xff]  ;;  %s3329_s16 = smov (!%p169_p4, %s2784_s16), 63 }
   0xf   : > { %2003 = vmatpush3.msra.mxu0 %v310_v1  ;;  %2223 = vmatpush3.msra.mxu1 %v310_v1  ;;  %s1728_s4 = sshll.u32 %s3327_s18, 3  ;;  %s1730_s13 = sshll.u32 %s3329_s16, 3 }
  0x10   : > { %2004 = vmatprep.subr.mxu0 %v309_v2  ;;  %2214 = vmatprep.subr.mxu1 %v309_v2  ;;  %s2308_s9 = scalar_lea.vmem %s3226_s0, %s1728_s4  ;;  %s2914_s19 = scalar_lea.vmem %s3229_s3, %s1730_s13 }
  0x11   : > { %2005 = vmatpush3.msra.mxu0 %v309_v2  ;;  %2224 = vmatpush3.msra.mxu1 %v309_v2  ;;  %v174_v10 = vld [vmem:[%s2308_s9] sm:$0xff]  ;;  %v175_v12 = vld [vmem:[%s2308_s9 + $0x8] sm:$0xff]  ;;  %v176_v14 = vld [vmem:[%s2308_s9 + $0x10] sm:$0xff] }
  0x12   : > { %2006 = vmatprep.subr.mxu0 %v308_v3  ;;  %2215 = vmatprep.subr.mxu1 %v308_v3  ;;  %v238_v11 = vld [vmem:[%s2308_s9 + $0x200] sm:$0xff]  ;;  %v239_v13 = vld [vmem:[%s2308_s9 + $0x208] sm:$0xff]  ;;  %v240_v15 = vld [vmem:[%s2308_s9 + $0x210] sm:$0xff] }
  0x13   : > { %2007 = vmatpush3.msra.mxu0 %v308_v3  ;;  %2225 = vmatpush3.msra.mxu1 %v308_v3  ;;  %v177_v16 = vld [vmem:[%s2308_s9 + $0x18] sm:$0xff]  ;;  %v178_v18 = vld [vmem:[%s2308_s9 + $0x20] sm:$0xff]  ;;  %v179_v20 = vld [vmem:[%s2308_s9 + $0x28] sm:$0xff] }
  0x14   : > { %2008 = vmatprep.subr.mxu0 %v307_v4  ;;  %2216 = vmatprep.subr.mxu1 %v307_v4  ;;  %v241_v17 = vld [vmem:[%s2308_s9 + $0x218] sm:$0xff]  ;;  %v242_v19 = vld [vmem:[%s2308_s9 + $0x220] sm:$0xff]  ;;  %v243_v21 = vld [vmem:[%s2308_s9 + $0x228] sm:$0xff] }
  0x15   : > { %2009 = vmatpush3.msra.mxu0 %v307_v4  ;;  %2226 = vmatpush3.msra.mxu1 %v307_v4  ;;  %v180_v22 = vld [vmem:[%s2308_s9 + $0x30] sm:$0xff]  ;;  %v181_v24 = vld [vmem:[%s2308_s9 + $0x38] sm:$0xff]  ;;  %v182_v26 = vld [vmem:[%s2308_s9 + $0x40] sm:$0xff] }
  0x16   : > { %2010 = vmatprep.subr.mxu0 %v306_v5  ;;  %2217 = vmatprep.subr.mxu1 %v306_v5  ;;  %v244_v23 = vld [vmem:[%s2308_s9 + $0x230] sm:$0xff]  ;;  %v245_v25 = vld [vmem:[%s2308_s9 + $0x238] sm:$0xff]  ;;  %v246_v27 = vld [vmem:[%s2308_s9 + $0x240] sm:$0xff] }
  0x17   : > { %2011 = vmatpush3.msra.mxu0 %v306_v5  ;;  %2227 = vmatpush3.msra.mxu1 %v306_v5  ;;  %v183_v28 = vld [vmem:[%s2308_s9 + $0x48] sm:$0xff]  ;;  %v184_v30 = vld [vmem:[%s2308_s9 + $0x50] sm:$0xff]  ;;  %v185_v32 = vld [vmem:[%s2308_s9 + $0x58] sm:$0xff] }
  0x18   : > { %2012 = vmatprep.subr.mxu0 %v305_v6  ;;  %2218 = vmatprep.subr.mxu1 %v305_v6  ;;  %v247_v29 = vld [vmem:[%s2308_s9 + $0x248] sm:$0xff]  ;;  %v248_v31 = vld [vmem:[%s2308_s9 + $0x250] sm:$0xff]  ;;  %v249_v33 = vld [vmem:[%s2308_s9 + $0x258] sm:$0xff] }
  0x19   : > { %2013 = vmatpush3.msra.mxu0 %v305_v6  ;;  %2228 = vmatpush3.msra.mxu1 %v305_v6  ;;  %v186_v34 = vld [vmem:[%s2308_s9 + $0x60] sm:$0xff]  ;;  %v187_v36 = vld [vmem:[%s2308_s9 + $0x68] sm:$0xff]  ;;  %v188_v38 = vld [vmem:[%s2308_s9 + $0x70] sm:$0xff] }
  0x1a   : > { %2014 = vmatprep.subr.mxu0 %v304_v7  ;;  %2219 = vmatprep.subr.mxu1 %v304_v7  ;;  %v250_v35 = vld [vmem:[%s2308_s9 + $0x260] sm:$0xff]  ;;  %v251_v37 = vld [vmem:[%s2308_s9 + $0x268] sm:$0xff]  ;;  %v252_v39 = vld [vmem:[%s2308_s9 + $0x270] sm:$0xff] }
  0x1b   : > { %2015 = vmatpush3.msra.mxu0 %v304_v7  ;;  %2229 = vmatpush3.msra.mxu1 %v304_v7  ;;  %v189_v40 = vld [vmem:[%s2308_s9 + $0x78] sm:$0xff]  ;;  %v190_v42 = vld [vmem:[%s2308_s9 + $0x80] sm:$0xff]  ;;  %v191_v44 = vld [vmem:[%s2308_s9 + $0x88] sm:$0xff] }
  0x1c   : > { %2016 = vmatprep.subr.mxu0 %v303_v8  ;;  %2220 = vmatprep.subr.mxu1 %v303_v8  ;;  %v253_v41 = vld [vmem:[%s2308_s9 + $0x278] sm:$0xff]  ;;  %v254_v43 = vld [vmem:[%s2308_s9 + $0x280] sm:$0xff]  ;;  %v255_v45 = vld [vmem:[%s2308_s9 + $0x288] sm:$0xff] }
  0x1d   : > { %2017 = vmatpush3.msra.mxu0 %v303_v8  ;;  %2230 = vmatpush3.msra.mxu1 %v303_v8  ;;  %v192_v46 = vld [vmem:[%s2308_s9 + $0x90] sm:$0xff]  ;;  %v193_v48 = vld [vmem:[%s2308_s9 + $0x98] sm:$0xff]  ;;  %v194_v50 = vld [vmem:[%s2308_s9 + $0xa0] sm:$0xff] }
  0x1e   : > { %2018 = vmatprep.subr.mxu0 %v302_v9  ;;  %2221 = vmatprep.subr.mxu1 %v302_v9  ;;  %v256_v47 = vld [vmem:[%s2308_s9 + $0x290] sm:$0xff]  ;;  %v257_v49 = vld [vmem:[%s2308_s9 + $0x298] sm:$0xff]  ;;  %v258_v51 = vld [vmem:[%s2308_s9 + $0x2a0] sm:$0xff] }
  0x1f   : > { %2019 = vmatpush3.msra.mxu0 %v302_v9  ;;  %2231 = vmatpush3.msra.mxu1 %v302_v9  ;;  %v195_v52 = vld [vmem:[%s2308_s9 + $0xa8] sm:$0xff]  ;;  %v196_v54 = vld [vmem:[%s2308_s9 + $0xb0] sm:$0xff]  ;;  %v197_v56 = vld [vmem:[%s2308_s9 + $0xb8] sm:$0xff] }
  0x20   : > { %2020 = vmatprep.mubr.msk.f32.mxu0 %vm319_vm0, %v174_v10  ;;  %2116 = vmatprep.mubr.msk.f32.mxu1 %vm319_vm0, %v238_v11  ;;  %v259_v53 = vld [vmem:[%s2308_s9 + $0x2a8] sm:$0xff]  ;;  %v260_v55 = vld [vmem:[%s2308_s9 + $0x2b0] sm:$0xff]  ;;  %v261_v57 = vld [vmem:[%s2308_s9 + $0x2b8] sm:$0xff] }
  0x21   : > { %2021 = vmatmul.mubr.msk.f32.vlgmr.msra.gmra.mxu0 %vm319_vm0, %v175_v12  ;;  %2117 = vmatmul.mubr.msk.f32.vlgmr.msra.gmra.mxu1 %vm319_vm0, %v239_v13  ;;  %v198_v58 = vld [vmem:[%s2308_s9 + $0xc0] sm:$0xff]  ;;  %v199_v60 = vld [vmem:[%s2308_s9 + $0xc8] sm:$0xff]  ;;  %v200_v62 = vld [vmem:[%s2308_s9 + $0xd0] sm:$0xff] }
  0x22   : > { %2023 = vmatprep.mubr.msk.f32.mxu0 %vm319_vm0, %v176_v14  ;;  %2119 = vmatprep.mubr.msk.f32.mxu1 %vm319_vm0, %v240_v15  ;;  %v262_v59 = vld [vmem:[%s2308_s9 + $0x2c0] sm:$0xff]  ;;  %v263_v61 = vld [vmem:[%s2308_s9 + $0x2c8] sm:$0xff]  ;;  %v264_v63 = vld [vmem:[%s2308_s9 + $0x2d0] sm:$0xff] }
  0x23   : > { %v201_v0 = vld [vmem:[%s2308_s9 + $0xd8] sm:$0xff]  ;;  %v202_v2 = vld [vmem:[%s2308_s9 + $0xe0] sm:$0xff]  ;;  %v203_v4 = vld [vmem:[%s2308_s9 + $0xe8] sm:$0xff] }
  0x24   : > { %v265_v1 = vld [vmem:[%s2308_s9 + $0x2d8] sm:$0xff]  ;;  %v266_v3 = vld [vmem:[%s2308_s9 + $0x2e0] sm:$0xff]  ;;  %v267_v5 = vld [vmem:[%s2308_s9 + $0x2e8] sm:$0xff] }
  0x25   : > { %2024 = vmatmul.mubr.msk.f32.gmra.mxu0 %vm319_vm0, %v177_v16  ;;  %2120 = vmatmul.mubr.msk.f32.gmra.mxu1 %vm319_vm0, %v241_v17  ;;  %v204_v6 = vld [vmem:[%s2308_s9 + $0xf0] sm:$0xff]  ;;  %v205_v8 = vld [vmem:[%s2308_s9 + $0xf8] sm:$0xff]  ;;  %v206_v10 = vld [vmem:[%s2308_s9 + $0x100] sm:$0xff] }
  0x26   : > { %2026 = vmatprep.mubr.msk.f32.mxu0 %vm319_vm0, %v178_v18  ;;  %2122 = vmatprep.mubr.msk.f32.mxu1 %vm319_vm0, %v242_v19  ;;  %v268_v7 = vld [vmem:[%s2308_s9 + $0x2f0] sm:$0xff]  ;;  %v269_v9 = vld [vmem:[%s2308_s9 + $0x2f8] sm:$0xff]  ;;  %v270_v11 = vld [vmem:[%s2308_s9 + $0x300] sm:$0xff] }
  0x27   : > { %v207_v12 = vld [vmem:[%s2308_s9 + $0x108] sm:$0xff]  ;;  %v208_v14 = vld [vmem:[%s2308_s9 + $0x110] sm:$0xff]  ;;  %v209_v16 = vld [vmem:[%s2308_s9 + $0x118] sm:$0xff] }
  0x28   : > { %v271_v13 = vld [vmem:[%s2308_s9 + $0x308] sm:$0xff]  ;;  %v272_v15 = vld [vmem:[%s2308_s9 + $0x310] sm:$0xff]  ;;  %v273_v17 = vld [vmem:[%s2308_s9 + $0x318] sm:$0xff] }
  0x29   : > { %2027 = vmatmul.mubr.msk.f32.gmra.mxu0 %vm319_vm0, %v179_v20  ;;  %2123 = vmatmul.mubr.msk.f32.gmra.mxu1 %vm319_vm0, %v243_v21  ;;  %v210_v18 = vld [vmem:[%s2308_s9 + $0x120] sm:$0xff]  ;;  %v211_v20 = vld [vmem:[%s2308_s9 + $0x128] sm:$0xff] }
  0x2a   : > { %2029 = vmatprep.mubr.msk.f32.mxu0 %vm319_vm0, %v180_v22  ;;  %2125 = vmatprep.mubr.msk.f32.mxu1 %vm319_vm0, %v244_v23  ;;  %v274_v19 = vld [vmem:[%s2308_s9 + $0x320] sm:$0xff]  ;;  %v275_v21 = vld [vmem:[%s2308_s9 + $0x328] sm:$0xff]  ;;  %v212_v22 = vld [vmem:[%s2308_s9 + $0x130] sm:$0xff] }
  0x2b   : > { %v276_v23 = vld [vmem:[%s2308_s9 + $0x330] sm:$0xff] }
  0x2d   : > { %2030 = vmatmul.mubr.msk.f32.gmra.mxu0 %vm319_vm0, %v181_v24  ;;  %2126 = vmatmul.mubr.msk.f32.gmra.mxu1 %vm319_vm0, %v245_v25  ;;  %v213_v24 = vld [vmem:[%s2308_s9 + $0x138] sm:$0xff] }
  0x2e   : > { %2032 = vmatprep.mubr.msk.f32.mxu0 %vm319_vm0, %v182_v26  ;;  %2128 = vmatprep.mubr.msk.f32.mxu1 %vm319_vm0, %v246_v27  ;;  %v277_v25 = vld [vmem:[%s2308_s9 + $0x338] sm:$0xff]  ;;  %v214_v26 = vld [vmem:[%s2308_s9 + $0x140] sm:$0xff] }
  0x2f   : > { %v278_v27 = vld [vmem:[%s2308_s9 + $0x340] sm:$0xff] }
  0x31   : > { %2033 = vmatmul.mubr.msk.f32.gmra.mxu0 %vm319_vm0, %v183_v28  ;;  %2129 = vmatmul.mubr.msk.f32.gmra.mxu1 %vm319_vm0, %v247_v29  ;;  %v215_v28 = vld [vmem:[%s2308_s9 + $0x148] sm:$0xff] }
  0x32   : > { %2035 = vmatprep.mubr.msk.f32.mxu0 %vm319_vm0, %v184_v30  ;;  %2131 = vmatprep.mubr.msk.f32.mxu1 %vm319_vm0, %v248_v31  ;;  %v279_v29 = vld [vmem:[%s2308_s9 + $0x348] sm:$0xff]  ;;  %v216_v30 = vld [vmem:[%s2308_s9 + $0x150] sm:$0xff] }
  0x33   : > { %v280_v31 = vld [vmem:[%s2308_s9 + $0x350] sm:$0xff] }
  0x35   : > { %2036 = vmatmul.mubr.msk.f32.gmra.mxu0 %vm319_vm0, %v185_v32  ;;  %2132 = vmatmul.mubr.msk.f32.gmra.mxu1 %vm319_vm0, %v249_v33  ;;  %v217_v32 = vld [vmem:[%s2308_s9 + $0x158] sm:$0xff] }
  0x36   : > { %2038 = vmatprep.mubr.msk.f32.mxu0 %vm319_vm0, %v186_v34  ;;  %2134 = vmatprep.mubr.msk.f32.mxu1 %vm319_vm0, %v250_v35  ;;  %v281_v33 = vld [vmem:[%s2308_s9 + $0x358] sm:$0xff]  ;;  %v218_v34 = vld [vmem:[%s2308_s9 + $0x160] sm:$0xff] }
  0x37   : > { %v282_v35 = vld [vmem:[%s2308_s9 + $0x360] sm:$0xff] }
  0x39   : > { %2039 = vmatmul.mubr.msk.f32.gmra.mxu0 %vm319_vm0, %v187_v36  ;;  %2135 = vmatmul.mubr.msk.f32.gmra.mxu1 %vm319_vm0, %v251_v37  ;;  %v219_v36 = vld [vmem:[%s2308_s9 + $0x168] sm:$0xff] }
  0x3a   : > { %2041 = vmatprep.mubr.msk.f32.mxu0 %vm319_vm0, %v188_v38  ;;  %2137 = vmatprep.mubr.msk.f32.mxu1 %vm319_vm0, %v252_v39  ;;  %v283_v37 = vld [vmem:[%s2308_s9 + $0x368] sm:$0xff]  ;;  %v220_v38 = vld [vmem:[%s2308_s9 + $0x170] sm:$0xff] }
  0x3b   : > { %v284_v39 = vld [vmem:[%s2308_s9 + $0x370] sm:$0xff] }
  0x3d   : > { %2042 = vmatmul.mubr.msk.f32.gmra.mxu0 %vm319_vm0, %v189_v40  ;;  %2138 = vmatmul.mubr.msk.f32.gmra.mxu1 %vm319_vm0, %v253_v41  ;;  %v221_v40 = vld [vmem:[%s2308_s9 + $0x178] sm:$0xff] }
  0x3e   : > { %2044 = vmatprep.mubr.msk.f32.mxu0 %vm319_vm0, %v190_v42  ;;  %2140 = vmatprep.mubr.msk.f32.mxu1 %vm319_vm0, %v254_v43  ;;  %v285_v41 = vld [vmem:[%s2308_s9 + $0x378] sm:$0xff]  ;;  %v222_v42 = vld [vmem:[%s2308_s9 + $0x180] sm:$0xff] }
  0x3f   : > { %v286_v43 = vld [vmem:[%s2308_s9 + $0x380] sm:$0xff] }
  0x41   : > { %2045 = vmatmul.mubr.msk.f32.gmra.mxu0 %vm319_vm0, %v191_v44  ;;  %2141 = vmatmul.mubr.msk.f32.gmra.mxu1 %vm319_vm0, %v255_v45  ;;  %v223_v44 = vld [vmem:[%s2308_s9 + $0x188] sm:$0xff] }
  0x42   : > { %2047 = vmatprep.mubr.msk.f32.mxu0 %vm319_vm0, %v192_v46  ;;  %2143 = vmatprep.mubr.msk.f32.mxu1 %vm319_vm0, %v256_v47  ;;  %v287_v45 = vld [vmem:[%s2308_s9 + $0x388] sm:$0xff]  ;;  %v224_v46 = vld [vmem:[%s2308_s9 + $0x190] sm:$0xff] }
  0x43   : > { %v288_v47 = vld [vmem:[%s2308_s9 + $0x390] sm:$0xff] }
  0x45   : > { %2048 = vmatmul.mubr.msk.f32.gmra.mxu0 %vm319_vm0, %v193_v48  ;;  %2144 = vmatmul.mubr.msk.f32.gmra.mxu1 %vm319_vm0, %v257_v49  ;;  %v225_v48 = vld [vmem:[%s2308_s9 + $0x198] sm:$0xff] }
  0x46   : > { %2050 = vmatprep.mubr.msk.f32.mxu0 %vm319_vm0, %v194_v50  ;;  %2146 = vmatprep.mubr.msk.f32.mxu1 %vm319_vm0, %v258_v51  ;;  %v289_v49 = vld [vmem:[%s2308_s9 + $0x398] sm:$0xff]  ;;  %v226_v50 = vld [vmem:[%s2308_s9 + $0x1a0] sm:$0xff] }
  0x47   : > { %v290_v51 = vld [vmem:[%s2308_s9 + $0x3a0] sm:$0xff] }
  0x49   : > { %2051 = vmatmul.mubr.msk.f32.gmra.mxu0 %vm319_vm0, %v195_v52  ;;  %2147 = vmatmul.mubr.msk.f32.gmra.mxu1 %vm319_vm0, %v259_v53  ;;  %v227_v52 = vld [vmem:[%s2308_s9 + $0x1a8] sm:$0xff] }
  0x4a   : > { %2053 = vmatprep.mubr.msk.f32.mxu0 %vm319_vm0, %v196_v54  ;;  %2149 = vmatprep.mubr.msk.f32.mxu1 %vm319_vm0, %v260_v55  ;;  %v291_v53 = vld [vmem:[%s2308_s9 + $0x3a8] sm:$0xff]  ;;  %v228_v54 = vld [vmem:[%s2308_s9 + $0x1b0] sm:$0xff] }
  0x4b   : > { %v292_v55 = vld [vmem:[%s2308_s9 + $0x3b0] sm:$0xff] }
  0x4d   : > { %2054 = vmatmul.mubr.msk.f32.gmra.mxu0 %vm319_vm0, %v197_v56  ;;  %2150 = vmatmul.mubr.msk.f32.gmra.mxu1 %vm319_vm0, %v261_v57  ;;  %v229_v56 = vld [vmem:[%s2308_s9 + $0x1b8] sm:$0xff] }
  0x4e   : > { %2056 = vmatprep.mubr.msk.f32.mxu0 %vm319_vm0, %v198_v58  ;;  %2152 = vmatprep.mubr.msk.f32.mxu1 %vm319_vm0, %v262_v59  ;;  %v293_v57 = vld [vmem:[%s2308_s9 + $0x3b8] sm:$0xff]  ;;  %v230_v58 = vld [vmem:[%s2308_s9 + $0x1c0] sm:$0xff] }
  0x4f   : > { %v294_v59 = vld [vmem:[%s2308_s9 + $0x3c0] sm:$0xff] }
  0x51   : > { %2057 = vmatmul.mubr.msk.f32.gmra.mxu0 %vm319_vm0, %v199_v60  ;;  %2153 = vmatmul.mubr.msk.f32.gmra.mxu1 %vm319_vm0, %v263_v61  ;;  %v231_v60 = vld [vmem:[%s2308_s9 + $0x1c8] sm:$0xff] }
  0x52   : > { %2059 = vmatprep.mubr.msk.f32.mxu0 %vm319_vm0, %v200_v62  ;;  %2155 = vmatprep.mubr.msk.f32.mxu1 %vm319_vm0, %v264_v63  ;;  %v295_v61 = vld [vmem:[%s2308_s9 + $0x3c8] sm:$0xff]  ;;  %v232_v62 = vld [vmem:[%s2308_s9 + $0x1d0] sm:$0xff] }
  0x53   : > { %v296_v63 = vld [vmem:[%s2308_s9 + $0x3d0] sm:$0xff] }
  0x55   : > { %2060 = vmatmul.mubr.msk.f32.gmra.mxu0 %vm319_vm0, %v201_v0  ;;  %2156 = vmatmul.mubr.msk.f32.gmra.mxu1 %vm319_vm0, %v265_v1  ;;  %v233_v0 = vld [vmem:[%s2308_s9 + $0x1d8] sm:$0xff] }
  0x56   : > { %2062 = vmatprep.mubr.msk.f32.mxu0 %vm319_vm0, %v202_v2  ;;  %2158 = vmatprep.mubr.msk.f32.mxu1 %vm319_vm0, %v266_v3  ;;  %v297_v1 = vld [vmem:[%s2308_s9 + $0x3d8] sm:$0xff]  ;;  %v234_v2 = vld [vmem:[%s2308_s9 + $0x1e0] sm:$0xff] }
  0x57   : > { %v298_v3 = vld [vmem:[%s2308_s9 + $0x3e0] sm:$0xff] }
  0x59   : > { %2063 = vmatmul.mubr.msk.f32.gmra.mxu0 %vm319_vm0, %v203_v4  ;;  %2159 = vmatmul.mubr.msk.f32.gmra.mxu1 %vm319_vm0, %v267_v5  ;;  %v235_v4 = vld [vmem:[%s2308_s9 + $0x1e8] sm:$0xff] }
  0x5a   : > { %2065 = vmatprep.mubr.msk.f32.mxu0 %vm319_vm0, %v204_v6  ;;  %2161 = vmatprep.mubr.msk.f32.mxu1 %vm319_vm0, %v268_v7  ;;  %v299_v5 = vld [vmem:[%s2308_s9 + $0x3e8] sm:$0xff]  ;;  %v236_v6 = vld [vmem:[%s2308_s9 + $0x1f0] sm:$0xff] }
  0x5b   : > { %v300_v7 = vld [vmem:[%s2308_s9 + $0x3f0] sm:$0xff] }
  0x5d   : > { %2066 = vmatmul.mubr.msk.f32.gmra.mxu0 %vm319_vm0, %v205_v8  ;;  %2162 = vmatmul.mubr.msk.f32.gmra.mxu1 %vm319_vm0, %v269_v9  ;;  %v237_v8 = vld [vmem:[%s2308_s9 + $0x1f8] sm:$0xff] }
  0x5e   : > { %2068 = vmatprep.mubr.msk.f32.mxu0 %vm319_vm0, %v206_v10  ;;  %2164 = vmatprep.mubr.msk.f32.mxu1 %vm319_vm0, %v270_v11  ;;  %v301_v9 = vld [vmem:[%s2308_s9 + $0x3f8] sm:$0xff] }
  0x61   : > { %2069 = vmatmul.mubr.msk.f32.gmra.mxu0 %vm319_vm0, %v207_v12  ;;  %2165 = vmatmul.mubr.msk.f32.gmra.mxu1 %vm319_vm0, %v271_v13 }
  0x62   : > { %2071 = vmatprep.mubr.msk.f32.mxu0 %vm319_vm0, %v208_v14  ;;  %2167 = vmatprep.mubr.msk.f32.mxu1 %vm319_vm0, %v272_v15 }
  0x65   : > { %2072 = vmatmul.mubr.msk.f32.gmra.mxu0 %vm319_vm0, %v209_v16  ;;  %2168 = vmatmul.mubr.msk.f32.gmra.mxu1 %vm319_vm0, %v273_v17 }
  0x66   : > { %2074 = vmatprep.mubr.msk.f32.mxu0 %vm319_vm0, %v210_v18  ;;  %2170 = vmatprep.mubr.msk.f32.mxu1 %vm319_vm0, %v274_v19 }
  0x69   : > { %2075 = vmatmul.mubr.msk.f32.gmra.mxu0 %vm319_vm0, %v211_v20  ;;  %2171 = vmatmul.mubr.msk.f32.gmra.mxu1 %vm319_vm0, %v275_v21 }
  0x6a   : > { %2077 = vmatprep.mubr.msk.f32.mxu0 %vm319_vm0, %v212_v22  ;;  %2173 = vmatprep.mubr.msk.f32.mxu1 %vm319_vm0, %v276_v23 }
  0x6d   : > { %2078 = vmatmul.mubr.msk.f32.gmra.mxu0 %vm319_vm0, %v213_v24  ;;  %2174 = vmatmul.mubr.msk.f32.gmra.mxu1 %vm319_vm0, %v277_v25 }
  0x6e   : > { %2080 = vmatprep.mubr.msk.f32.mxu0 %vm319_vm0, %v214_v26  ;;  %2176 = vmatprep.mubr.msk.f32.mxu1 %vm319_vm0, %v278_v27 }
  0x71   : > { %2081 = vmatmul.mubr.msk.f32.gmra.mxu0 %vm319_vm0, %v215_v28  ;;  %2177 = vmatmul.mubr.msk.f32.gmra.mxu1 %vm319_vm0, %v279_v29 }
  0x72   : > { %2083 = vmatprep.mubr.msk.f32.mxu0 %vm319_vm0, %v216_v30  ;;  %2179 = vmatprep.mubr.msk.f32.mxu1 %vm319_vm0, %v280_v31 }
  0x75   : > { %2084 = vmatmul.mubr.msk.f32.gmra.mxu0 %vm319_vm0, %v217_v32  ;;  %2180 = vmatmul.mubr.msk.f32.gmra.mxu1 %vm319_vm0, %v281_v33 }
  0x76   : > { %2086 = vmatprep.mubr.msk.f32.mxu0 %vm319_vm0, %v218_v34  ;;  %2182 = vmatprep.mubr.msk.f32.mxu1 %vm319_vm0, %v282_v35 }
  0x79   : > { %2087 = vmatmul.mubr.msk.f32.gmra.mxu0 %vm319_vm0, %v219_v36  ;;  %2183 = vmatmul.mubr.msk.f32.gmra.mxu1 %vm319_vm0, %v283_v37 }
  0x7a   : > { %2089 = vmatprep.mubr.msk.f32.mxu0 %vm319_vm0, %v220_v38  ;;  %2185 = vmatprep.mubr.msk.f32.mxu1 %vm319_vm0, %v284_v39 }
  0x7d   : > { %2090 = vmatmul.mubr.msk.f32.gmra.mxu0 %vm319_vm0, %v221_v40  ;;  %2186 = vmatmul.mubr.msk.f32.gmra.mxu1 %vm319_vm0, %v285_v41 }
  0x7e   : > { %2092 = vmatprep.mubr.msk.f32.mxu0 %vm319_vm0, %v222_v42  ;;  %2188 = vmatprep.mubr.msk.f32.mxu1 %vm319_vm0, %v286_v43 }
  0x81   : > { %2093 = vmatmul.mubr.msk.f32.gmra.mxu0 %vm319_vm0, %v223_v44  ;;  %2189 = vmatmul.mubr.msk.f32.gmra.mxu1 %vm319_vm0, %v287_v45 }
  0x82   : > { %2095 = vmatprep.mubr.msk.f32.mxu0 %vm319_vm0, %v224_v46  ;;  %2191 = vmatprep.mubr.msk.f32.mxu1 %vm319_vm0, %v288_v47 }
  0x85   : > { %2096 = vmatmul.mubr.msk.f32.gmra.mxu0 %vm319_vm0, %v225_v48  ;;  %2192 = vmatmul.mubr.msk.f32.gmra.mxu1 %vm319_vm0, %v289_v49  ;;  %v2612_v48 = vld [vmem:[%s3228_s2] ss:$0 sm:$0xff] }
  0x86   : > { %2098 = vmatprep.mubr.msk.f32.mxu0 %vm319_vm0, %v226_v50  ;;  %2194 = vmatprep.mubr.msk.f32.mxu1 %vm319_vm0, %v290_v51 }
  0x89   : > { %2099 = vmatmul.mubr.msk.f32.gmra.mxu0 %vm319_vm0, %v227_v52  ;;  %2195 = vmatmul.mubr.msk.f32.gmra.mxu1 %vm319_vm0, %v291_v53 }
  0x8a   : > { %2101 = vmatprep.mubr.msk.f32.mxu0 %vm319_vm0, %v228_v54  ;;  %2197 = vmatprep.mubr.msk.f32.mxu1 %vm319_vm0, %v292_v55 }
  0x8d   : > { %2102 = vmatmul.mubr.msk.f32.gmra.mxu0 %vm319_vm0, %v229_v56  ;;  %2198 = vmatmul.mubr.msk.f32.gmra.mxu1 %vm319_vm0, %v293_v57 }
  0x8e   : > { %2104 = vmatprep.mubr.msk.f32.mxu0 %vm319_vm0, %v230_v58  ;;  %2200 = vmatprep.mubr.msk.f32.mxu1 %vm319_vm0, %v294_v59 }
  0x91   : > { %2105 = vmatmul.mubr.msk.f32.gmra.mxu0 %vm319_vm0, %v231_v60  ;;  %2201 = vmatmul.mubr.msk.f32.gmra.mxu1 %vm319_vm0, %v295_v61 }
  0x92   : > { %2107 = vmatprep.mubr.msk.f32.mxu0 %vm319_vm0, %v232_v62  ;;  %2203 = vmatprep.mubr.msk.f32.mxu1 %vm319_vm0, %v296_v63 }
  0x95   : > { %2108 = vmatmul.mubr.msk.f32.gmra.mxu0 %vm319_vm0, %v233_v0  ;;  %2204 = vmatmul.mubr.msk.f32.gmra.mxu1 %vm319_vm0, %v297_v1 }
  0x96   : > { %2110 = vmatprep.mubr.msk.f32.mxu0 %vm319_vm0, %v234_v2  ;;  %2206 = vmatprep.mubr.msk.f32.mxu1 %vm319_vm0, %v298_v3 }
  0x99   : > { %2111 = vmatmul.mubr.msk.f32.gmra.mxu0 %vm319_vm0, %v235_v4  ;;  %2207 = vmatmul.mubr.msk.f32.gmra.mxu1 %vm319_vm0, %v299_v5 }
  0x9a   : > { %2113 = vmatprep.mubr.msk.f32.mxu0 %vm319_vm0, %v236_v6  ;;  %2209 = vmatprep.mubr.msk.f32.mxu1 %vm319_vm0, %v300_v7 }
  0x9d   : > { %2114 = vmatmul.mubr.msk.f32.gmra.mxu0 %vm319_vm0, %v237_v8  ;;  %2210 = vmatmul.mubr.msk.f32.gmra.mxu1 %vm319_vm0, %v301_v9 }
  0xe1   : > { %v2022_v10 = vpop.f32.mrf.mxu0  ;;  %v2118_v11 = vpop.f32.mrf.mxu1 }
  0xe2   : > { %v2623_v53 = vadd.f32 %v2022_v10, %v2612_v48  ;;  %v2626_v54 = vadd.f32 %v2118_v11, %v2612_v48 }
  0xe3   : > { %v770_v12 = vpop.f32.mrf.mxu0  ;;  %v1090_v13 = vpop.f32.mrf.mxu1 }
  0xe4   : > { %v2633_v57 = vadd.f32 %v2612_v48, %v770_v12  ;;  %v2636_v58 = vadd.f32 %v2612_v48, %v1090_v13 }
  0xe5   : > { %v2025_v14 = vpop.f32.mrf.mxu0  ;;  %v2121_v15 = vpop.f32.mrf.mxu1 }
  0xe6   : > { %v2639_v59 = vadd.f32 %v2025_v14, %v2612_v48  ;;  %v2642_v60 = vadd.f32 %v2121_v15, %v2612_v48 }
  0xe7   : > { %v780_v16 = vpop.f32.mrf.mxu0  ;;  %v1100_v17 = vpop.f32.mrf.mxu1 }
  0xe8   : > { %v2650_v0 = vadd.f32 %v2612_v48, %v780_v16  ;;  %v2653_v1 = vadd.f32 %v2612_v48, %v1100_v17 }
  0xe9   : > { %v2028_v18 = vpop.f32.mrf.mxu0  ;;  %v2124_v19 = vpop.f32.mrf.mxu1 }
  0xea   : > { %v2657_v3 = vadd.f32 %v2028_v18, %v2612_v48  ;;  %v2660_v4 = vadd.f32 %v2124_v19, %v2612_v48 }
  0xeb   : > { %v790_v20 = vpop.f32.mrf.mxu0  ;;  %v1110_v21 = vpop.f32.mrf.mxu1 }
  0xec   : > { %v2663_v5 = vadd.f32 %v2612_v48, %v790_v20  ;;  %v2674_v12 = vadd.f32 %v2612_v48, %v1110_v21 }
  0xed   : > { %v2031_v22 = vpop.f32.mrf.mxu0  ;;  %v2127_v23 = vpop.f32.mrf.mxu1 }
  0xee   : > { %v2677_v13 = vadd.f32 %v2031_v22, %v2612_v48  ;;  %v2680_v14 = vadd.f32 %v2127_v23, %v2612_v48 }
  0xef   : > { %v800_v24 = vpop.f32.mrf.mxu0  ;;  %v1120_v25 = vpop.f32.mrf.mxu1 }
  0xf0   : > { %v2683_v15 = vadd.f32 %v2612_v48, %v800_v24  ;;  %v2692_v20 = vadd.f32 %v2612_v48, %v1120_v25 }
  0xf1   : > { %v2034_v26 = vpop.f32.mrf.mxu0  ;;  %v2130_v27 = vpop.f32.mrf.mxu1 }
  0xf2   : > { %v2695_v21 = vadd.f32 %v2034_v26, %v2612_v48  ;;  %v2701_v11 = vadd.f32 %v2130_v27, %v2612_v48 }
  0xf3   : > { %v2569_v28 = vpop.f32.mrf.mxu0  ;;  %v2571_v29 = vpop.f32.mrf.mxu1 }
  0xf4   : > { %v2709_v25 = vadd.f32 %v2612_v48, %v2569_v28  ;;  %v2713_v26 = vadd.f32 %v2612_v48, %v2571_v29 }
  0xf5   : > { %v2573_v30 = vpop.f32.mrf.mxu0  ;;  %v2575_v31 = vpop.f32.mrf.mxu1 }
  0xf6   : > { %v2717_v23 = vadd.f32 %v2573_v30, %v2612_v48  ;;  %v2721_v27 = vadd.f32 %v2575_v31, %v2612_v48 }
  0xf7   : > { %v2577_v32 = vpop.f32.mrf.mxu0  ;;  %v2579_v33 = vpop.f32.mrf.mxu1 }
  0xf8   : > { %v2735_v31 = vadd.f32 %v2612_v48, %v2577_v32  ;;  %v2739_v24 = vadd.f32 %v2612_v48, %v2579_v33 }
  0xf9   : > { %v2581_v34 = vpop.f32.mrf.mxu0  ;;  %v2583_v35 = vpop.f32.mrf.mxu1 }
  0xfa   : > { %v2744_v28 = vadd.f32 %v2581_v34, %v2612_v48  ;;  %v2748_v8 = vadd.f32 %v2583_v35, %v2612_v48 }
  0xfb   : > { %v2585_v36 = vpop.f32.mrf.mxu0  ;;  %v2587_v37 = vpop.f32.mrf.mxu1 }
  0xfc   : > { %v2752_v30 = vadd.f32 %v2612_v48, %v2585_v36  ;;  %v2764_v35 = vadd.f32 %v2612_v48, %v2587_v37 }
  0xfd   : > { %v2589_v38 = vpop.f32.mrf.mxu0  ;;  %v2591_v39 = vpop.f32.mrf.mxu1 }
  0xfe   : > { %3240 = vst [vmem:[#allocation2_spill] sm:$0xff] %v2752_v30  ;;  %v2768_v36 = vadd.f32 %v2589_v38, %v2612_v48  ;;  %v2772_v63 = vadd.f32 %v2591_v39, %v2612_v48 }
  0xff   : > { %v2593_v40 = vpop.f32.mrf.mxu0  ;;  %v2595_v41 = vpop.f32.mrf.mxu1 }
 0x100   : > { %v2776_v33 = vadd.f32 %v2612_v48, %v2593_v40  ;;  %v2790_v39 = vadd.f32 %v2612_v48, %v2595_v41 }
 0x101   : > { %v2597_v42 = vpop.f32.mrf.mxu0  ;;  %v2599_v43 = vpop.f32.mrf.mxu1 }
 0x102   : > { %v2794_v40 = vadd.f32 %v2597_v42, %v2612_v48 }
 0x103   : > { %v2601_v44 = vpop.f32.mrf.mxu0  ;;  %v2603_v45 = vpop.f32.mrf.mxu1 }
 0x104   : > { %v2809_v41 = vadd.f32 %v2612_v48, %v2601_v44  ;;  %v2813_v42 = vadd.f32 %v2612_v48, %v2603_v45 }
 0x105   : > { %v2605_v46 = vpop.f32.mrf.mxu0  ;;  %v2607_v47 = vpop.f32.mrf.mxu1 }
 0x106   : > { %3246 = vst [vmem:[#allocation8_spill] sm:$0xff] %v2809_v41  ;;  %3247 = vst [vmem:[#allocation9_spill] sm:$0xff] %v2813_v42 }
 0x107   : > { %v2614_v49 = vpop.f32.mrf.mxu0  ;;  %v2616_v50 = vpop.f32.mrf.mxu1 }
 0x108   : > { %v2836_v30 = vadd.f32 %v2612_v48, %v2614_v49  ;;  %v2840_v34 = vadd.f32 %v2612_v48, %v2616_v50 }
 0x109   : > { %v2618_v51 = vpop.f32.mrf.mxu0  ;;  %v2620_v52 = vpop.f32.mrf.mxu1 }
 0x10a   : > { %3252 = vst [vmem:[#allocation14_spill] sm:$0xff] %v2840_v34  ;;  %v2845_v44 = vadd.f32 %v2618_v51, %v2612_v48 }
 0x10b   : > { %v2628_v55 = vpop.f32.mrf.mxu0  ;;  %v2630_v56 = vpop.f32.mrf.mxu1 }
 0x10c   : > { %3253 = vst [vmem:[#allocation15_spill] sm:$0xff] %v2845_v44 }
 0x10d   : > { %v2644_v61 = vpop.f32.mrf.mxu0  ;;  %v2646_v62 = vpop.f32.mrf.mxu1 }
 0x10e   : > { %v2878_v50 = vadd.f32 %v2646_v62, %v2612_v48 }
 0x10f   : > { %v2665_v6 = vpop.f32.mrf.mxu0  ;;  %v2667_v7 = vpop.f32.mrf.mxu1 }
 0x110   : > { %v2882_v51 = vadd.f32 %v2612_v48, %v2665_v6  ;;  %v2893_v6 = vadd.f32 %v2612_v48, %v2667_v7 }
 0x111   : > { %v2685_v16 = vpop.f32.mrf.mxu0  ;;  %v2687_v17 = vpop.f32.mrf.mxu1 }
 0x112   : > { %3258 = vst [vmem:[#allocation20_spill] sm:$0xff] %v2893_v6  ;;  %v2925_v62 = vadd.f32 %v2687_v17, %v2612_v48  ;;  %v3263_v17 = vmax.f32 %v2639_v59, 0.0 }
 0x113   : > { %v2703_v10 = vpop.f32.mrf.mxu0  ;;  %v2705_v18 = vpop.f32.mrf.mxu1 }
 0x115   : > { %v2727_v9 = vpop.f32.mrf.mxu0  ;;  %v2729_v29 = vpop.f32.mrf.mxu1 }
 0x117   : > { %v2754_v32 = vpop.f32.mrf.mxu0  ;;  %v2756_v22 = vpop.f32.mrf.mxu1 }
 0x118   : > { %3241 = vst [vmem:[#allocation3_spill] sm:$0xff] %v2756_v22  ;;  %v2801_v22 = vadd.f32 %v2599_v43, %v2612_v48  ;;  %v2821_v43 = vadd.f32 %v2607_v47, %v2612_v48  ;;  %v2853_v47 = vadd.f32 %v2612_v48, %v2628_v55  ;;  %v2874_v55 = vadd.f32 %v2644_v61, %v2612_v48 }
 0x119   : > { %v2778_v19 = vpop.f32.mrf.mxu0  ;;  %v2780_v2 = vpop.f32.mrf.mxu1 }
 0x11a   : > { %3242 = vst [vmem:[#allocation4_spill] sm:$0xff] %v2778_v19  ;;  %3243 = vst [vmem:[#allocation5_spill] sm:$0xff] %v2780_v2  ;;  %v2817_v2 = vadd.f32 %v2605_v46, %v2612_v48  ;;  %v2849_v19 = vadd.f32 %v2620_v52, %v2612_v48  ;;  %v2870_v52 = vadd.f32 %v2612_v48, %v2630_v56 }
 0x11b   : > { %v2803_v37 = vpop.f32.mrf.mxu0  ;;  %v2805_v38 = vpop.f32.mrf.mxu1  ;;  %3249 = vst [vmem:[#allocation11_spill] sm:$0xff] %v2821_v43  ;;  %3255 = vst [vmem:[#allocation17_spill] sm:$0xff] %v2853_v47 }
 0x11c   : > { %3244 = vst [vmem:[#allocation6_spill] sm:$0xff] %v2803_v37  ;;  %3245 = vst [vmem:[#allocation7_spill] sm:$0xff] %v2805_v38 }
 0x11d   : > { %3248 = vst [vmem:[#allocation10_spill] sm:$0xff] %v2817_v2  ;;  %v2828_v37 = vpop.f32.mrf.mxu0  ;;  %v2830_v45 = vpop.f32.mrf.mxu1  ;;  %3254 = vst [vmem:[#allocation16_spill] sm:$0xff] %v2849_v19  ;;  %v3259_v19 = vmax.f32 %v2623_v53, 0.0 }
 0x11e   : > { %3250 = vst [vmem:[#allocation12_spill] sm:$0xff] %v2828_v37  ;;  %3251 = vst [vmem:[#allocation13_spill] sm:$0xff] %v2830_v45 }
 0x11f   : > { %v2855_v49 = vpop.f32.mrf.mxu0  ;;  %v2857_v46 = vpop.f32.mrf.mxu1 }
 0x120   : > { %3256 = vst [vmem:[#allocation18_spill] sm:$0xff] %v2855_v49  ;;  %3257 = vst [vmem:[#allocation19_spill] sm:$0xff] %v2857_v46 }
 0x121   : > { %v2070_v45 = vpop.f32.mrf.mxu0  ;;  %v2166_v38 = vpop.f32.mrf.mxu1 }
 0x122   : > { %v936_v49 = vadd.f32 %v2070_v45, %v2612_v48  ;;  %v1256_v61 = vadd.f32 %v2166_v38, %v2612_v48  ;;  %v2909_v38 = vadd.f32 %v2685_v16, %v2612_v48 }
 0x123   : > { %v930_v2 = vpop.f32.mrf.mxu0  ;;  %v1250_v42 = vpop.f32.mrf.mxu1 }
 0x124   : > { %v1442_v41 = vmax.f32 %v936_v49, 0.0  ;;  %v1506_v46 = vmax.f32 %v1256_v61, 0.0  ;;  %v931_v56 = vadd.f32 %v2612_v48, %v930_v2  ;;  %v1251_v45 = vadd.f32 %v2612_v48, %v1250_v42 }
 0x125   : > { %v2073_v47 = vpop.f32.mrf.mxu0  ;;  %v2169_v7 = vpop.f32.mrf.mxu1  ;;  %v3260_v49 = vmax.f32 %v2626_v54, 0.0 }
 0x126   : > { %v1538_v44 = vmax.f32 %v3259_v19, %v1442_v41  ;;  %v1441_v34 = vmax.f32 %v931_v56, 0.0  ;;  %v1505_v2 = vmax.f32 %v1251_v45, 0.0  ;;  %v946_v53 = vadd.f32 %v2073_v47, %v2612_v48 }
 0x127   : > { %v1570_v61 = vmax.f32 %v3260_v49, %v1506_v46  ;;  %v1266_v19 = vadd.f32 %v2169_v7, %v2612_v48  ;;  %v940_v54 = vpop.f32.mrf.mxu0  ;;  %v1260_v41 = vpop.f32.mrf.mxu1  ;;  %v3261_v56 = vmax.f32 %v2633_v57, 0.0  ;;  %v3262_v49 = vmax.f32 %v2636_v58, 0.0 }
 0x128   : > { %v941_v42 = vadd.f32 %v2612_v48, %v940_v54  ;;  %v1444_v43 = vmax.f32 %v946_v53, 0.0  ;;  %v1261_v7 = vadd.f32 %v2612_v48, %v1260_v41  ;;  %v3264_v53 = vmax.f32 %v2642_v60, 0.0 }
 0x129   : > { %v1602_v46 = vmax.f32 %v1538_v44, %v1570_v61  ;;  %v1537_v45 = vmax.f32 %v3261_v56, %v1441_v34  ;;  %v1569_v16 = vmax.f32 %v3262_v49, %v1505_v2  ;;  %v1508_v47 = vmax.f32 %v1266_v19, 0.0  ;;  %v2076_v37 = vpop.f32.mrf.mxu0  ;;  %v2172_v6 = vpop.f32.mrf.mxu1 }
 0x12a   : > { %v1443_v34 = vmax.f32 %v941_v42, 0.0  ;;  %v956_v58 = vadd.f32 %v2076_v37, %v2612_v48  ;;  %v1276_v44 = vadd.f32 %v2172_v6, %v2612_v48  ;;  %v1434_v61 = vmax.f32 %v2909_v38, 0.0 }
 0x12b   : > { %1635 = vst.msk [vmem:[%s2914_s19 + $0x8] sm:$0xff] %vm1633_vm1, %v1602_v46  ;;  %v1601_v57 = vmax.f32 %v1537_v45, %v1569_v16  ;;  %v1540_v2 = vmax.f32 %v3263_v17, %v1444_v43  ;;  %v1572_v19 = vmax.f32 %v3264_v53, %v1508_v47  ;;  %v1507_v54 = vmax.f32 %v1261_v7, 0.0  ;;  %v950_v41 = vpop.f32.mrf.mxu0  ;;  %v1270_v56 = vpop.f32.mrf.mxu1 }
 0x12c   : > { %v3265_v46 = vmax.f32 %v2650_v0, 0.0  ;;  %v1446_v37 = vmax.f32 %v956_v58, 0.0  ;;  %v1510_v45 = vmax.f32 %v1276_v44, 0.0  ;;  %v951_v6 = vadd.f32 %v2612_v48, %v950_v41 }
 0x12d   : > { %1634 = vst.msk [vmem:[%s2914_s19] sm:$0xff] %vm1633_vm1, %v1601_v57  ;;  %v1498_v49 = vmax.f32 %v2925_v62, 0.0  ;;  %v1604_v59 = vmax.f32 %v1540_v2, %v1572_v19  ;;  %v3266_v43 = vmax.f32 %v2653_v1, 0.0  ;;  %v1271_v16 = vadd.f32 %v2612_v48, %v1270_v56  ;;  %v2079_v47 = vpop.f32.mrf.mxu0  ;;  %v2175_v7 = vpop.f32.mrf.mxu1 }
 0x12e   : > { %v1539_v42 = vmax.f32 %v3265_v46, %v1443_v34  ;;  %v3267_v57 = vmax.f32 %v2657_v3, 0.0  ;;  %v3268_v0 = vmax.f32 %v2660_v4, 0.0  ;;  %v1445_v58 = vmax.f32 %v951_v6, 0.0 }
 0x12f   : > { %v1571_v60 = vmax.f32 %v3266_v43, %v1507_v54  ;;  %v966_v44 = vadd.f32 %v2079_v47, %v2612_v48  ;;  %v2953_v2 = vadd.f32 %v2612_v48, %v2703_v10  ;;  %1637 = vst.msk [vmem:[%s2914_s19 + $0x18] sm:$0xff] %vm1633_vm1, %v1604_v59  ;;  %v1509_v53 = vmax.f32 %v1271_v16, 0.0  ;;  %v960_v3 = vpop.f32.mrf.mxu0  ;;  %v1280_v54 = vpop.f32.mrf.mxu1 }
 0x130   : > { %v1542_v17 = vmax.f32 %v3267_v57, %v1446_v37  ;;  %v1574_v34 = vmax.f32 %v3268_v0, %v1510_v45  ;;  %v1286_v19 = vadd.f32 %v2175_v7, %v2612_v48  ;;  %v3269_v4 = vmax.f32 %v2663_v5, 0.0 }
 0x131   : > { %v1603_v1 = vmax.f32 %v1539_v42, %v1571_v60  ;;  %v1448_v46 = vmax.f32 %v966_v44, 0.0  ;;  %v961_v37 = vadd.f32 %v2612_v48, %v960_v3  ;;  %v2963_v10 = vadd.f32 %v2612_v48, %v2705_v18  ;;  %v2082_v43 = vpop.f32.mrf.mxu0  ;;  %v2178_v60 = vpop.f32.mrf.mxu1 }
 0x132   : > { %v1606_v41 = vmax.f32 %v1542_v17, %v1574_v34  ;;  %v1541_v56 = vmax.f32 %v3269_v4, %v1445_v58  ;;  %v3270_v42 = vmax.f32 %v2674_v12, 0.0  ;;  %v1512_v6 = vmax.f32 %v1286_v19, 0.0 }
 0x133   : > { %1636 = vst.msk [vmem:[%s2914_s19 + $0x10] sm:$0xff] %vm1633_vm1, %v1603_v1  ;;  %v1281_v59 = vadd.f32 %v2612_v48, %v1280_v54  ;;  %v3271_v5 = vmax.f32 %v2677_v13, 0.0  ;;  %v1447_v47 = vmax.f32 %v961_v37, 0.0  ;;  %v976_v18 = vadd.f32 %v2082_v43, %v2612_v48  ;;  %v970_v58 = vpop.f32.mrf.mxu0  ;;  %v1290_v44 = vpop.f32.mrf.mxu1 }
 0x134   : > { %v1573_v45 = vmax.f32 %v3270_v42, %v1509_v53  ;;  %1639 = vst.msk [vmem:[%s2914_s19 + $0x28] sm:$0xff] %vm1633_vm1, %v1606_v41  ;;  %v1296_v7 = vadd.f32 %v2178_v60, %v2612_v48  ;;  %v1433_v57 = vmax.f32 %v2953_v2, 0.0  ;;  %v3272_v17 = vmax.f32 %v2680_v14, 0.0 }
 0x135   : > { %v1544_v16 = vmax.f32 %v3271_v5, %v1448_v46  ;;  %v1511_v34 = vmax.f32 %v1281_v59, 0.0  ;;  %v3273_v1 = vmax.f32 %v2683_v15, 0.0  ;;  %v1450_v13 = vmax.f32 %v976_v18, 0.0  ;;  %v2085_v46 = vpop.f32.mrf.mxu0  ;;  %v2181_v37 = vpop.f32.mrf.mxu1 }
 0x136   : > { %v1605_v12 = vmax.f32 %v1541_v56, %v1573_v45  ;;  %v1576_v0 = vmax.f32 %v3272_v17, %v1512_v6  ;;  %v1514_v19 = vmax.f32 %v1296_v7, 0.0  ;;  %v971_v3 = vadd.f32 %v2612_v48, %v970_v58 }
 0x137   : > { %v1543_v53 = vmax.f32 %v3273_v1, %v1447_v47  ;;  %v1497_v54 = vmax.f32 %v2963_v10, 0.0  ;;  %v3274_v4 = vmax.f32 %v2692_v20, 0.0  ;;  %v1291_v56 = vadd.f32 %v2612_v48, %v1290_v44  ;;  %v1300_v47 = vpop.f32.mrf.mxu1 }
 0x138   : > { %1638 = vst.msk [vmem:[%s2914_s19 + $0x20] sm:$0xff] %vm1633_vm1, %v1605_v12  ;;  %v1608_v41 = vmax.f32 %v1544_v16, %v1576_v0  ;;  %v3275_v15 = vmax.f32 %v2695_v21, 0.0  ;;  %v3276_v45 = vmax.f32 %v2701_v11, 0.0  ;;  %v1449_v59 = vmax.f32 %v971_v3, 0.0  ;;  %v980_v21 = vpop.f32.mrf.mxu0 }
 0x139   : > { %v1575_v14 = vmax.f32 %v3274_v4, %v1511_v34  ;;  %v986_v43 = vadd.f32 %v2085_v46, %v2612_v48  ;;  %v2995_v60 = vadd.f32 %v2727_v9, %v2612_v48  ;;  %v1513_v5 = vmax.f32 %v1291_v56, 0.0 }
 0x13a   : > { %v1546_v42 = vmax.f32 %v3275_v15, %v1450_v13  ;;  %v1578_v6 = vmax.f32 %v3276_v45, %v1514_v19  ;;  %1641 = vst.msk [vmem:[%s2914_s19 + $0x38] sm:$0xff] %vm1633_vm1, %v1608_v41  ;;  %v1306_v16 = vadd.f32 %v2181_v37, %v2612_v48  ;;  %v3277_v11 = vmax.f32 %v2709_v25, 0.0  ;;  %v2088_v1 = vpop.f32.mrf.mxu0 }
 0x13b   : > { %v1607_v20 = vmax.f32 %v1543_v53, %v1575_v14  ;;  %v1452_v12 = vmax.f32 %v986_v43, 0.0  ;;  %v981_v17 = vadd.f32 %v2612_v48, %v980_v21  ;;  %v3005_v9 = vadd.f32 %v2729_v29, %v2612_v48  ;;  %v2184_v53 = vpop.f32.mrf.mxu1 }
 0x13c   : > { %v1610_v18 = vmax.f32 %v1546_v42, %v1578_v6  ;;  %v1545_v7 = vmax.f32 %v3277_v11, %v1449_v59  ;;  %v3278_v0 = vmax.f32 %v2713_v26, 0.0  ;;  %v1516_v58 = vmax.f32 %v1306_v16, 0.0  ;;  %v990_v46 = vpop.f32.mrf.mxu0 }
 0x13d   : > { %1640 = vst.msk [vmem:[%s2914_s19 + $0x30] sm:$0xff] %vm1633_vm1, %v1607_v20  ;;  %v1301_v44 = vadd.f32 %v2612_v48, %v1300_v47  ;;  %v3279_v25 = vmax.f32 %v2717_v23, 0.0  ;;  %v1451_v19 = vmax.f32 %v981_v17, 0.0  ;;  %v996_v29 = vadd.f32 %v2088_v1, %v2612_v48  ;;  %v1310_v37 = vpop.f32.mrf.mxu1 }
 0x13e   : > { %v1577_v34 = vmax.f32 %v3278_v0, %v1513_v5  ;;  %1643 = vst.msk [vmem:[%s2914_s19 + $0x48] sm:$0xff] %vm1633_vm1, %v1610_v18  ;;  %v1316_v3 = vadd.f32 %v2184_v53, %v2612_v48  ;;  %v1436_v41 = vmax.f32 %v2995_v60, 0.0  ;;  %v3280_v4 = vmax.f32 %v2721_v27, 0.0  ;;  %v2091_v16 = vpop.f32.mrf.mxu0 }
 0x13f   : > { %v1548_v13 = vmax.f32 %v3279_v25, %v1452_v12  ;;  %v1515_v56 = vmax.f32 %v1301_v44, 0.0  ;;  %v3281_v15 = vmax.f32 %v2735_v31, 0.0  ;;  %v1454_v23 = vmax.f32 %v996_v29, 0.0  ;;  %v2187_v21 = vpop.f32.mrf.mxu1 }
 0x140   : > { %v1609_v26 = vmax.f32 %v1545_v7, %v1577_v34  ;;  %v1580_v14 = vmax.f32 %v3280_v4, %v1516_v58  ;;  %v1518_v45 = vmax.f32 %v1316_v3, 0.0  ;;  %v991_v6 = vadd.f32 %v2612_v48, %v990_v46 }
 0x141   : > { %v1547_v42 = vmax.f32 %v3281_v15, %v1451_v19  ;;  %v1500_v59 = vmax.f32 %v3005_v9, 0.0  ;;  %v3282_v20 = vmax.f32 %v2739_v24, 0.0  ;;  %v1311_v5 = vadd.f32 %v2612_v48, %v1310_v37  ;;  %v1320_v58 = vpop.f32.mrf.mxu1  ;;  %v3287_v19 = vld [vmem:[#allocation3_spill] sm:$0xff] }
 0x142   : > { %1642 = vst.msk [vmem:[%s2914_s19 + $0x40] sm:$0xff] %vm1633_vm1, %v1609_v26  ;;  %v1612_v43 = vmax.f32 %v1548_v13, %v1580_v14  ;;  %v3283_v31 = vmax.f32 %v2744_v28, 0.0  ;;  %v3284_v18 = vmax.f32 %v2748_v8, 0.0  ;;  %v1453_v7 = vmax.f32 %v991_v6, 0.0  ;;  %v1000_v28 = vpop.f32.mrf.mxu0  ;;  %v3285_v8 = vld [vmem:[#allocation2_spill] sm:$0xff] }
 0x143   : > { %v1579_v27 = vmax.f32 %v3282_v20, %v1515_v56  ;;  %v1006_v12 = vadd.f32 %v2091_v16, %v2612_v48  ;;  %v3037_v17 = vadd.f32 %v2612_v48, %v2754_v32  ;;  %v1517_v0 = vmax.f32 %v1311_v5, 0.0  ;;  %v2190_v56 = vpop.f32.mrf.mxu1 }
 0x144   : > { %v1550_v47 = vmax.f32 %v3283_v31, %v1454_v23  ;;  %v1582_v11 = vmax.f32 %v3284_v18, %v1518_v45  ;;  %1645 = vst.msk [vmem:[%s2914_s19 + $0x58] sm:$0xff] %vm1633_vm1, %v1612_v43  ;;  %v1326_v34 = vadd.f32 %v2187_v21, %v2612_v48  ;;  %v3286_v1 = vmax.f32 %v3285_v8, 0.0  ;;  %v2094_v14 = vpop.f32.mrf.mxu0 }
 0x145   : > { %v1611_v24 = vmax.f32 %v1547_v42, %v1579_v27  ;;  %v1456_v25 = vmax.f32 %v1006_v12, 0.0  ;;  %v1001_v13 = vadd.f32 %v2612_v48, %v1000_v28  ;;  %v3047_v32 = vadd.f32 %v2612_v48, %v3287_v19  ;;  %v1330_v5 = vpop.f32.mrf.mxu1 }
 0x146   : > { %v1614_v44 = vmax.f32 %v1550_v47, %v1582_v11  ;;  %v1549_v53 = vmax.f32 %v3286_v1, %v1453_v7  ;;  %v3288_v29 = vmax.f32 %v2764_v35, 0.0  ;;  %v1520_v26 = vmax.f32 %v1326_v34, 0.0  ;;  %v1010_v27 = vpop.f32.mrf.mxu0  ;;  %v3295_v1 = vld [vmem:[#allocation4_spill] sm:$0xff] }
 0x147   : > { %1644 = vst.msk [vmem:[%s2914_s19 + $0x50] sm:$0xff] %vm1633_vm1, %v1611_v24  ;;  %v1321_v4 = vadd.f32 %v2612_v48, %v1320_v58  ;;  %v3289_v46 = vmax.f32 %v2768_v36, 0.0  ;;  %v1455_v15 = vmax.f32 %v1001_v13, 0.0  ;;  %v1016_v42 = vadd.f32 %v2094_v14, %v2612_v48 }
 0x148   : > { %v1581_v3 = vmax.f32 %v3288_v29, %v1517_v0  ;;  %1647 = vst.msk [vmem:[%s2914_s19 + $0x68] sm:$0xff] %vm1633_vm1, %v1614_v44  ;;  %v1336_v23 = vadd.f32 %v2190_v56, %v2612_v48  ;;  %v1435_v45 = vmax.f32 %v3037_v17, 0.0  ;;  %v3290_v6 = vmax.f32 %v2772_v63, 0.0  ;;  %v2097_v24 = vpop.f32.mrf.mxu0  ;;  %v2193_v0 = vpop.f32.mrf.mxu1  ;;  %v3298_v56 = vld [vmem:[#allocation5_spill] sm:$0xff] }
 0x149   : > { %v1552_v37 = vmax.f32 %v3289_v46, %v1456_v25  ;;  %v1519_v20 = vmax.f32 %v1321_v4, 0.0  ;;  %v3291_v16 = vmax.f32 %v2776_v33, 0.0  ;;  %v1458_v36 = vmax.f32 %v1016_v42, 0.0 }
 0x14a   : > { %v1613_v35 = vmax.f32 %v1549_v53, %v1581_v3  ;;  %v1584_v43 = vmax.f32 %v3290_v6, %v1520_v26  ;;  %v1522_v31 = vmax.f32 %v1336_v23, 0.0  ;;  %v1011_v47 = vadd.f32 %v2612_v48, %v1010_v27  ;;  %v1340_v19 = vpop.f32.mrf.mxu1 }
 0x14b   : > { %v1551_v21 = vmax.f32 %v3291_v16, %v1455_v15  ;;  %v1499_v18 = vmax.f32 %v3047_v32, 0.0  ;;  %v3292_v7 = vmax.f32 %v2790_v39, 0.0  ;;  %v1331_v12 = vadd.f32 %v2612_v48, %v1330_v5 }
 0x14c   : > { %1646 = vst.msk [vmem:[%s2914_s19 + $0x60] sm:$0xff] %vm1633_vm1, %v1613_v35  ;;  %v1616_v11 = vmax.f32 %v1552_v37, %v1584_v43  ;;  %v3293_v33 = vmax.f32 %v2794_v40, 0.0  ;;  %v3294_v28 = vmax.f32 %v2801_v22, 0.0  ;;  %v1457_v44 = vmax.f32 %v1011_v47, 0.0  ;;  %v1020_v40 = vpop.f32.mrf.mxu0  ;;  %v3296_v22 = vld [vmem:[#allocation8_spill] sm:$0xff]  ;;  %v3299_v37 = vld [vmem:[#allocation9_spill] sm:$0xff]  ;;  %v2196_v43 = vpop.f32.mrf.mxu1 }
 0x14d   : > { %v1583_v63 = vmax.f32 %v3292_v7, %v1519_v20  ;;  %v1026_v8 = vadd.f32 %v2097_v24, %v2612_v48  ;;  %v3079_v53 = vadd.f32 %v3295_v1, %v2612_v48  ;;  %v1521_v25 = vmax.f32 %v1331_v12, 0.0  ;;  %v3301_v20 = vld [vmem:[#allocation10_spill] sm:$0xff] }
 0x14e   : > { %v1554_v34 = vmax.f32 %v3293_v33, %v1458_v36  ;;  %v1586_v58 = vmax.f32 %v3294_v28, %v1522_v31  ;;  %1649 = vst.msk [vmem:[%s2914_s19 + $0x78] sm:$0xff] %vm1633_vm1, %v1616_v11  ;;  %v1346_v13 = vadd.f32 %v2193_v0, %v2612_v48  ;;  %v3297_v3 = vmax.f32 %v3296_v22, 0.0  ;;  %v2100_v6 = vpop.f32.mrf.mxu0  ;;  %v3303_v11 = vld [vmem:[#allocation11_spill] sm:$0xff]  ;;  %v1350_v0 = vpop.f32.mrf.mxu1 }
 0x14f   : > { %v1615_v39 = vmax.f32 %v1551_v21, %v1583_v63  ;;  %v1460_v4 = vmax.f32 %v1026_v8, 0.0  ;;  %v1021_v14 = vadd.f32 %v2612_v48, %v1020_v40  ;;  %v3089_v46 = vadd.f32 %v3298_v56, %v2612_v48  ;;  %v3308_v22 = vld [vmem:[#allocation15_spill] sm:$0xff] }
 0x150   : > { %v1618_v29 = vmax.f32 %v1554_v34, %v1586_v58  ;;  %v1553_v26 = vmax.f32 %v3297_v3, %v1457_v44  ;;  %v3300_v15 = vmax.f32 %v3299_v37, 0.0  ;;  %v1524_v23 = vmax.f32 %v1346_v13, 0.0  ;;  %v1030_v24 = vpop.f32.mrf.mxu0 }
 0x151   : > { %1648 = vst.msk [vmem:[%s2914_s19 + $0x70] sm:$0xff] %vm1633_vm1, %v1615_v39  ;;  %v1341_v35 = vadd.f32 %v2612_v48, %v1340_v19  ;;  %v3302_v27 = vmax.f32 %v3301_v20, 0.0  ;;  %v1459_v16 = vmax.f32 %v1021_v14, 0.0  ;;  %v1036_v21 = vadd.f32 %v2100_v6, %v2612_v48  ;;  %v3306_v39 = vld [vmem:[#allocation14_spill] sm:$0xff] }
 0x152   : > { %v1585_v42 = vmax.f32 %v3300_v15, %v1521_v25  ;;  %1651 = vst.msk [vmem:[%s2914_s19 + $0x88] sm:$0xff] %vm1633_vm1, %v1618_v29  ;;  %v1356_v36 = vadd.f32 %v2196_v43, %v2612_v48  ;;  %v1438_v31 = vmax.f32 %v3079_v53, 0.0  ;;  %v3304_v7 = vmax.f32 %v3303_v11, 0.0  ;;  %v2103_v19 = vpop.f32.mrf.mxu0  ;;  %v2199_v29 = vpop.f32.mrf.mxu1  ;;  %v3312_v15 = vld [vmem:[#allocation6_spill] sm:$0xff]  ;;  %v3315_v11 = vld [vmem:[#allocation7_spill] sm:$0xff] }
 0x153   : > { %v1556_v5 = vmax.f32 %v3302_v27, %v1460_v4  ;;  %v1523_v12 = vmax.f32 %v1341_v35, 0.0  ;;  %v3305_v33 = vmax.f32 %v2836_v30, 0.0  ;;  %v1462_v28 = vmax.f32 %v1036_v21, 0.0 }
 0x154   : > { %v1617_v47 = vmax.f32 %v1553_v26, %v1585_v42  ;;  %v1588_v63 = vmax.f32 %v3304_v7, %v1524_v23  ;;  %v1526_v58 = vmax.f32 %v1356_v36, 0.0  ;;  %v1031_v44 = vadd.f32 %v2612_v48, %v1030_v24  ;;  %v3310_v26 = vld [vmem:[#allocation16_spill] sm:$0xff]  ;;  %v1040_v43 = vpop.f32.mrf.mxu0  ;;  %v1360_v20 = vpop.f32.mrf.mxu1 }
 0x155   : > { %v1555_v34 = vmax.f32 %v3305_v33, %v1459_v16  ;;  %v1502_v8 = vmax.f32 %v3089_v46, 0.0  ;;  %v3307_v25 = vmax.f32 %v3306_v39, 0.0  ;;  %v1351_v40 = vadd.f32 %v2612_v48, %v1350_v0 }
 0x156   : > { %1650 = vst.msk [vmem:[%s2914_s19 + $0x80] sm:$0xff] %vm1633_vm1, %v1617_v47  ;;  %v1620_v1 = vmax.f32 %v1556_v5, %v1588_v63  ;;  %v3309_v30 = vmax.f32 %v3308_v22, 0.0  ;;  %v3311_v4 = vmax.f32 %v3310_v26, 0.0  ;;  %v1461_v56 = vmax.f32 %v1031_v44, 0.0  ;;  %v3313_v5 = vld [vmem:[#allocation17_spill] sm:$0xff]  ;;  %v2106_v33 = vpop.f32.mrf.mxu0 }
 0x157   : > { %v1587_v13 = vmax.f32 %v3307_v25, %v1523_v12  ;;  %v1046_v37 = vadd.f32 %v2103_v19, %v2612_v48  ;;  %v3121_v42 = vadd.f32 %v2612_v48, %v3312_v15  ;;  %v1525_v35 = vmax.f32 %v1351_v40, 0.0 }
 0x158   : > { %v1558_v3 = vmax.f32 %v3309_v30, %v1462_v28  ;;  %v1590_v14 = vmax.f32 %v3311_v4, %v1526_v58  ;;  %1653 = vst.msk [vmem:[%s2914_s19 + $0x98] sm:$0xff] %vm1633_vm1, %v1620_v1  ;;  %v1366_v6 = vadd.f32 %v2199_v29, %v2612_v48  ;;  %v3314_v16 = vmax.f32 %v3313_v5, 0.0  ;;  %v1050_v29 = vpop.f32.mrf.mxu0  ;;  %v3322_v5 = vld [vmem:[#allocation12_spill] sm:$0xff] }
 0x159   : > { %v1619_v23 = vmax.f32 %v1555_v34, %v1587_v13  ;;  %v1464_v36 = vmax.f32 %v1046_v37, 0.0  ;;  %v1041_v47 = vadd.f32 %v2612_v48, %v1040_v43  ;;  %v3131_v7 = vadd.f32 %v2612_v48, %v3315_v11  ;;  %v2202_v34 = vpop.f32.mrf.mxu1  ;;  %v3320_v37 = vld [vmem:[#allocation20_spill] sm:$0xff] }
 0x15a   : > { %v1622_v27 = vmax.f32 %v1558_v3, %v1590_v14  ;;  %v1557_v21 = vmax.f32 %v3314_v16, %v1461_v56  ;;  %v3316_v63 = vmax.f32 %v2870_v52, 0.0  ;;  %v1528_v24 = vmax.f32 %v1366_v6, 0.0 }
 0x15b   : > { %1652 = vst.msk [vmem:[%s2914_s19 + $0x90] sm:$0xff] %vm1633_vm1, %v1619_v23  ;;  %v1361_v0 = vadd.f32 %v2612_v48, %v1360_v20  ;;  %v3317_v28 = vmax.f32 %v2874_v55, 0.0  ;;  %v1463_v44 = vmax.f32 %v1041_v47, 0.0  ;;  %v1056_v1 = vadd.f32 %v2106_v33, %v2612_v48  ;;  %v1370_v22 = vpop.f32.mrf.mxu1 }
 0x15c   : > { %v1589_v12 = vmax.f32 %v3316_v63, %v1525_v35  ;;  %1655 = vst.msk [vmem:[%s2914_s19 + $0xa8] sm:$0xff] %vm1633_vm1, %v1622_v27  ;;  %v1376_v39 = vadd.f32 %v2202_v34, %v2612_v48  ;;  %v1437_v25 = vmax.f32 %v3121_v42, 0.0  ;;  %v3318_v13 = vmax.f32 %v2878_v50, 0.0  ;;  %v2109_v35 = vpop.f32.mrf.mxu0 }
 0x15d   : > { %v1560_v58 = vmax.f32 %v3317_v28, %v1464_v36  ;;  %v1527_v19 = vmax.f32 %v1361_v0, 0.0  ;;  %v3319_v30 = vmax.f32 %v2882_v51, 0.0  ;;  %v1466_v55 = vmax.f32 %v1056_v1, 0.0  ;;  %v2205_v6 = vpop.f32.mrf.mxu1 }
 0x15e   : > { %v1621_v52 = vmax.f32 %v1557_v21, %v1589_v12  ;;  %v1592_v40 = vmax.f32 %v3318_v13, %v1528_v24  ;;  %v1530_v26 = vmax.f32 %v1376_v39, 0.0  ;;  %v1051_v4 = vadd.f32 %v2612_v48, %v1050_v29  ;;  %v1060_v38 = vpop.f32.mrf.mxu0  ;;  %v3323_v12 = vld [vmem:[#allocation13_spill] sm:$0xff] }
 0x15f   : > { %v1559_v3 = vmax.f32 %v3319_v30, %v1463_v44  ;;  %v1501_v14 = vmax.f32 %v3131_v7, 0.0  ;;  %v3321_v15 = vmax.f32 %v3320_v37, 0.0  ;;  %v1371_v23 = vadd.f32 %v2612_v48, %v1370_v22  ;;  %v3324_v22 = vld [vmem:[#allocation18_spill] sm:$0xff]  ;;  %v3325_v37 = vld [vmem:[#allocation19_spill] sm:$0xff] }
 0x160   : > { %1654 = vst.msk [vmem:[%s2914_s19 + $0xa0] sm:$0xff] %vm1633_vm1, %v1621_v52  ;;  %v1624_v56 = vmax.f32 %v1560_v58, %v1592_v40  ;;  %v1562_v51 = vmax.f32 %v1434_v61, %v1466_v55  ;;  %v1594_v43 = vmax.f32 %v1498_v49, %v1530_v26  ;;  %v1465_v20 = vmax.f32 %v1051_v4, 0.0  ;;  %v1380_v61 = vpop.f32.mrf.mxu1  ;;  %v2112_v28 = vpop.f32.mrf.mxu0 }
 0x161   : > { %v1591_v50 = vmax.f32 %v3321_v15, %v1527_v19  ;;  %v1066_v27 = vadd.f32 %v2109_v35, %v2612_v48  ;;  %v3163_v16 = vadd.f32 %v3322_v5, %v2612_v48  ;;  %v1529_v36 = vmax.f32 %v1371_v23, 0.0 }
 0x162   : > { %1657 = vst.msk [vmem:[%s2914_s19 + $0xb8] sm:$0xff] %vm1633_vm1, %v1624_v56  ;;  %v1386_v47 = vadd.f32 %v2205_v6, %v2612_v48  ;;  %v1626_v11 = vmax.f32 %v1562_v51, %v1594_v43  ;;  %v1561_v62 = vmax.f32 %v1433_v57, %v1465_v20  ;;  %v1061_v63 = vadd.f32 %v2612_v48, %v1060_v38  ;;  %v2208_v58 = vpop.f32.mrf.mxu1  ;;  %v1070_v13 = vpop.f32.mrf.mxu0 }
 0x163   : > { %v1623_v21 = vmax.f32 %v1559_v3, %v1591_v50  ;;  %v1468_v49 = vmax.f32 %v1066_v27, 0.0  ;;  %v1246_v24 = vadd.f32 %v3323_v12, %v2612_v48  ;;  %v1593_v0 = vmax.f32 %v1497_v54, %v1529_v36 }
 0x164   : > { %v1532_v33 = vmax.f32 %v1386_v47, 0.0  ;;  %v1381_v34 = vadd.f32 %v2612_v48, %v1380_v61  ;;  %1659 = vst.msk [vmem:[%s2914_s19 + $0xc8] sm:$0xff] %vm1633_vm1, %v1626_v11  ;;  %v1467_v57 = vmax.f32 %v1061_v63, 0.0  ;;  %v1076_v44 = vadd.f32 %v2112_v28, %v2612_v48  ;;  %v1390_v40 = vpop.f32.mrf.mxu1  ;;  %v2115_v55 = vpop.f32.mrf.mxu0 }
 0x165   : > { %1656 = vst.msk [vmem:[%s2914_s19 + $0xb0] sm:$0xff] %vm1633_vm1, %v1623_v21  ;;  %v1564_v2 = vmax.f32 %v1436_v41, %v1468_v49  ;;  %v1396_v1 = vadd.f32 %v2208_v58, %v2612_v48  ;;  %v1440_v39 = vmax.f32 %v3163_v16, 0.0  ;;  %v1625_v10 = vmax.f32 %v1561_v62, %v1593_v0 }
 0x166   : > { %v1596_v54 = vmax.f32 %v1500_v59, %v1532_v33  ;;  %v1531_v52 = vmax.f32 %v1381_v34, 0.0  ;;  %v1563_v19 = vmax.f32 %v1435_v45, %v1467_v57  ;;  %v1470_v60 = vmax.f32 %v1076_v44, 0.0  ;;  %v2211_v26 = vpop.f32.mrf.mxu1  ;;  %v1080_v23 = vpop.f32.mrf.mxu0 }
 0x167   : > { %v1534_v41 = vmax.f32 %v1396_v1, 0.0  ;;  %v1071_v29 = vadd.f32 %v2612_v48, %v1070_v13  ;;  %v921_v30 = vadd.f32 %v2612_v48, %v3324_v22  ;;  %1658 = vst.msk [vmem:[%s2914_s19 + $0xc0] sm:$0xff] %vm1633_vm1, %v1625_v10  ;;  %v1391_v59 = vadd.f32 %v2612_v48, %v1390_v40 }
 0x168   : > { %v1628_v3 = vmax.f32 %v1564_v2, %v1596_v54  ;;  %v1595_v9 = vmax.f32 %v1499_v18, %v1531_v52  ;;  %v1566_v17 = vmax.f32 %v1438_v31, %v1470_v60  ;;  %v1086_v56 = vadd.f32 %v2115_v55, %v2612_v48  ;;  %v1400_v53 = vpop.f32.mrf.mxu1 }
 0x169   : > { %v1598_v45 = vmax.f32 %v1502_v8, %v1534_v41  ;;  %v1469_v4 = vmax.f32 %v1071_v29, 0.0  ;;  %v1241_v15 = vadd.f32 %v2612_v48, %v3325_v37  ;;  %v1533_v18 = vmax.f32 %v1391_v59, 0.0 }
 0x16a   : > { %1661 = vst.msk [vmem:[%s2914_s19 + $0xd8] sm:$0xff] %vm1633_vm1, %v1628_v3  ;;  %v1627_v32 = vmax.f32 %v1563_v19, %v1595_v9  ;;  %v1406_v50 = vadd.f32 %v2211_v26, %v2612_v48  ;;  %v1472_v8 = vmax.f32 %v1086_v56, 0.0  ;;  %v1081_v35 = vadd.f32 %v2612_v48, %v1080_v23 }
 0x16b   : > { %v1630_v31 = vmax.f32 %v1566_v17, %v1598_v45  ;;  %v1565_v46 = vmax.f32 %v1437_v25, %v1469_v4  ;;  %v1504_v6 = vmax.f32 %v1246_v24, 0.0  ;;  %v1597_v51 = vmax.f32 %v1501_v14, %v1533_v18 }
 0x16c   : > { %1660 = vst.msk [vmem:[%s2914_s19 + $0xd0] sm:$0xff] %vm1633_vm1, %v1627_v32  ;;  %v1536_v43 = vmax.f32 %v1406_v50, 0.0  ;;  %v1401_v20 = vadd.f32 %v2612_v48, %v1400_v53  ;;  %v1439_v27 = vmax.f32 %v921_v30, 0.0  ;;  %v1568_v42 = vmax.f32 %v1440_v39, %v1472_v8 }
 0x16d   : > { %1663 = vst.msk [vmem:[%s2914_s19 + $0xe8] sm:$0xff] %vm1633_vm1, %v1630_v31  ;;  %v1471_v25 = vmax.f32 %v1081_v35, 0.0  ;;  %v1503_v5 = vmax.f32 %v1241_v15, 0.0  ;;  %v1629_v16 = vmax.f32 %v1565_v46, %v1597_v51 }
 0x16e   : > { %v1600_v21 = vmax.f32 %v1504_v6, %v1536_v43  ;;  %v1535_v36 = vmax.f32 %v1401_v20, 0.0 }
 0x16f   : > { %v1567_v47 = vmax.f32 %v1439_v27, %v1471_v25  ;;  %1662 = vst.msk [vmem:[%s2914_s19 + $0xe0] sm:$0xff] %vm1633_vm1, %v1629_v16 }
 0x170   : > { %v1632_v38 = vmax.f32 %v1568_v42, %v1600_v21  ;;  %v1599_v7 = vmax.f32 %v1503_v5, %v1535_v36 }
 0x172   : > { %1665 = vst.msk [vmem:[%s2914_s19 + $0xf8] sm:$0xff] %vm1633_vm1, %v1632_v38  ;;  %v1631_v14 = vmax.f32 %v1567_v47, %v1599_v7 }
 0x174   : > { %1664 = vst.msk [vmem:[%s2914_s19 + $0xf0] sm:$0xff] %vm1633_vm1, %v1631_v14 }
 0x175 PF: > { %s13_s12 = sadd.s32 1, %s2246_s12  }
 0x176   : > { %p10_p5 = scmp.ge.s32.totalorder %s13_s12, 4  }
 0x178   :  { %12 = sbr.rel (!%p10_p5) target bundleno = 1 (0x1), region = 62 }

// kernel: _flnet_forward.4
= control target key start
LH: loop header
LB: loop body
LE: loop exit
PB: predicated region body
PF: predicated region fallthrough
CT: control target
= control target key end

     0   :  { %s1865_s12 = smov 0   ;;  %s2765_s0 = inlined_call_operand.vmem [shape: f32[512,800], index: 0, kind: input, shape index: {}]   ;;  %s2766_s1 = inlined_call_operand.vmem [shape: f32[800,64], index: 1, kind: input, shape index: {}]   ;;  %s2767_s2 = inlined_call_operand.vmem [shape: f32[1,64], index: 2, kind: input, shape index: {}]   ;;  %s2768_s3 = inlined_call_operand.vmem [shape: f32[128,64], index: 3, kind: output, shape index: {}]  }
   0x1 LB: > { %s1626_s13 = sadd.s32 4294967295, %s1842_s12   ;;  %p1630_p0 = scmp.ge.s32.totalorder %s1842_s12, 1  ;;  %s1842_s12 = sphi %s1865_s12, %s13_s12  }
   0x2   : > { %p139_p1 = scmp.lt.s32.totalorder %s1842_s12, 3 }
   0x4   : > { %p140_p2 = pnand %p1630_p0, %p139_p1 }
   0x5   : > { %s1631_s4 = sshll.u32 (!%p140_p2), %s1626_s13, 5 }
   0x6   : > { %143 = sbr.rel (%p140_p2) target bundleno = 501 (0x1f5), region = 32  ;;  %p165_p3 = scmp.lt.s32.totalorder (!%p140_p2), %s1631_s4, 63 }
   0xb   : > { %v416_v0 = vld [vmem:[%s2766_s1 + $0x78] sm:$0xff]  ;;  %v1844_v2 = vmov 0.0   ;;  %v415_v3 = vld [vmem:[%s2766_s1 + $0x70] sm:$0xff]  ;;  %v414_v5 = vld [vmem:[%s2766_s1 + $0x68] sm:$0xff]  ;;  %s2770_s4 = smov (!%p165_p3, %s1631_s4), 63  ;;  %vm508_vm0 = vcmask 261120  }
   0xc   : > { %v448_v1 = vld [vmem:[%s2766_s1 + $0x178] sm:$0xff]  ;;  %605 = vmatprep.subr.mxu0 %v1844_v2  ;;  %830 = vmatprep.subr.mxu1 %v1844_v2  ;;  %v447_v4 = vld [vmem:[%s2766_s1 + $0x170] sm:$0xff]  ;;  %v446_v6 = vld [vmem:[%s2766_s1 + $0x168] sm:$0xff]  ;;  %s1826_s27 = smul.u32 56, %s2770_s4  ;;  %vm1561_vm1 = vcmask 523264  }
   0xd   : > { %606 = vmatpush1.msra.mxu0 %v416_v0  ;;  %831 = vmatpush1.msra.mxu1 %v448_v1  ;;  %v413_v7 = vld [vmem:[%s2766_s1 + $0x60] sm:$0xff]  ;;  %v412_v9 = vld [vmem:[%s2766_s1 + $0x58] sm:$0xff]  ;;  %v411_v11 = vld [vmem:[%s2766_s1 + $0x50] sm:$0xff] }
   0xe   : > { %607 = vmatprep.subr.mxu0 %v1844_v2  ;;  %832 = vmatprep.subr.mxu1 %v1844_v2  ;;  %v445_v8 = vld [vmem:[%s2766_s1 + $0x160] sm:$0xff]  ;;  %v444_v10 = vld [vmem:[%s2766_s1 + $0x158] sm:$0xff]  ;;  %v443_v12 = vld [vmem:[%s2766_s1 + $0x150] sm:$0xff]  ;;  %s2116_s11 = scalar_lea.vmem %s2765_s0, %s1826_s27 }
   0xf   : > { %608 = vmatpush1.msra.mxu0 %v415_v3  ;;  %833 = vmatpush1.msra.mxu1 %v447_v4  ;;  %v410_v13 = vld [vmem:[%s2766_s1 + $0x48] sm:$0xff]  ;;  %v409_v15 = vld [vmem:[%s2766_s1 + $0x40] sm:$0xff]  ;;  %v408_v17 = vld [vmem:[%s2766_s1 + $0x38] sm:$0xff] }
  0x10   : > { %609 = vmatprep.subr.mxu0 %v1844_v2  ;;  %834 = vmatprep.subr.mxu1 %v1844_v2  ;;  %v442_v14 = vld [vmem:[%s2766_s1 + $0x148] sm:$0xff]  ;;  %v441_v16 = vld [vmem:[%s2766_s1 + $0x140] sm:$0xff]  ;;  %v440_v18 = vld [vmem:[%s2766_s1 + $0x138] sm:$0xff] }
  0x11   : > { %610 = vmatpush1.msra.mxu0 %v414_v5  ;;  %835 = vmatpush1.msra.mxu1 %v446_v6  ;;  %v407_v19 = vld [vmem:[%s2766_s1 + $0x30] sm:$0xff]  ;;  %v406_v21 = vld [vmem:[%s2766_s1 + $0x28] sm:$0xff]  ;;  %v405_v23 = vld [vmem:[%s2766_s1 + $0x20] sm:$0xff] }
  0x12   : > { %611 = vmatprep.subr.mxu0 %v1844_v2  ;;  %836 = vmatprep.subr.mxu1 %v1844_v2  ;;  %v439_v20 = vld [vmem:[%s2766_s1 + $0x130] sm:$0xff]  ;;  %v438_v22 = vld [vmem:[%s2766_s1 + $0x128] sm:$0xff]  ;;  %v437_v24 = vld [vmem:[%s2766_s1 + $0x120] sm:$0xff] }
  0x13   : > { %612 = vmatpush1.msra.mxu0 %v413_v7  ;;  %837 = vmatpush1.msra.mxu1 %v445_v8  ;;  %v404_v25 = vld [vmem:[%s2766_s1 + $0x18] sm:$0xff]  ;;  %v403_v27 = vld [vmem:[%s2766_s1 + $0x10] sm:$0xff]  ;;  %v402_v29 = vld [vmem:[%s2766_s1 + $0x8] sm:$0xff] }
  0x14   : > { %613 = vmatprep.subr.mxu0 %v1844_v2  ;;  %838 = vmatprep.subr.mxu1 %v1844_v2  ;;  %v436_v26 = vld [vmem:[%s2766_s1 + $0x118] sm:$0xff]  ;;  %v435_v28 = vld [vmem:[%s2766_s1 + $0x110] sm:$0xff]  ;;  %v434_v30 = vld [vmem:[%s2766_s1 + $0x108] sm:$0xff] }
  0x15   : > { %614 = vmatpush1.msra.mxu0 %v412_v9  ;;  %839 = vmatpush1.msra.mxu1 %v444_v10  ;;  %v401_v31 = vld [vmem:[%s2766_s1] sm:$0xff]  ;;  %v432_v33 = vld [vmem:[%s2766_s1 + $0xf8] sm:$0xff]  ;;  %v431_v35 = vld [vmem:[%s2766_s1 + $0xf0] sm:$0xff] }
  0x16   : > { %615 = vmatprep.subr.mxu0 %v1844_v2  ;;  %840 = vmatprep.subr.mxu1 %v1844_v2  ;;  %v433_v32 = vld [vmem:[%s2766_s1 + $0x100] sm:$0xff]  ;;  %v464_v34 = vld [vmem:[%s2766_s1 + $0x1f8] sm:$0xff]  ;;  %v463_v36 = vld [vmem:[%s2766_s1 + $0x1f0] sm:$0xff] }
  0x17   : > { %616 = vmatpush1.msra.mxu0 %v411_v11  ;;  %841 = vmatpush1.msra.mxu1 %v443_v12  ;;  %v430_v37 = vld [vmem:[%s2766_s1 + $0xe8] sm:$0xff]  ;;  %v429_v39 = vld [vmem:[%s2766_s1 + $0xe0] sm:$0xff]  ;;  %v428_v41 = vld [vmem:[%s2766_s1 + $0xd8] sm:$0xff] }
  0x18   : > { %617 = vmatprep.subr.mxu0 %v1844_v2  ;;  %842 = vmatprep.subr.mxu1 %v1844_v2  ;;  %v462_v38 = vld [vmem:[%s2766_s1 + $0x1e8] sm:$0xff]  ;;  %v461_v40 = vld [vmem:[%s2766_s1 + $0x1e0] sm:$0xff]  ;;  %v460_v42 = vld [vmem:[%s2766_s1 + $0x1d8] sm:$0xff] }
  0x19   : > { %618 = vmatpush1.msra.mxu0 %v410_v13  ;;  %843 = vmatpush1.msra.mxu1 %v442_v14  ;;  %v427_v43 = vld [vmem:[%s2766_s1 + $0xd0] sm:$0xff]  ;;  %v426_v45 = vld [vmem:[%s2766_s1 + $0xc8] sm:$0xff]  ;;  %v425_v47 = vld [vmem:[%s2766_s1 + $0xc0] sm:$0xff] }
  0x1a   : > { %619 = vmatprep.subr.mxu0 %v1844_v2  ;;  %844 = vmatprep.subr.mxu1 %v1844_v2  ;;  %v459_v44 = vld [vmem:[%s2766_s1 + $0x1d0] sm:$0xff]  ;;  %v458_v46 = vld [vmem:[%s2766_s1 + $0x1c8] sm:$0xff]  ;;  %v457_v48 = vld [vmem:[%s2766_s1 + $0x1c0] sm:$0xff] }
  0x1b   : > { %620 = vmatpush1.msra.mxu0 %v409_v15  ;;  %845 = vmatpush1.msra.mxu1 %v441_v16  ;;  %v424_v49 = vld [vmem:[%s2766_s1 + $0xb8] sm:$0xff]  ;;  %v423_v51 = vld [vmem:[%s2766_s1 + $0xb0] sm:$0xff]  ;;  %v422_v53 = vld [vmem:[%s2766_s1 + $0xa8] sm:$0xff] }
  0x1c   : > { %621 = vmatprep.subr.mxu0 %v1844_v2  ;;  %846 = vmatprep.subr.mxu1 %v1844_v2  ;;  %v456_v50 = vld [vmem:[%s2766_s1 + $0x1b8] sm:$0xff]  ;;  %v455_v52 = vld [vmem:[%s2766_s1 + $0x1b0] sm:$0xff]  ;;  %v454_v54 = vld [vmem:[%s2766_s1 + $0x1a8] sm:$0xff] }
  0x1d   : > { %622 = vmatpush1.msra.mxu0 %v408_v17  ;;  %847 = vmatpush1.msra.mxu1 %v440_v18  ;;  %v421_v55 = vld [vmem:[%s2766_s1 + $0xa0] sm:$0xff]  ;;  %v420_v57 = vld [vmem:[%s2766_s1 + $0x98] sm:$0xff]  ;;  %v419_v59 = vld [vmem:[%s2766_s1 + $0x90] sm:$0xff] }
  0x1e   : > { %623 = vmatprep.subr.mxu0 %v1844_v2  ;;  %848 = vmatprep.subr.mxu1 %v1844_v2  ;;  %v453_v56 = vld [vmem:[%s2766_s1 + $0x1a0] sm:$0xff]  ;;  %v452_v58 = vld [vmem:[%s2766_s1 + $0x198] sm:$0xff]  ;;  %v451_v60 = vld [vmem:[%s2766_s1 + $0x190] sm:$0xff] }
  0x1f   : > { %624 = vmatpush1.msra.mxu0 %v407_v19  ;;  %849 = vmatpush1.msra.mxu1 %v439_v20  ;;  %v418_v61 = vld [vmem:[%s2766_s1 + $0x88] sm:$0xff]  ;;  %v417_v63 = vld [vmem:[%s2766_s1 + $0x80] sm:$0xff]  ;;  %v180_v3 = vld [vmem:[%s2116_s11 + $0x18] sm:$0xff] }
  0x20   : > { %625 = vmatprep.subr.mxu0 %v1844_v2  ;;  %850 = vmatprep.subr.mxu1 %v1844_v2  ;;  %v450_v62 = vld [vmem:[%s2766_s1 + $0x188] sm:$0xff]  ;;  %v449_v1 = vld [vmem:[%s2766_s1 + $0x180] sm:$0xff]  ;;  %v179_v5 = vld [vmem:[%s2116_s11 + $0x10] sm:$0xff] }
  0x21   : > { %626 = vmatpush1.msra.mxu0 %v406_v21  ;;  %851 = vmatpush1.msra.mxu1 %v438_v22  ;;  %v178_v0 = vld [vmem:[%s2116_s11 + $0x8] sm:$0xff]  ;;  %v177_v4 = vld [vmem:[%s2116_s11] sm:$0xff]  ;;  %v480_v6 = vld [vmem:[%s2766_s1 + $0x278] sm:$0xff] }
  0x22   : > { %627 = vmatprep.subr.mxu0 %v1844_v2  ;;  %852 = vmatprep.subr.mxu1 %v1844_v2  ;;  %v185_v7 = vld [vmem:[%s2116_s11 + $0x40] sm:$0xff]  ;;  %v187_v8 = vld [vmem:[%s2116_s11 + $0x50] sm:$0xff]  ;;  %v184_v9 = vld [vmem:[%s2116_s11 + $0x38] sm:$0xff] }
  0x23   : > { %628 = vmatpush1.msra.mxu0 %v405_v23  ;;  %853 = vmatpush1.msra.mxu1 %v437_v24  ;;  %v186_v10 = vld [vmem:[%s2116_s11 + $0x48] sm:$0xff]  ;;  %v479_v11 = vld [vmem:[%s2766_s1 + $0x270] sm:$0xff]  ;;  %v192_v12 = vld [vmem:[%s2116_s11 + $0x78] sm:$0xff] }
  0x24   : > { %629 = vmatprep.subr.mxu0 %v1844_v2  ;;  %854 = vmatprep.subr.mxu1 %v1844_v2  ;;  %v194_v13 = vld [vmem:[%s2116_s11 + $0x88] sm:$0xff]  ;;  %v191_v14 = vld [vmem:[%s2116_s11 + $0x70] sm:$0xff]  ;;  %v193_v15 = vld [vmem:[%s2116_s11 + $0x80] sm:$0xff] }
  0x25   : > { %630 = vmatpush1.msra.mxu0 %v404_v25  ;;  %855 = vmatpush1.msra.mxu1 %v436_v26  ;;  %v478_v16 = vld [vmem:[%s2766_s1 + $0x268] sm:$0xff]  ;;  %v199_v17 = vld [vmem:[%s2116_s11 + $0xb0] sm:$0xff]  ;;  %v201_v18 = vld [vmem:[%s2116_s11 + $0xc0] sm:$0xff] }
  0x26   : > { %631 = vmatprep.subr.mxu0 %v1844_v2  ;;  %856 = vmatprep.subr.mxu1 %v1844_v2  ;;  %v198_v19 = vld [vmem:[%s2116_s11 + $0xa8] sm:$0xff]  ;;  %v200_v20 = vld [vmem:[%s2116_s11 + $0xb8] sm:$0xff]  ;;  %v477_v21 = vld [vmem:[%s2766_s1 + $0x260] sm:$0xff] }
  0x27   : > { %632 = vmatpush1.msra.mxu0 %v403_v27  ;;  %857 = vmatpush1.msra.mxu1 %v435_v28  ;;  %v206_v22 = vld [vmem:[%s2116_s11 + $0xe8] sm:$0xff]  ;;  %v208_v23 = vld [vmem:[%s2116_s11 + $0xf8] sm:$0xff]  ;;  %v205_v24 = vld [vmem:[%s2116_s11 + $0xe0] sm:$0xff] }
  0x28   : > { %633 = vmatprep.subr.mxu0 %v1844_v2  ;;  %858 = vmatprep.subr.mxu1 %v1844_v2  ;;  %v207_v25 = vld [vmem:[%s2116_s11 + $0xf0] sm:$0xff]  ;;  %v476_v26 = vld [vmem:[%s2766_s1 + $0x258] sm:$0xff]  ;;  %v213_v27 = vld [vmem:[%s2116_s11 + $0x120] sm:$0xff] }
  0x29   : > { %634 = vmatpush1.msra.mxu0 %v402_v29  ;;  %859 = vmatpush1.msra.mxu1 %v434_v30  ;;  %v215_v28 = vld [vmem:[%s2116_s11 + $0x130] sm:$0xff]  ;;  %v212_v29 = vld [vmem:[%s2116_s11 + $0x118] sm:$0xff]  ;;  %v214_v30 = vld [vmem:[%s2116_s11 + $0x128] sm:$0xff] }
  0x2a   : > { %635 = vmatprep.subr.mxu0 %v1844_v2  ;;  %860 = vmatprep.subr.mxu1 %v1844_v2 }
  0x2b   : > { %636 = vmatpush1.msra.mxu0 %v401_v31  ;;  %861 = vmatpush1.msra.mxu1 %v433_v32  ;;  %v475_v31 = vld [vmem:[%s2766_s1 + $0x250] sm:$0xff]  ;;  %v220_v32 = vld [vmem:[%s2116_s11 + $0x158] sm:$0xff] }
  0x2c   : > { %637 = vmatprep.subr.mxu0 %v1844_v2  ;;  %862 = vmatprep.subr.mxu1 %v1844_v2 }
  0x2d   : > { %638 = vmatpush2.msra.mxu0 %v432_v33  ;;  %863 = vmatpush2.msra.mxu1 %v464_v34  ;;  %v222_v33 = vld [vmem:[%s2116_s11 + $0x168] sm:$0xff]  ;;  %v219_v34 = vld [vmem:[%s2116_s11 + $0x150] sm:$0xff] }
  0x2e   : > { %639 = vmatprep.subr.mxu0 %v1844_v2  ;;  %864 = vmatprep.subr.mxu1 %v1844_v2 }
  0x2f   : > { %640 = vmatpush2.msra.mxu0 %v431_v35  ;;  %865 = vmatpush2.msra.mxu1 %v463_v36  ;;  %v221_v35 = vld [vmem:[%s2116_s11 + $0x160] sm:$0xff]  ;;  %v474_v36 = vld [vmem:[%s2766_s1 + $0x248] sm:$0xff] }
  0x30   : > { %641 = vmatprep.subr.mxu0 %v1844_v2  ;;  %866 = vmatprep.subr.mxu1 %v1844_v2 }
  0x31   : > { %642 = vmatpush2.msra.mxu0 %v430_v37  ;;  %867 = vmatpush2.msra.mxu1 %v462_v38  ;;  %v227_v37 = vld [vmem:[%s2116_s11 + $0x190] sm:$0xff]  ;;  %v229_v38 = vld [vmem:[%s2116_s11 + $0x1a0] sm:$0xff] }
  0x32   : > { %643 = vmatprep.subr.mxu0 %v1844_v2  ;;  %868 = vmatprep.subr.mxu1 %v1844_v2 }
  0x33   : > { %644 = vmatpush2.msra.mxu0 %v429_v39  ;;  %869 = vmatpush2.msra.mxu1 %v461_v40  ;;  %v226_v39 = vld [vmem:[%s2116_s11 + $0x188] sm:$0xff]  ;;  %v228_v40 = vld [vmem:[%s2116_s11 + $0x198] sm:$0xff] }
  0x34   : > { %645 = vmatprep.subr.mxu0 %v1844_v2  ;;  %870 = vmatprep.subr.mxu1 %v1844_v2 }
  0x35   : > { %646 = vmatpush2.msra.mxu0 %v428_v41  ;;  %871 = vmatpush2.msra.mxu1 %v460_v42  ;;  %v473_v41 = vld [vmem:[%s2766_s1 + $0x240] sm:$0xff]  ;;  %v234_v42 = vld [vmem:[%s2116_s11 + $0x1c8] sm:$0xff] }
  0x36   : > { %647 = vmatprep.subr.mxu0 %v1844_v2  ;;  %872 = vmatprep.subr.mxu1 %v1844_v2 }
  0x37   : > { %648 = vmatpush2.msra.mxu0 %v427_v43  ;;  %873 = vmatpush2.msra.mxu1 %v459_v44  ;;  %v236_v43 = vld [vmem:[%s2116_s11 + $0x1d8] sm:$0xff]  ;;  %v233_v44 = vld [vmem:[%s2116_s11 + $0x1c0] sm:$0xff] }
  0x38   : > { %649 = vmatprep.subr.mxu0 %v1844_v2  ;;  %874 = vmatprep.subr.mxu1 %v1844_v2 }
  0x39   : > { %650 = vmatpush2.msra.mxu0 %v426_v45  ;;  %875 = vmatpush2.msra.mxu1 %v458_v46  ;;  %v235_v45 = vld [vmem:[%s2116_s11 + $0x1d0] sm:$0xff]  ;;  %v472_v46 = vld [vmem:[%s2766_s1 + $0x238] sm:$0xff] }
  0x3a   : > { %651 = vmatprep.subr.mxu0 %v1844_v2  ;;  %876 = vmatprep.subr.mxu1 %v1844_v2 }
  0x3b   : > { %652 = vmatpush2.msra.mxu0 %v425_v47  ;;  %877 = vmatpush2.msra.mxu1 %v457_v48  ;;  %v241_v47 = vld [vmem:[%s2116_s11 + $0x200] sm:$0xff]  ;;  %v243_v48 = vld [vmem:[%s2116_s11 + $0x210] sm:$0xff] }
  0x3c   : > { %653 = vmatprep.subr.mxu0 %v1844_v2  ;;  %878 = vmatprep.subr.mxu1 %v1844_v2 }
  0x3d   : > { %654 = vmatpush2.msra.mxu0 %v424_v49  ;;  %879 = vmatpush2.msra.mxu1 %v456_v50  ;;  %v240_v49 = vld [vmem:[%s2116_s11 + $0x1f8] sm:$0xff]  ;;  %v242_v50 = vld [vmem:[%s2116_s11 + $0x208] sm:$0xff] }
  0x3e   : > { %655 = vmatprep.subr.mxu0 %v1844_v2  ;;  %880 = vmatprep.subr.mxu1 %v1844_v2 }
  0x3f   : > { %656 = vmatpush2.msra.mxu0 %v423_v51  ;;  %881 = vmatpush2.msra.mxu1 %v455_v52  ;;  %v471_v51 = vld [vmem:[%s2766_s1 + $0x230] sm:$0xff]  ;;  %v248_v52 = vld [vmem:[%s2116_s11 + $0x238] sm:$0xff] }
  0x40   : > { %657 = vmatprep.subr.mxu0 %v1844_v2  ;;  %882 = vmatprep.subr.mxu1 %v1844_v2 }
  0x41   : > { %658 = vmatpush2.msra.mxu0 %v422_v53  ;;  %883 = vmatpush2.msra.mxu1 %v454_v54  ;;  %v250_v53 = vld [vmem:[%s2116_s11 + $0x248] sm:$0xff]  ;;  %v247_v54 = vld [vmem:[%s2116_s11 + $0x230] sm:$0xff] }
  0x42   : > { %659 = vmatprep.subr.mxu0 %v1844_v2  ;;  %884 = vmatprep.subr.mxu1 %v1844_v2 }
  0x43   : > { %660 = vmatpush2.msra.mxu0 %v421_v55  ;;  %885 = vmatpush2.msra.mxu1 %v453_v56  ;;  %v249_v55 = vld [vmem:[%s2116_s11 + $0x240] sm:$0xff]  ;;  %v470_v56 = vld [vmem:[%s2766_s1 + $0x228] sm:$0xff] }
  0x44   : > { %661 = vmatprep.subr.mxu0 %v1844_v2  ;;  %886 = vmatprep.subr.mxu1 %v1844_v2 }
  0x45   : > { %662 = vmatpush2.msra.mxu0 %v420_v57  ;;  %887 = vmatpush2.msra.mxu1 %v452_v58  ;;  %v255_v57 = vld [vmem:[%s2116_s11 + $0x270] sm:$0xff]  ;;  %v257_v58 = vld [vmem:[%s2116_s11 + $0x280] sm:$0xff] }
  0x46   : > { %663 = vmatprep.subr.mxu0 %v1844_v2  ;;  %888 = vmatprep.subr.mxu1 %v1844_v2 }
  0x47   : > { %664 = vmatpush2.msra.mxu0 %v419_v59  ;;  %889 = vmatpush2.msra.mxu1 %v451_v60  ;;  %v254_v59 = vld [vmem:[%s2116_s11 + $0x268] sm:$0xff]  ;;  %v256_v60 = vld [vmem:[%s2116_s11 + $0x278] sm:$0xff] }
  0x48   : > { %665 = vmatprep.subr.mxu0 %v1844_v2  ;;  %890 = vmatprep.subr.mxu1 %v1844_v2 }
  0x49   : > { %666 = vmatpush2.msra.mxu0 %v418_v61  ;;  %891 = vmatpush2.msra.mxu1 %v450_v62  ;;  %v469_v61 = vld [vmem:[%s2766_s1 + $0x220] sm:$0xff]  ;;  %v262_v62 = vld [vmem:[%s2116_s11 + $0x2a8] sm:$0xff] }
  0x4a   : > { %667 = vmatprep.subr.mxu0 %v1844_v2  ;;  %892 = vmatprep.subr.mxu1 %v1844_v2 }
  0x4b   : > { %668 = vmatpush2.msra.mxu0 %v417_v63  ;;  %669 = vmatprep.mubr.f32.mxu0 %v178_v0  ;;  %v264_v63 = vld [vmem:[%s2116_s11 + $0x2b8] sm:$0xff]  ;;  %v261_v0 = vld [vmem:[%s2116_s11 + $0x2a0] sm:$0xff] }
  0x4c   : > { %893 = vmatpush2.msra.mxu1 %v449_v1  ;;  %894 = vmatprep.mubr.f32.mxu1 %v180_v3  ;;  %v263_v1 = vld [vmem:[%s2116_s11 + $0x2b0] sm:$0xff]  ;;  %v468_v3 = vld [vmem:[%s2766_s1 + $0x218] sm:$0xff] }
  0x4d   : > { %670 = vmatmul.mubr.f32.vlgmr.msra.gmra.mxu0 %v177_v4  ;;  %895 = vmatmul.mubr.f32.vlgmr.msra.gmra.mxu1 %v179_v5  ;;  %v269_v4 = vld [vmem:[%s2116_s11 + $0x2e0] sm:$0xff]  ;;  %v271_v5 = vld [vmem:[%s2116_s11 + $0x2f0] sm:$0xff] }
  0x4e   : > { %1055 = vmatprep.subr.mxu0 %v1844_v2  ;;  %1762 = vmatprep.subr.mxu1 %v1844_v2 }
  0x4f   : > { %1056 = vmatpush1.msra.mxu0 %v480_v6  ;;  %1794 = vmatpush1.msra.mxu1 %v480_v6  ;;  %v268_v6 = vld [vmem:[%s2116_s11 + $0x2d8] sm:$0xff] }
  0x50   : > { %674 = vmatprep.mubr.f32.mxu0 %v185_v7  ;;  %899 = vmatprep.mubr.f32.mxu1 %v187_v8  ;;  %v270_v7 = vld [vmem:[%s2116_s11 + $0x2e8] sm:$0xff]  ;;  %v467_v8 = vld [vmem:[%s2766_s1 + $0x210] sm:$0xff] }
  0x51   : > { %675 = vmatmul.mubr.f32.gmra.mxu0 %v184_v9  ;;  %900 = vmatmul.mubr.f32.gmra.mxu1 %v186_v10  ;;  %v276_v9 = vld [vmem:[%s2116_s11 + $0x318] sm:$0xff]  ;;  %v278_v10 = vld [vmem:[%s2116_s11 + $0x328] sm:$0xff] }
  0x52   : > { %1057 = vmatprep.subr.mxu0 %v1844_v2  ;;  %1763 = vmatprep.subr.mxu1 %v1844_v2 }
  0x53   : > { %1058 = vmatpush1.msra.mxu0 %v479_v11  ;;  %1795 = vmatpush1.msra.mxu1 %v479_v11  ;;  %v275_v11 = vld [vmem:[%s2116_s11 + $0x310] sm:$0xff] }
  0x54   : > { %679 = vmatprep.mubr.f32.mxu0 %v192_v12  ;;  %904 = vmatprep.mubr.f32.mxu1 %v194_v13  ;;  %v277_v12 = vld [vmem:[%s2116_s11 + $0x320] sm:$0xff]  ;;  %v466_v13 = vld [vmem:[%s2766_s1 + $0x208] sm:$0xff] }
  0x55   : > { %680 = vmatmul.mubr.f32.gmra.mxu0 %v191_v14  ;;  %905 = vmatmul.mubr.f32.gmra.mxu1 %v193_v15  ;;  %v283_v14 = vld [vmem:[%s2116_s11 + $0x350] sm:$0xff]  ;;  %v285_v15 = vld [vmem:[%s2116_s11 + $0x360] sm:$0xff] }
  0x56   : > { %1059 = vmatprep.subr.mxu0 %v1844_v2  ;;  %1764 = vmatprep.subr.mxu1 %v1844_v2 }
  0x57   : > { %1060 = vmatpush1.msra.mxu0 %v478_v16  ;;  %1796 = vmatpush1.msra.mxu1 %v478_v16  ;;  %v282_v16 = vld [vmem:[%s2116_s11 + $0x348] sm:$0xff] }
  0x58   : > { %684 = vmatprep.mubr.f32.mxu0 %v199_v17  ;;  %909 = vmatprep.mubr.f32.mxu1 %v201_v18  ;;  %v284_v17 = vld [vmem:[%s2116_s11 + $0x358] sm:$0xff]  ;;  %v465_v18 = vld [vmem:[%s2766_s1 + $0x200] sm:$0xff] }
  0x59   : > { %685 = vmatmul.mubr.f32.gmra.mxu0 %v198_v19  ;;  %910 = vmatmul.mubr.f32.gmra.mxu1 %v200_v20  ;;  %v290_v19 = vld [vmem:[%s2116_s11 + $0x388] sm:$0xff]  ;;  %v292_v20 = vld [vmem:[%s2116_s11 + $0x398] sm:$0xff] }
  0x5a   : > { %1061 = vmatprep.subr.mxu0 %v1844_v2  ;;  %1765 = vmatprep.subr.mxu1 %v1844_v2 }
  0x5b   : > { %1062 = vmatpush1.msra.mxu0 %v477_v21  ;;  %1797 = vmatpush1.msra.mxu1 %v477_v21  ;;  %v289_v21 = vld [vmem:[%s2116_s11 + $0x380] sm:$0xff] }
  0x5c   : > { %689 = vmatprep.mubr.f32.mxu0 %v206_v22  ;;  %914 = vmatprep.mubr.f32.mxu1 %v208_v23  ;;  %v291_v22 = vld [vmem:[%s2116_s11 + $0x390] sm:$0xff]  ;;  %v496_v23 = vld [vmem:[%s2766_s1 + $0x2f8] sm:$0xff] }
  0x5d   : > { %690 = vmatmul.mubr.f32.gmra.mxu0 %v205_v24  ;;  %915 = vmatmul.mubr.f32.gmra.mxu1 %v207_v25  ;;  %v297_v24 = vld [vmem:[%s2116_s11 + $0x3c0] sm:$0xff]  ;;  %v299_v25 = vld [vmem:[%s2116_s11 + $0x3d0] sm:$0xff] }
  0x5e   : > { %1063 = vmatprep.subr.mxu0 %v1844_v2  ;;  %1766 = vmatprep.subr.mxu1 %v1844_v2 }
  0x5f   : > { %1064 = vmatpush1.msra.mxu0 %v476_v26  ;;  %1798 = vmatpush1.msra.mxu1 %v476_v26  ;;  %v296_v26 = vld [vmem:[%s2116_s11 + $0x3b8] sm:$0xff] }
  0x60   : > { %694 = vmatprep.mubr.f32.mxu0 %v213_v27  ;;  %919 = vmatprep.mubr.f32.mxu1 %v215_v28  ;;  %v298_v27 = vld [vmem:[%s2116_s11 + $0x3c8] sm:$0xff]  ;;  %v495_v28 = vld [vmem:[%s2766_s1 + $0x2f0] sm:$0xff] }
  0x61   : > { %695 = vmatmul.mubr.f32.gmra.mxu0 %v212_v29  ;;  %920 = vmatmul.mubr.f32.gmra.mxu1 %v214_v30  ;;  %v304_v29 = vld [vmem:[%s2116_s11 + $0x3f8] sm:$0xff]  ;;  %v306_v30 = vld [vmem:[%s2116_s11 + $0x408] sm:$0xff] }
  0x62   : > { %1065 = vmatprep.subr.mxu0 %v1844_v2  ;;  %1767 = vmatprep.subr.mxu1 %v1844_v2 }
  0x63   : > { %1066 = vmatpush1.msra.mxu0 %v475_v31  ;;  %1799 = vmatpush1.msra.mxu1 %v475_v31  ;;  %v303_v31 = vld [vmem:[%s2116_s11 + $0x3f0] sm:$0xff] }
  0x64   : > { %699 = vmatprep.mubr.f32.mxu0 %v220_v32  ;;  %924 = vmatprep.mubr.f32.mxu1 %v222_v33  ;;  %v305_v32 = vld [vmem:[%s2116_s11 + $0x400] sm:$0xff]  ;;  %v494_v33 = vld [vmem:[%s2766_s1 + $0x2e8] sm:$0xff] }
  0x65   : > { %700 = vmatmul.mubr.f32.gmra.mxu0 %v219_v34  ;;  %925 = vmatmul.mubr.f32.gmra.mxu1 %v221_v35  ;;  %v311_v34 = vld [vmem:[%s2116_s11 + $0x430] sm:$0xff]  ;;  %v313_v35 = vld [vmem:[%s2116_s11 + $0x440] sm:$0xff] }
  0x66   : > { %1067 = vmatprep.subr.mxu0 %v1844_v2  ;;  %1768 = vmatprep.subr.mxu1 %v1844_v2 }
  0x67   : > { %1068 = vmatpush1.msra.mxu0 %v474_v36  ;;  %1800 = vmatpush1.msra.mxu1 %v474_v36  ;;  %v310_v36 = vld [vmem:[%s2116_s11 + $0x428] sm:$0xff] }
  0x68   : > { %704 = vmatprep.mubr.f32.mxu0 %v227_v37  ;;  %929 = vmatprep.mubr.f32.mxu1 %v229_v38  ;;  %v312_v37 = vld [vmem:[%s2116_s11 + $0x438] sm:$0xff]  ;;  %v493_v38 = vld [vmem:[%s2766_s1 + $0x2e0] sm:$0xff] }
  0x69   : > { %705 = vmatmul.mubr.f32.gmra.mxu0 %v226_v39  ;;  %930 = vmatmul.mubr.f32.gmra.mxu1 %v228_v40  ;;  %v318_v39 = vld [vmem:[%s2116_s11 + $0x468] sm:$0xff]  ;;  %v320_v40 = vld [vmem:[%s2116_s11 + $0x478] sm:$0xff] }
  0x6a   : > { %1069 = vmatprep.subr.mxu0 %v1844_v2  ;;  %1769 = vmatprep.subr.mxu1 %v1844_v2 }
  0x6b   : > { %1070 = vmatpush1.msra.mxu0 %v473_v41  ;;  %1801 = vmatpush1.msra.mxu1 %v473_v41  ;;  %v317_v41 = vld [vmem:[%s2116_s11 + $0x460] sm:$0xff] }
  0x6c   : > { %709 = vmatprep.mubr.f32.mxu0 %v234_v42  ;;  %934 = vmatprep.mubr.f32.mxu1 %v236_v43  ;;  %v319_v42 = vld [vmem:[%s2116_s11 + $0x470] sm:$0xff]  ;;  %v492_v43 = vld [vmem:[%s2766_s1 + $0x2d8] sm:$0xff] }
  0x6d   : > { %710 = vmatmul.mubr.f32.gmra.mxu0 %v233_v44  ;;  %935 = vmatmul.mubr.f32.gmra.mxu1 %v235_v45  ;;  %v325_v44 = vld [vmem:[%s2116_s11 + $0x4a0] sm:$0xff]  ;;  %v327_v45 = vld [vmem:[%s2116_s11 + $0x4b0] sm:$0xff] }
  0x6e   : > { %1071 = vmatprep.subr.mxu0 %v1844_v2  ;;  %1770 = vmatprep.subr.mxu1 %v1844_v2 }
  0x6f   : > { %1072 = vmatpush1.msra.mxu0 %v472_v46  ;;  %1802 = vmatpush1.msra.mxu1 %v472_v46  ;;  %v324_v46 = vld [vmem:[%s2116_s11 + $0x498] sm:$0xff] }
  0x70   : > { %714 = vmatprep.mubr.f32.mxu0 %v241_v47  ;;  %939 = vmatprep.mubr.f32.mxu1 %v243_v48  ;;  %v326_v47 = vld [vmem:[%s2116_s11 + $0x4a8] sm:$0xff]  ;;  %v491_v48 = vld [vmem:[%s2766_s1 + $0x2d0] sm:$0xff] }
  0x71   : > { %715 = vmatmul.mubr.f32.gmra.mxu0 %v240_v49  ;;  %940 = vmatmul.mubr.f32.gmra.mxu1 %v242_v50  ;;  %v332_v49 = vld [vmem:[%s2116_s11 + $0x4d8] sm:$0xff]  ;;  %v334_v50 = vld [vmem:[%s2116_s11 + $0x4e8] sm:$0xff] }
  0x72   : > { %1073 = vmatprep.subr.mxu0 %v1844_v2  ;;  %1771 = vmatprep.subr.mxu1 %v1844_v2 }
  0x73   : > { %1074 = vmatpush1.msra.mxu0 %v471_v51  ;;  %1803 = vmatpush1.msra.mxu1 %v471_v51  ;;  %v331_v51 = vld [vmem:[%s2116_s11 + $0x4d0] sm:$0xff] }
  0x74   : > { %719 = vmatprep.mubr.f32.mxu0 %v248_v52  ;;  %944 = vmatprep.mubr.f32.mxu1 %v250_v53  ;;  %v333_v52 = vld [vmem:[%s2116_s11 + $0x4e0] sm:$0xff]  ;;  %v490_v53 = vld [vmem:[%s2766_s1 + $0x2c8] sm:$0xff] }
  0x75   : > { %720 = vmatmul.mubr.f32.gmra.mxu0 %v247_v54  ;;  %945 = vmatmul.mubr.f32.gmra.mxu1 %v249_v55  ;;  %v339_v54 = vld [vmem:[%s2116_s11 + $0x510] sm:$0xff]  ;;  %v341_v55 = vld [vmem:[%s2116_s11 + $0x520] sm:$0xff] }
  0x76   : > { %1075 = vmatprep.subr.mxu0 %v1844_v2  ;;  %1772 = vmatprep.subr.mxu1 %v1844_v2 }
  0x77   : > { %1076 = vmatpush1.msra.mxu0 %v470_v56  ;;  %1804 = vmatpush1.msra.mxu1 %v470_v56  ;;  %v338_v56 = vld [vmem:[%s2116_s11 + $0x508] sm:$0xff] }
  0x78   : > { %724 = vmatprep.mubr.f32.mxu0 %v255_v57  ;;  %949 = vmatprep.mubr.f32.mxu1 %v257_v58  ;;  %v340_v57 = vld [vmem:[%s2116_s11 + $0x518] sm:$0xff]  ;;  %v489_v58 = vld [vmem:[%s2766_s1 + $0x2c0] sm:$0xff] }
  0x79   : > { %725 = vmatmul.mubr.f32.gmra.mxu0 %v254_v59  ;;  %950 = vmatmul.mubr.f32.gmra.mxu1 %v256_v60  ;;  %v346_v59 = vld [vmem:[%s2116_s11 + $0x548] sm:$0xff]  ;;  %v348_v60 = vld [vmem:[%s2116_s11 + $0x558] sm:$0xff] }
  0x7a   : > { %1077 = vmatprep.subr.mxu0 %v1844_v2  ;;  %1773 = vmatprep.subr.mxu1 %v1844_v2 }
  0x7b   : > { %1078 = vmatpush1.msra.mxu0 %v469_v61  ;;  %1805 = vmatpush1.msra.mxu1 %v469_v61  ;;  %v345_v61 = vld [vmem:[%s2116_s11 + $0x540] sm:$0xff] }
  0x7c   : > { %729 = vmatprep.mubr.f32.mxu0 %v262_v62  ;;  %954 = vmatprep.mubr.f32.mxu1 %v264_v63  ;;  %v347_v62 = vld [vmem:[%s2116_s11 + $0x550] sm:$0xff]  ;;  %v488_v63 = vld [vmem:[%s2766_s1 + $0x2b8] sm:$0xff] }
  0x7d   : > { %730 = vmatmul.mubr.f32.gmra.mxu0 %v261_v0  ;;  %955 = vmatmul.mubr.f32.gmra.mxu1 %v263_v1  ;;  %v353_v0 = vld [vmem:[%s2116_s11 + $0x580] sm:$0xff]  ;;  %v355_v1 = vld [vmem:[%s2116_s11 + $0x590] sm:$0xff] }
  0x7e   : > { %1079 = vmatprep.subr.mxu0 %v1844_v2  ;;  %1774 = vmatprep.subr.mxu1 %v1844_v2 }
  0x7f   : > { %1080 = vmatpush1.msra.mxu0 %v468_v3  ;;  %1806 = vmatpush1.msra.mxu1 %v468_v3  ;;  %v352_v3 = vld [vmem:[%s2116_s11 + $0x578] sm:$0xff] }
  0x80   : > { %734 = vmatprep.mubr.f32.mxu0 %v269_v4  ;;  %959 = vmatprep.mubr.f32.mxu1 %v271_v5  ;;  %v354_v4 = vld [vmem:[%s2116_s11 + $0x588] sm:$0xff]  ;;  %v487_v5 = vld [vmem:[%s2766_s1 + $0x2b0] sm:$0xff] }
  0x81   : > { %735 = vmatmul.mubr.f32.gmra.mxu0 %v268_v6  ;;  %960 = vmatmul.mubr.f32.gmra.mxu1 %v270_v7  ;;  %v360_v6 = vld [vmem:[%s2116_s11 + $0x5b8] sm:$0xff]  ;;  %v362_v7 = vld [vmem:[%s2116_s11 + $0x5c8] sm:$0xff] }
  0x82   : > { %1081 = vmatprep.subr.mxu0 %v1844_v2  ;;  %1775 = vmatprep.subr.mxu1 %v1844_v2 }
  0x83   : > { %1082 = vmatpush1.msra.mxu0 %v467_v8  ;;  %1807 = vmatpush1.msra.mxu1 %v467_v8  ;;  %v359_v8 = vld [vmem:[%s2116_s11 + $0x5b0] sm:$0xff] }
  0x84   : > { %739 = vmatprep.mubr.f32.mxu0 %v276_v9  ;;  %964 = vmatprep.mubr.f32.mxu1 %v278_v10  ;;  %v361_v9 = vld [vmem:[%s2116_s11 + $0x5c0] sm:$0xff]  ;;  %v486_v10 = vld [vmem:[%s2766_s1 + $0x2a8] sm:$0xff] }
  0x85   : > { %740 = vmatmul.mubr.f32.gmra.mxu0 %v275_v11  ;;  %965 = vmatmul.mubr.f32.gmra.mxu1 %v277_v12  ;;  %v367_v11 = vld [vmem:[%s2116_s11 + $0x5f0] sm:$0xff]  ;;  %v369_v12 = vld [vmem:[%s2116_s11 + $0x600] sm:$0xff] }
  0x86   : > { %1083 = vmatprep.subr.mxu0 %v1844_v2  ;;  %1776 = vmatprep.subr.mxu1 %v1844_v2 }
  0x87   : > { %1084 = vmatpush1.msra.mxu0 %v466_v13  ;;  %1808 = vmatpush1.msra.mxu1 %v466_v13  ;;  %v366_v13 = vld [vmem:[%s2116_s11 + $0x5e8] sm:$0xff] }
  0x88   : > { %744 = vmatprep.mubr.f32.mxu0 %v283_v14  ;;  %969 = vmatprep.mubr.f32.mxu1 %v285_v15  ;;  %v368_v14 = vld [vmem:[%s2116_s11 + $0x5f8] sm:$0xff]  ;;  %v485_v15 = vld [vmem:[%s2766_s1 + $0x2a0] sm:$0xff] }
  0x89   : > { %745 = vmatmul.mubr.f32.gmra.mxu0 %v282_v16  ;;  %970 = vmatmul.mubr.f32.gmra.mxu1 %v284_v17  ;;  %v374_v16 = vld [vmem:[%s2116_s11 + $0x628] sm:$0xff]  ;;  %v376_v17 = vld [vmem:[%s2116_s11 + $0x638] sm:$0xff] }
  0x8a   : > { %1085 = vmatprep.subr.mxu0 %v1844_v2  ;;  %1777 = vmatprep.subr.mxu1 %v1844_v2 }
  0x8b   : > { %1086 = vmatpush1.msra.mxu0 %v465_v18  ;;  %1809 = vmatpush1.msra.mxu1 %v465_v18  ;;  %v373_v18 = vld [vmem:[%s2116_s11 + $0x620] sm:$0xff] }
  0x8c   : > { %749 = vmatprep.mubr.f32.mxu0 %v290_v19  ;;  %974 = vmatprep.mubr.f32.mxu1 %v292_v20  ;;  %v375_v19 = vld [vmem:[%s2116_s11 + $0x630] sm:$0xff]  ;;  %v484_v20 = vld [vmem:[%s2766_s1 + $0x298] sm:$0xff] }
  0x8d   : > { %750 = vmatmul.mubr.f32.gmra.mxu0 %v289_v21  ;;  %975 = vmatmul.mubr.f32.gmra.mxu1 %v291_v22  ;;  %v381_v21 = vld [vmem:[%s2116_s11 + $0x660] sm:$0xff]  ;;  %v383_v22 = vld [vmem:[%s2116_s11 + $0x670] sm:$0xff] }
  0x8e   : > { %1087 = vmatprep.subr.mxu0 %v1844_v2  ;;  %1778 = vmatprep.subr.mxu1 %v1844_v2 }
  0x8f   : > { %1088 = vmatpush2.msra.mxu0 %v496_v23  ;;  %1810 = vmatpush2.msra.mxu1 %v496_v23  ;;  %v380_v23 = vld [vmem:[%s2116_s11 + $0x658] sm:$0xff] }
  0x90   : > { %754 = vmatprep.mubr.f32.mxu0 %v297_v24  ;;  %979 = vmatprep.mubr.f32.mxu1 %v299_v25  ;;  %v382_v24 = vld [vmem:[%s2116_s11 + $0x668] sm:$0xff]  ;;  %v483_v25 = vld [vmem:[%s2766_s1 + $0x290] sm:$0xff] }
  0x91   : > { %755 = vmatmul.mubr.f32.gmra.mxu0 %v296_v26  ;;  %980 = vmatmul.mubr.f32.gmra.mxu1 %v298_v27  ;;  %v388_v26 = vld [vmem:[%s2116_s11 + $0x698] sm:$0xff]  ;;  %v390_v27 = vld [vmem:[%s2116_s11 + $0x6a8] sm:$0xff] }
  0x92   : > { %1089 = vmatprep.subr.mxu0 %v1844_v2  ;;  %1779 = vmatprep.subr.mxu1 %v1844_v2 }
  0x93   : > { %1090 = vmatpush2.msra.mxu0 %v495_v28  ;;  %1811 = vmatpush2.msra.mxu1 %v495_v28  ;;  %v387_v28 = vld [vmem:[%s2116_s11 + $0x690] sm:$0xff] }
  0x94   : > { %759 = vmatprep.mubr.f32.mxu0 %v304_v29  ;;  %984 = vmatprep.mubr.f32.mxu1 %v306_v30  ;;  %v389_v29 = vld [vmem:[%s2116_s11 + $0x6a0] sm:$0xff]  ;;  %v482_v30 = vld [vmem:[%s2766_s1 + $0x288] sm:$0xff] }
  0x95   : > { %760 = vmatmul.mubr.f32.gmra.mxu0 %v303_v31  ;;  %985 = vmatmul.mubr.f32.gmra.mxu1 %v305_v32  ;;  %v395_v31 = vld [vmem:[%s2116_s11 + $0x6d0] sm:$0xff]  ;;  %v397_v32 = vld [vmem:[%s2116_s11 + $0x6e0] sm:$0xff] }
  0x96   : > { %1091 = vmatprep.subr.mxu0 %v1844_v2  ;;  %1780 = vmatprep.subr.mxu1 %v1844_v2 }
  0x97   : > { %1092 = vmatpush2.msra.mxu0 %v494_v33  ;;  %1812 = vmatpush2.msra.mxu1 %v494_v33  ;;  %v394_v33 = vld [vmem:[%s2116_s11 + $0x6c8] sm:$0xff] }
  0x98   : > { %764 = vmatprep.mubr.f32.mxu0 %v311_v34  ;;  %989 = vmatprep.mubr.f32.mxu1 %v313_v35  ;;  %v396_v34 = vld [vmem:[%s2116_s11 + $0x6d8] sm:$0xff]  ;;  %v481_v35 = vld [vmem:[%s2766_s1 + $0x280] sm:$0xff] }
  0x99   : > { %765 = vmatmul.mubr.f32.gmra.mxu0 %v310_v36  ;;  %990 = vmatmul.mubr.f32.gmra.mxu1 %v312_v37  ;;  %v182_v36 = vld [vmem:[%s2116_s11 + $0x28] sm:$0xff] }
  0x9a   : > { %1093 = vmatprep.subr.mxu0 %v1844_v2  ;;  %1781 = vmatprep.subr.mxu1 %v1844_v2  ;;  %v350_v37 = vld [vmem:[%s2116_s11 + $0x568] sm:$0xff] }
  0x9b   : > { %1094 = vmatpush2.msra.mxu0 %v493_v38  ;;  %1813 = vmatpush2.msra.mxu1 %v493_v38  ;;  %v181_v38 = vld [vmem:[%s2116_s11 + $0x20] sm:$0xff] }
  0x9c   : > { %769 = vmatprep.mubr.f32.mxu0 %v318_v39  ;;  %994 = vmatprep.mubr.f32.mxu1 %v320_v40  ;;  %v349_v39 = vld [vmem:[%s2116_s11 + $0x560] sm:$0xff]  ;;  %v500_v40 = vld [vmem:[%s2766_s1 + $0x318] sm:$0xff] }
  0x9d   : > { %770 = vmatmul.mubr.f32.gmra.mxu0 %v317_v41  ;;  %995 = vmatmul.mubr.f32.gmra.mxu1 %v319_v42  ;;  %v189_v41 = vld [vmem:[%s2116_s11 + $0x60] sm:$0xff] }
  0x9e   : > { %1095 = vmatprep.subr.mxu0 %v1844_v2  ;;  %1782 = vmatprep.subr.mxu1 %v1844_v2  ;;  %v357_v42 = vld [vmem:[%s2116_s11 + $0x5a0] sm:$0xff] }
  0x9f   : > { %1096 = vmatpush2.msra.mxu0 %v492_v43  ;;  %1814 = vmatpush2.msra.mxu1 %v492_v43  ;;  %v188_v43 = vld [vmem:[%s2116_s11 + $0x58] sm:$0xff] }
  0xa0   : > { %774 = vmatprep.mubr.f32.mxu0 %v325_v44  ;;  %999 = vmatprep.mubr.f32.mxu1 %v327_v45  ;;  %v356_v44 = vld [vmem:[%s2116_s11 + $0x598] sm:$0xff] }
  0xa1   : > { %775 = vmatmul.mubr.f32.gmra.mxu0 %v324_v46  ;;  %1000 = vmatmul.mubr.f32.gmra.mxu1 %v326_v47  ;;  %v196_v45 = vld [vmem:[%s2116_s11 + $0x98] sm:$0xff]  ;;  %v498_v47 = vld [vmem:[%s2766_s1 + $0x308] sm:$0xff] }
  0xa2   : > { %1097 = vmatprep.subr.mxu0 %v1844_v2  ;;  %1783 = vmatprep.subr.mxu1 %v1844_v2  ;;  %v364_v46 = vld [vmem:[%s2116_s11 + $0x5d8] sm:$0xff] }
  0xa3   : > { %1098 = vmatpush2.msra.mxu0 %v491_v48  ;;  %1815 = vmatpush2.msra.mxu1 %v491_v48  ;;  %v195_v48 = vld [vmem:[%s2116_s11 + $0x90] sm:$0xff] }
  0xa4   : > { %779 = vmatprep.mubr.f32.mxu0 %v332_v49  ;;  %1004 = vmatprep.mubr.f32.mxu1 %v334_v50  ;;  %v363_v49 = vld [vmem:[%s2116_s11 + $0x5d0] sm:$0xff] }
  0xa5   : > { %780 = vmatmul.mubr.f32.gmra.mxu0 %v331_v51  ;;  %1005 = vmatmul.mubr.f32.gmra.mxu1 %v333_v52  ;;  %v203_v50 = vld [vmem:[%s2116_s11 + $0xd0] sm:$0xff]  ;;  %v497_v52 = vld [vmem:[%s2766_s1 + $0x300] sm:$0xff] }
  0xa6   : > { %1099 = vmatprep.subr.mxu0 %v1844_v2  ;;  %1784 = vmatprep.subr.mxu1 %v1844_v2  ;;  %v371_v51 = vld [vmem:[%s2116_s11 + $0x610] sm:$0xff] }
  0xa7   : > { %1100 = vmatpush2.msra.mxu0 %v490_v53  ;;  %1816 = vmatpush2.msra.mxu1 %v490_v53  ;;  %v202_v53 = vld [vmem:[%s2116_s11 + $0xc8] sm:$0xff] }
  0xa8   : > { %784 = vmatprep.mubr.f32.mxu0 %v339_v54  ;;  %1009 = vmatprep.mubr.f32.mxu1 %v341_v55  ;;  %v370_v54 = vld [vmem:[%s2116_s11 + $0x608] sm:$0xff] }
  0xa9   : > { %785 = vmatmul.mubr.f32.gmra.mxu0 %v338_v56  ;;  %1010 = vmatmul.mubr.f32.gmra.mxu1 %v340_v57  ;;  %v210_v55 = vld [vmem:[%s2116_s11 + $0x108] sm:$0xff]  ;;  %v209_v57 = vld [vmem:[%s2116_s11 + $0x100] sm:$0xff] }
  0xaa   : > { %1101 = vmatprep.subr.mxu0 %v1844_v2  ;;  %1785 = vmatprep.subr.mxu1 %v1844_v2  ;;  %v378_v56 = vld [vmem:[%s2116_s11 + $0x648] sm:$0xff] }
  0xab   : > { %1102 = vmatpush2.msra.mxu0 %v489_v58  ;;  %1817 = vmatpush2.msra.mxu1 %v489_v58  ;;  %v377_v58 = vld [vmem:[%s2116_s11 + $0x640] sm:$0xff] }
  0xac   : > { %789 = vmatprep.mubr.f32.mxu0 %v346_v59  ;;  %1014 = vmatprep.mubr.f32.mxu1 %v348_v60  ;;  %v217_v59 = vld [vmem:[%s2116_s11 + $0x140] sm:$0xff] }
  0xad   : > { %790 = vmatmul.mubr.f32.gmra.mxu0 %v345_v61  ;;  %1015 = vmatmul.mubr.f32.gmra.mxu1 %v347_v62  ;;  %v385_v60 = vld [vmem:[%s2116_s11 + $0x680] sm:$0xff]  ;;  %v216_v61 = vld [vmem:[%s2116_s11 + $0x138] sm:$0xff] }
  0xae   : > { %1103 = vmatprep.subr.mxu0 %v1844_v2  ;;  %1786 = vmatprep.subr.mxu1 %v1844_v2  ;;  %v384_v62 = vld [vmem:[%s2116_s11 + $0x678] sm:$0xff] }
  0xaf   : > { %1104 = vmatpush2.msra.mxu0 %v488_v63  ;;  %1818 = vmatpush2.msra.mxu1 %v488_v63  ;;  %v224_v63 = vld [vmem:[%s2116_s11 + $0x178] sm:$0xff] }
  0xb0   : > { %794 = vmatprep.mubr.f32.mxu0 %v353_v0  ;;  %1019 = vmatprep.mubr.f32.mxu1 %v355_v1  ;;  %v392_v0 = vld [vmem:[%s2116_s11 + $0x6b8] sm:$0xff]  ;;  %v223_v1 = vld [vmem:[%s2116_s11 + $0x170] sm:$0xff] }
  0xb1   : > { %795 = vmatmul.mubr.f32.gmra.mxu0 %v352_v3  ;;  %1020 = vmatmul.mubr.f32.gmra.mxu1 %v354_v4  ;;  %v391_v3 = vld [vmem:[%s2116_s11 + $0x6b0] sm:$0xff] }
  0xb2   : > { %1105 = vmatprep.subr.mxu0 %v1844_v2  ;;  %1787 = vmatprep.subr.mxu1 %v1844_v2  ;;  %v231_v4 = vld [vmem:[%s2116_s11 + $0x1b0] sm:$0xff] }
  0xb3   : > { %1106 = vmatpush2.msra.mxu0 %v487_v5  ;;  %1819 = vmatpush2.msra.mxu1 %v487_v5  ;;  %v399_v5 = vld [vmem:[%s2116_s11 + $0x6f0] sm:$0xff] }
  0xb4   : > { %799 = vmatprep.mubr.f32.mxu0 %v360_v6  ;;  %1024 = vmatprep.mubr.f32.mxu1 %v362_v7  ;;  %v230_v6 = vld [vmem:[%s2116_s11 + $0x1a8] sm:$0xff] }
  0xb5   : > { %800 = vmatmul.mubr.f32.gmra.mxu0 %v359_v8  ;;  %1025 = vmatmul.mubr.f32.gmra.mxu1 %v361_v9  ;;  %v398_v7 = vld [vmem:[%s2116_s11 + $0x6e8] sm:$0xff]  ;;  %v183_v9 = vld [vmem:[%s2116_s11 + $0x30] sm:$0xff] }
  0xb6   : > { %1107 = vmatprep.subr.mxu0 %v1844_v2  ;;  %1788 = vmatprep.subr.mxu1 %v1844_v2  ;;  %v238_v8 = vld [vmem:[%s2116_s11 + $0x1e8] sm:$0xff] }
  0xb7   : > { %1108 = vmatpush2.msra.mxu0 %v486_v10  ;;  %1820 = vmatpush2.msra.mxu1 %v486_v10  ;;  %v237_v10 = vld [vmem:[%s2116_s11 + $0x1e0] sm:$0xff] }
  0xb8   : > { %804 = vmatprep.mubr.f32.mxu0 %v367_v11  ;;  %1029 = vmatprep.mubr.f32.mxu1 %v369_v12  ;;  %v190_v11 = vld [vmem:[%s2116_s11 + $0x68] sm:$0xff]  ;;  %v245_v12 = vld [vmem:[%s2116_s11 + $0x220] sm:$0xff] }
  0xb9   : > { %805 = vmatmul.mubr.f32.gmra.mxu0 %v366_v13  ;;  %1030 = vmatmul.mubr.f32.gmra.mxu1 %v368_v14  ;;  %v197_v13 = vld [vmem:[%s2116_s11 + $0xa0] sm:$0xff]  ;;  %v244_v14 = vld [vmem:[%s2116_s11 + $0x218] sm:$0xff] }
  0xba   : > { %1109 = vmatprep.subr.mxu0 %v1844_v2  ;;  %1789 = vmatprep.subr.mxu1 %v1844_v2 }
  0xbb   : > { %1110 = vmatpush2.msra.mxu0 %v485_v15  ;;  %1821 = vmatpush2.msra.mxu1 %v485_v15  ;;  %v204_v15 = vld [vmem:[%s2116_s11 + $0xd8] sm:$0xff] }
  0xbc   : > { %809 = vmatprep.mubr.f32.mxu0 %v374_v16  ;;  %1034 = vmatprep.mubr.f32.mxu1 %v376_v17  ;;  %v252_v16 = vld [vmem:[%s2116_s11 + $0x258] sm:$0xff]  ;;  %v211_v17 = vld [vmem:[%s2116_s11 + $0x110] sm:$0xff] }
  0xbd   : > { %810 = vmatmul.mubr.f32.gmra.mxu0 %v373_v18  ;;  %1035 = vmatmul.mubr.f32.gmra.mxu1 %v375_v19  ;;  %v251_v18 = vld [vmem:[%s2116_s11 + $0x250] sm:$0xff]  ;;  %v218_v19 = vld [vmem:[%s2116_s11 + $0x148] sm:$0xff] }
  0xbe   : > { %1111 = vmatprep.subr.mxu0 %v1844_v2  ;;  %1790 = vmatprep.subr.mxu1 %v1844_v2 }
  0xbf   : > { %1112 = vmatpush2.msra.mxu0 %v484_v20  ;;  %1822 = vmatpush2.msra.mxu1 %v484_v20  ;;  %v259_v20 = vld [vmem:[%s2116_s11 + $0x290] sm:$0xff] }
  0xc0   : > { %814 = vmatprep.mubr.f32.mxu0 %v381_v21  ;;  %1039 = vmatprep.mubr.f32.mxu1 %v383_v22  ;;  %v225_v21 = vld [vmem:[%s2116_s11 + $0x180] sm:$0xff]  ;;  %v258_v22 = vld [vmem:[%s2116_s11 + $0x288] sm:$0xff] }
  0xc1   : > { %815 = vmatmul.mubr.f32.gmra.mxu0 %v380_v23  ;;  %1040 = vmatmul.mubr.f32.gmra.mxu1 %v382_v24  ;;  %v232_v23 = vld [vmem:[%s2116_s11 + $0x1b8] sm:$0xff]  ;;  %v266_v24 = vld [vmem:[%s2116_s11 + $0x2c8] sm:$0xff] }
  0xc2   : > { %1113 = vmatprep.subr.mxu0 %v1844_v2  ;;  %1791 = vmatprep.subr.mxu1 %v1844_v2 }
  0xc3   : > { %1114 = vmatpush2.msra.mxu0 %v483_v25  ;;  %1823 = vmatpush2.msra.mxu1 %v483_v25  ;;  %v239_v25 = vld [vmem:[%s2116_s11 + $0x1f0] sm:$0xff] }
  0xc4   : > { %819 = vmatprep.mubr.f32.mxu0 %v388_v26  ;;  %1044 = vmatprep.mubr.f32.mxu1 %v390_v27  ;;  %v265_v26 = vld [vmem:[%s2116_s11 + $0x2c0] sm:$0xff]  ;;  %v246_v27 = vld [vmem:[%s2116_s11 + $0x228] sm:$0xff] }
  0xc5   : > { %820 = vmatmul.mubr.f32.gmra.mxu0 %v387_v28  ;;  %1045 = vmatmul.mubr.f32.gmra.mxu1 %v389_v29  ;;  %v273_v28 = vld [vmem:[%s2116_s11 + $0x300] sm:$0xff] }
  0xc6   : > { %1115 = vmatprep.subr.mxu0 %v1844_v2  ;;  %1792 = vmatprep.subr.mxu1 %v1844_v2  ;;  %v253_v29 = vld [vmem:[%s2116_s11 + $0x260] sm:$0xff] }
  0xc7   : > { %1116 = vmatpush2.msra.mxu0 %v482_v30  ;;  %1824 = vmatpush2.msra.mxu1 %v482_v30  ;;  %v272_v30 = vld [vmem:[%s2116_s11 + $0x2f8] sm:$0xff] }
  0xc8   : > { %824 = vmatprep.mubr.f32.mxu0 %v395_v31  ;;  %1049 = vmatprep.mubr.f32.mxu1 %v397_v32  ;;  %v260_v31 = vld [vmem:[%s2116_s11 + $0x298] sm:$0xff] }
  0xc9   : > { %825 = vmatmul.mubr.f32.gmra.mxu0 %v394_v33  ;;  %1050 = vmatmul.mubr.f32.gmra.mxu1 %v396_v34  ;;  %v280_v32 = vld [vmem:[%s2116_s11 + $0x338] sm:$0xff]  ;;  %v267_v33 = vld [vmem:[%s2116_s11 + $0x2d0] sm:$0xff] }
  0xca   : > { %1117 = vmatprep.subr.mxu0 %v1844_v2  ;;  %1793 = vmatprep.subr.mxu1 %v1844_v2  ;;  %v499_v2 = vld [vmem:[%s2766_s1 + $0x310] sm:$0xff] }
  0xcb   : > { %1118 = vmatpush2.msra.mxu0 %v481_v35  ;;  %1825 = vmatpush2.msra.mxu1 %v481_v35  ;;  %v279_v34 = vld [vmem:[%s2116_s11 + $0x330] sm:$0xff]  ;;  %v274_v35 = vld [vmem:[%s2116_s11 + $0x308] sm:$0xff] }
  0xcc   : > { %1119 = vmatprep.mubr.f32.mxu0 %v182_v36  ;;  %1239 = vmatprep.mubr.f32.mxu1 %v350_v37  ;;  %v287_v36 = vld [vmem:[%s2116_s11 + $0x370] sm:$0xff]  ;;  %v281_v37 = vld [vmem:[%s2116_s11 + $0x340] sm:$0xff] }
  0xcd   : > { %1120 = vmatmul.mubr.f32.vlgmr.msra.gmra.mxu0 %v181_v38  ;;  %1240 = vmatmul.mubr.f32.vlgmr.msra.gmra.mxu1 %v349_v39  ;;  %v286_v38 = vld [vmem:[%s2116_s11 + $0x368] sm:$0xff]  ;;  %v288_v39 = vld [vmem:[%s2116_s11 + $0x378] sm:$0xff] }
  0xce   : > { %1706 = vmatprep.subr.mxu1 %v500_v40  ;;  %1124 = vmatprep.mubr.f32.mxu0 %v189_v41  ;;  %v295_v41 = vld [vmem:[%s2116_s11 + $0x3b0] sm:$0xff] }
  0xcf   : > { %1707 = vmatpush3.msra.mxu1 %v500_v40  ;;  %1244 = vmatprep.mubr.f32.mxu1 %v357_v42  ;;  %v294_v40 = vld [vmem:[%s2116_s11 + $0x3a8] sm:$0xff]  ;;  %v293_v42 = vld [vmem:[%s2116_s11 + $0x3a0] sm:$0xff] }
  0xd0   : > { %1708 = vmatprep.subr.mxu1 %v499_v2 }
  0xd1   : > { %1125 = vmatmul.mubr.f32.gmra.mxu0 %v188_v43  ;;  %1245 = vmatmul.mubr.f32.gmra.mxu1 %v356_v44  ;;  %v2524_v43 = vld [vmem:[%s2767_s2] ss:$0 sm:$0xff] }
  0xd2   : > { %1129 = vmatprep.mubr.f32.mxu0 %v196_v45  ;;  %1249 = vmatprep.mubr.f32.mxu1 %v364_v46  ;;  %v301_v44 = vld [vmem:[%s2116_s11 + $0x3e0] sm:$0xff] }
  0xd3   : > { %1709 = vmatpush3.msra.mxu1 %v499_v2  ;;  %v302_v2 = vld [vmem:[%s2116_s11 + $0x3e8] sm:$0xff]  ;;  %v309_v45 = vld [vmem:[%s2116_s11 + $0x420] sm:$0xff] }
  0xd4   : > { %1710 = vmatprep.subr.mxu1 %v498_v47 }
  0xd5   : > { %1130 = vmatmul.mubr.f32.gmra.mxu0 %v195_v48  ;;  %1250 = vmatmul.mubr.f32.gmra.mxu1 %v363_v49  ;;  %v300_v49 = vld [vmem:[%s2116_s11 + $0x3d8] sm:$0xff] }
  0xd6   : > { %1134 = vmatprep.mubr.f32.mxu0 %v203_v50  ;;  %1254 = vmatprep.mubr.f32.mxu1 %v371_v51  ;;  %v316_v50 = vld [vmem:[%s2116_s11 + $0x458] sm:$0xff] }
  0xd7   : > { %1711 = vmatpush3.msra.mxu1 %v498_v47 }
  0xd8   : > { %1712 = vmatprep.subr.mxu1 %v497_v52 }
  0xd9   : > { %1135 = vmatmul.mubr.f32.gmra.mxu0 %v202_v53  ;;  %1255 = vmatmul.mubr.f32.gmra.mxu1 %v370_v54  ;;  %v308_v53 = vld [vmem:[%s2116_s11 + $0x418] sm:$0xff]  ;;  %v323_v54 = vld [vmem:[%s2116_s11 + $0x490] sm:$0xff] }
  0xda   : > { %1139 = vmatprep.mubr.f32.mxu0 %v210_v55  ;;  %1259 = vmatprep.mubr.f32.mxu1 %v378_v56 }
  0xdb   : > { %1713 = vmatpush3.msra.mxu1 %v497_v52 }
  0xdd   : > { %1140 = vmatmul.mubr.f32.gmra.mxu0 %v209_v57  ;;  %1260 = vmatmul.mubr.f32.gmra.mxu1 %v377_v58 }
  0xde   : > { %1144 = vmatprep.mubr.f32.mxu0 %v217_v59  ;;  %1264 = vmatprep.mubr.f32.mxu1 %v385_v60  ;;  %v307_v59 = vld [vmem:[%s2116_s11 + $0x410] sm:$0xff]  ;;  %v330_v60 = vld [vmem:[%s2116_s11 + $0x4c8] sm:$0xff] }
  0xe1   : > { %1145 = vmatmul.mubr.f32.gmra.mxu0 %v216_v61  ;;  %1265 = vmatmul.mubr.f32.gmra.mxu1 %v384_v62 }
  0xe2   : > { %1149 = vmatprep.mubr.f32.mxu0 %v224_v63  ;;  %1269 = vmatprep.mubr.f32.mxu1 %v392_v0  ;;  %v315_v63 = vld [vmem:[%s2116_s11 + $0x450] sm:$0xff]  ;;  %v337_v0 = vld [vmem:[%s2116_s11 + $0x500] sm:$0xff] }
  0xe5   : > { %1150 = vmatmul.mubr.f32.gmra.mxu0 %v223_v1  ;;  %1270 = vmatmul.mubr.f32.gmra.mxu1 %v391_v3 }
  0xe6   : > { %1154 = vmatprep.mubr.f32.mxu0 %v231_v4  ;;  %1274 = vmatprep.mubr.f32.mxu1 %v399_v5 }
  0xe9   : > { %1155 = vmatmul.mubr.f32.gmra.mxu0 %v230_v6  ;;  %1275 = vmatmul.mubr.f32.gmra.mxu1 %v398_v7  ;;  %v314_v6 = vld [vmem:[%s2116_s11 + $0x448] sm:$0xff]  ;;  %v344_v7 = vld [vmem:[%s2116_s11 + $0x538] sm:$0xff] }
  0xea   : > { %1159 = vmatprep.mubr.f32.mxu0 %v238_v8  ;;  %1714 = vmatprep.mubr.msk.f32.mxu1 %vm508_vm0, %v183_v9 }
  0xed   : > { %1160 = vmatmul.mubr.f32.gmra.mxu0 %v237_v10  ;;  %1715 = vmatmul.mubr.msk.f32.vlgmr.msra.gmra.mxu1 %vm508_vm0, %v190_v11  ;;  %v322_v10 = vld [vmem:[%s2116_s11 + $0x488] sm:$0xff]  ;;  %v351_v11 = vld [vmem:[%s2116_s11 + $0x570] sm:$0xff] }
  0xee   : > { %1164 = vmatprep.mubr.f32.mxu0 %v245_v12  ;;  %1717 = vmatprep.mubr.msk.f32.mxu1 %vm508_vm0, %v197_v13 }
  0xf1   : > { %1165 = vmatmul.mubr.f32.gmra.mxu0 %v244_v14  ;;  %1718 = vmatmul.mubr.msk.f32.gmra.mxu1 %vm508_vm0, %v204_v15 }
  0xf2   : > { %1169 = vmatprep.mubr.f32.mxu0 %v252_v16  ;;  %1720 = vmatprep.mubr.msk.f32.mxu1 %vm508_vm0, %v211_v17  ;;  %v321_v16 = vld [vmem:[%s2116_s11 + $0x480] sm:$0xff]  ;;  %v358_v17 = vld [vmem:[%s2116_s11 + $0x5a8] sm:$0xff] }
  0xf5   : > { %1170 = vmatmul.mubr.f32.gmra.mxu0 %v251_v18  ;;  %1721 = vmatmul.mubr.msk.f32.gmra.mxu1 %vm508_vm0, %v218_v19 }
  0xf6   : > { %1174 = vmatprep.mubr.f32.mxu0 %v259_v20  ;;  %1723 = vmatprep.mubr.msk.f32.mxu1 %vm508_vm0, %v225_v21  ;;  %v329_v20 = vld [vmem:[%s2116_s11 + $0x4c0] sm:$0xff] }
  0xf7   : > { %v365_v21 = vld [vmem:[%s2116_s11 + $0x5e0] sm:$0xff] }
  0xf9   : > { %1175 = vmatmul.mubr.f32.gmra.mxu0 %v258_v22  ;;  %1724 = vmatmul.mubr.msk.f32.gmra.mxu1 %vm508_vm0, %v232_v23 }
  0xfa   : > { %1179 = vmatprep.mubr.f32.mxu0 %v266_v24  ;;  %1726 = vmatprep.mubr.msk.f32.mxu1 %vm508_vm0, %v239_v25 }
  0xfd   : > { %1180 = vmatmul.mubr.f32.gmra.mxu0 %v265_v26  ;;  %1727 = vmatmul.mubr.msk.f32.gmra.mxu1 %vm508_vm0, %v246_v27  ;;  %v328_v26 = vld [vmem:[%s2116_s11 + $0x4b8] sm:$0xff] }
  0xfe   : > { %1184 = vmatprep.mubr.f32.mxu0 %v273_v28  ;;  %1729 = vmatprep.mubr.msk.f32.mxu1 %vm508_vm0, %v253_v29  ;;  %v372_v27 = vld [vmem:[%s2116_s11 + $0x618] sm:$0xff] }
 0x101   : > { %1185 = vmatmul.mubr.f32.gmra.mxu0 %v272_v30  ;;  %1730 = vmatmul.mubr.msk.f32.gmra.mxu1 %vm508_vm0, %v260_v31  ;;  %v336_v30 = vld [vmem:[%s2116_s11 + $0x4f8] sm:$0xff]  ;;  %v379_v31 = vld [vmem:[%s2116_s11 + $0x650] sm:$0xff] }
 0x102   : > { %1189 = vmatprep.mubr.f32.mxu0 %v280_v32  ;;  %1732 = vmatprep.mubr.msk.f32.mxu1 %vm508_vm0, %v267_v33 }
 0x105   : > { %1190 = vmatmul.mubr.f32.gmra.mxu0 %v279_v34  ;;  %1733 = vmatmul.mubr.msk.f32.gmra.mxu1 %vm508_vm0, %v274_v35 }
 0x106   : > { %1194 = vmatprep.mubr.f32.mxu0 %v287_v36  ;;  %1735 = vmatprep.mubr.msk.f32.mxu1 %vm508_vm0, %v281_v37  ;;  %v335_v36 = vld [vmem:[%s2116_s11 + $0x4f0] sm:$0xff]  ;;  %v386_v37 = vld [vmem:[%s2116_s11 + $0x688] sm:$0xff] }
 0x109   : > { %1195 = vmatmul.mubr.f32.gmra.mxu0 %v286_v38  ;;  %1736 = vmatmul.mubr.msk.f32.gmra.mxu1 %vm508_vm0, %v288_v39 }
 0x10a   : > { %1199 = vmatprep.mubr.f32.mxu0 %v294_v40  ;;  %1738 = vmatprep.mubr.msk.f32.mxu1 %vm508_vm0, %v295_v41  ;;  %v343_v40 = vld [vmem:[%s2116_s11 + $0x530] sm:$0xff]  ;;  %v393_v41 = vld [vmem:[%s2116_s11 + $0x6c0] sm:$0xff] }
 0x10d   : > { %v671_v46 = vpop.f32.mrf.mxu0  ;;  %v896_v47 = vpop.f32.mrf.mxu1  ;;  %1200 = vmatmul.mubr.f32.gmra.mxu0 %v293_v42  ;;  %1739 = vmatmul.mubr.msk.f32.gmra.mxu1 %vm508_vm0, %v302_v2 }
 0x10e   : > { %v672_v48 = vadd.f32 %v2524_v43, %v671_v46  ;;  %1204 = vmatprep.mubr.f32.mxu0 %v301_v44  ;;  %1741 = vmatprep.mubr.msk.f32.mxu1 %vm508_vm0, %v309_v45  ;;  %v342_v46 = vld [vmem:[%s2116_s11 + $0x528] sm:$0xff] }
 0x10f   : > { %v673_v51 = vpop.f32.mrf.mxu0  ;;  %v898_v52 = vpop.f32.mrf.mxu1 }
 0x110   : > { %v2535_v55 = vadd.f32 %v896_v47, %v672_v48  ;;  %v400_v47 = vld [vmem:[%s2116_s11 + $0x6f8] sm:$0xff]  ;;  %s1633_s11 = sshll.u32 %s1626_s13, 3 }
 0x111   : > { %v676_v56 = vpop.f32.mrf.mxu0  ;;  %v901_v57 = vpop.f32.mrf.mxu1  ;;  %1205 = vmatmul.mubr.f32.gmra.mxu0 %v300_v49  ;;  %1742 = vmatmul.mubr.msk.f32.gmra.mxu1 %vm508_vm0, %v316_v50  ;;  %p172_p4 = scmp.lt.s32.totalorder %s1633_s11, 15 }
 0x112   : > { %v677_v58 = vadd.f32 %v2524_v43, %v676_v56  ;;  %1209 = vmatprep.mubr.f32.mxu0 %v308_v53  ;;  %1744 = vmatprep.mubr.msk.f32.mxu1 %vm508_vm0, %v323_v54 }
 0x113   : > { %v678_v61 = vpop.f32.mrf.mxu0  ;;  %v903_v62 = vpop.f32.mrf.mxu1  ;;  %s2772_s11 = smov (!%p172_p4, %s1633_s11), 15 }
 0x114   : > { %v2544_v1 = vadd.f32 %v901_v57, %v677_v58  ;;  %s1634_s13 = sshll.u32 %s2772_s11, 3 }
 0x115   : > { %v681_v3 = vpop.f32.mrf.mxu0  ;;  %v906_v4 = vpop.f32.mrf.mxu1  ;;  %1210 = vmatmul.mubr.f32.gmra.mxu0 %v307_v59  ;;  %1745 = vmatmul.mubr.msk.f32.gmra.mxu1 %vm508_vm0, %v330_v60  ;;  %s2727_s26 = scalar_lea.vmem %s2768_s3, %s1634_s13 }
 0x116   : > { %v682_v5 = vadd.f32 %v2524_v43, %v681_v3  ;;  %1214 = vmatprep.mubr.f32.mxu0 %v315_v63  ;;  %1747 = vmatprep.mubr.msk.f32.mxu1 %vm508_vm0, %v337_v0 }
 0x117   : > { %v683_v8 = vpop.f32.mrf.mxu0  ;;  %v908_v9 = vpop.f32.mrf.mxu1 }
 0x118   : > { %v2553_v12 = vadd.f32 %v906_v4, %v682_v5 }
 0x119   : > { %v686_v13 = vpop.f32.mrf.mxu0  ;;  %v911_v14 = vpop.f32.mrf.mxu1  ;;  %1215 = vmatmul.mubr.f32.gmra.mxu0 %v314_v6  ;;  %1748 = vmatmul.mubr.msk.f32.gmra.mxu1 %vm508_vm0, %v344_v7 }
 0x11a   : > { %v687_v15 = vadd.f32 %v2524_v43, %v686_v13  ;;  %1219 = vmatprep.mubr.f32.mxu0 %v322_v10  ;;  %1750 = vmatprep.mubr.msk.f32.mxu1 %vm508_vm0, %v351_v11 }
 0x11b   : > { %v688_v18 = vpop.f32.mrf.mxu0  ;;  %v913_v19 = vpop.f32.mrf.mxu1 }
 0x11c   : > { %v2562_v22 = vadd.f32 %v911_v14, %v687_v15 }
 0x11d   : > { %v691_v23 = vpop.f32.mrf.mxu0  ;;  %v916_v24 = vpop.f32.mrf.mxu1  ;;  %1220 = vmatmul.mubr.f32.gmra.mxu0 %v321_v16  ;;  %1751 = vmatmul.mubr.msk.f32.gmra.mxu1 %vm508_vm0, %v358_v17 }
 0x11e   : > { %v692_v25 = vadd.f32 %v2524_v43, %v691_v23  ;;  %1224 = vmatprep.mubr.f32.mxu0 %v329_v20  ;;  %1753 = vmatprep.mubr.msk.f32.mxu1 %vm508_vm0, %v365_v21 }
 0x11f   : > { %v693_v28 = vpop.f32.mrf.mxu0  ;;  %v918_v29 = vpop.f32.mrf.mxu1 }
 0x120   : > { %v2571_v32 = vadd.f32 %v916_v24, %v692_v25 }
 0x121   : > { %v696_v33 = vpop.f32.mrf.mxu0  ;;  %v921_v34 = vpop.f32.mrf.mxu1  ;;  %1225 = vmatmul.mubr.f32.gmra.mxu0 %v328_v26  ;;  %1754 = vmatmul.mubr.msk.f32.gmra.mxu1 %vm508_vm0, %v372_v27 }
 0x122   : > { %v697_v35 = vadd.f32 %v2524_v43, %v696_v33  ;;  %1229 = vmatprep.mubr.f32.mxu0 %v336_v30  ;;  %1756 = vmatprep.mubr.msk.f32.mxu1 %vm508_vm0, %v379_v31 }
 0x123   : > { %v698_v38 = vpop.f32.mrf.mxu0  ;;  %v923_v39 = vpop.f32.mrf.mxu1 }
 0x124   : > { %v2580_v42 = vadd.f32 %v921_v34, %v697_v35 }
 0x125   : > { %v701_v2 = vpop.f32.mrf.mxu0  ;;  %v926_v44 = vpop.f32.mrf.mxu1  ;;  %1230 = vmatmul.mubr.f32.gmra.mxu0 %v335_v36  ;;  %1757 = vmatmul.mubr.msk.f32.gmra.mxu1 %vm508_vm0, %v386_v37 }
 0x126   : > { %v702_v45 = vadd.f32 %v2524_v43, %v701_v2  ;;  %1234 = vmatprep.mubr.f32.mxu0 %v343_v40  ;;  %1759 = vmatprep.mubr.msk.f32.mxu1 %vm508_vm0, %v393_v41 }
 0x127   : > { %v703_v48 = vpop.f32.mrf.mxu0  ;;  %v928_v49 = vpop.f32.mrf.mxu1 }
 0x128   : > { %v2587_v50 = vadd.f32 %v926_v44, %v702_v45 }
 0x129   : > { %v706_v51 = vpop.f32.mrf.mxu0  ;;  %v931_v52 = vpop.f32.mrf.mxu1  ;;  %1235 = vmatmul.mubr.f32.gmra.mxu0 %v342_v46  ;;  %1760 = vmatmul.mubr.msk.f32.gmra.mxu1 %vm508_vm0, %v400_v47 }
 0x12a   : > { %v707_v53 = vadd.f32 %v2524_v43, %v706_v51 }
 0x12b   : > { %v708_v54 = vpop.f32.mrf.mxu0  ;;  %v933_v56 = vpop.f32.mrf.mxu1 }
 0x12c   : > { %v2591_v57 = vadd.f32 %v931_v52, %v707_v53 }
 0x12d   : > { %v711_v58 = vpop.f32.mrf.mxu0  ;;  %v936_v59 = vpop.f32.mrf.mxu1 }
 0x12e   : > { %v712_v60 = vadd.f32 %v2524_v43, %v711_v58 }
 0x12f   : > { %v713_v61 = vpop.f32.mrf.mxu0  ;;  %v938_v62 = vpop.f32.mrf.mxu1 }
 0x130   : > { %v2594_v63 = vadd.f32 %v936_v59, %v712_v60 }
 0x131   : > { %v716_v0 = vpop.f32.mrf.mxu0  ;;  %v941_v3 = vpop.f32.mrf.mxu1 }
 0x132   : > { %v717_v4 = vadd.f32 %v2524_v43, %v716_v0 }
 0x133   : > { %v718_v5 = vpop.f32.mrf.mxu0  ;;  %v943_v6 = vpop.f32.mrf.mxu1 }
 0x134   : > { %v2597_v7 = vadd.f32 %v941_v3, %v717_v4 }
 0x135   : > { %v721_v8 = vpop.f32.mrf.mxu0  ;;  %v946_v9 = vpop.f32.mrf.mxu1 }
 0x136   : > { %v722_v10 = vadd.f32 %v2524_v43, %v721_v8 }
 0x137   : > { %v723_v11 = vpop.f32.mrf.mxu0  ;;  %v948_v13 = vpop.f32.mrf.mxu1 }
 0x138   : > { %v2600_v14 = vadd.f32 %v946_v9, %v722_v10 }
 0x139   : > { %v726_v15 = vpop.f32.mrf.mxu0  ;;  %v951_v16 = vpop.f32.mrf.mxu1 }
 0x13a   : > { %v727_v17 = vadd.f32 %v2524_v43, %v726_v15 }
 0x13b   : > { %v728_v18 = vpop.f32.mrf.mxu0  ;;  %v953_v19 = vpop.f32.mrf.mxu1 }
 0x13c   : > { %v2603_v20 = vadd.f32 %v951_v16, %v727_v17 }
 0x13d   : > { %v731_v21 = vpop.f32.mrf.mxu0  ;;  %v956_v23 = vpop.f32.mrf.mxu1 }
 0x13e   : > { %v732_v24 = vadd.f32 %v2524_v43, %v731_v21 }
 0x13f   : > { %v733_v25 = vpop.f32.mrf.mxu0  ;;  %v958_v26 = vpop.f32.mrf.mxu1 }
 0x140   : > { %v2606_v27 = vadd.f32 %v956_v23, %v732_v24 }
 0x141   : > { %v736_v28 = vpop.f32.mrf.mxu0  ;;  %v961_v29 = vpop.f32.mrf.mxu1 }
 0x142   : > { %v737_v30 = vadd.f32 %v2524_v43, %v736_v28 }
 0x143   : > { %v738_v31 = vpop.f32.mrf.mxu0  ;;  %v963_v33 = vpop.f32.mrf.mxu1 }
 0x144   : > { %v2609_v34 = vadd.f32 %v961_v29, %v737_v30 }
 0x145   : > { %v741_v35 = vpop.f32.mrf.mxu0  ;;  %v966_v36 = vpop.f32.mrf.mxu1 }
 0x146   : > { %v742_v37 = vadd.f32 %v2524_v43, %v741_v35 }
 0x147   : > { %v743_v38 = vpop.f32.mrf.mxu0  ;;  %v968_v39 = vpop.f32.mrf.mxu1 }
 0x148   : > { %v2612_v40 = vadd.f32 %v966_v36, %v742_v37 }
 0x149   : > { %v746_v41 = vpop.f32.mrf.mxu0  ;;  %v971_v2 = vpop.f32.mrf.mxu1 }
 0x14a   : > { %v747_v44 = vadd.f32 %v2524_v43, %v746_v41 }
 0x14b   : > { %v748_v45 = vpop.f32.mrf.mxu0  ;;  %v973_v46 = vpop.f32.mrf.mxu1 }
 0x14c   : > { %v2615_v47 = vadd.f32 %v971_v2, %v747_v44 }
 0x14d   : > { %v751_v48 = vpop.f32.mrf.mxu0  ;;  %v976_v49 = vpop.f32.mrf.mxu1 }
 0x14e   : > { %v752_v51 = vadd.f32 %v2524_v43, %v751_v48 }
 0x14f   : > { %v753_v52 = vpop.f32.mrf.mxu0  ;;  %v978_v53 = vpop.f32.mrf.mxu1 }
 0x150   : > { %v2618_v54 = vadd.f32 %v976_v49, %v752_v51 }
 0x151   : > { %v756_v56 = vpop.f32.mrf.mxu0  ;;  %v981_v58 = vpop.f32.mrf.mxu1 }
 0x152   : > { %v757_v59 = vadd.f32 %v2524_v43, %v756_v56 }
 0x153   : > { %v758_v60 = vpop.f32.mrf.mxu0  ;;  %v983_v61 = vpop.f32.mrf.mxu1 }
 0x154   : > { %v2621_v62 = vadd.f32 %v981_v58, %v757_v59 }
 0x155   : > { %v761_v0 = vpop.f32.mrf.mxu0  ;;  %v986_v3 = vpop.f32.mrf.mxu1 }
 0x156   : > { %v762_v4 = vadd.f32 %v2524_v43, %v761_v0 }
 0x157   : > { %v763_v5 = vpop.f32.mrf.mxu0  ;;  %v988_v6 = vpop.f32.mrf.mxu1 }
 0x158   : > { %v2624_v8 = vadd.f32 %v986_v3, %v762_v4 }
 0x159   : > { %v766_v9 = vpop.f32.mrf.mxu0  ;;  %v991_v10 = vpop.f32.mrf.mxu1 }
 0x15a   : > { %v767_v11 = vadd.f32 %v2524_v43, %v766_v9 }
 0x15b   : > { %v768_v13 = vpop.f32.mrf.mxu0  ;;  %v993_v15 = vpop.f32.mrf.mxu1 }
 0x15c   : > { %v2627_v16 = vadd.f32 %v991_v10, %v767_v11 }
 0x15d   : > { %v771_v17 = vpop.f32.mrf.mxu0  ;;  %v996_v18 = vpop.f32.mrf.mxu1 }
 0x15e   : > { %v772_v19 = vadd.f32 %v2524_v43, %v771_v17 }
 0x15f   : > { %v773_v21 = vpop.f32.mrf.mxu0  ;;  %v998_v23 = vpop.f32.mrf.mxu1 }
 0x160   : > { %v2630_v24 = vadd.f32 %v996_v18, %v772_v19 }
 0x161   : > { %v776_v25 = vpop.f32.mrf.mxu0  ;;  %v1001_v26 = vpop.f32.mrf.mxu1 }
 0x162   : > { %v777_v28 = vadd.f32 %v2524_v43, %v776_v25 }
 0x163   : > { %v778_v29 = vpop.f32.mrf.mxu0  ;;  %v1003_v30 = vpop.f32.mrf.mxu1 }
 0x164   : > { %v2633_v31 = vadd.f32 %v1001_v26, %v777_v28 }
 0x165   : > { %v781_v33 = vpop.f32.mrf.mxu0  ;;  %v1006_v35 = vpop.f32.mrf.mxu1 }
 0x166   : > { %v782_v36 = vadd.f32 %v2524_v43, %v781_v33 }
 0x167   : > { %v783_v37 = vpop.f32.mrf.mxu0  ;;  %v1008_v38 = vpop.f32.mrf.mxu1 }
 0x168   : > { %v2636_v39 = vadd.f32 %v1006_v35, %v782_v36 }
 0x169   : > { %v786_v41 = vpop.f32.mrf.mxu0  ;;  %v1011_v2 = vpop.f32.mrf.mxu1 }
 0x16a   : > { %v787_v44 = vadd.f32 %v2524_v43, %v786_v41 }
 0x16b   : > { %v788_v45 = vpop.f32.mrf.mxu0  ;;  %v1013_v46 = vpop.f32.mrf.mxu1 }
 0x16c   : > { %v2639_v48 = vadd.f32 %v1011_v2, %v787_v44 }
 0x16d   : > { %v791_v49 = vpop.f32.mrf.mxu0  ;;  %v1016_v51 = vpop.f32.mrf.mxu1 }
 0x16e   : > { %v792_v52 = vadd.f32 %v2524_v43, %v791_v49 }
 0x16f   : > { %v793_v53 = vpop.f32.mrf.mxu0  ;;  %v1018_v56 = vpop.f32.mrf.mxu1 }
 0x170   : > { %v1017_v58 = vadd.f32 %v1016_v51, %v792_v52 }
 0x171   : > { %v796_v59 = vpop.f32.mrf.mxu0  ;;  %v1021_v60 = vpop.f32.mrf.mxu1 }
 0x172   : > { %v797_v61 = vadd.f32 %v2524_v43, %v796_v59 }
 0x173   : > { %v798_v0 = vpop.f32.mrf.mxu0  ;;  %v1023_v3 = vpop.f32.mrf.mxu1 }
 0x174   : > { %v1022_v4 = vadd.f32 %v1021_v60, %v797_v61 }
 0x175   : > { %v801_v5 = vpop.f32.mrf.mxu0  ;;  %v1026_v6 = vpop.f32.mrf.mxu1 }
 0x176   : > { %v802_v9 = vadd.f32 %v2524_v43, %v801_v5 }
 0x177   : > { %v803_v10 = vpop.f32.mrf.mxu0  ;;  %v1028_v11 = vpop.f32.mrf.mxu1 }
 0x178   : > { %v1027_v13 = vadd.f32 %v1026_v6, %v802_v9 }
 0x179   : > { %v806_v15 = vpop.f32.mrf.mxu0  ;;  %v1031_v17 = vpop.f32.mrf.mxu1 }
 0x17a   : > { %v807_v18 = vadd.f32 %v2524_v43, %v806_v15 }
 0x17b   : > { %v808_v19 = vpop.f32.mrf.mxu0  ;;  %v1033_v21 = vpop.f32.mrf.mxu1 }
 0x17c   : > { %v1032_v23 = vadd.f32 %v1031_v17, %v807_v18 }
 0x17d   : > { %v811_v25 = vpop.f32.mrf.mxu0  ;;  %v1036_v26 = vpop.f32.mrf.mxu1 }
 0x17e   : > { %v812_v28 = vadd.f32 %v2524_v43, %v811_v25 }
 0x17f   : > { %v813_v29 = vpop.f32.mrf.mxu0  ;;  %v1038_v30 = vpop.f32.mrf.mxu1 }
 0x180   : > { %v1037_v33 = vadd.f32 %v1036_v26, %v812_v28 }
 0x181   : > { %v816_v35 = vpop.f32.mrf.mxu0  ;;  %v1041_v36 = vpop.f32.mrf.mxu1 }
 0x182   : > { %v817_v37 = vadd.f32 %v2524_v43, %v816_v35 }
 0x183   : > { %v818_v38 = vpop.f32.mrf.mxu0  ;;  %v1043_v41 = vpop.f32.mrf.mxu1 }
 0x184   : > { %v1042_v2 = vadd.f32 %v1041_v36, %v817_v37 }
 0x185   : > { %v821_v44 = vpop.f32.mrf.mxu0  ;;  %v1046_v45 = vpop.f32.mrf.mxu1 }
 0x186   : > { %v822_v46 = vadd.f32 %v2524_v43, %v821_v44 }
 0x187   : > { %v823_v49 = vpop.f32.mrf.mxu0  ;;  %v1048_v51 = vpop.f32.mrf.mxu1 }
 0x188   : > { %v1047_v52 = vadd.f32 %v1046_v45, %v822_v46 }
 0x189   : > { %v826_v53 = vpop.f32.mrf.mxu0  ;;  %v1051_v56 = vpop.f32.mrf.mxu1 }
 0x18a   : > { %v827_v59 = vadd.f32 %v2524_v43, %v826_v53 }
 0x18b   : > { %v828_v60 = vpop.f32.mrf.mxu0  ;;  %v1053_v61 = vpop.f32.mrf.mxu1 }
 0x18c   : > { %v1052_v0 = vadd.f32 %v1051_v56, %v827_v59 }
 0x18d   : > { %v1121_v3 = vpop.f32.mrf.mxu0  ;;  %v1241_v5 = vpop.f32.mrf.mxu1 }
 0x18e   : > { %v2650_v6 = vadd.f32 %v1121_v3, %v2535_v55  ;;  %v2652_v9 = vadd.f32 %v1241_v5, %v1017_v58 }
 0x18f   : > { %v1123_v10 = vpop.f32.mrf.mxu0  ;;  %v1243_v11 = vpop.f32.mrf.mxu1 }
 0x191   : > { %v1126_v15 = vpop.f32.mrf.mxu0  ;;  %v1246_v17 = vpop.f32.mrf.mxu1 }
 0x192   : > { %v1127_v18 = vadd.f32 %v1126_v15, %v2544_v1  ;;  %v2655_v19 = vadd.f32 %v1246_v17, %v1022_v4 }
 0x193   : > { %v1128_v21 = vpop.f32.mrf.mxu0  ;;  %v1248_v43 = vpop.f32.mrf.mxu1 }
 0x195   : > { %v1131_v25 = vpop.f32.mrf.mxu0  ;;  %v1251_v26 = vpop.f32.mrf.mxu1 }
 0x196   : > { %v2658_v28 = vadd.f32 %v1131_v25, %v2553_v12  ;;  %v2660_v29 = vadd.f32 %v1251_v26, %v1027_v13 }
 0x197   : > { %v1133_v55 = vpop.f32.mrf.mxu0  ;;  %v1253_v58 = vpop.f32.mrf.mxu1 }
 0x199   : > { %v1136_v30 = vpop.f32.mrf.mxu0  ;;  %v1256_v35 = vpop.f32.mrf.mxu1 }
 0x19a   : > { %v1137_v36 = vadd.f32 %v1136_v30, %v2562_v22  ;;  %v2663_v37 = vadd.f32 %v1256_v35, %v1032_v23 }
 0x19b   : > { %v1138_v1 = vpop.f32.mrf.mxu0  ;;  %v1258_v4 = vpop.f32.mrf.mxu1 }
 0x19d   : > { %v1141_v38 = vpop.f32.mrf.mxu0  ;;  %v1261_v41 = vpop.f32.mrf.mxu1 }
 0x19e   : > { %v2666_v44 = vadd.f32 %v1141_v38, %v2571_v32  ;;  %v2668_v45 = vadd.f32 %v1261_v41, %v1037_v33 }
 0x19f   : > { %v1143_v12 = vpop.f32.mrf.mxu0  ;;  %v1263_v13 = vpop.f32.mrf.mxu1 }
 0x1a1   : > { %v1146_v46 = vpop.f32.mrf.mxu0  ;;  %v1266_v49 = vpop.f32.mrf.mxu1 }
 0x1a2   : > { %v1147_v51 = vadd.f32 %v1146_v46, %v2580_v42  ;;  %v2671_v53 = vadd.f32 %v1266_v49, %v1042_v2 }
 0x1a3   : > { %v1148_v22 = vpop.f32.mrf.mxu0  ;;  %v1268_v23 = vpop.f32.mrf.mxu1 }
 0x1a5   : > { %v1151_v56 = vpop.f32.mrf.mxu0  ;;  %v1271_v59 = vpop.f32.mrf.mxu1 }
 0x1a6   : > { %v2674_v60 = vadd.f32 %v1151_v56, %v2587_v50  ;;  %v2676_v61 = vadd.f32 %v1271_v59, %v1047_v52 }
 0x1a7   : > { %v1153_v32 = vpop.f32.mrf.mxu0  ;;  %v1273_v33 = vpop.f32.mrf.mxu1 }
 0x1a9   : > { %v1156_v3 = vpop.f32.mrf.mxu0  ;;  %v1276_v5 = vpop.f32.mrf.mxu1 }
 0x1aa   : > { %v2679_v10 = vadd.f32 %v1156_v3, %v2591_v57  ;;  %v2681_v11 = vadd.f32 %v1276_v5, %v1052_v0 }
 0x1ab   : > { %v1158_v42 = vpop.f32.mrf.mxu0  ;;  %v1278_v2 = vpop.f32.mrf.mxu1 }
 0x1ad   : > { %v1161_v15 = vpop.f32.mrf.mxu0  ;;  %v1716_v17 = vpop.f32.mrf.mxu1 }
 0x1ae   : > { %v1352_v0 = vadd.f32 %v1716_v17, %v1127_v18  ;;  %v1162_v49 = vadd.f32 %v1161_v15, %v2594_v63 }
 0x1af   : > { %v1163_v21 = vpop.f32.mrf.mxu0  ;;  %v1346_v43 = vpop.f32.mrf.mxu1 }
 0x1b0   : > { %v1347_v12 = vadd.f32 %v1346_v43, %v2650_v6  ;;  %v1506_v32 = vmax.f32 %v1352_v0, 0.0 }
 0x1b1   : > { %v1166_v25 = vpop.f32.mrf.mxu0  ;;  %v1719_v50 = vpop.f32.mrf.mxu1 }
 0x1b2   : > { %v1167_v41 = vadd.f32 %v1166_v25, %v2597_v7  ;;  %v1362_v23 = vadd.f32 %v1719_v50, %v1137_v36  ;;  %v1505_v42 = vmax.f32 %v1347_v12, 0.0 }
 0x1b3   : > { %v1168_v26 = vpop.f32.mrf.mxu0  ;;  %v1356_v52 = vpop.f32.mrf.mxu1 }
 0x1b4   : > { %v1357_v18 = vadd.f32 %v1356_v52, %v2658_v28  ;;  %v1508_v15 = vmax.f32 %v1362_v23, 0.0 }
 0x1b5   : > { %v1171_v55 = vpop.f32.mrf.mxu0  ;;  %v1722_v58 = vpop.f32.mrf.mxu1 }
 0x1b6   : > { %v1172_v6 = vadd.f32 %v1171_v55, %v2600_v14  ;;  %v1372_v36 = vadd.f32 %v1722_v58, %v1147_v51 }
 0x1b7   : > { %v1173_v30 = vpop.f32.mrf.mxu0  ;;  %v1366_v35 = vpop.f32.mrf.mxu1 }
 0x1b8   : > { %v1367_v28 = vadd.f32 %v1366_v35, %v2666_v44  ;;  %v1510_v12 = vmax.f32 %v1372_v36, 0.0 }
 0x1b9   : > { %v1176_v1 = vpop.f32.mrf.mxu0  ;;  %v1725_v4 = vpop.f32.mrf.mxu1 }
 0x1ba   : > { %v1177_v33 = vadd.f32 %v1176_v1, %v2603_v20  ;;  %v1507_v1 = vmax.f32 %v1357_v18, 0.0  ;;  %v1382_v23 = vadd.f32 %v1725_v4, %v2679_v10 }
 0x1bb   : > { %v1178_v57 = vpop.f32.mrf.mxu0  ;;  %v1376_v38 = vpop.f32.mrf.mxu1 }
 0x1bc   : > { %v1377_v44 = vadd.f32 %v1376_v38, %v2674_v60  ;;  %v1512_v4 = vmax.f32 %v1382_v23, 0.0 }
 0x1bd   : > { %v1181_v13 = vpop.f32.mrf.mxu0  ;;  %v1728_v46 = vpop.f32.mrf.mxu1 }
 0x1be   : > { %v1392_v22 = vadd.f32 %v1728_v46, %v1167_v41  ;;  %v1182_v14 = vadd.f32 %v1181_v13, %v2606_v27  ;;  %v1511_v60 = vmax.f32 %v1377_v44, 0.0 }
 0x1bf   : > { %v1183_v56 = vpop.f32.mrf.mxu0  ;;  %v1386_v59 = vpop.f32.mrf.mxu1 }
 0x1c0   : > { %v1514_v3 = vmax.f32 %v1392_v22, 0.0  ;;  %v1387_v5 = vadd.f32 %v1386_v59, %v1162_v49  ;;  %v1509_v22 = vmax.f32 %v1367_v28, 0.0 }
 0x1c1   : > { %v1186_v2 = vpop.f32.mrf.mxu0  ;;  %v1731_v7 = vpop.f32.mrf.mxu1 }
 0x1c2   : > { %v2689_v17 = vmax.f32 %v1506_v32, %v1514_v3  ;;  %v1513_v21 = vmax.f32 %v1387_v5, 0.0  ;;  %v1402_v63 = vadd.f32 %v1731_v7, %v1177_v33  ;;  %v1187_v20 = vadd.f32 %v1186_v2, %v2609_v34 }
 0x1c3   : > { %v1188_v43 = vpop.f32.mrf.mxu0  ;;  %v1396_v25 = vpop.f32.mrf.mxu1 }
 0x1c4   : > { %v2691_v50 = vmax.f32 %v1505_v42, %v1513_v21  ;;  %v1516_v26 = vmax.f32 %v1402_v63, 0.0  ;;  %v1397_v30 = vadd.f32 %v1396_v25, %v1172_v6 }
 0x1c5   : > { %v1191_v52 = vpop.f32.mrf.mxu0  ;;  %v1734_v57 = vpop.f32.mrf.mxu1 }
 0x1c6   : > { %v2696_v55 = vmax.f32 %v1508_v15, %v1516_v26  ;;  %v1515_v0 = vmax.f32 %v1397_v30, 0.0  ;;  %v1412_v41 = vadd.f32 %v1734_v57, %v1187_v20  ;;  %v1192_v27 = vadd.f32 %v1191_v52, %v2612_v40 }
 0x1c7   : > { %v1193_v51 = vpop.f32.mrf.mxu0  ;;  %v1406_v58 = vpop.f32.mrf.mxu1 }
 0x1c8   : > { %v2698_v46 = vmax.f32 %v1507_v1, %v1515_v0  ;;  %v1518_v49 = vmax.f32 %v1412_v41, 0.0  ;;  %v1407_v34 = vadd.f32 %v1406_v58, %v1182_v14 }
 0x1c9   : > { %v1196_v35 = vpop.f32.mrf.mxu0  ;;  %v1737_v56 = vpop.f32.mrf.mxu1 }
 0x1ca   : > { %v2703_v13 = vmax.f32 %v1510_v12, %v1518_v49  ;;  %v1517_v59 = vmax.f32 %v1407_v34, 0.0  ;;  %v1197_v32 = vadd.f32 %v1196_v35, %v2615_v47 }
 0x1cb   : > { %v1198_v33 = vpop.f32.mrf.mxu0  ;;  %v1416_v3 = vpop.f32.mrf.mxu1 }
 0x1cc   : > { %v2706_v5 = vmax.f32 %v1509_v22, %v1517_v59  ;;  %v1422_v42 = vadd.f32 %v1737_v56, %v1197_v32  ;;  %v1417_v18 = vadd.f32 %v1416_v3, %v1192_v27 }
 0x1cd   : > { %v1201_v2 = vpop.f32.mrf.mxu0  ;;  %v1740_v10 = vpop.f32.mrf.mxu1 }
 0x1ce   : > { %v1520_v38 = vmax.f32 %v1422_v42, 0.0  ;;  %v1519_v7 = vmax.f32 %v1417_v18, 0.0  ;;  %v1202_v28 = vadd.f32 %v1201_v2, %v2618_v54 }
 0x1cf   : > { %v1203_v6 = vpop.f32.mrf.mxu0  ;;  %v1426_v40 = vpop.f32.mrf.mxu1 }
 0x1d0   : > { %v2708_v21 = vmax.f32 %v1512_v4, %v1520_v38  ;;  %v2710_v63 = vmax.f32 %v1511_v60, %v1519_v7  ;;  %v1427_v51 = vadd.f32 %v1426_v40, %v1202_v28 }
 0x1d1   : > { %v1206_v47 = vpop.f32.mrf.mxu0  ;;  %v1743_v15 = vpop.f32.mrf.mxu1 }
 0x1d2   : > { %v1207_v1 = vadd.f32 %v1206_v47, %v2621_v62  ;;  %v1521_v56 = vmax.f32 %v1427_v51, 0.0 }
 0x1d3   : > { %v1208_v36 = vpop.f32.mrf.mxu0  ;;  %v1436_v43 = vpop.f32.mrf.mxu1 }
 0x1d4   : > { %v1432_v41 = vadd.f32 %v1740_v10, %v1207_v1 }
 0x1d5   : > { %v1211_v25 = vpop.f32.mrf.mxu0  ;;  %v1746_v20 = vpop.f32.mrf.mxu1 }
 0x1d6   : > { %v1212_v58 = vadd.f32 %v1211_v25, %v2624_v8  ;;  %v1522_v44 = vmax.f32 %v1432_v41, 0.0 }
 0x1d7   : > { %v1213_v26 = vpop.f32.mrf.mxu0  ;;  %v1446_v30 = vpop.f32.mrf.mxu1 }
 0x1d8   : > { %v1437_v27 = vadd.f32 %v1436_v43, %v1212_v58 }
 0x1d9   : > { %v1216_v52 = vpop.f32.mrf.mxu0  ;;  %v2716_v57 = vpop.f32.mrf.mxu1 }
 0x1da   : > { %v1217_v12 = vadd.f32 %v1216_v52, %v2627_v16  ;;  %v1523_v4 = vmax.f32 %v1437_v27, 0.0 }
 0x1db   : > { %v1218_v14 = vpop.f32.mrf.mxu0  ;;  %v1456_v0 = vpop.f32.mrf.mxu1 }
 0x1dc   : > { %v1442_v59 = vadd.f32 %v1743_v15, %v1217_v12 }
 0x1dd   : > { %v1221_v49 = vpop.f32.mrf.mxu0  ;;  %v1752_v34 = vpop.f32.mrf.mxu1 }
 0x1de   : > { %v1472_v22 = vadd.f32 %v1752_v34, %v2655_v19  ;;  %v1222_v8 = vadd.f32 %v1221_v49, %v2630_v24  ;;  %v1524_v60 = vmax.f32 %v1442_v59, 0.0 }
 0x1df   : > { %v1223_v62 = vpop.f32.mrf.mxu0  ;;  %v1466_v23 = vpop.f32.mrf.mxu1 }
 0x1e0   : > { %v1530_v54 = vmax.f32 %v1472_v22, 0.0  ;;  %v1467_v35 = vadd.f32 %v1466_v23, %v2652_v9  ;;  %v1447_v40 = vadd.f32 %v1446_v30, %v1222_v8 }
 0x1e1   : > { %v1226_v32 = vpop.f32.mrf.mxu0  ;;  %v1755_v33 = vpop.f32.mrf.mxu1 }
 0x1e2   : > { %v1546_v3 = vmax.f32 %v1522_v44, %v1530_v54  ;;  %v1529_v16 = vmax.f32 %v1467_v35, 0.0  ;;  %v1227_v42 = vadd.f32 %v1226_v32, %v2633_v31  ;;  %v1482_v9 = vadd.f32 %v1755_v33, %v2663_v37 }
 0x1e3   : > { %v1228_v19 = vpop.f32.mrf.mxu0  ;;  %v1476_v18 = vpop.f32.mrf.mxu1 }
 0x1e4   : > { %v1554_v2 = vmax.f32 %v2689_v17, %v1546_v3  ;;  %v1545_v10 = vmax.f32 %v1521_v56, %v1529_v16  ;;  %v1477_v24 = vadd.f32 %v1476_v18, %v2660_v29  ;;  %v1452_v31 = vadd.f32 %v1746_v20, %v1227_v42 }
 0x1e5   : > { %v1532_v38 = vmax.f32 %v1482_v9, 0.0  ;;  %v1231_v7 = vpop.f32.mrf.mxu0  ;;  %v1758_v6 = vpop.f32.mrf.mxu1 }
 0x1e6   : > { %1563 = vst.msk [vmem:[%s2727_s26 + $0x8] sm:$0xff] %vm1561_vm1, %v1554_v2  ;;  %v1553_v47 = vmax.f32 %v2691_v50, %v1545_v10  ;;  %v1531_v37 = vmax.f32 %v1477_v24, 0.0  ;;  %v1232_v15 = vadd.f32 %v1231_v7, %v2636_v39  ;;  %v1492_v17 = vadd.f32 %v1758_v6, %v2671_v53 }
 0x1e7   : > { %v1548_v36 = vmax.f32 %v1524_v60, %v1532_v38  ;;  %v1233_v29 = vpop.f32.mrf.mxu0  ;;  %v1486_v43 = vpop.f32.mrf.mxu1  ;;  %v1526_v26 = vmax.f32 %v1452_v31, 0.0  ;;  %v1525_v39 = vmax.f32 %v1447_v40, 0.0 }
 0x1e8   : > { %1562 = vst.msk [vmem:[%s2727_s26] sm:$0xff] %vm1561_vm1, %v1553_v47  ;;  %v1547_v25 = vmax.f32 %v1523_v4, %v1531_v37  ;;  %v1487_v20 = vadd.f32 %v1486_v43, %v2668_v45  ;;  %v1457_v1 = vadd.f32 %v1456_v0, %v1232_v15  ;;  %v1534_v50 = vmax.f32 %v1492_v17, 0.0 }
 0x1e9   : > { %v1556_v30 = vmax.f32 %v2696_v55, %v1548_v36  ;;  %v1236_v28 = vpop.f32.mrf.mxu0  ;;  %v1761_v52 = vpop.f32.mrf.mxu1 }
 0x1ea   : > { %v1555_v14 = vmax.f32 %v2698_v46, %v1547_v25  ;;  %v1533_v53 = vmax.f32 %v1487_v20, 0.0  ;;  %v1237_v41 = vadd.f32 %v1236_v28, %v2639_v48  ;;  %v1550_v51 = vmax.f32 %v1526_v26, %v1534_v50 }
 0x1eb   : > { %1565 = vst.msk [vmem:[%s2727_s26 + $0x18] sm:$0xff] %vm1561_vm1, %v1556_v30  ;;  %v1502_v45 = vadd.f32 %v1761_v52, %v2681_v11  ;;  %v1238_v58 = vpop.f32.mrf.mxu0  ;;  %v1496_v12 = vpop.f32.mrf.mxu1  ;;  %v1527_v49 = vmax.f32 %v1457_v1, 0.0 }
 0x1ec   : > { %1564 = vst.msk [vmem:[%s2727_s26 + $0x10] sm:$0xff] %vm1561_vm1, %v1555_v14  ;;  %v1549_v55 = vmax.f32 %v1525_v39, %v1533_v53  ;;  %v1462_v0 = vadd.f32 %v2716_v57, %v1237_v41  ;;  %v1497_v46 = vadd.f32 %v1496_v12, %v2676_v61  ;;  %v1558_v48 = vmax.f32 %v2703_v13, %v1550_v51 }
 0x1ed   : > { %v1536_v62 = vmax.f32 %v1502_v45, 0.0 }
 0x1ee   : > { %v1557_v34 = vmax.f32 %v2706_v5, %v1549_v55  ;;  %v1528_v22 = vmax.f32 %v1462_v0, 0.0  ;;  %v1535_v23 = vmax.f32 %v1497_v46, 0.0  ;;  %1567 = vst.msk [vmem:[%s2727_s26 + $0x28] sm:$0xff] %vm1561_vm1, %v1558_v48 }
 0x1f0   : > { %1566 = vst.msk [vmem:[%s2727_s26 + $0x20] sm:$0xff] %vm1561_vm1, %v1557_v34  ;;  %v1552_v11 = vmax.f32 %v1528_v22, %v1536_v62  ;;  %v1551_v44 = vmax.f32 %v1527_v49, %v1535_v23 }
 0x1f2   : > { %v1560_v54 = vmax.f32 %v2708_v21, %v1552_v11  ;;  %v1559_v57 = vmax.f32 %v2710_v63, %v1551_v44 }
 0x1f4   : > { %1569 = vst.msk [vmem:[%s2727_s26 + $0x38] sm:$0xff] %vm1561_vm1, %v1560_v54  ;;  %1568 = vst.msk [vmem:[%s2727_s26 + $0x30] sm:$0xff] %vm1561_vm1, %v1559_v57 }
 0x1f5 PF: > { %s13_s12 = sadd.s32 1, %s1842_s12  }
 0x1f6   : > { %p10_p5 = scmp.ge.s32.totalorder %s13_s12, 4  }
 0x1f8   :  { %12 = sbr.rel (!%p10_p5) target bundleno = 1 (0x1), region = 62 }

// kernel: _flnet_forward.5
= control target key start
LH: loop header
LB: loop body
LE: loop exit
PB: predicated region body
PF: predicated region fallthrough
CT: control target
= control target key end

     0   :  { %s11520_s0 = inlined_call_operand.vmem [shape: f32[2,4096], index: 0, kind: input, shape index: {}]   ;;  %s11521_s1 = inlined_call_operand.vmem [shape: f32[4096,512], index: 1, kind: input, shape index: {}]   ;;  %s11522_s2 = inlined_call_operand.vmem [shape: f32[1,512], index: 2, kind: input, shape index: {}]   ;;  %s11523_s3 = inlined_call_operand.vmem [shape: f32[512,128], index: 3, kind: input, shape index: {}]   ;;  %s11524_s4 = inlined_call_operand.vmem [shape: f32[1,128], index: 4, kind: input, shape index: {}]   ;;  %s11525_s5 = inlined_call_operand.hbm [shape: f32[2,128], index: 5, kind: output, shape index: {}]  }
   0x1   :  { %v90_v0 = vld [vmem:[%s11521_s1 + $0x1e8] sm:$0xff]  ;;  %v89_v2 = vld [vmem:[%s11521_s1 + $0x1e0] sm:$0xff] }
   0x2   :  { %v218_v1 = vld [vmem:[%s11521_s1 + $0x5e8] sm:$0xff]  ;;  %2275 = vmatprep.subr.mxu0 %v90_v0  ;;  %v217_v3 = vld [vmem:[%s11521_s1 + $0x5e0] sm:$0xff] }
   0x3   :  { %2346 = vmatprep.subr.mxu1 %v218_v1  ;;  %v86_v4 = vld [vmem:[%s11521_s1 + $0x1c8] sm:$0xff]  ;;  %2276 = vmatpush1.msra.mxu0 %v89_v2  ;;  %v85_v6 = vld [vmem:[%s11521_s1 + $0x1c0] sm:$0xff] }
   0x4   :  { %v214_v5 = vld [vmem:[%s11521_s1 + $0x5c8] sm:$0xff]  ;;  %2347 = vmatpush1.msra.mxu1 %v217_v3  ;;  %v213_v7 = vld [vmem:[%s11521_s1 + $0x5c0] sm:$0xff]  ;;  %2277 = vmatprep.subr.mxu0 %v86_v4 }
   0x5   :  { %v82_v8 = vld [vmem:[%s11521_s1 + $0x1a8] sm:$0xff]  ;;  %2348 = vmatprep.subr.mxu1 %v214_v5  ;;  %v81_v10 = vld [vmem:[%s11521_s1 + $0x1a0] sm:$0xff]  ;;  %2278 = vmatpush1.msra.mxu0 %v85_v6 }
   0x6   :  { %v210_v9 = vld [vmem:[%s11521_s1 + $0x5a8] sm:$0xff]  ;;  %v209_v11 = vld [vmem:[%s11521_s1 + $0x5a0] sm:$0xff]  ;;  %2349 = vmatpush1.msra.mxu1 %v213_v7  ;;  %2279 = vmatprep.subr.mxu0 %v82_v8 }
   0x7   :  { %v78_v12 = vld [vmem:[%s11521_s1 + $0x188] sm:$0xff]  ;;  %2350 = vmatprep.subr.mxu1 %v210_v9  ;;  %v77_v14 = vld [vmem:[%s11521_s1 + $0x180] sm:$0xff]  ;;  %2280 = vmatpush1.msra.mxu0 %v81_v10 }
   0x8   :  { %v206_v13 = vld [vmem:[%s11521_s1 + $0x588] sm:$0xff]  ;;  %v205_v15 = vld [vmem:[%s11521_s1 + $0x580] sm:$0xff]  ;;  %2351 = vmatpush1.msra.mxu1 %v209_v11  ;;  %2281 = vmatprep.subr.mxu0 %v78_v12 }
   0x9   :  { %v74_v16 = vld [vmem:[%s11521_s1 + $0x168] sm:$0xff]  ;;  %2352 = vmatprep.subr.mxu1 %v206_v13  ;;  %v73_v18 = vld [vmem:[%s11521_s1 + $0x160] sm:$0xff]  ;;  %2282 = vmatpush1.msra.mxu0 %v77_v14 }
   0xa   :  { %v202_v17 = vld [vmem:[%s11521_s1 + $0x568] sm:$0xff]  ;;  %v201_v19 = vld [vmem:[%s11521_s1 + $0x560] sm:$0xff]  ;;  %2353 = vmatpush1.msra.mxu1 %v205_v15  ;;  %2283 = vmatprep.subr.mxu0 %v74_v16 }
   0xb   :  { %v70_v20 = vld [vmem:[%s11521_s1 + $0x148] sm:$0xff]  ;;  %2354 = vmatprep.subr.mxu1 %v202_v17  ;;  %v69_v22 = vld [vmem:[%s11521_s1 + $0x140] sm:$0xff]  ;;  %2284 = vmatpush1.msra.mxu0 %v73_v18 }
   0xc   :  { %v198_v21 = vld [vmem:[%s11521_s1 + $0x548] sm:$0xff]  ;;  %v197_v23 = vld [vmem:[%s11521_s1 + $0x540] sm:$0xff]  ;;  %2355 = vmatpush1.msra.mxu1 %v201_v19  ;;  %2285 = vmatprep.subr.mxu0 %v70_v20 }
   0xd   :  { %v66_v24 = vld [vmem:[%s11521_s1 + $0x128] sm:$0xff]  ;;  %2356 = vmatprep.subr.mxu1 %v198_v21  ;;  %v65_v26 = vld [vmem:[%s11521_s1 + $0x120] sm:$0xff]  ;;  %2286 = vmatpush1.msra.mxu0 %v69_v22 }
   0xe   :  { %v194_v25 = vld [vmem:[%s11521_s1 + $0x528] sm:$0xff]  ;;  %v193_v27 = vld [vmem:[%s11521_s1 + $0x520] sm:$0xff]  ;;  %2357 = vmatpush1.msra.mxu1 %v197_v23  ;;  %2287 = vmatprep.subr.mxu0 %v66_v24 }
   0xf   :  { %v62_v28 = vld [vmem:[%s11521_s1 + $0x108] sm:$0xff]  ;;  %2358 = vmatprep.subr.mxu1 %v194_v25  ;;  %v61_v30 = vld [vmem:[%s11521_s1 + $0x100] sm:$0xff]  ;;  %2288 = vmatpush1.msra.mxu0 %v65_v26 }
  0x10   :  { %v190_v29 = vld [vmem:[%s11521_s1 + $0x508] sm:$0xff]  ;;  %v189_v31 = vld [vmem:[%s11521_s1 + $0x500] sm:$0xff]  ;;  %2359 = vmatpush1.msra.mxu1 %v193_v27  ;;  %2289 = vmatprep.subr.mxu0 %v62_v28 }
  0x11   :  { %v58_v32 = vld [vmem:[%s11521_s1 + $0xe8] sm:$0xff]  ;;  %2360 = vmatprep.subr.mxu1 %v190_v29  ;;  %v57_v34 = vld [vmem:[%s11521_s1 + $0xe0] sm:$0xff]  ;;  %2290 = vmatpush1.msra.mxu0 %v61_v30  ;;  %v2079_v30 = vlaneseq }
  0x12   :  { %v186_v33 = vld [vmem:[%s11521_s1 + $0x4e8] sm:$0xff]  ;;  %v185_v35 = vld [vmem:[%s11521_s1 + $0x4e0] sm:$0xff]  ;;  %2361 = vmatpush1.msra.mxu1 %v189_v31  ;;  %2291 = vmatprep.subr.mxu0 %v58_v32  ;;  %v4880_v31 = vmov 1983009808  }
  0x13   :  { %v54_v36 = vld [vmem:[%s11521_s1 + $0xc8] sm:$0xff]  ;;  %2362 = vmatprep.subr.mxu1 %v186_v33  ;;  %v53_v38 = vld [vmem:[%s11521_s1 + $0xc0] sm:$0xff]  ;;  %2292 = vmatpush1.msra.mxu0 %v57_v34  ;;  %v2109_v32 = vunpack.c.l.s4 %v4880_v31 }
  0x14   :  { %v182_v37 = vld [vmem:[%s11521_s1 + $0x4c8] sm:$0xff]  ;;  %v181_v39 = vld [vmem:[%s11521_s1 + $0x4c0] sm:$0xff]  ;;  %2363 = vmatpush1.msra.mxu1 %v185_v35  ;;  %2293 = vmatprep.subr.mxu0 %v54_v36 }
  0x15   :  { %v50_v40 = vld [vmem:[%s11521_s1 + $0xa8] sm:$0xff]  ;;  %2364 = vmatprep.subr.mxu1 %v182_v37  ;;  %v49_v42 = vld [vmem:[%s11521_s1 + $0xa0] sm:$0xff]  ;;  %2294 = vmatpush1.msra.mxu0 %v53_v38 }
  0x16   :  { %v178_v41 = vld [vmem:[%s11521_s1 + $0x4a8] sm:$0xff]  ;;  %v177_v43 = vld [vmem:[%s11521_s1 + $0x4a0] sm:$0xff]  ;;  %2365 = vmatpush1.msra.mxu1 %v181_v39  ;;  %2295 = vmatprep.subr.mxu0 %v50_v40 }
  0x17   :  { %v46_v44 = vld [vmem:[%s11521_s1 + $0x88] sm:$0xff]  ;;  %2366 = vmatprep.subr.mxu1 %v178_v41  ;;  %v45_v46 = vld [vmem:[%s11521_s1 + $0x80] sm:$0xff]  ;;  %2296 = vmatpush1.msra.mxu0 %v49_v42  ;;  %v5218_v41 = vshrl.u32 %v2079_v30, 7  ;;  %v2110_v42 = vunpack.c.0.s8 %v2109_v32 }
  0x18   :  { %v174_v45 = vld [vmem:[%s11521_s1 + $0x488] sm:$0xff]  ;;  %v173_v47 = vld [vmem:[%s11521_s1 + $0x480] sm:$0xff]  ;;  %2367 = vmatpush1.msra.mxu1 %v177_v43  ;;  %2297 = vmatprep.subr.mxu0 %v46_v44 }
  0x19   :  { %v42_v48 = vld [vmem:[%s11521_s1 + $0x68] sm:$0xff]  ;;  %2368 = vmatprep.subr.mxu1 %v174_v45  ;;  %v41_v50 = vld [vmem:[%s11521_s1 + $0x60] sm:$0xff]  ;;  %2298 = vmatpush1.msra.mxu0 %v45_v46 }
  0x1a   :  { %v170_v49 = vld [vmem:[%s11521_s1 + $0x468] sm:$0xff]  ;;  %v169_v51 = vld [vmem:[%s11521_s1 + $0x460] sm:$0xff]  ;;  %2369 = vmatpush1.msra.mxu1 %v173_v47  ;;  %2299 = vmatprep.subr.mxu0 %v42_v48 }
  0x1b   :  { %v38_v52 = vld [vmem:[%s11521_s1 + $0x48] sm:$0xff]  ;;  %2370 = vmatprep.subr.mxu1 %v170_v49  ;;  %v37_v54 = vld [vmem:[%s11521_s1 + $0x40] sm:$0xff]  ;;  %2300 = vmatpush1.msra.mxu0 %v41_v50 }
  0x1c   :  { %v166_v53 = vld [vmem:[%s11521_s1 + $0x448] sm:$0xff]  ;;  %v165_v55 = vld [vmem:[%s11521_s1 + $0x440] sm:$0xff]  ;;  %2371 = vmatpush1.msra.mxu1 %v169_v51  ;;  %2301 = vmatprep.subr.mxu0 %v38_v52  ;;  %v5248_v52 = vsub.s32 %v2110_v42, %v5218_v41 }
  0x1d   :  { %v34_v56 = vld [vmem:[%s11521_s1 + $0x28] sm:$0xff]  ;;  %2372 = vmatprep.subr.mxu1 %v166_v53  ;;  %v33_v58 = vld [vmem:[%s11521_s1 + $0x20] sm:$0xff]  ;;  %2302 = vmatpush1.msra.mxu0 %v37_v54 }
  0x1e   :  { %v162_v57 = vld [vmem:[%s11521_s1 + $0x428] sm:$0xff]  ;;  %v161_v59 = vld [vmem:[%s11521_s1 + $0x420] sm:$0xff]  ;;  %2373 = vmatpush1.msra.mxu1 %v165_v55  ;;  %2303 = vmatprep.subr.mxu0 %v34_v56 }
  0x1f   :  { %v30_v60 = vld [vmem:[%s11521_s1 + $0x8] sm:$0xff]  ;;  %2374 = vmatprep.subr.mxu1 %v162_v57  ;;  %v29_v62 = vld [vmem:[%s11521_s1] sm:$0xff]  ;;  %2304 = vmatpush1.msra.mxu0 %v33_v58 }
  0x20   :  { %v158_v61 = vld [vmem:[%s11521_s1 + $0x408] sm:$0xff]  ;;  %v157_v63 = vld [vmem:[%s11521_s1 + $0x400] sm:$0xff]  ;;  %2375 = vmatpush1.msra.mxu1 %v161_v59  ;;  %2305 = vmatprep.subr.mxu0 %v30_v60 }
  0x21   :  { %v154_v0 = vld [vmem:[%s11521_s1 + $0x3e8] sm:$0xff]  ;;  %2376 = vmatprep.subr.mxu1 %v158_v61  ;;  %v153_v2 = vld [vmem:[%s11521_s1 + $0x3e0] sm:$0xff]  ;;  %2306 = vmatpush1.msra.mxu0 %v29_v62 }
  0x22   :  { %v282_v1 = vld [vmem:[%s11521_s1 + $0x7e8] sm:$0xff]  ;;  %v281_v3 = vld [vmem:[%s11521_s1 + $0x7e0] sm:$0xff]  ;;  %2377 = vmatpush1.msra.mxu1 %v157_v63  ;;  %2307 = vmatprep.subr.mxu0 %v154_v0 }
  0x23   :  { %v150_v4 = vld [vmem:[%s11521_s1 + $0x3c8] sm:$0xff]  ;;  %2378 = vmatprep.subr.mxu1 %v282_v1  ;;  %v149_v6 = vld [vmem:[%s11521_s1 + $0x3c0] sm:$0xff]  ;;  %2308 = vmatpush2.msra.mxu0 %v153_v2 }
  0x24   :  { %v278_v5 = vld [vmem:[%s11521_s1 + $0x7c8] sm:$0xff]  ;;  %v277_v7 = vld [vmem:[%s11521_s1 + $0x7c0] sm:$0xff]  ;;  %2379 = vmatpush2.msra.mxu1 %v281_v3  ;;  %2309 = vmatprep.subr.mxu0 %v150_v4 }
  0x25   :  { %v146_v8 = vld [vmem:[%s11521_s1 + $0x3a8] sm:$0xff]  ;;  %2380 = vmatprep.subr.mxu1 %v278_v5  ;;  %v145_v10 = vld [vmem:[%s11521_s1 + $0x3a0] sm:$0xff]  ;;  %2310 = vmatpush2.msra.mxu0 %v149_v6 }
  0x26   :  { %v274_v9 = vld [vmem:[%s11521_s1 + $0x7a8] sm:$0xff]  ;;  %v273_v11 = vld [vmem:[%s11521_s1 + $0x7a0] sm:$0xff]  ;;  %2381 = vmatpush2.msra.mxu1 %v277_v7  ;;  %2311 = vmatprep.subr.mxu0 %v146_v8 }
  0x27   :  { %v142_v12 = vld [vmem:[%s11521_s1 + $0x388] sm:$0xff]  ;;  %2382 = vmatprep.subr.mxu1 %v274_v9  ;;  %v141_v14 = vld [vmem:[%s11521_s1 + $0x380] sm:$0xff]  ;;  %2312 = vmatpush2.msra.mxu0 %v145_v10 }
  0x28   :  { %v270_v13 = vld [vmem:[%s11521_s1 + $0x788] sm:$0xff]  ;;  %v269_v15 = vld [vmem:[%s11521_s1 + $0x780] sm:$0xff]  ;;  %2383 = vmatpush2.msra.mxu1 %v273_v11  ;;  %2313 = vmatprep.subr.mxu0 %v142_v12 }
  0x29   :  { %v138_v16 = vld [vmem:[%s11521_s1 + $0x368] sm:$0xff]  ;;  %2384 = vmatprep.subr.mxu1 %v270_v13  ;;  %v137_v18 = vld [vmem:[%s11521_s1 + $0x360] sm:$0xff]  ;;  %2314 = vmatpush2.msra.mxu0 %v141_v14 }
  0x2a   :  { %v266_v17 = vld [vmem:[%s11521_s1 + $0x768] sm:$0xff]  ;;  %v265_v19 = vld [vmem:[%s11521_s1 + $0x760] sm:$0xff]  ;;  %2385 = vmatpush2.msra.mxu1 %v269_v15  ;;  %2315 = vmatprep.subr.mxu0 %v138_v16 }
  0x2b   :  { %v134_v20 = vld [vmem:[%s11521_s1 + $0x348] sm:$0xff]  ;;  %2386 = vmatprep.subr.mxu1 %v266_v17  ;;  %v133_v22 = vld [vmem:[%s11521_s1 + $0x340] sm:$0xff]  ;;  %2316 = vmatpush2.msra.mxu0 %v137_v18 }
  0x2c   :  { %v262_v21 = vld [vmem:[%s11521_s1 + $0x748] sm:$0xff]  ;;  %v261_v23 = vld [vmem:[%s11521_s1 + $0x740] sm:$0xff]  ;;  %2387 = vmatpush2.msra.mxu1 %v265_v19  ;;  %2317 = vmatprep.subr.mxu0 %v134_v20 }
  0x2d   :  { %v130_v24 = vld [vmem:[%s11521_s1 + $0x328] sm:$0xff]  ;;  %2388 = vmatprep.subr.mxu1 %v262_v21  ;;  %v129_v26 = vld [vmem:[%s11521_s1 + $0x320] sm:$0xff]  ;;  %2318 = vmatpush2.msra.mxu0 %v133_v22 }
  0x2e   :  { %v258_v25 = vld [vmem:[%s11521_s1 + $0x728] sm:$0xff]  ;;  %v257_v27 = vld [vmem:[%s11521_s1 + $0x720] sm:$0xff]  ;;  %2389 = vmatpush2.msra.mxu1 %v261_v23  ;;  %2319 = vmatprep.subr.mxu0 %v130_v24 }
  0x2f   :  { %v126_v28 = vld [vmem:[%s11521_s1 + $0x308] sm:$0xff]  ;;  %2390 = vmatprep.subr.mxu1 %v258_v25  ;;  %v125_v33 = vld [vmem:[%s11521_s1 + $0x300] sm:$0xff]  ;;  %2320 = vmatpush2.msra.mxu0 %v129_v26 }
  0x30   :  { %v254_v29 = vld [vmem:[%s11521_s1 + $0x708] sm:$0xff]  ;;  %v253_v34 = vld [vmem:[%s11521_s1 + $0x700] sm:$0xff]  ;;  %2391 = vmatpush2.msra.mxu1 %v257_v27  ;;  %2321 = vmatprep.subr.mxu0 %v126_v28 }
  0x31   :  { %v122_v35 = vld [vmem:[%s11521_s1 + $0x2e8] sm:$0xff]  ;;  %2392 = vmatprep.subr.mxu1 %v254_v29  ;;  %v121_v37 = vld [vmem:[%s11521_s1 + $0x2e0] sm:$0xff]  ;;  %2322 = vmatpush2.msra.mxu0 %v125_v33 }
  0x32   :  { %v250_v36 = vld [vmem:[%s11521_s1 + $0x6e8] sm:$0xff]  ;;  %v249_v38 = vld [vmem:[%s11521_s1 + $0x6e0] sm:$0xff]  ;;  %2393 = vmatpush2.msra.mxu1 %v253_v34  ;;  %2323 = vmatprep.subr.mxu0 %v122_v35 }
  0x33   :  { %v118_v39 = vld [vmem:[%s11521_s1 + $0x2c8] sm:$0xff]  ;;  %2394 = vmatprep.subr.mxu1 %v250_v36  ;;  %v117_v43 = vld [vmem:[%s11521_s1 + $0x2c0] sm:$0xff]  ;;  %2324 = vmatpush2.msra.mxu0 %v121_v37 }
  0x34   :  { %v246_v40 = vld [vmem:[%s11521_s1 + $0x6c8] sm:$0xff]  ;;  %v245_v44 = vld [vmem:[%s11521_s1 + $0x6c0] sm:$0xff]  ;;  %2395 = vmatpush2.msra.mxu1 %v249_v38  ;;  %2325 = vmatprep.subr.mxu0 %v118_v39 }
  0x35   :  { %v114_v45 = vld [vmem:[%s11521_s1 + $0x2a8] sm:$0xff]  ;;  %2396 = vmatprep.subr.mxu1 %v246_v40  ;;  %v113_v47 = vld [vmem:[%s11521_s1 + $0x2a0] sm:$0xff]  ;;  %2326 = vmatpush2.msra.mxu0 %v117_v43 }
  0x36   :  { %v242_v46 = vld [vmem:[%s11521_s1 + $0x6a8] sm:$0xff]  ;;  %v241_v48 = vld [vmem:[%s11521_s1 + $0x6a0] sm:$0xff]  ;;  %2397 = vmatpush2.msra.mxu1 %v245_v44  ;;  %2327 = vmatprep.subr.mxu0 %v114_v45 }
  0x37   :  { %v21_v49 = vld [vmem:[%s11520_s0] sm:$0xff]  ;;  %v110_v50 = vld [vmem:[%s11521_s1 + $0x288] sm:$0xff]  ;;  %2398 = vmatprep.subr.mxu1 %v242_v46  ;;  %2328 = vmatpush2.msra.mxu0 %v113_v47 }
  0x38   :  { %v238_v51 = vld [vmem:[%s11521_s1 + $0x688] sm:$0xff]  ;;  %v109_v53 = vld [vmem:[%s11521_s1 + $0x280] sm:$0xff]  ;;  %2399 = vmatpush2.msra.mxu1 %v241_v48  ;;  %v2107_v57 = vcombine.high %v21_v49, %v21_v49  ;;  %2329 = vmatprep.subr.mxu0 %v110_v50  ;;  %v5275_v62 = vrot.slane %v21_v49, %v5248_v52 }
  0x39   :  { %v237_v54 = vld [vmem:[%s11521_s1 + $0x680] sm:$0xff]  ;;  %v106_v55 = vld [vmem:[%s11521_s1 + $0x268] sm:$0xff]  ;;  %2400 = vmatprep.subr.mxu1 %v238_v51  ;;  %2330 = vmatpush2.msra.mxu0 %v109_v53 }
  0x3a   :  { %v234_v56 = vld [vmem:[%s11521_s1 + $0x668] sm:$0xff]  ;;  %v105_v58 = vld [vmem:[%s11521_s1 + $0x260] sm:$0xff]  ;;  %2401 = vmatpush2.msra.mxu1 %v237_v54  ;;  %2331 = vmatprep.subr.mxu0 %v106_v55  ;;  %v5290_v3 = vrot.slane %v2107_v57, %v5248_v52  ;;  %v5306_v8 = vcombine.high %v5275_v62, %v5275_v62 }
  0x3b   :  { %v233_v59 = vld [vmem:[%s11521_s1 + $0x660] sm:$0xff]  ;;  %v102_v60 = vld [vmem:[%s11521_s1 + $0x248] sm:$0xff]  ;;  %2402 = vmatprep.subr.mxu1 %v234_v56  ;;  %2332 = vmatpush2.msra.mxu0 %v105_v58 }
  0x3c   :  { %v230_v61 = vld [vmem:[%s11521_s1 + $0x648] sm:$0xff]  ;;  %v101_v63 = vld [vmem:[%s11521_s1 + $0x240] sm:$0xff]  ;;  %2403 = vmatpush2.msra.mxu1 %v233_v59  ;;  %2333 = vmatprep.subr.mxu0 %v102_v60  ;;  %v5316_v11 = vcombine.high %v5290_v3, %v5290_v3 }
  0x3d   :  { %v229_v0 = vld [vmem:[%s11521_s1 + $0x640] sm:$0xff]  ;;  %v98_v1 = vld [vmem:[%s11521_s1 + $0x228] sm:$0xff]  ;;  %2404 = vmatprep.subr.mxu1 %v230_v61  ;;  %2334 = vmatpush2.msra.mxu0 %v101_v63 }
  0x3e   :  { %v226_v2 = vld [vmem:[%s11521_s1 + $0x628] sm:$0xff]  ;;  %v97_v4 = vld [vmem:[%s11521_s1 + $0x220] sm:$0xff]  ;;  %2405 = vmatpush2.msra.mxu1 %v229_v0  ;;  %2335 = vmatprep.subr.mxu0 %v98_v1 }
  0x3f   :  { %v225_v5 = vld [vmem:[%s11521_s1 + $0x620] sm:$0xff]  ;;  %v94_v6 = vld [vmem:[%s11521_s1 + $0x208] sm:$0xff]  ;;  %2406 = vmatprep.subr.mxu1 %v226_v2  ;;  %2336 = vmatpush2.msra.mxu0 %v97_v4 }
  0x40   :  { %v222_v7 = vld [vmem:[%s11521_s1 + $0x608] sm:$0xff]  ;;  %v93_v9 = vld [vmem:[%s11521_s1 + $0x200] sm:$0xff]  ;;  %2407 = vmatpush2.msra.mxu1 %v225_v5  ;;  %2337 = vmatprep.subr.mxu0 %v94_v6 }
  0x41   :  { %v221_v10 = vld [vmem:[%s11521_s1 + $0x600] sm:$0xff]  ;;  %2408 = vmatprep.subr.mxu1 %v222_v7  ;;  %v346_v12 = vld [vmem:[%s11521_s1 + $0x9e8] sm:$0xff]  ;;  %2338 = vmatpush2.msra.mxu0 %v93_v9 }
  0x42   :  { %2339 = vmatprep.mubr.f32.mxu0 %v5306_v8  ;;  %v474_v13 = vld [vmem:[%s11521_s1 + $0xde8] sm:$0xff]  ;;  %2409 = vmatpush2.msra.mxu1 %v221_v10  ;;  %v345_v14 = vld [vmem:[%s11521_s1 + $0x9e0] sm:$0xff] }
  0x43   :  { %2340 = vmatmul.mubr.f32.vlgmr.msra.gmra.mxu0 %v5275_v62  ;;  %v473_v15 = vld [vmem:[%s11521_s1 + $0xde0] sm:$0xff]  ;;  %2410 = vmatprep.mubr.f32.mxu1 %v5316_v11  ;;  %v342_v16 = vld [vmem:[%s11521_s1 + $0x9c8] sm:$0xff] }
  0x44   :  { %2417 = vmatprep.subr.mxu0 %v346_v12  ;;  %v470_v17 = vld [vmem:[%s11521_s1 + $0xdc8] sm:$0xff]  ;;  %2488 = vmatprep.subr.mxu1 %v474_v13  ;;  %v341_v18 = vld [vmem:[%s11521_s1 + $0x9c0] sm:$0xff] }
  0x45   :  { %2411 = vmatmul.mubr.f32.vlgmr.msra.gmra.mxu1 %v5290_v3  ;;  %v469_v19 = vld [vmem:[%s11521_s1 + $0xdc0] sm:$0xff]  ;;  %2418 = vmatpush1.msra.mxu0 %v345_v14  ;;  %v338_v20 = vld [vmem:[%s11521_s1 + $0x9a8] sm:$0xff] }
  0x46   :  { %2489 = vmatpush1.msra.mxu1 %v473_v15  ;;  %v466_v21 = vld [vmem:[%s11521_s1 + $0xda8] sm:$0xff]  ;;  %2419 = vmatprep.subr.mxu0 %v342_v16  ;;  %v337_v22 = vld [vmem:[%s11521_s1 + $0x9a0] sm:$0xff] }
  0x47   :  { %2490 = vmatprep.subr.mxu1 %v470_v17  ;;  %v465_v23 = vld [vmem:[%s11521_s1 + $0xda0] sm:$0xff]  ;;  %2420 = vmatpush1.msra.mxu0 %v341_v18  ;;  %v334_v24 = vld [vmem:[%s11521_s1 + $0x988] sm:$0xff] }
  0x48   :  { %2491 = vmatpush1.msra.mxu1 %v469_v19  ;;  %v462_v25 = vld [vmem:[%s11521_s1 + $0xd88] sm:$0xff]  ;;  %2421 = vmatprep.subr.mxu0 %v338_v20  ;;  %v333_v26 = vld [vmem:[%s11521_s1 + $0x980] sm:$0xff] }
  0x49   :  { %2492 = vmatprep.subr.mxu1 %v466_v21  ;;  %v461_v27 = vld [vmem:[%s11521_s1 + $0xd80] sm:$0xff]  ;;  %2422 = vmatpush1.msra.mxu0 %v337_v22  ;;  %v330_v28 = vld [vmem:[%s11521_s1 + $0x968] sm:$0xff] }
  0x4a   :  { %2493 = vmatpush1.msra.mxu1 %v465_v23  ;;  %v458_v29 = vld [vmem:[%s11521_s1 + $0xd68] sm:$0xff]  ;;  %2423 = vmatprep.subr.mxu0 %v334_v24  ;;  %v329_v30 = vld [vmem:[%s11521_s1 + $0x960] sm:$0xff] }
  0x4b   :  { %2494 = vmatprep.subr.mxu1 %v462_v25  ;;  %v457_v31 = vld [vmem:[%s11521_s1 + $0xd60] sm:$0xff]  ;;  %2424 = vmatpush1.msra.mxu0 %v333_v26  ;;  %v326_v32 = vld [vmem:[%s11521_s1 + $0x948] sm:$0xff] }
  0x4c   :  { %2495 = vmatpush1.msra.mxu1 %v461_v27  ;;  %v454_v33 = vld [vmem:[%s11521_s1 + $0xd48] sm:$0xff]  ;;  %2425 = vmatprep.subr.mxu0 %v330_v28  ;;  %v325_v34 = vld [vmem:[%s11521_s1 + $0x940] sm:$0xff] }
  0x4d   :  { %2496 = vmatprep.subr.mxu1 %v458_v29  ;;  %v453_v35 = vld [vmem:[%s11521_s1 + $0xd40] sm:$0xff]  ;;  %2426 = vmatpush1.msra.mxu0 %v329_v30  ;;  %v322_v36 = vld [vmem:[%s11521_s1 + $0x928] sm:$0xff] }
  0x4e   :  { %2497 = vmatpush1.msra.mxu1 %v457_v31  ;;  %v450_v37 = vld [vmem:[%s11521_s1 + $0xd28] sm:$0xff]  ;;  %2427 = vmatprep.subr.mxu0 %v326_v32  ;;  %v321_v38 = vld [vmem:[%s11521_s1 + $0x920] sm:$0xff] }
  0x4f   :  { %2498 = vmatprep.subr.mxu1 %v454_v33  ;;  %v449_v39 = vld [vmem:[%s11521_s1 + $0xd20] sm:$0xff]  ;;  %2428 = vmatpush1.msra.mxu0 %v325_v34  ;;  %v318_v40 = vld [vmem:[%s11521_s1 + $0x908] sm:$0xff] }
  0x50   :  { %2499 = vmatpush1.msra.mxu1 %v453_v35  ;;  %v446_v42 = vld [vmem:[%s11521_s1 + $0xd08] sm:$0xff]  ;;  %2429 = vmatprep.subr.mxu0 %v322_v36  ;;  %v317_v43 = vld [vmem:[%s11521_s1 + $0x900] sm:$0xff] }
  0x51   :  { %2500 = vmatprep.subr.mxu1 %v450_v37  ;;  %v445_v44 = vld [vmem:[%s11521_s1 + $0xd00] sm:$0xff]  ;;  %2430 = vmatpush1.msra.mxu0 %v321_v38  ;;  %v314_v45 = vld [vmem:[%s11521_s1 + $0x8e8] sm:$0xff] }
  0x52   :  { %2501 = vmatpush1.msra.mxu1 %v449_v39  ;;  %v442_v46 = vld [vmem:[%s11521_s1 + $0xce8] sm:$0xff]  ;;  %2431 = vmatprep.subr.mxu0 %v318_v40  ;;  %v313_v47 = vld [vmem:[%s11521_s1 + $0x8e0] sm:$0xff] }
  0x53   :  { %2502 = vmatprep.subr.mxu1 %v446_v42  ;;  %v441_v48 = vld [vmem:[%s11521_s1 + $0xce0] sm:$0xff]  ;;  %2432 = vmatpush1.msra.mxu0 %v317_v43  ;;  %v310_v49 = vld [vmem:[%s11521_s1 + $0x8c8] sm:$0xff] }
  0x54   :  { %2503 = vmatpush1.msra.mxu1 %v445_v44  ;;  %v438_v50 = vld [vmem:[%s11521_s1 + $0xcc8] sm:$0xff]  ;;  %2433 = vmatprep.subr.mxu0 %v314_v45  ;;  %v309_v51 = vld [vmem:[%s11521_s1 + $0x8c0] sm:$0xff] }
  0x55   :  { %2504 = vmatprep.subr.mxu1 %v442_v46  ;;  %v437_v53 = vld [vmem:[%s11521_s1 + $0xcc0] sm:$0xff]  ;;  %2434 = vmatpush1.msra.mxu0 %v313_v47  ;;  %v306_v54 = vld [vmem:[%s11521_s1 + $0x8a8] sm:$0xff] }
  0x56   :  { %2505 = vmatpush1.msra.mxu1 %v441_v48  ;;  %v434_v55 = vld [vmem:[%s11521_s1 + $0xca8] sm:$0xff]  ;;  %2435 = vmatprep.subr.mxu0 %v310_v49  ;;  %v305_v56 = vld [vmem:[%s11521_s1 + $0x8a0] sm:$0xff] }
  0x57   :  { %2506 = vmatprep.subr.mxu1 %v438_v50  ;;  %v433_v57 = vld [vmem:[%s11521_s1 + $0xca0] sm:$0xff]  ;;  %2436 = vmatpush1.msra.mxu0 %v309_v51  ;;  %v302_v58 = vld [vmem:[%s11521_s1 + $0x888] sm:$0xff] }
  0x58   :  { %2507 = vmatpush1.msra.mxu1 %v437_v53  ;;  %v430_v59 = vld [vmem:[%s11521_s1 + $0xc88] sm:$0xff]  ;;  %2437 = vmatprep.subr.mxu0 %v306_v54  ;;  %v301_v60 = vld [vmem:[%s11521_s1 + $0x880] sm:$0xff] }
  0x59   :  { %2508 = vmatprep.subr.mxu1 %v434_v55  ;;  %v429_v61 = vld [vmem:[%s11521_s1 + $0xc80] sm:$0xff]  ;;  %2438 = vmatpush1.msra.mxu0 %v305_v56  ;;  %v298_v63 = vld [vmem:[%s11521_s1 + $0x868] sm:$0xff] }
  0x5a   :  { %2509 = vmatpush1.msra.mxu1 %v433_v57  ;;  %v426_v0 = vld [vmem:[%s11521_s1 + $0xc68] sm:$0xff]  ;;  %2439 = vmatprep.subr.mxu0 %v302_v58  ;;  %v297_v1 = vld [vmem:[%s11521_s1 + $0x860] sm:$0xff] }
  0x5b   :  { %2510 = vmatprep.subr.mxu1 %v430_v59  ;;  %v425_v2 = vld [vmem:[%s11521_s1 + $0xc60] sm:$0xff]  ;;  %2440 = vmatpush1.msra.mxu0 %v301_v60  ;;  %v294_v4 = vld [vmem:[%s11521_s1 + $0x848] sm:$0xff] }
  0x5c   :  { %2511 = vmatpush1.msra.mxu1 %v429_v61  ;;  %v422_v5 = vld [vmem:[%s11521_s1 + $0xc48] sm:$0xff]  ;;  %2441 = vmatprep.subr.mxu0 %v298_v63  ;;  %v293_v6 = vld [vmem:[%s11521_s1 + $0x840] sm:$0xff] }
  0x5d   :  { %2512 = vmatprep.subr.mxu1 %v426_v0  ;;  %v421_v7 = vld [vmem:[%s11521_s1 + $0xc40] sm:$0xff]  ;;  %2442 = vmatpush1.msra.mxu0 %v297_v1  ;;  %v290_v9 = vld [vmem:[%s11521_s1 + $0x828] sm:$0xff] }
  0x5e   :  { %2513 = vmatpush1.msra.mxu1 %v425_v2  ;;  %v418_v10 = vld [vmem:[%s11521_s1 + $0xc28] sm:$0xff]  ;;  %2443 = vmatprep.subr.mxu0 %v294_v4  ;;  %v289_v12 = vld [vmem:[%s11521_s1 + $0x820] sm:$0xff] }
  0x5f   :  { %2514 = vmatprep.subr.mxu1 %v422_v5  ;;  %v417_v13 = vld [vmem:[%s11521_s1 + $0xc20] sm:$0xff]  ;;  %2444 = vmatpush1.msra.mxu0 %v293_v6  ;;  %v286_v14 = vld [vmem:[%s11521_s1 + $0x808] sm:$0xff] }
  0x60   :  { %2515 = vmatpush1.msra.mxu1 %v421_v7  ;;  %v414_v15 = vld [vmem:[%s11521_s1 + $0xc08] sm:$0xff]  ;;  %2445 = vmatprep.subr.mxu0 %v290_v9  ;;  %v285_v16 = vld [vmem:[%s11521_s1 + $0x800] sm:$0xff] }
  0x61   :  { %2516 = vmatprep.subr.mxu1 %v418_v10  ;;  %v413_v17 = vld [vmem:[%s11521_s1 + $0xc00] sm:$0xff]  ;;  %2446 = vmatpush1.msra.mxu0 %v289_v12  ;;  %v410_v18 = vld [vmem:[%s11521_s1 + $0xbe8] sm:$0xff] }
  0x62   :  { %2517 = vmatpush1.msra.mxu1 %v417_v13  ;;  %v538_v19 = vld [vmem:[%s11521_s1 + $0xfe8] sm:$0xff]  ;;  %2447 = vmatprep.subr.mxu0 %v286_v14  ;;  %v409_v20 = vld [vmem:[%s11521_s1 + $0xbe0] sm:$0xff] }
  0x63   :  { %2518 = vmatprep.subr.mxu1 %v414_v15  ;;  %v537_v21 = vld [vmem:[%s11521_s1 + $0xfe0] sm:$0xff]  ;;  %2448 = vmatpush1.msra.mxu0 %v285_v16  ;;  %v406_v22 = vld [vmem:[%s11521_s1 + $0xbc8] sm:$0xff] }
  0x64   :  { %2519 = vmatpush1.msra.mxu1 %v413_v17  ;;  %v534_v23 = vld [vmem:[%s11521_s1 + $0xfc8] sm:$0xff]  ;;  %2449 = vmatprep.subr.mxu0 %v410_v18  ;;  %v405_v24 = vld [vmem:[%s11521_s1 + $0xbc0] sm:$0xff] }
  0x65   :  { %2520 = vmatprep.subr.mxu1 %v538_v19  ;;  %v533_v25 = vld [vmem:[%s11521_s1 + $0xfc0] sm:$0xff]  ;;  %2450 = vmatpush2.msra.mxu0 %v409_v20  ;;  %v402_v26 = vld [vmem:[%s11521_s1 + $0xba8] sm:$0xff] }
  0x66   :  { %2521 = vmatpush2.msra.mxu1 %v537_v21  ;;  %v530_v27 = vld [vmem:[%s11521_s1 + $0xfa8] sm:$0xff]  ;;  %2451 = vmatprep.subr.mxu0 %v406_v22  ;;  %v401_v28 = vld [vmem:[%s11521_s1 + $0xba0] sm:$0xff] }
  0x67   :  { %2522 = vmatprep.subr.mxu1 %v534_v23  ;;  %v529_v29 = vld [vmem:[%s11521_s1 + $0xfa0] sm:$0xff]  ;;  %2452 = vmatpush2.msra.mxu0 %v405_v24  ;;  %v398_v30 = vld [vmem:[%s11521_s1 + $0xb88] sm:$0xff] }
  0x68   :  { %2523 = vmatpush2.msra.mxu1 %v533_v25  ;;  %v526_v31 = vld [vmem:[%s11521_s1 + $0xf88] sm:$0xff]  ;;  %2453 = vmatprep.subr.mxu0 %v402_v26  ;;  %v397_v32 = vld [vmem:[%s11521_s1 + $0xb80] sm:$0xff] }
  0x69   :  { %2524 = vmatprep.subr.mxu1 %v530_v27  ;;  %v525_v33 = vld [vmem:[%s11521_s1 + $0xf80] sm:$0xff]  ;;  %2454 = vmatpush2.msra.mxu0 %v401_v28  ;;  %v394_v34 = vld [vmem:[%s11521_s1 + $0xb68] sm:$0xff] }
  0x6a   :  { %2525 = vmatpush2.msra.mxu1 %v529_v29  ;;  %v522_v35 = vld [vmem:[%s11521_s1 + $0xf68] sm:$0xff]  ;;  %2455 = vmatprep.subr.mxu0 %v398_v30  ;;  %v393_v36 = vld [vmem:[%s11521_s1 + $0xb60] sm:$0xff] }
  0x6b   :  { %2526 = vmatprep.subr.mxu1 %v526_v31  ;;  %v521_v37 = vld [vmem:[%s11521_s1 + $0xf60] sm:$0xff]  ;;  %2456 = vmatpush2.msra.mxu0 %v397_v32  ;;  %v390_v38 = vld [vmem:[%s11521_s1 + $0xb48] sm:$0xff] }
  0x6c   :  { %2527 = vmatpush2.msra.mxu1 %v525_v33  ;;  %v518_v39 = vld [vmem:[%s11521_s1 + $0xf48] sm:$0xff]  ;;  %2457 = vmatprep.subr.mxu0 %v394_v34  ;;  %v389_v40 = vld [vmem:[%s11521_s1 + $0xb40] sm:$0xff] }
  0x6d   :  { %2528 = vmatprep.subr.mxu1 %v522_v35  ;;  %v517_v42 = vld [vmem:[%s11521_s1 + $0xf40] sm:$0xff]  ;;  %2458 = vmatpush2.msra.mxu0 %v393_v36  ;;  %v386_v43 = vld [vmem:[%s11521_s1 + $0xb28] sm:$0xff] }
  0x6e   :  { %2529 = vmatpush2.msra.mxu1 %v521_v37  ;;  %v514_v44 = vld [vmem:[%s11521_s1 + $0xf28] sm:$0xff]  ;;  %2459 = vmatprep.subr.mxu0 %v390_v38  ;;  %v385_v45 = vld [vmem:[%s11521_s1 + $0xb20] sm:$0xff] }
  0x6f   :  { %2530 = vmatprep.subr.mxu1 %v518_v39  ;;  %v513_v46 = vld [vmem:[%s11521_s1 + $0xf20] sm:$0xff]  ;;  %2460 = vmatpush2.msra.mxu0 %v389_v40  ;;  %v382_v47 = vld [vmem:[%s11521_s1 + $0xb08] sm:$0xff] }
  0x70   :  { %2531 = vmatpush2.msra.mxu1 %v517_v42  ;;  %v510_v48 = vld [vmem:[%s11521_s1 + $0xf08] sm:$0xff]  ;;  %2461 = vmatprep.subr.mxu0 %v386_v43  ;;  %v381_v49 = vld [vmem:[%s11521_s1 + $0xb00] sm:$0xff] }
  0x71   :  { %2532 = vmatprep.subr.mxu1 %v514_v44  ;;  %v509_v50 = vld [vmem:[%s11521_s1 + $0xf00] sm:$0xff]  ;;  %2462 = vmatpush2.msra.mxu0 %v385_v45  ;;  %v378_v51 = vld [vmem:[%s11521_s1 + $0xae8] sm:$0xff] }
  0x72   :  { %2533 = vmatpush2.msra.mxu1 %v513_v46  ;;  %v506_v53 = vld [vmem:[%s11521_s1 + $0xee8] sm:$0xff]  ;;  %2463 = vmatprep.subr.mxu0 %v382_v47  ;;  %v377_v54 = vld [vmem:[%s11521_s1 + $0xae0] sm:$0xff] }
  0x73   :  { %2534 = vmatprep.subr.mxu1 %v510_v48  ;;  %v505_v55 = vld [vmem:[%s11521_s1 + $0xee0] sm:$0xff]  ;;  %2464 = vmatpush2.msra.mxu0 %v381_v49  ;;  %v374_v56 = vld [vmem:[%s11521_s1 + $0xac8] sm:$0xff] }
  0x74   :  { %2535 = vmatpush2.msra.mxu1 %v509_v50  ;;  %v502_v57 = vld [vmem:[%s11521_s1 + $0xec8] sm:$0xff]  ;;  %2465 = vmatprep.subr.mxu0 %v378_v51  ;;  %v373_v58 = vld [vmem:[%s11521_s1 + $0xac0] sm:$0xff] }
  0x75   :  { %2536 = vmatprep.subr.mxu1 %v506_v53  ;;  %v501_v59 = vld [vmem:[%s11521_s1 + $0xec0] sm:$0xff]  ;;  %2466 = vmatpush2.msra.mxu0 %v377_v54  ;;  %v370_v60 = vld [vmem:[%s11521_s1 + $0xaa8] sm:$0xff] }
  0x76   :  { %2537 = vmatpush2.msra.mxu1 %v505_v55  ;;  %v498_v61 = vld [vmem:[%s11521_s1 + $0xea8] sm:$0xff]  ;;  %2467 = vmatprep.subr.mxu0 %v374_v56  ;;  %v369_v63 = vld [vmem:[%s11521_s1 + $0xaa0] sm:$0xff] }
  0x77   :  { %2538 = vmatprep.subr.mxu1 %v502_v57  ;;  %v497_v0 = vld [vmem:[%s11521_s1 + $0xea0] sm:$0xff]  ;;  %v22_v1 = vld [vmem:[%s11520_s0 + $0x8] sm:$0xff]  ;;  %2468 = vmatpush2.msra.mxu0 %v373_v58 }
  0x78   :  { %2539 = vmatpush2.msra.mxu1 %v501_v59  ;;  %v366_v2 = vld [vmem:[%s11521_s1 + $0xa88] sm:$0xff]  ;;  %2469 = vmatprep.subr.mxu0 %v370_v60  ;;  %v365_v5 = vld [vmem:[%s11521_s1 + $0xa80] sm:$0xff]  ;;  %v2124_v10 = vcombine.high %v22_v1, %v22_v1  ;;  %v5680_v16 = vrot.slane %v22_v1, %v5248_v52 }
  0x79   :  { %v494_v4 = vld [vmem:[%s11521_s1 + $0xe88] sm:$0xff]  ;;  %2540 = vmatprep.subr.mxu1 %v498_v61  ;;  %v493_v6 = vld [vmem:[%s11521_s1 + $0xe80] sm:$0xff]  ;;  %2470 = vmatpush2.msra.mxu0 %v369_v63 }
  0x7a   :  { %2541 = vmatpush2.msra.mxu1 %v497_v0  ;;  %v362_v7 = vld [vmem:[%s11521_s1 + $0xa68] sm:$0xff]  ;;  %2471 = vmatprep.subr.mxu0 %v366_v2  ;;  %v361_v12 = vld [vmem:[%s11521_s1 + $0xa60] sm:$0xff]  ;;  %v5695_v21 = vrot.slane %v2124_v10, %v5248_v52  ;;  %v5711_v26 = vcombine.high %v5680_v16, %v5680_v16 }
  0x7b   :  { %v490_v9 = vld [vmem:[%s11521_s1 + $0xe68] sm:$0xff]  ;;  %2542 = vmatprep.subr.mxu1 %v494_v4  ;;  %v489_v13 = vld [vmem:[%s11521_s1 + $0xe60] sm:$0xff]  ;;  %2472 = vmatpush2.msra.mxu0 %v365_v5 }
  0x7c   :  { %2543 = vmatpush2.msra.mxu1 %v493_v6  ;;  %v358_v14 = vld [vmem:[%s11521_s1 + $0xa48] sm:$0xff]  ;;  %2473 = vmatprep.subr.mxu0 %v362_v7  ;;  %v357_v17 = vld [vmem:[%s11521_s1 + $0xa40] sm:$0xff]  ;;  %v5721_v29 = vcombine.high %v5695_v21, %v5695_v21 }
  0x7d   :  { %v486_v15 = vld [vmem:[%s11521_s1 + $0xe48] sm:$0xff]  ;;  %2544 = vmatprep.subr.mxu1 %v490_v9  ;;  %v485_v18 = vld [vmem:[%s11521_s1 + $0xe40] sm:$0xff]  ;;  %2474 = vmatpush2.msra.mxu0 %v361_v12 }
  0x7e   :  { %2545 = vmatpush2.msra.mxu1 %v489_v13  ;;  %v354_v19 = vld [vmem:[%s11521_s1 + $0xa28] sm:$0xff]  ;;  %2475 = vmatprep.subr.mxu0 %v358_v14  ;;  %v353_v22 = vld [vmem:[%s11521_s1 + $0xa20] sm:$0xff] }
  0x7f   :  { %v482_v20 = vld [vmem:[%s11521_s1 + $0xe28] sm:$0xff]  ;;  %2546 = vmatprep.subr.mxu1 %v486_v15  ;;  %v481_v23 = vld [vmem:[%s11521_s1 + $0xe20] sm:$0xff]  ;;  %2476 = vmatpush2.msra.mxu0 %v357_v17 }
  0x80   :  { %2547 = vmatpush2.msra.mxu1 %v485_v18  ;;  %v350_v24 = vld [vmem:[%s11521_s1 + $0xa08] sm:$0xff]  ;;  %2477 = vmatprep.subr.mxu0 %v354_v19  ;;  %v349_v27 = vld [vmem:[%s11521_s1 + $0xa00] sm:$0xff] }
  0x81   :  { %v478_v25 = vld [vmem:[%s11521_s1 + $0xe08] sm:$0xff]  ;;  %2548 = vmatprep.subr.mxu1 %v482_v20  ;;  %2478 = vmatpush2.msra.mxu0 %v353_v22  ;;  %v477_v28 = vld [vmem:[%s11521_s1 + $0xe00] sm:$0xff] }
  0x82   :  { %2549 = vmatpush2.msra.mxu1 %v481_v23  ;;  %2479 = vmatprep.subr.mxu0 %v350_v24  ;;  %v602_v30 = vld [vmem:[%s11521_s1 + $0x11e8] sm:$0xff]  ;;  %v601_v32 = vld [vmem:[%s11521_s1 + $0x11e0] sm:$0xff] }
  0x83   :  { %2550 = vmatprep.subr.mxu1 %v478_v25  ;;  %2480 = vmatpush2.msra.mxu0 %v349_v27  ;;  %v730_v31 = vld [vmem:[%s11521_s1 + $0x15e8] sm:$0xff]  ;;  %v729_v33 = vld [vmem:[%s11521_s1 + $0x15e0] sm:$0xff] }
  0x84   :  { %2481 = vmatprep.mubr.f32.mxu0 %v5711_v26  ;;  %2551 = vmatpush2.msra.mxu1 %v477_v28  ;;  %v598_v34 = vld [vmem:[%s11521_s1 + $0x11c8] sm:$0xff]  ;;  %v597_v36 = vld [vmem:[%s11521_s1 + $0x11c0] sm:$0xff] }
  0x85   :  { %2482 = vmatmul.mubr.f32.vlgmr.msra.gmra.mxu0 %v5680_v16  ;;  %2552 = vmatprep.mubr.f32.mxu1 %v5721_v29  ;;  %v726_v35 = vld [vmem:[%s11521_s1 + $0x15c8] sm:$0xff]  ;;  %v725_v37 = vld [vmem:[%s11521_s1 + $0x15c0] sm:$0xff] }
  0x86   :  { %2559 = vmatprep.subr.mxu0 %v602_v30  ;;  %2630 = vmatprep.subr.mxu1 %v730_v31  ;;  %v594_v38 = vld [vmem:[%s11521_s1 + $0x11a8] sm:$0xff]  ;;  %v593_v40 = vld [vmem:[%s11521_s1 + $0x11a0] sm:$0xff] }
  0x87   :  { %2553 = vmatmul.mubr.f32.vlgmr.msra.gmra.mxu1 %v5695_v21  ;;  %2560 = vmatpush1.msra.mxu0 %v601_v32  ;;  %v722_v39 = vld [vmem:[%s11521_s1 + $0x15a8] sm:$0xff]  ;;  %v721_v42 = vld [vmem:[%s11521_s1 + $0x15a0] sm:$0xff] }
  0x88   :  { %2631 = vmatpush1.msra.mxu1 %v729_v33  ;;  %2561 = vmatprep.subr.mxu0 %v598_v34  ;;  %v590_v43 = vld [vmem:[%s11521_s1 + $0x1188] sm:$0xff]  ;;  %v589_v45 = vld [vmem:[%s11521_s1 + $0x1180] sm:$0xff] }
  0x89   :  { %2632 = vmatprep.subr.mxu1 %v726_v35  ;;  %2562 = vmatpush1.msra.mxu0 %v597_v36  ;;  %v718_v44 = vld [vmem:[%s11521_s1 + $0x1588] sm:$0xff]  ;;  %v717_v46 = vld [vmem:[%s11521_s1 + $0x1580] sm:$0xff] }
  0x8a   :  { %2633 = vmatpush1.msra.mxu1 %v725_v37  ;;  %2563 = vmatprep.subr.mxu0 %v594_v38  ;;  %v586_v47 = vld [vmem:[%s11521_s1 + $0x1168] sm:$0xff]  ;;  %v585_v49 = vld [vmem:[%s11521_s1 + $0x1160] sm:$0xff] }
  0x8b   :  { %2634 = vmatprep.subr.mxu1 %v722_v39  ;;  %2564 = vmatpush1.msra.mxu0 %v593_v40  ;;  %v714_v48 = vld [vmem:[%s11521_s1 + $0x1568] sm:$0xff]  ;;  %v713_v50 = vld [vmem:[%s11521_s1 + $0x1560] sm:$0xff] }
  0x8c   :  { %2635 = vmatpush1.msra.mxu1 %v721_v42  ;;  %2565 = vmatprep.subr.mxu0 %v590_v43  ;;  %v582_v51 = vld [vmem:[%s11521_s1 + $0x1148] sm:$0xff]  ;;  %v581_v54 = vld [vmem:[%s11521_s1 + $0x1140] sm:$0xff] }
  0x8d   :  { %2636 = vmatprep.subr.mxu1 %v718_v44  ;;  %2566 = vmatpush1.msra.mxu0 %v589_v45  ;;  %v710_v53 = vld [vmem:[%s11521_s1 + $0x1548] sm:$0xff]  ;;  %v709_v55 = vld [vmem:[%s11521_s1 + $0x1540] sm:$0xff] }
  0x8e   :  { %2637 = vmatpush1.msra.mxu1 %v717_v46  ;;  %2567 = vmatprep.subr.mxu0 %v586_v47  ;;  %v578_v56 = vld [vmem:[%s11521_s1 + $0x1128] sm:$0xff]  ;;  %v577_v58 = vld [vmem:[%s11521_s1 + $0x1120] sm:$0xff] }
  0x8f   :  { %2638 = vmatprep.subr.mxu1 %v714_v48  ;;  %2568 = vmatpush1.msra.mxu0 %v585_v49  ;;  %v706_v57 = vld [vmem:[%s11521_s1 + $0x1528] sm:$0xff]  ;;  %v705_v59 = vld [vmem:[%s11521_s1 + $0x1520] sm:$0xff] }
  0x90   :  { %2639 = vmatpush1.msra.mxu1 %v713_v50  ;;  %2569 = vmatprep.subr.mxu0 %v582_v51  ;;  %v574_v60 = vld [vmem:[%s11521_s1 + $0x1108] sm:$0xff]  ;;  %v573_v63 = vld [vmem:[%s11521_s1 + $0x1100] sm:$0xff] }
  0x91   :  { %2640 = vmatprep.subr.mxu1 %v710_v53  ;;  %2570 = vmatpush1.msra.mxu0 %v581_v54  ;;  %v702_v61 = vld [vmem:[%s11521_s1 + $0x1508] sm:$0xff]  ;;  %v701_v0 = vld [vmem:[%s11521_s1 + $0x1500] sm:$0xff] }
  0x92   :  { %2641 = vmatpush1.msra.mxu1 %v709_v55  ;;  %2571 = vmatprep.subr.mxu0 %v578_v56  ;;  %v570_v1 = vld [vmem:[%s11521_s1 + $0x10e8] sm:$0xff]  ;;  %v569_v4 = vld [vmem:[%s11521_s1 + $0x10e0] sm:$0xff] }
  0x93   :  { %2642 = vmatprep.subr.mxu1 %v706_v57  ;;  %2572 = vmatpush1.msra.mxu0 %v577_v58  ;;  %v698_v2 = vld [vmem:[%s11521_s1 + $0x14e8] sm:$0xff]  ;;  %v697_v5 = vld [vmem:[%s11521_s1 + $0x14e0] sm:$0xff] }
  0x94   :  { %2643 = vmatpush1.msra.mxu1 %v705_v59  ;;  %2573 = vmatprep.subr.mxu0 %v574_v60  ;;  %v566_v6 = vld [vmem:[%s11521_s1 + $0x10c8] sm:$0xff]  ;;  %v565_v9 = vld [vmem:[%s11521_s1 + $0x10c0] sm:$0xff] }
  0x95   :  { %2644 = vmatprep.subr.mxu1 %v702_v61  ;;  %2574 = vmatpush1.msra.mxu0 %v573_v63  ;;  %v694_v7 = vld [vmem:[%s11521_s1 + $0x14c8] sm:$0xff]  ;;  %v693_v10 = vld [vmem:[%s11521_s1 + $0x14c0] sm:$0xff] }
  0x96   :  { %2645 = vmatpush1.msra.mxu1 %v701_v0  ;;  %2575 = vmatprep.subr.mxu0 %v570_v1  ;;  %v562_v12 = vld [vmem:[%s11521_s1 + $0x10a8] sm:$0xff]  ;;  %v561_v14 = vld [vmem:[%s11521_s1 + $0x10a0] sm:$0xff] }
  0x97   :  { %2646 = vmatprep.subr.mxu1 %v698_v2  ;;  %2576 = vmatpush1.msra.mxu0 %v569_v4  ;;  %v690_v13 = vld [vmem:[%s11521_s1 + $0x14a8] sm:$0xff]  ;;  %v689_v15 = vld [vmem:[%s11521_s1 + $0x14a0] sm:$0xff] }
  0x98   :  { %2647 = vmatpush1.msra.mxu1 %v697_v5  ;;  %2577 = vmatprep.subr.mxu0 %v566_v6  ;;  %v558_v17 = vld [vmem:[%s11521_s1 + $0x1088] sm:$0xff]  ;;  %v557_v19 = vld [vmem:[%s11521_s1 + $0x1080] sm:$0xff] }
  0x99   :  { %2648 = vmatprep.subr.mxu1 %v694_v7  ;;  %2578 = vmatpush1.msra.mxu0 %v565_v9  ;;  %v686_v18 = vld [vmem:[%s11521_s1 + $0x1488] sm:$0xff]  ;;  %v685_v20 = vld [vmem:[%s11521_s1 + $0x1480] sm:$0xff] }
  0x9a   :  { %2649 = vmatpush1.msra.mxu1 %v693_v10  ;;  %2579 = vmatprep.subr.mxu0 %v562_v12  ;;  %v554_v22 = vld [vmem:[%s11521_s1 + $0x1068] sm:$0xff]  ;;  %v553_v24 = vld [vmem:[%s11521_s1 + $0x1060] sm:$0xff] }
  0x9b   :  { %2650 = vmatprep.subr.mxu1 %v690_v13  ;;  %2580 = vmatpush1.msra.mxu0 %v561_v14  ;;  %v682_v23 = vld [vmem:[%s11521_s1 + $0x1468] sm:$0xff]  ;;  %v681_v25 = vld [vmem:[%s11521_s1 + $0x1460] sm:$0xff] }
  0x9c   :  { %2651 = vmatpush1.msra.mxu1 %v689_v15  ;;  %2581 = vmatprep.subr.mxu0 %v558_v17  ;;  %v550_v27 = vld [vmem:[%s11521_s1 + $0x1048] sm:$0xff]  ;;  %v549_v30 = vld [vmem:[%s11521_s1 + $0x1040] sm:$0xff] }
  0x9d   :  { %2652 = vmatprep.subr.mxu1 %v686_v18  ;;  %2582 = vmatpush1.msra.mxu0 %v557_v19  ;;  %v678_v28 = vld [vmem:[%s11521_s1 + $0x1448] sm:$0xff]  ;;  %v677_v31 = vld [vmem:[%s11521_s1 + $0x1440] sm:$0xff] }
  0x9e   :  { %2653 = vmatpush1.msra.mxu1 %v685_v20  ;;  %2583 = vmatprep.subr.mxu0 %v554_v22  ;;  %v546_v32 = vld [vmem:[%s11521_s1 + $0x1028] sm:$0xff]  ;;  %v545_v34 = vld [vmem:[%s11521_s1 + $0x1020] sm:$0xff] }
  0x9f   :  { %2654 = vmatprep.subr.mxu1 %v682_v23  ;;  %2584 = vmatpush1.msra.mxu0 %v553_v24  ;;  %v674_v33 = vld [vmem:[%s11521_s1 + $0x1428] sm:$0xff]  ;;  %v673_v35 = vld [vmem:[%s11521_s1 + $0x1420] sm:$0xff] }
  0xa0   :  { %2655 = vmatpush1.msra.mxu1 %v681_v25  ;;  %2585 = vmatprep.subr.mxu0 %v550_v27  ;;  %v542_v36 = vld [vmem:[%s11521_s1 + $0x1008] sm:$0xff]  ;;  %v541_v38 = vld [vmem:[%s11521_s1 + $0x1000] sm:$0xff] }
  0xa1   :  { %2656 = vmatprep.subr.mxu1 %v678_v28  ;;  %2586 = vmatpush1.msra.mxu0 %v549_v30  ;;  %v670_v37 = vld [vmem:[%s11521_s1 + $0x1408] sm:$0xff]  ;;  %v669_v39 = vld [vmem:[%s11521_s1 + $0x1400] sm:$0xff]  ;;  %v23_v30 = vld [vmem:[%s11520_s0 + $0x10] sm:$0xff] }
  0xa2   :  { %2657 = vmatpush1.msra.mxu1 %v677_v31  ;;  %2587 = vmatprep.subr.mxu0 %v546_v32  ;;  %v666_v40 = vld [vmem:[%s11521_s1 + $0x13e8] sm:$0xff]  ;;  %v665_v43 = vld [vmem:[%s11521_s1 + $0x13e0] sm:$0xff] }
  0xa3   :  { %2658 = vmatprep.subr.mxu1 %v674_v33  ;;  %2588 = vmatpush1.msra.mxu0 %v545_v34  ;;  %v794_v42 = vld [vmem:[%s11521_s1 + $0x17e8] sm:$0xff]  ;;  %v793_v44 = vld [vmem:[%s11521_s1 + $0x17e0] sm:$0xff] }
  0xa4   :  { %2659 = vmatpush1.msra.mxu1 %v673_v35  ;;  %2589 = vmatprep.subr.mxu0 %v542_v36  ;;  %v662_v45 = vld [vmem:[%s11521_s1 + $0x13c8] sm:$0xff]  ;;  %v661_v47 = vld [vmem:[%s11521_s1 + $0x13c0] sm:$0xff] }
  0xa5   :  { %2660 = vmatprep.subr.mxu1 %v670_v37  ;;  %2590 = vmatpush1.msra.mxu0 %v541_v38  ;;  %v790_v46 = vld [vmem:[%s11521_s1 + $0x17c8] sm:$0xff]  ;;  %v789_v48 = vld [vmem:[%s11521_s1 + $0x17c0] sm:$0xff]  ;;  %v2141_v37 = vcombine.high %v23_v30, %v23_v30 }
  0xa6   :  { %2661 = vmatpush1.msra.mxu1 %v669_v39  ;;  %2591 = vmatprep.subr.mxu0 %v666_v40  ;;  %v658_v49 = vld [vmem:[%s11521_s1 + $0x13a8] sm:$0xff]  ;;  %v657_v51 = vld [vmem:[%s11521_s1 + $0x13a0] sm:$0xff] }
  0xa7   :  { %2662 = vmatprep.subr.mxu1 %v794_v42  ;;  %2592 = vmatpush2.msra.mxu0 %v665_v43  ;;  %v786_v50 = vld [vmem:[%s11521_s1 + $0x17a8] sm:$0xff]  ;;  %v785_v53 = vld [vmem:[%s11521_s1 + $0x17a0] sm:$0xff]  ;;  %v6085_v43 = vrot.slane %v23_v30, %v5248_v52 }
  0xa8   :  { %2663 = vmatpush2.msra.mxu1 %v793_v44  ;;  %2593 = vmatprep.subr.mxu0 %v662_v45  ;;  %v654_v54 = vld [vmem:[%s11521_s1 + $0x1388] sm:$0xff]  ;;  %v653_v56 = vld [vmem:[%s11521_s1 + $0x1380] sm:$0xff] }
  0xa9   :  { %2664 = vmatprep.subr.mxu1 %v790_v46  ;;  %2594 = vmatpush2.msra.mxu0 %v661_v47  ;;  %v782_v55 = vld [vmem:[%s11521_s1 + $0x1788] sm:$0xff]  ;;  %v781_v57 = vld [vmem:[%s11521_s1 + $0x1780] sm:$0xff] }
  0xaa   :  { %2665 = vmatpush2.msra.mxu1 %v789_v48  ;;  %2595 = vmatprep.subr.mxu0 %v658_v49  ;;  %v650_v58 = vld [vmem:[%s11521_s1 + $0x1368] sm:$0xff]  ;;  %v649_v60 = vld [vmem:[%s11521_s1 + $0x1360] sm:$0xff]  ;;  %v6100_v48 = vrot.slane %v2141_v37, %v5248_v52 }
  0xab   :  { %2666 = vmatprep.subr.mxu1 %v786_v50  ;;  %2596 = vmatpush2.msra.mxu0 %v657_v51  ;;  %v778_v59 = vld [vmem:[%s11521_s1 + $0x1768] sm:$0xff]  ;;  %v777_v61 = vld [vmem:[%s11521_s1 + $0x1760] sm:$0xff] }
  0xac   :  { %2667 = vmatpush2.msra.mxu1 %v785_v53  ;;  %2597 = vmatprep.subr.mxu0 %v654_v54  ;;  %v646_v63 = vld [vmem:[%s11521_s1 + $0x1348] sm:$0xff]  ;;  %v645_v1 = vld [vmem:[%s11521_s1 + $0x1340] sm:$0xff]  ;;  %v6116_v54 = vcombine.high %v6085_v43, %v6085_v43 }
  0xad   :  { %2668 = vmatprep.subr.mxu1 %v782_v55  ;;  %2598 = vmatpush2.msra.mxu0 %v653_v56  ;;  %v774_v0 = vld [vmem:[%s11521_s1 + $0x1748] sm:$0xff]  ;;  %v773_v2 = vld [vmem:[%s11521_s1 + $0x1740] sm:$0xff] }
  0xae   :  { %2669 = vmatpush2.msra.mxu1 %v781_v57  ;;  %2599 = vmatprep.subr.mxu0 %v650_v58  ;;  %v642_v4 = vld [vmem:[%s11521_s1 + $0x1328] sm:$0xff]  ;;  %v641_v6 = vld [vmem:[%s11521_s1 + $0x1320] sm:$0xff]  ;;  %v6126_v57 = vcombine.high %v6100_v48, %v6100_v48 }
  0xaf   :  { %2670 = vmatprep.subr.mxu1 %v778_v59  ;;  %2600 = vmatpush2.msra.mxu0 %v649_v60  ;;  %v770_v5 = vld [vmem:[%s11521_s1 + $0x1728] sm:$0xff]  ;;  %v769_v7 = vld [vmem:[%s11521_s1 + $0x1720] sm:$0xff] }
  0xb0   :  { %2671 = vmatpush2.msra.mxu1 %v777_v61  ;;  %2601 = vmatprep.subr.mxu0 %v646_v63  ;;  %v638_v9 = vld [vmem:[%s11521_s1 + $0x1308] sm:$0xff]  ;;  %v637_v12 = vld [vmem:[%s11521_s1 + $0x1300] sm:$0xff] }
  0xb1   :  { %2672 = vmatprep.subr.mxu1 %v774_v0  ;;  %2602 = vmatpush2.msra.mxu0 %v645_v1  ;;  %v766_v10 = vld [vmem:[%s11521_s1 + $0x1708] sm:$0xff]  ;;  %v765_v13 = vld [vmem:[%s11521_s1 + $0x1700] sm:$0xff] }
  0xb2   :  { %2673 = vmatpush2.msra.mxu1 %v773_v2  ;;  %2603 = vmatprep.subr.mxu0 %v642_v4  ;;  %v634_v14 = vld [vmem:[%s11521_s1 + $0x12e8] sm:$0xff]  ;;  %v633_v17 = vld [vmem:[%s11521_s1 + $0x12e0] sm:$0xff] }
  0xb3   :  { %2674 = vmatprep.subr.mxu1 %v770_v5  ;;  %2604 = vmatpush2.msra.mxu0 %v641_v6  ;;  %v762_v15 = vld [vmem:[%s11521_s1 + $0x16e8] sm:$0xff]  ;;  %v761_v18 = vld [vmem:[%s11521_s1 + $0x16e0] sm:$0xff] }
  0xb4   :  { %2675 = vmatpush2.msra.mxu1 %v769_v7  ;;  %2605 = vmatprep.subr.mxu0 %v638_v9  ;;  %v630_v19 = vld [vmem:[%s11521_s1 + $0x12c8] sm:$0xff]  ;;  %v629_v22 = vld [vmem:[%s11521_s1 + $0x12c0] sm:$0xff] }
  0xb5   :  { %2676 = vmatprep.subr.mxu1 %v766_v10  ;;  %2606 = vmatpush2.msra.mxu0 %v637_v12  ;;  %v758_v20 = vld [vmem:[%s11521_s1 + $0x16c8] sm:$0xff]  ;;  %v757_v23 = vld [vmem:[%s11521_s1 + $0x16c0] sm:$0xff] }
  0xb6   :  { %2677 = vmatpush2.msra.mxu1 %v765_v13  ;;  %2607 = vmatprep.subr.mxu0 %v634_v14  ;;  %v626_v24 = vld [vmem:[%s11521_s1 + $0x12a8] sm:$0xff]  ;;  %v625_v27 = vld [vmem:[%s11521_s1 + $0x12a0] sm:$0xff] }
  0xb7   :  { %2678 = vmatprep.subr.mxu1 %v762_v15  ;;  %2608 = vmatpush2.msra.mxu0 %v633_v17  ;;  %v754_v25 = vld [vmem:[%s11521_s1 + $0x16a8] sm:$0xff]  ;;  %v753_v28 = vld [vmem:[%s11521_s1 + $0x16a0] sm:$0xff] }
  0xb8   :  { %2679 = vmatpush2.msra.mxu1 %v761_v18  ;;  %2609 = vmatprep.subr.mxu0 %v630_v19  ;;  %v622_v31 = vld [vmem:[%s11521_s1 + $0x1288] sm:$0xff]  ;;  %v621_v33 = vld [vmem:[%s11521_s1 + $0x1280] sm:$0xff] }
  0xb9   :  { %2680 = vmatprep.subr.mxu1 %v758_v20  ;;  %2610 = vmatpush2.msra.mxu0 %v629_v22  ;;  %v750_v32 = vld [vmem:[%s11521_s1 + $0x1688] sm:$0xff]  ;;  %v749_v34 = vld [vmem:[%s11521_s1 + $0x1680] sm:$0xff] }
  0xba   :  { %2681 = vmatpush2.msra.mxu1 %v757_v23  ;;  %2611 = vmatprep.subr.mxu0 %v626_v24  ;;  %v618_v35 = vld [vmem:[%s11521_s1 + $0x1268] sm:$0xff]  ;;  %v617_v38 = vld [vmem:[%s11521_s1 + $0x1260] sm:$0xff] }
  0xbb   :  { %2682 = vmatprep.subr.mxu1 %v754_v25  ;;  %2612 = vmatpush2.msra.mxu0 %v625_v27  ;;  %v746_v36 = vld [vmem:[%s11521_s1 + $0x1668] sm:$0xff]  ;;  %v745_v39 = vld [vmem:[%s11521_s1 + $0x1660] sm:$0xff] }
  0xbc   :  { %2683 = vmatpush2.msra.mxu1 %v753_v28  ;;  %2613 = vmatprep.subr.mxu0 %v622_v31  ;;  %v614_v40 = vld [vmem:[%s11521_s1 + $0x1248] sm:$0xff]  ;;  %v613_v44 = vld [vmem:[%s11521_s1 + $0x1240] sm:$0xff] }
  0xbd   :  { %2684 = vmatprep.subr.mxu1 %v750_v32  ;;  %2614 = vmatpush2.msra.mxu0 %v621_v33  ;;  %v742_v42 = vld [vmem:[%s11521_s1 + $0x1648] sm:$0xff]  ;;  %v741_v45 = vld [vmem:[%s11521_s1 + $0x1640] sm:$0xff] }
  0xbe   :  { %2685 = vmatpush2.msra.mxu1 %v749_v34  ;;  %2615 = vmatprep.subr.mxu0 %v618_v35  ;;  %v610_v46 = vld [vmem:[%s11521_s1 + $0x1228] sm:$0xff]  ;;  %v609_v49 = vld [vmem:[%s11521_s1 + $0x1220] sm:$0xff] }
  0xbf   :  { %2686 = vmatprep.subr.mxu1 %v746_v36  ;;  %2616 = vmatpush2.msra.mxu0 %v617_v38  ;;  %v738_v47 = vld [vmem:[%s11521_s1 + $0x1628] sm:$0xff]  ;;  %v737_v50 = vld [vmem:[%s11521_s1 + $0x1620] sm:$0xff] }
  0xc0   :  { %2687 = vmatpush2.msra.mxu1 %v745_v39  ;;  %2617 = vmatprep.subr.mxu0 %v614_v40  ;;  %v606_v51 = vld [vmem:[%s11521_s1 + $0x1208] sm:$0xff]  ;;  %v605_v55 = vld [vmem:[%s11521_s1 + $0x1200] sm:$0xff] }
  0xc1   :  { %2688 = vmatprep.subr.mxu1 %v742_v42  ;;  %2618 = vmatpush2.msra.mxu0 %v613_v44  ;;  %v734_v53 = vld [vmem:[%s11521_s1 + $0x1608] sm:$0xff]  ;;  %v733_v56 = vld [vmem:[%s11521_s1 + $0x1600] sm:$0xff] }
  0xc2   :  { %2689 = vmatpush2.msra.mxu1 %v741_v45  ;;  %2619 = vmatprep.subr.mxu0 %v610_v46  ;;  %v858_v58 = vld [vmem:[%s11521_s1 + $0x19e8] sm:$0xff]  ;;  %v857_v60 = vld [vmem:[%s11521_s1 + $0x19e0] sm:$0xff] }
  0xc3   :  { %2690 = vmatprep.subr.mxu1 %v738_v47  ;;  %2620 = vmatpush2.msra.mxu0 %v609_v49  ;;  %v986_v59 = vld [vmem:[%s11521_s1 + $0x1de8] sm:$0xff]  ;;  %v985_v61 = vld [vmem:[%s11521_s1 + $0x1de0] sm:$0xff] }
  0xc4   :  { %2691 = vmatpush2.msra.mxu1 %v737_v50  ;;  %2621 = vmatprep.subr.mxu0 %v606_v51  ;;  %v854_v63 = vld [vmem:[%s11521_s1 + $0x19c8] sm:$0xff]  ;;  %v853_v1 = vld [vmem:[%s11521_s1 + $0x19c0] sm:$0xff] }
  0xc5   :  { %2692 = vmatprep.subr.mxu1 %v734_v53  ;;  %2622 = vmatpush2.msra.mxu0 %v605_v55  ;;  %v982_v0 = vld [vmem:[%s11521_s1 + $0x1dc8] sm:$0xff]  ;;  %v981_v2 = vld [vmem:[%s11521_s1 + $0x1dc0] sm:$0xff] }
  0xc6   :  { %2623 = vmatprep.mubr.f32.mxu0 %v6116_v54  ;;  %2693 = vmatpush2.msra.mxu1 %v733_v56  ;;  %v850_v4 = vld [vmem:[%s11521_s1 + $0x19a8] sm:$0xff]  ;;  %v849_v6 = vld [vmem:[%s11521_s1 + $0x19a0] sm:$0xff] }
  0xc7   :  { %2624 = vmatmul.mubr.f32.vlgmr.msra.gmra.mxu0 %v6085_v43  ;;  %2694 = vmatprep.mubr.f32.mxu1 %v6126_v57  ;;  %v978_v5 = vld [vmem:[%s11521_s1 + $0x1da8] sm:$0xff]  ;;  %v977_v7 = vld [vmem:[%s11521_s1 + $0x1da0] sm:$0xff] }
  0xc8   :  { %2701 = vmatprep.subr.mxu0 %v858_v58  ;;  %2772 = vmatprep.subr.mxu1 %v986_v59  ;;  %v846_v9 = vld [vmem:[%s11521_s1 + $0x1988] sm:$0xff]  ;;  %v845_v12 = vld [vmem:[%s11521_s1 + $0x1980] sm:$0xff] }
  0xc9   :  { %2695 = vmatmul.mubr.f32.vlgmr.msra.gmra.mxu1 %v6100_v48  ;;  %2702 = vmatpush1.msra.mxu0 %v857_v60  ;;  %v974_v10 = vld [vmem:[%s11521_s1 + $0x1d88] sm:$0xff]  ;;  %v973_v13 = vld [vmem:[%s11521_s1 + $0x1d80] sm:$0xff] }
  0xca   :  { %2773 = vmatpush1.msra.mxu1 %v985_v61  ;;  %2703 = vmatprep.subr.mxu0 %v854_v63  ;;  %v842_v14 = vld [vmem:[%s11521_s1 + $0x1968] sm:$0xff]  ;;  %v841_v17 = vld [vmem:[%s11521_s1 + $0x1960] sm:$0xff] }
  0xcb   :  { %2774 = vmatprep.subr.mxu1 %v982_v0  ;;  %2704 = vmatpush1.msra.mxu0 %v853_v1  ;;  %v970_v15 = vld [vmem:[%s11521_s1 + $0x1d68] sm:$0xff]  ;;  %v969_v18 = vld [vmem:[%s11521_s1 + $0x1d60] sm:$0xff] }
  0xcc   :  { %2775 = vmatpush1.msra.mxu1 %v981_v2  ;;  %2705 = vmatprep.subr.mxu0 %v850_v4  ;;  %v838_v19 = vld [vmem:[%s11521_s1 + $0x1948] sm:$0xff]  ;;  %v837_v22 = vld [vmem:[%s11521_s1 + $0x1940] sm:$0xff] }
  0xcd   :  { %2776 = vmatprep.subr.mxu1 %v978_v5  ;;  %2706 = vmatpush1.msra.mxu0 %v849_v6  ;;  %v966_v20 = vld [vmem:[%s11521_s1 + $0x1d48] sm:$0xff]  ;;  %v965_v23 = vld [vmem:[%s11521_s1 + $0x1d40] sm:$0xff] }
  0xce   :  { %2777 = vmatpush1.msra.mxu1 %v977_v7  ;;  %2707 = vmatprep.subr.mxu0 %v846_v9  ;;  %v834_v24 = vld [vmem:[%s11521_s1 + $0x1928] sm:$0xff]  ;;  %v833_v27 = vld [vmem:[%s11521_s1 + $0x1920] sm:$0xff] }
  0xcf   :  { %2778 = vmatprep.subr.mxu1 %v974_v10  ;;  %2708 = vmatpush1.msra.mxu0 %v845_v12  ;;  %v962_v25 = vld [vmem:[%s11521_s1 + $0x1d28] sm:$0xff]  ;;  %v961_v28 = vld [vmem:[%s11521_s1 + $0x1d20] sm:$0xff] }
  0xd0   :  { %2779 = vmatpush1.msra.mxu1 %v973_v13  ;;  %2709 = vmatprep.subr.mxu0 %v842_v14  ;;  %v830_v30 = vld [vmem:[%s11521_s1 + $0x1908] sm:$0xff]  ;;  %v829_v32 = vld [vmem:[%s11521_s1 + $0x1900] sm:$0xff] }
  0xd1   :  { %2780 = vmatprep.subr.mxu1 %v970_v15  ;;  %2710 = vmatpush1.msra.mxu0 %v841_v17  ;;  %v958_v31 = vld [vmem:[%s11521_s1 + $0x1d08] sm:$0xff]  ;;  %v957_v33 = vld [vmem:[%s11521_s1 + $0x1d00] sm:$0xff] }
  0xd2   :  { %2781 = vmatpush1.msra.mxu1 %v969_v18  ;;  %2711 = vmatprep.subr.mxu0 %v838_v19  ;;  %v826_v34 = vld [vmem:[%s11521_s1 + $0x18e8] sm:$0xff]  ;;  %v825_v36 = vld [vmem:[%s11521_s1 + $0x18e0] sm:$0xff] }
  0xd3   :  { %2782 = vmatprep.subr.mxu1 %v966_v20  ;;  %2712 = vmatpush1.msra.mxu0 %v837_v22  ;;  %v954_v35 = vld [vmem:[%s11521_s1 + $0x1ce8] sm:$0xff]  ;;  %v953_v37 = vld [vmem:[%s11521_s1 + $0x1ce0] sm:$0xff] }
  0xd4   :  { %2783 = vmatpush1.msra.mxu1 %v965_v23  ;;  %2713 = vmatprep.subr.mxu0 %v834_v24  ;;  %v822_v38 = vld [vmem:[%s11521_s1 + $0x18c8] sm:$0xff]  ;;  %v821_v40 = vld [vmem:[%s11521_s1 + $0x18c0] sm:$0xff] }
  0xd5   :  { %2784 = vmatprep.subr.mxu1 %v962_v25  ;;  %2714 = vmatpush1.msra.mxu0 %v833_v27  ;;  %v950_v39 = vld [vmem:[%s11521_s1 + $0x1cc8] sm:$0xff]  ;;  %v949_v42 = vld [vmem:[%s11521_s1 + $0x1cc0] sm:$0xff] }
  0xd6   :  { %2785 = vmatpush1.msra.mxu1 %v961_v28  ;;  %2715 = vmatprep.subr.mxu0 %v830_v30  ;;  %v818_v44 = vld [vmem:[%s11521_s1 + $0x18a8] sm:$0xff]  ;;  %v817_v46 = vld [vmem:[%s11521_s1 + $0x18a0] sm:$0xff] }
  0xd7   :  { %2786 = vmatprep.subr.mxu1 %v958_v31  ;;  %2716 = vmatpush1.msra.mxu0 %v829_v32  ;;  %v946_v45 = vld [vmem:[%s11521_s1 + $0x1ca8] sm:$0xff]  ;;  %v945_v47 = vld [vmem:[%s11521_s1 + $0x1ca0] sm:$0xff] }
  0xd8   :  { %2787 = vmatpush1.msra.mxu1 %v957_v33  ;;  %2717 = vmatprep.subr.mxu0 %v826_v34  ;;  %v814_v49 = vld [vmem:[%s11521_s1 + $0x1888] sm:$0xff]  ;;  %v813_v51 = vld [vmem:[%s11521_s1 + $0x1880] sm:$0xff] }
  0xd9   :  { %2788 = vmatprep.subr.mxu1 %v954_v35  ;;  %2718 = vmatpush1.msra.mxu0 %v825_v36  ;;  %v942_v50 = vld [vmem:[%s11521_s1 + $0x1c88] sm:$0xff]  ;;  %v941_v53 = vld [vmem:[%s11521_s1 + $0x1c80] sm:$0xff] }
  0xda   :  { %2789 = vmatpush1.msra.mxu1 %v953_v37  ;;  %2719 = vmatprep.subr.mxu0 %v822_v38  ;;  %v810_v55 = vld [vmem:[%s11521_s1 + $0x1868] sm:$0xff]  ;;  %v809_v58 = vld [vmem:[%s11521_s1 + $0x1860] sm:$0xff] }
  0xdb   :  { %2790 = vmatprep.subr.mxu1 %v950_v39  ;;  %2720 = vmatpush1.msra.mxu0 %v821_v40  ;;  %v938_v56 = vld [vmem:[%s11521_s1 + $0x1c68] sm:$0xff]  ;;  %v937_v59 = vld [vmem:[%s11521_s1 + $0x1c60] sm:$0xff] }
  0xdc   :  { %2791 = vmatpush1.msra.mxu1 %v949_v42  ;;  %2721 = vmatprep.subr.mxu0 %v818_v44  ;;  %v806_v60 = vld [vmem:[%s11521_s1 + $0x1848] sm:$0xff]  ;;  %v805_v63 = vld [vmem:[%s11521_s1 + $0x1840] sm:$0xff] }
  0xdd   :  { %2792 = vmatprep.subr.mxu1 %v946_v45  ;;  %2722 = vmatpush1.msra.mxu0 %v817_v46  ;;  %v934_v61 = vld [vmem:[%s11521_s1 + $0x1c48] sm:$0xff]  ;;  %v933_v0 = vld [vmem:[%s11521_s1 + $0x1c40] sm:$0xff] }
  0xde   :  { %2793 = vmatpush1.msra.mxu1 %v945_v47  ;;  %2723 = vmatprep.subr.mxu0 %v814_v49  ;;  %v802_v1 = vld [vmem:[%s11521_s1 + $0x1828] sm:$0xff]  ;;  %v801_v4 = vld [vmem:[%s11521_s1 + $0x1820] sm:$0xff] }
  0xdf   :  { %2794 = vmatprep.subr.mxu1 %v942_v50  ;;  %2724 = vmatpush1.msra.mxu0 %v813_v51  ;;  %v930_v2 = vld [vmem:[%s11521_s1 + $0x1c28] sm:$0xff]  ;;  %v929_v5 = vld [vmem:[%s11521_s1 + $0x1c20] sm:$0xff] }
  0xe0   :  { %2795 = vmatpush1.msra.mxu1 %v941_v53  ;;  %2725 = vmatprep.subr.mxu0 %v810_v55  ;;  %v798_v6 = vld [vmem:[%s11521_s1 + $0x1808] sm:$0xff]  ;;  %v797_v9 = vld [vmem:[%s11521_s1 + $0x1800] sm:$0xff] }
  0xe1   :  { %2796 = vmatprep.subr.mxu1 %v938_v56  ;;  %2726 = vmatpush1.msra.mxu0 %v809_v58  ;;  %v926_v7 = vld [vmem:[%s11521_s1 + $0x1c08] sm:$0xff]  ;;  %v925_v10 = vld [vmem:[%s11521_s1 + $0x1c00] sm:$0xff] }
  0xe2   :  { %2797 = vmatpush1.msra.mxu1 %v937_v59  ;;  %2727 = vmatprep.subr.mxu0 %v806_v60  ;;  %v922_v12 = vld [vmem:[%s11521_s1 + $0x1be8] sm:$0xff]  ;;  %v921_v14 = vld [vmem:[%s11521_s1 + $0x1be0] sm:$0xff] }
  0xe3   :  { %2798 = vmatprep.subr.mxu1 %v934_v61  ;;  %2728 = vmatpush1.msra.mxu0 %v805_v63  ;;  %v1050_v13 = vld [vmem:[%s11521_s1 + $0x1fe8] sm:$0xff]  ;;  %v1049_v15 = vld [vmem:[%s11521_s1 + $0x1fe0] sm:$0xff] }
  0xe4   :  { %2799 = vmatpush1.msra.mxu1 %v933_v0  ;;  %2729 = vmatprep.subr.mxu0 %v802_v1  ;;  %v918_v17 = vld [vmem:[%s11521_s1 + $0x1bc8] sm:$0xff]  ;;  %v917_v19 = vld [vmem:[%s11521_s1 + $0x1bc0] sm:$0xff] }
  0xe5   :  { %2800 = vmatprep.subr.mxu1 %v930_v2  ;;  %2730 = vmatpush1.msra.mxu0 %v801_v4  ;;  %v1046_v18 = vld [vmem:[%s11521_s1 + $0x1fc8] sm:$0xff]  ;;  %v1045_v20 = vld [vmem:[%s11521_s1 + $0x1fc0] sm:$0xff] }
  0xe6   :  { %2801 = vmatpush1.msra.mxu1 %v929_v5  ;;  %2731 = vmatprep.subr.mxu0 %v798_v6  ;;  %v914_v22 = vld [vmem:[%s11521_s1 + $0x1ba8] sm:$0xff]  ;;  %v913_v24 = vld [vmem:[%s11521_s1 + $0x1ba0] sm:$0xff] }
  0xe7   :  { %2802 = vmatprep.subr.mxu1 %v926_v7  ;;  %2732 = vmatpush1.msra.mxu0 %v797_v9  ;;  %v1042_v23 = vld [vmem:[%s11521_s1 + $0x1fa8] sm:$0xff]  ;;  %v1041_v25 = vld [vmem:[%s11521_s1 + $0x1fa0] sm:$0xff] }
  0xe8   :  { %2803 = vmatpush1.msra.mxu1 %v925_v10  ;;  %2733 = vmatprep.subr.mxu0 %v922_v12  ;;  %v910_v27 = vld [vmem:[%s11521_s1 + $0x1b88] sm:$0xff]  ;;  %v909_v30 = vld [vmem:[%s11521_s1 + $0x1b80] sm:$0xff] }
  0xe9   :  { %2804 = vmatprep.subr.mxu1 %v1050_v13  ;;  %2734 = vmatpush2.msra.mxu0 %v921_v14  ;;  %v1038_v28 = vld [vmem:[%s11521_s1 + $0x1f88] sm:$0xff]  ;;  %v1037_v31 = vld [vmem:[%s11521_s1 + $0x1f80] sm:$0xff] }
  0xea   :  { %2805 = vmatpush2.msra.mxu1 %v1049_v15  ;;  %2735 = vmatprep.subr.mxu0 %v918_v17  ;;  %v906_v32 = vld [vmem:[%s11521_s1 + $0x1b68] sm:$0xff]  ;;  %v905_v34 = vld [vmem:[%s11521_s1 + $0x1b60] sm:$0xff] }
  0xeb   :  { %2806 = vmatprep.subr.mxu1 %v1046_v18  ;;  %2736 = vmatpush2.msra.mxu0 %v917_v19  ;;  %v1034_v33 = vld [vmem:[%s11521_s1 + $0x1f68] sm:$0xff]  ;;  %v1033_v35 = vld [vmem:[%s11521_s1 + $0x1f60] sm:$0xff] }
  0xec   :  { %2807 = vmatpush2.msra.mxu1 %v1045_v20  ;;  %2737 = vmatprep.subr.mxu0 %v914_v22  ;;  %v902_v36 = vld [vmem:[%s11521_s1 + $0x1b48] sm:$0xff]  ;;  %v901_v38 = vld [vmem:[%s11521_s1 + $0x1b40] sm:$0xff] }
  0xed   :  { %2808 = vmatprep.subr.mxu1 %v1042_v23  ;;  %2738 = vmatpush2.msra.mxu0 %v913_v24  ;;  %v1030_v37 = vld [vmem:[%s11521_s1 + $0x1f48] sm:$0xff]  ;;  %v1029_v39 = vld [vmem:[%s11521_s1 + $0x1f40] sm:$0xff] }
  0xee   :  { %2809 = vmatpush2.msra.mxu1 %v1041_v25  ;;  %2739 = vmatprep.subr.mxu0 %v910_v27  ;;  %v898_v40 = vld [vmem:[%s11521_s1 + $0x1b28] sm:$0xff]  ;;  %v897_v44 = vld [vmem:[%s11521_s1 + $0x1b20] sm:$0xff] }
  0xef   :  { %2810 = vmatprep.subr.mxu1 %v1038_v28  ;;  %2740 = vmatpush2.msra.mxu0 %v909_v30  ;;  %v1026_v42 = vld [vmem:[%s11521_s1 + $0x1f28] sm:$0xff]  ;;  %v1025_v45 = vld [vmem:[%s11521_s1 + $0x1f20] sm:$0xff] }
  0xf0   :  { %2811 = vmatpush2.msra.mxu1 %v1037_v31  ;;  %2741 = vmatprep.subr.mxu0 %v906_v32  ;;  %v894_v46 = vld [vmem:[%s11521_s1 + $0x1b08] sm:$0xff] }
  0xf1   :  { %2812 = vmatprep.subr.mxu1 %v1034_v33  ;;  %2742 = vmatpush2.msra.mxu0 %v905_v34  ;;  %v1022_v47 = vld [vmem:[%s11521_s1 + $0x1f08] sm:$0xff] }
  0xf2   :  { %2813 = vmatpush2.msra.mxu1 %v1033_v35  ;;  %2743 = vmatprep.subr.mxu0 %v902_v36 }
  0xf3   :  { %2814 = vmatprep.subr.mxu1 %v1030_v37  ;;  %2744 = vmatpush2.msra.mxu0 %v901_v38 }
  0xf4   :  { %2815 = vmatpush2.msra.mxu1 %v1029_v39 }
  0xf5   :  { %10 = vsyncpa [#allocation3], 0  ;;  %2745 = vmatprep.subr.mxu0 %v898_v40  ;;  %2816 = vmatprep.subr.mxu1 %v1026_v42  ;;  %v893_v49 = vld [vmem:[%s11521_s1 + $0x1b00] sm:$0xff]  ;;  %v890_v51 = vld [vmem:[%s11521_s1 + $0x1ae8] sm:$0xff]  ;;  %s4881_s8 = smov [#allocation2]  }
  0xf6   :  { %v1021_v50 = vld [vmem:[%s11521_s1 + $0x1f00] sm:$0xff]  ;;  %2746 = vmatpush2.msra.mxu0 %v897_v44  ;;  %2817 = vmatpush2.msra.mxu1 %v1025_v45  ;;  %v1018_v53 = vld [vmem:[%s11521_s1 + $0x1ee8] sm:$0xff]  ;;  %v24_v4 = vld [vmem:[%s11520_s0 + $0x18] sm:$0xff]  ;;  %s4769_s9 = sshll.u32 %s4881_s8, 4  ;;  %s4770_s9 = int_to_ptr.vmem [resolvable:$true] %s4769_s9 }
  0xf7   :  { %2747 = vmatprep.subr.mxu0 %v894_v46  ;;  %2818 = vmatprep.subr.mxu1 %v1022_v47  ;;  %v889_v55 = vld [vmem:[%s11521_s1 + $0x1ae0] sm:$0xff]  ;;  %v886_v58 = vld [vmem:[%s11521_s1 + $0x1ac8] sm:$0xff]  ;;  %v2158_v13 = vcombine.high %v24_v4, %v24_v4  ;;  %v6490_v19 = vrot.slane %v24_v4, %v5248_v52  ;;  %s4858_s10 = scalar_lea.vmem %s4770_s9, 32  ;;  %p4863_p1 = scmp.lt.s32.totalorder %s4770_s9, %s4770_s9 }
  0xf8   :  { %v1017_v56 = vld [vmem:[%s11521_s1 + $0x1ee0] sm:$0xff]  ;;  %2748 = vmatpush2.msra.mxu0 %v893_v49  ;;  %2819 = vmatpush2.msra.mxu1 %v1021_v50  ;;  %v1014_v59 = vld [vmem:[%s11521_s1 + $0x1ec8] sm:$0xff]  ;;  %p4859_p0 = scmp.ne.s32.totalorder %s4770_s9, %s4858_s10  ;;  %p4864_p2 = scmp.lt.s32.totalorder %s4858_s10, %s4858_s10 }
  0xf9   :  { %2749 = vmatprep.subr.mxu0 %v890_v51  ;;  %2820 = vmatprep.subr.mxu1 %v1018_v53  ;;  %v885_v60 = vld [vmem:[%s11521_s1 + $0x1ac0] sm:$0xff]  ;;  %v882_v63 = vld [vmem:[%s11521_s1 + $0x1aa8] sm:$0xff]  ;;  %v6505_v25 = vrot.slane %v2158_v13, %v5248_v52  ;;  %v6521_v32 = vcombine.high %v6490_v19, %v6490_v19 }
  0xfa   :  { %v1013_v61 = vld [vmem:[%s11521_s1 + $0x1ec0] sm:$0xff]  ;;  %2750 = vmatpush2.msra.mxu0 %v889_v55  ;;  %2821 = vmatpush2.msra.mxu1 %v1017_v56  ;;  %v1010_v0 = vld [vmem:[%s11521_s1 + $0x1ea8] sm:$0xff]  ;;  %p4865_p3 = por %p4864_p2, %p4863_p1 }
  0xfb   :  { %2751 = vmatprep.subr.mxu0 %v886_v58  ;;  %2822 = vmatprep.subr.mxu1 %v1014_v59  ;;  %v881_v1 = vld [vmem:[%s11521_s1 + $0x1aa0] sm:$0xff]  ;;  %v878_v5 = vld [vmem:[%s11521_s1 + $0x1a88] sm:$0xff]  ;;  %v6531_v35 = vcombine.high %v6505_v25, %v6505_v25 }
  0xfc   :  { %v1009_v2 = vld [vmem:[%s11521_s1 + $0x1ea0] sm:$0xff]  ;;  %2752 = vmatpush2.msra.mxu0 %v885_v60  ;;  %2823 = vmatpush2.msra.mxu1 %v1013_v61  ;;  %v1006_v6 = vld [vmem:[%s11521_s1 + $0x1e88] sm:$0xff]  ;;  %p4866_p4 = pnand %p4865_p3, %p4859_p0 }
  0xfd   :  { %2753 = vmatprep.subr.mxu0 %v882_v63  ;;  %2824 = vmatprep.subr.mxu1 %v1010_v0  ;;  %v877_v7 = vld [vmem:[%s11521_s1 + $0x1a80] sm:$0xff]  ;;  %v874_v10 = vld [vmem:[%s11521_s1 + $0x1a68] sm:$0xff] }
  0xfe   :  { %v1005_v9 = vld [vmem:[%s11521_s1 + $0x1e80] sm:$0xff]  ;;  %2754 = vmatpush2.msra.mxu0 %v881_v1  ;;  %2825 = vmatpush2.msra.mxu1 %v1009_v2  ;;  %v1002_v12 = vld [vmem:[%s11521_s1 + $0x1e68] sm:$0xff] }
  0xff   :  { %2755 = vmatprep.subr.mxu0 %v878_v5  ;;  %2826 = vmatprep.subr.mxu1 %v1006_v6  ;;  %v873_v14 = vld [vmem:[%s11521_s1 + $0x1a60] sm:$0xff]  ;;  %v870_v17 = vld [vmem:[%s11521_s1 + $0x1a48] sm:$0xff] }
 0x100   :  { %v1001_v15 = vld [vmem:[%s11521_s1 + $0x1e60] sm:$0xff]  ;;  %2756 = vmatpush2.msra.mxu0 %v877_v7  ;;  %2827 = vmatpush2.msra.mxu1 %v1005_v9  ;;  %v998_v18 = vld [vmem:[%s11521_s1 + $0x1e48] sm:$0xff] }
 0x101   :  { %2757 = vmatprep.subr.mxu0 %v874_v10  ;;  %2828 = vmatprep.subr.mxu1 %v1002_v12  ;;  %v869_v20 = vld [vmem:[%s11521_s1 + $0x1a40] sm:$0xff]  ;;  %v866_v23 = vld [vmem:[%s11521_s1 + $0x1a28] sm:$0xff] }
 0x102   :  { %v997_v22 = vld [vmem:[%s11521_s1 + $0x1e40] sm:$0xff]  ;;  %2758 = vmatpush2.msra.mxu0 %v873_v14  ;;  %2829 = vmatpush2.msra.mxu1 %v1001_v15  ;;  %v994_v24 = vld [vmem:[%s11521_s1 + $0x1e28] sm:$0xff] }
 0x103   :  { %2759 = vmatprep.subr.mxu0 %v870_v17  ;;  %2830 = vmatprep.subr.mxu1 %v998_v18  ;;  %v865_v27 = vld [vmem:[%s11521_s1 + $0x1a20] sm:$0xff]  ;;  %v862_v30 = vld [vmem:[%s11521_s1 + $0x1a08] sm:$0xff] }
 0x104   :  { %v993_v28 = vld [vmem:[%s11521_s1 + $0x1e20] sm:$0xff]  ;;  %2760 = vmatpush2.msra.mxu0 %v869_v20  ;;  %2831 = vmatpush2.msra.mxu1 %v997_v22  ;;  %v990_v31 = vld [vmem:[%s11521_s1 + $0x1e08] sm:$0xff] }
 0x105   :  { %2761 = vmatprep.subr.mxu0 %v866_v23  ;;  %2832 = vmatprep.subr.mxu1 %v994_v24  ;;  %v861_v33 = vld [vmem:[%s11521_s1 + $0x1a00] sm:$0xff]  ;;  %v1114_v36 = vld [vmem:[%s11521_s1 + $0x21e8] sm:$0xff] }
 0x106   :  { %2762 = vmatpush2.msra.mxu0 %v865_v27  ;;  %2833 = vmatpush2.msra.mxu1 %v993_v28  ;;  %v989_v34 = vld [vmem:[%s11521_s1 + $0x1e00] sm:$0xff]  ;;  %v1242_v37 = vld [vmem:[%s11521_s1 + $0x25e8] sm:$0xff] }
 0x107   :  { %2763 = vmatprep.subr.mxu0 %v862_v30  ;;  %2834 = vmatprep.subr.mxu1 %v990_v31  ;;  %v1113_v38 = vld [vmem:[%s11521_s1 + $0x21e0] sm:$0xff]  ;;  %v1110_v40 = vld [vmem:[%s11521_s1 + $0x21c8] sm:$0xff] }
 0x108   :  { %2764 = vmatpush2.msra.mxu0 %v861_v33  ;;  %2765 = vmatprep.mubr.f32.mxu0 %v6521_v32  ;;  %v1241_v39 = vld [vmem:[%s11521_s1 + $0x25e0] sm:$0xff]  ;;  %v1238_v42 = vld [vmem:[%s11521_s1 + $0x25c8] sm:$0xff] }
 0x109   :  { %2835 = vmatpush2.msra.mxu1 %v989_v34  ;;  %2766 = vmatmul.mubr.f32.vlgmr.msra.gmra.mxu0 %v6490_v19  ;;  %v1109_v44 = vld [vmem:[%s11521_s1 + $0x21c0] sm:$0xff]  ;;  %v1106_v46 = vld [vmem:[%s11521_s1 + $0x21a8] sm:$0xff] }
 0x10a   :  { %2836 = vmatprep.mubr.f32.mxu1 %v6531_v35  ;;  %2843 = vmatprep.subr.mxu0 %v1114_v36  ;;  %v1237_v45 = vld [vmem:[%s11521_s1 + $0x25c0] sm:$0xff]  ;;  %v1234_v47 = vld [vmem:[%s11521_s1 + $0x25a8] sm:$0xff] }
 0x10b   :  { %2914 = vmatprep.subr.mxu1 %v1242_v37  ;;  %2837 = vmatmul.mubr.f32.vlgmr.msra.gmra.mxu1 %v6505_v25  ;;  %v1105_v49 = vld [vmem:[%s11521_s1 + $0x21a0] sm:$0xff]  ;;  %v1102_v51 = vld [vmem:[%s11521_s1 + $0x2188] sm:$0xff] }
 0x10c   :  { %2844 = vmatpush1.msra.mxu0 %v1113_v38  ;;  %2915 = vmatpush1.msra.mxu1 %v1241_v39  ;;  %v1233_v50 = vld [vmem:[%s11521_s1 + $0x25a0] sm:$0xff]  ;;  %v1230_v53 = vld [vmem:[%s11521_s1 + $0x2588] sm:$0xff] }
 0x10d   :  { %2845 = vmatprep.subr.mxu0 %v1110_v40  ;;  %2916 = vmatprep.subr.mxu1 %v1238_v42  ;;  %v1101_v55 = vld [vmem:[%s11521_s1 + $0x2180] sm:$0xff]  ;;  %v1098_v58 = vld [vmem:[%s11521_s1 + $0x2168] sm:$0xff] }
 0x10e   :  { %2846 = vmatpush1.msra.mxu0 %v1109_v44  ;;  %2917 = vmatpush1.msra.mxu1 %v1237_v45  ;;  %v1229_v56 = vld [vmem:[%s11521_s1 + $0x2580] sm:$0xff]  ;;  %v1226_v59 = vld [vmem:[%s11521_s1 + $0x2568] sm:$0xff] }
 0x10f   :  { %2847 = vmatprep.subr.mxu0 %v1106_v46  ;;  %2918 = vmatprep.subr.mxu1 %v1234_v47  ;;  %v1097_v60 = vld [vmem:[%s11521_s1 + $0x2160] sm:$0xff]  ;;  %v1094_v63 = vld [vmem:[%s11521_s1 + $0x2148] sm:$0xff] }
 0x110   :  { %2848 = vmatpush1.msra.mxu0 %v1105_v49  ;;  %2919 = vmatpush1.msra.mxu1 %v1233_v50  ;;  %v1225_v61 = vld [vmem:[%s11521_s1 + $0x2560] sm:$0xff]  ;;  %v1222_v0 = vld [vmem:[%s11521_s1 + $0x2548] sm:$0xff] }
 0x111   :  { %2849 = vmatprep.subr.mxu0 %v1102_v51  ;;  %2920 = vmatprep.subr.mxu1 %v1230_v53  ;;  %v1093_v1 = vld [vmem:[%s11521_s1 + $0x2140] sm:$0xff]  ;;  %v1090_v4 = vld [vmem:[%s11521_s1 + $0x2128] sm:$0xff] }
 0x112   :  { %2850 = vmatpush1.msra.mxu0 %v1101_v55  ;;  %2921 = vmatpush1.msra.mxu1 %v1229_v56  ;;  %v1221_v2 = vld [vmem:[%s11521_s1 + $0x2540] sm:$0xff]  ;;  %v1218_v5 = vld [vmem:[%s11521_s1 + $0x2528] sm:$0xff] }
 0x113   :  { %2851 = vmatprep.subr.mxu0 %v1098_v58  ;;  %2922 = vmatprep.subr.mxu1 %v1226_v59  ;;  %v1089_v6 = vld [vmem:[%s11521_s1 + $0x2120] sm:$0xff]  ;;  %v1086_v9 = vld [vmem:[%s11521_s1 + $0x2108] sm:$0xff] }
 0x114   :  { %2852 = vmatpush1.msra.mxu0 %v1097_v60  ;;  %2923 = vmatpush1.msra.mxu1 %v1225_v61  ;;  %v1217_v7 = vld [vmem:[%s11521_s1 + $0x2520] sm:$0xff]  ;;  %v1214_v10 = vld [vmem:[%s11521_s1 + $0x2508] sm:$0xff] }
 0x115   :  { %2853 = vmatprep.subr.mxu0 %v1094_v63  ;;  %2924 = vmatprep.subr.mxu1 %v1222_v0  ;;  %v1085_v12 = vld [vmem:[%s11521_s1 + $0x2100] sm:$0xff]  ;;  %v1082_v14 = vld [vmem:[%s11521_s1 + $0x20e8] sm:$0xff] }
 0x116   :  { %2854 = vmatpush1.msra.mxu0 %v1093_v1  ;;  %2925 = vmatpush1.msra.mxu1 %v1221_v2  ;;  %v1213_v13 = vld [vmem:[%s11521_s1 + $0x2500] sm:$0xff]  ;;  %v1210_v15 = vld [vmem:[%s11521_s1 + $0x24e8] sm:$0xff] }
 0x117   :  { %2855 = vmatprep.subr.mxu0 %v1090_v4  ;;  %2926 = vmatprep.subr.mxu1 %v1218_v5  ;;  %v1081_v17 = vld [vmem:[%s11521_s1 + $0x20e0] sm:$0xff]  ;;  %v1078_v20 = vld [vmem:[%s11521_s1 + $0x20c8] sm:$0xff] }
 0x118   :  { %2856 = vmatpush1.msra.mxu0 %v1089_v6  ;;  %2927 = vmatpush1.msra.mxu1 %v1217_v7  ;;  %v1209_v18 = vld [vmem:[%s11521_s1 + $0x24e0] sm:$0xff]  ;;  %v1206_v22 = vld [vmem:[%s11521_s1 + $0x24c8] sm:$0xff] }
 0x119   :  { %2857 = vmatprep.subr.mxu0 %v1086_v9  ;;  %2928 = vmatprep.subr.mxu1 %v1214_v10  ;;  %v1077_v23 = vld [vmem:[%s11521_s1 + $0x20c0] sm:$0xff]  ;;  %v1074_v27 = vld [vmem:[%s11521_s1 + $0x20a8] sm:$0xff] }
 0x11a   :  { %2858 = vmatpush1.msra.mxu0 %v1085_v12  ;;  %2929 = vmatpush1.msra.mxu1 %v1213_v13  ;;  %v1205_v24 = vld [vmem:[%s11521_s1 + $0x24c0] sm:$0xff]  ;;  %v1202_v28 = vld [vmem:[%s11521_s1 + $0x24a8] sm:$0xff] }
 0x11b   :  { %2859 = vmatprep.subr.mxu0 %v1082_v14  ;;  %2930 = vmatprep.subr.mxu1 %v1210_v15  ;;  %v1073_v30 = vld [vmem:[%s11521_s1 + $0x20a0] sm:$0xff]  ;;  %v1070_v33 = vld [vmem:[%s11521_s1 + $0x2088] sm:$0xff] }
 0x11c   :  { %2860 = vmatpush1.msra.mxu0 %v1081_v17  ;;  %2931 = vmatpush1.msra.mxu1 %v1209_v18  ;;  %v1201_v31 = vld [vmem:[%s11521_s1 + $0x24a0] sm:$0xff]  ;;  %v1198_v34 = vld [vmem:[%s11521_s1 + $0x2488] sm:$0xff] }
 0x11d   :  { %2861 = vmatprep.subr.mxu0 %v1078_v20  ;;  %2932 = vmatprep.subr.mxu1 %v1206_v22  ;;  %v1069_v36 = vld [vmem:[%s11521_s1 + $0x2080] sm:$0xff]  ;;  %v1066_v38 = vld [vmem:[%s11521_s1 + $0x2068] sm:$0xff] }
 0x11e   :  { %2862 = vmatpush1.msra.mxu0 %v1077_v23  ;;  %2933 = vmatpush1.msra.mxu1 %v1205_v24  ;;  %v1197_v37 = vld [vmem:[%s11521_s1 + $0x2480] sm:$0xff]  ;;  %v1194_v39 = vld [vmem:[%s11521_s1 + $0x2468] sm:$0xff] }
 0x11f   :  { %2863 = vmatprep.subr.mxu0 %v1074_v27  ;;  %2934 = vmatprep.subr.mxu1 %v1202_v28  ;;  %v1065_v40 = vld [vmem:[%s11521_s1 + $0x2060] sm:$0xff]  ;;  %v1062_v44 = vld [vmem:[%s11521_s1 + $0x2048] sm:$0xff] }
 0x120   :  { %2864 = vmatpush1.msra.mxu0 %v1073_v30  ;;  %2935 = vmatpush1.msra.mxu1 %v1201_v31  ;;  %v1193_v42 = vld [vmem:[%s11521_s1 + $0x2460] sm:$0xff]  ;;  %v1190_v45 = vld [vmem:[%s11521_s1 + $0x2448] sm:$0xff] }
 0x121   :  { %2865 = vmatprep.subr.mxu0 %v1070_v33  ;;  %2936 = vmatprep.subr.mxu1 %v1198_v34  ;;  %v1061_v46 = vld [vmem:[%s11521_s1 + $0x2040] sm:$0xff]  ;;  %v1058_v49 = vld [vmem:[%s11521_s1 + $0x2028] sm:$0xff] }
 0x122   :  { %2866 = vmatpush1.msra.mxu0 %v1069_v36  ;;  %2937 = vmatpush1.msra.mxu1 %v1197_v37  ;;  %v1189_v47 = vld [vmem:[%s11521_s1 + $0x2440] sm:$0xff]  ;;  %v1186_v50 = vld [vmem:[%s11521_s1 + $0x2428] sm:$0xff] }
 0x123   :  { %2867 = vmatprep.subr.mxu0 %v1066_v38  ;;  %2938 = vmatprep.subr.mxu1 %v1194_v39  ;;  %v1057_v51 = vld [vmem:[%s11521_s1 + $0x2020] sm:$0xff]  ;;  %v1054_v55 = vld [vmem:[%s11521_s1 + $0x2008] sm:$0xff] }
 0x124   :  { %2868 = vmatpush1.msra.mxu0 %v1065_v40  ;;  %2939 = vmatpush1.msra.mxu1 %v1193_v42  ;;  %v1185_v53 = vld [vmem:[%s11521_s1 + $0x2420] sm:$0xff]  ;;  %v1182_v56 = vld [vmem:[%s11521_s1 + $0x2408] sm:$0xff] }
 0x125   :  { %2869 = vmatprep.subr.mxu0 %v1062_v44  ;;  %2940 = vmatprep.subr.mxu1 %v1190_v45  ;;  %v1053_v58 = vld [vmem:[%s11521_s1 + $0x2000] sm:$0xff]  ;;  %v1178_v60 = vld [vmem:[%s11521_s1 + $0x23e8] sm:$0xff] }
 0x126   :  { %2870 = vmatpush1.msra.mxu0 %v1061_v46  ;;  %2941 = vmatpush1.msra.mxu1 %v1189_v47  ;;  %v1181_v59 = vld [vmem:[%s11521_s1 + $0x2400] sm:$0xff]  ;;  %v1306_v61 = vld [vmem:[%s11521_s1 + $0x27e8] sm:$0xff] }
 0x127   :  { %2871 = vmatprep.subr.mxu0 %v1058_v49  ;;  %2942 = vmatprep.subr.mxu1 %v1186_v50  ;;  %v1177_v63 = vld [vmem:[%s11521_s1 + $0x23e0] sm:$0xff]  ;;  %v1174_v1 = vld [vmem:[%s11521_s1 + $0x23c8] sm:$0xff] }
 0x128   :  { %2872 = vmatpush1.msra.mxu0 %v1057_v51  ;;  %2943 = vmatpush1.msra.mxu1 %v1185_v53  ;;  %v1305_v0 = vld [vmem:[%s11521_s1 + $0x27e0] sm:$0xff]  ;;  %v1302_v2 = vld [vmem:[%s11521_s1 + $0x27c8] sm:$0xff] }
 0x129   :  { %2873 = vmatprep.subr.mxu0 %v1054_v55  ;;  %2944 = vmatprep.subr.mxu1 %v1182_v56  ;;  %v1173_v4 = vld [vmem:[%s11521_s1 + $0x23c0] sm:$0xff]  ;;  %v1170_v6 = vld [vmem:[%s11521_s1 + $0x23a8] sm:$0xff] }
 0x12a   :  { %2874 = vmatpush1.msra.mxu0 %v1053_v58  ;;  %2945 = vmatpush1.msra.mxu1 %v1181_v59  ;;  %v1301_v5 = vld [vmem:[%s11521_s1 + $0x27c0] sm:$0xff]  ;;  %v1298_v7 = vld [vmem:[%s11521_s1 + $0x27a8] sm:$0xff] }
 0x12b   :  { %2875 = vmatprep.subr.mxu0 %v1178_v60  ;;  %2946 = vmatprep.subr.mxu1 %v1306_v61  ;;  %v1169_v9 = vld [vmem:[%s11521_s1 + $0x23a0] sm:$0xff]  ;;  %v1166_v12 = vld [vmem:[%s11521_s1 + $0x2388] sm:$0xff] }
 0x12c   :  { %2876 = vmatpush2.msra.mxu0 %v1177_v63  ;;  %2947 = vmatpush2.msra.mxu1 %v1305_v0  ;;  %v1297_v10 = vld [vmem:[%s11521_s1 + $0x27a0] sm:$0xff]  ;;  %v1294_v13 = vld [vmem:[%s11521_s1 + $0x2788] sm:$0xff] }
 0x12d   :  { %2877 = vmatprep.subr.mxu0 %v1174_v1  ;;  %2948 = vmatprep.subr.mxu1 %v1302_v2  ;;  %v1165_v14 = vld [vmem:[%s11521_s1 + $0x2380] sm:$0xff]  ;;  %v1162_v17 = vld [vmem:[%s11521_s1 + $0x2368] sm:$0xff] }
 0x12e   :  { %2878 = vmatpush2.msra.mxu0 %v1173_v4  ;;  %2949 = vmatpush2.msra.mxu1 %v1301_v5  ;;  %v1293_v15 = vld [vmem:[%s11521_s1 + $0x2780] sm:$0xff]  ;;  %v1290_v18 = vld [vmem:[%s11521_s1 + $0x2768] sm:$0xff] }
 0x12f   :  { %2879 = vmatprep.subr.mxu0 %v1170_v6  ;;  %2950 = vmatprep.subr.mxu1 %v1298_v7  ;;  %v1161_v20 = vld [vmem:[%s11521_s1 + $0x2360] sm:$0xff]  ;;  %v1158_v23 = vld [vmem:[%s11521_s1 + $0x2348] sm:$0xff] }
 0x130   :  { %2880 = vmatpush2.msra.mxu0 %v1169_v9  ;;  %2951 = vmatpush2.msra.mxu1 %v1297_v10  ;;  %v1289_v22 = vld [vmem:[%s11521_s1 + $0x2760] sm:$0xff]  ;;  %v1286_v24 = vld [vmem:[%s11521_s1 + $0x2748] sm:$0xff] }
 0x131   :  { %2881 = vmatprep.subr.mxu0 %v1166_v12  ;;  %2952 = vmatprep.subr.mxu1 %v1294_v13  ;;  %v1157_v27 = vld [vmem:[%s11521_s1 + $0x2340] sm:$0xff]  ;;  %v1154_v30 = vld [vmem:[%s11521_s1 + $0x2328] sm:$0xff] }
 0x132   :  { %2882 = vmatpush2.msra.mxu0 %v1165_v14  ;;  %2953 = vmatpush2.msra.mxu1 %v1293_v15  ;;  %v1285_v28 = vld [vmem:[%s11521_s1 + $0x2740] sm:$0xff]  ;;  %v1282_v31 = vld [vmem:[%s11521_s1 + $0x2728] sm:$0xff] }
 0x133   :  { %2883 = vmatprep.subr.mxu0 %v1162_v17  ;;  %2954 = vmatprep.subr.mxu1 %v1290_v18  ;;  %v1153_v33 = vld [vmem:[%s11521_s1 + $0x2320] sm:$0xff]  ;;  %v1150_v36 = vld [vmem:[%s11521_s1 + $0x2308] sm:$0xff] }
 0x134   :  { %2884 = vmatpush2.msra.mxu0 %v1161_v20  ;;  %2955 = vmatpush2.msra.mxu1 %v1289_v22  ;;  %v1281_v34 = vld [vmem:[%s11521_s1 + $0x2720] sm:$0xff]  ;;  %v1278_v37 = vld [vmem:[%s11521_s1 + $0x2708] sm:$0xff] }
 0x135   :  { %2885 = vmatprep.subr.mxu0 %v1158_v23  ;;  %2956 = vmatprep.subr.mxu1 %v1286_v24  ;;  %v1149_v38 = vld [vmem:[%s11521_s1 + $0x2300] sm:$0xff]  ;;  %v1146_v40 = vld [vmem:[%s11521_s1 + $0x22e8] sm:$0xff] }
 0x136   :  { %2886 = vmatpush2.msra.mxu0 %v1157_v27  ;;  %2957 = vmatpush2.msra.mxu1 %v1285_v28  ;;  %v1277_v39 = vld [vmem:[%s11521_s1 + $0x2700] sm:$0xff]  ;;  %v1274_v42 = vld [vmem:[%s11521_s1 + $0x26e8] sm:$0xff] }
 0x137   :  { %2887 = vmatprep.subr.mxu0 %v1154_v30  ;;  %2958 = vmatprep.subr.mxu1 %v1282_v31  ;;  %v1145_v44 = vld [vmem:[%s11521_s1 + $0x22e0] sm:$0xff]  ;;  %v1142_v46 = vld [vmem:[%s11521_s1 + $0x22c8] sm:$0xff] }
 0x138   :  { %2888 = vmatpush2.msra.mxu0 %v1153_v33  ;;  %2959 = vmatpush2.msra.mxu1 %v1281_v34  ;;  %v1273_v45 = vld [vmem:[%s11521_s1 + $0x26e0] sm:$0xff]  ;;  %v1270_v47 = vld [vmem:[%s11521_s1 + $0x26c8] sm:$0xff] }
 0x139   :  { %2889 = vmatprep.subr.mxu0 %v1150_v36  ;;  %2960 = vmatprep.subr.mxu1 %v1278_v37  ;;  %v1141_v49 = vld [vmem:[%s11521_s1 + $0x22c0] sm:$0xff]  ;;  %v1138_v51 = vld [vmem:[%s11521_s1 + $0x22a8] sm:$0xff] }
 0x13a   :  { %2890 = vmatpush2.msra.mxu0 %v1149_v38  ;;  %2961 = vmatpush2.msra.mxu1 %v1277_v39  ;;  %v1269_v50 = vld [vmem:[%s11521_s1 + $0x26c0] sm:$0xff]  ;;  %v1266_v53 = vld [vmem:[%s11521_s1 + $0x26a8] sm:$0xff] }
 0x13b   :  { %2891 = vmatprep.subr.mxu0 %v1146_v40  ;;  %2962 = vmatprep.subr.mxu1 %v1274_v42  ;;  %v1137_v55 = vld [vmem:[%s11521_s1 + $0x22a0] sm:$0xff]  ;;  %v1134_v59 = vld [vmem:[%s11521_s1 + $0x2288] sm:$0xff] }
 0x13c   :  { %2892 = vmatpush2.msra.mxu0 %v1145_v44  ;;  %2963 = vmatpush2.msra.mxu1 %v1273_v45  ;;  %v1265_v56 = vld [vmem:[%s11521_s1 + $0x26a0] sm:$0xff]  ;;  %v1262_v60 = vld [vmem:[%s11521_s1 + $0x2688] sm:$0xff] }
 0x13d   :  { %2893 = vmatprep.subr.mxu0 %v1142_v46  ;;  %2964 = vmatprep.subr.mxu1 %v1270_v47  ;;  %v25_v58 = vld [vmem:[%s11520_s0 + $0x20] sm:$0xff]  ;;  %v1130_v0 = vld [vmem:[%s11521_s1 + $0x2268] sm:$0xff] }
 0x13e   :  { %2894 = vmatpush2.msra.mxu0 %v1141_v49  ;;  %2965 = vmatpush2.msra.mxu1 %v1269_v50  ;;  %v1133_v61 = vld [vmem:[%s11521_s1 + $0x2280] sm:$0xff]  ;;  %v1258_v1 = vld [vmem:[%s11521_s1 + $0x2668] sm:$0xff]  ;;  %v2175_v2 = vcombine.high %v25_v58, %v25_v58  ;;  %v6895_v9 = vrot.slane %v25_v58, %v5248_v52 }
 0x13f   :  { %2895 = vmatprep.subr.mxu0 %v1138_v51  ;;  %2966 = vmatprep.subr.mxu1 %v1266_v53  ;;  %v1261_v63 = vld [vmem:[%s11521_s1 + $0x2680] sm:$0xff]  ;;  %v1126_v6 = vld [vmem:[%s11521_s1 + $0x2248] sm:$0xff] }
 0x140   :  { %2896 = vmatpush2.msra.mxu0 %v1137_v55  ;;  %2967 = vmatpush2.msra.mxu1 %v1265_v56  ;;  %v1129_v4 = vld [vmem:[%s11521_s1 + $0x2260] sm:$0xff]  ;;  %v1254_v7 = vld [vmem:[%s11521_s1 + $0x2648] sm:$0xff]  ;;  %v6910_v15 = vrot.slane %v2175_v2, %v5248_v52  ;;  %v6926_v23 = vcombine.high %v6895_v9, %v6895_v9 }
 0x141   :  { %2897 = vmatprep.subr.mxu0 %v1134_v59  ;;  %2968 = vmatprep.subr.mxu1 %v1262_v60  ;;  %v1257_v5 = vld [vmem:[%s11521_s1 + $0x2660] sm:$0xff]  ;;  %v1122_v13 = vld [vmem:[%s11521_s1 + $0x2228] sm:$0xff] }
 0x142   :  { %2898 = vmatpush2.msra.mxu0 %v1133_v61  ;;  %2969 = vmatpush2.msra.mxu1 %v1261_v63  ;;  %v1125_v10 = vld [vmem:[%s11521_s1 + $0x2240] sm:$0xff]  ;;  %v1250_v14 = vld [vmem:[%s11521_s1 + $0x2628] sm:$0xff]  ;;  %v6936_v28 = vcombine.high %v6910_v15, %v6910_v15 }
 0x143   :  { %2899 = vmatprep.subr.mxu0 %v1130_v0  ;;  %2970 = vmatprep.subr.mxu1 %v1258_v1  ;;  %v1253_v12 = vld [vmem:[%s11521_s1 + $0x2640] sm:$0xff]  ;;  %v1118_v20 = vld [vmem:[%s11521_s1 + $0x2208] sm:$0xff] }
 0x144   :  { %2900 = vmatpush2.msra.mxu0 %v1129_v4  ;;  %2971 = vmatpush2.msra.mxu1 %v1257_v5  ;;  %v1121_v17 = vld [vmem:[%s11521_s1 + $0x2220] sm:$0xff]  ;;  %v1246_v22 = vld [vmem:[%s11521_s1 + $0x2608] sm:$0xff] }
 0x145   :  { %2901 = vmatprep.subr.mxu0 %v1126_v6  ;;  %2972 = vmatprep.subr.mxu1 %v1254_v7  ;;  %v1249_v18 = vld [vmem:[%s11521_s1 + $0x2620] sm:$0xff]  ;;  %v1370_v30 = vld [vmem:[%s11521_s1 + $0x29e8] sm:$0xff] }
 0x146   :  { %2902 = vmatpush2.msra.mxu0 %v1125_v10  ;;  %2973 = vmatpush2.msra.mxu1 %v1253_v12  ;;  %v1117_v24 = vld [vmem:[%s11521_s1 + $0x2200] sm:$0xff]  ;;  %v1498_v31 = vld [vmem:[%s11521_s1 + $0x2de8] sm:$0xff] }
 0x147   :  { %2903 = vmatprep.subr.mxu0 %v1122_v13  ;;  %2974 = vmatprep.subr.mxu1 %v1250_v14  ;;  %v1245_v27 = vld [vmem:[%s11521_s1 + $0x2600] sm:$0xff]  ;;  %v1366_v36 = vld [vmem:[%s11521_s1 + $0x29c8] sm:$0xff] }
 0x148   :  { %2904 = vmatpush2.msra.mxu0 %v1121_v17  ;;  %2975 = vmatpush2.msra.mxu1 %v1249_v18  ;;  %v1369_v33 = vld [vmem:[%s11521_s1 + $0x29e0] sm:$0xff]  ;;  %v1494_v37 = vld [vmem:[%s11521_s1 + $0x2dc8] sm:$0xff] }
 0x149   :  { %2905 = vmatprep.subr.mxu0 %v1118_v20  ;;  %2976 = vmatprep.subr.mxu1 %v1246_v22  ;;  %v1497_v34 = vld [vmem:[%s11521_s1 + $0x2de0] sm:$0xff]  ;;  %v1362_v40 = vld [vmem:[%s11521_s1 + $0x29a8] sm:$0xff] }
 0x14a   :  { %2906 = vmatpush2.msra.mxu0 %v1117_v24  ;;  %2907 = vmatprep.mubr.f32.mxu0 %v6926_v23  ;;  %v1365_v38 = vld [vmem:[%s11521_s1 + $0x29c0] sm:$0xff]  ;;  %v1490_v42 = vld [vmem:[%s11521_s1 + $0x2da8] sm:$0xff] }
 0x14b   :  { %2977 = vmatpush2.msra.mxu1 %v1245_v27  ;;  %2908 = vmatmul.mubr.f32.vlgmr.msra.gmra.mxu0 %v6895_v9  ;;  %v1493_v39 = vld [vmem:[%s11521_s1 + $0x2dc0] sm:$0xff]  ;;  %v1358_v46 = vld [vmem:[%s11521_s1 + $0x2988] sm:$0xff] }
 0x14c   :  { %2978 = vmatprep.mubr.f32.mxu1 %v6936_v28  ;;  %2985 = vmatprep.subr.mxu0 %v1370_v30  ;;  %v1361_v44 = vld [vmem:[%s11521_s1 + $0x29a0] sm:$0xff]  ;;  %v1486_v47 = vld [vmem:[%s11521_s1 + $0x2d88] sm:$0xff] }
 0x14d   :  { %3056 = vmatprep.subr.mxu1 %v1498_v31  ;;  %2979 = vmatmul.mubr.f32.vlgmr.msra.gmra.mxu1 %v6910_v15  ;;  %v1489_v45 = vld [vmem:[%s11521_s1 + $0x2da0] sm:$0xff]  ;;  %v1354_v51 = vld [vmem:[%s11521_s1 + $0x2968] sm:$0xff] }
 0x14e   :  { %2986 = vmatpush1.msra.mxu0 %v1369_v33  ;;  %3057 = vmatpush1.msra.mxu1 %v1497_v34  ;;  %v1357_v49 = vld [vmem:[%s11521_s1 + $0x2980] sm:$0xff]  ;;  %v1482_v53 = vld [vmem:[%s11521_s1 + $0x2d68] sm:$0xff] }
 0x14f   :  { %2987 = vmatprep.subr.mxu0 %v1366_v36  ;;  %3058 = vmatprep.subr.mxu1 %v1494_v37  ;;  %v1485_v50 = vld [vmem:[%s11521_s1 + $0x2d80] sm:$0xff]  ;;  %v1350_v58 = vld [vmem:[%s11521_s1 + $0x2948] sm:$0xff] }
 0x150   :  { %2988 = vmatpush1.msra.mxu0 %v1365_v38  ;;  %3059 = vmatpush1.msra.mxu1 %v1493_v39  ;;  %v1353_v55 = vld [vmem:[%s11521_s1 + $0x2960] sm:$0xff]  ;;  %v1478_v59 = vld [vmem:[%s11521_s1 + $0x2d48] sm:$0xff] }
 0x151   :  { %2989 = vmatprep.subr.mxu0 %v1362_v40  ;;  %3060 = vmatprep.subr.mxu1 %v1490_v42  ;;  %v1481_v56 = vld [vmem:[%s11521_s1 + $0x2d60] sm:$0xff]  ;;  %v1346_v63 = vld [vmem:[%s11521_s1 + $0x2928] sm:$0xff] }
 0x152   :  { %2990 = vmatpush1.msra.mxu0 %v1361_v44  ;;  %3061 = vmatpush1.msra.mxu1 %v1489_v45  ;;  %v1349_v60 = vld [vmem:[%s11521_s1 + $0x2940] sm:$0xff]  ;;  %v1474_v0 = vld [vmem:[%s11521_s1 + $0x2d28] sm:$0xff] }
 0x153   :  { %2991 = vmatprep.subr.mxu0 %v1358_v46  ;;  %3062 = vmatprep.subr.mxu1 %v1486_v47  ;;  %v1477_v61 = vld [vmem:[%s11521_s1 + $0x2d40] sm:$0xff]  ;;  %v1342_v4 = vld [vmem:[%s11521_s1 + $0x2908] sm:$0xff] }
 0x154   :  { %2992 = vmatpush1.msra.mxu0 %v1357_v49  ;;  %3063 = vmatpush1.msra.mxu1 %v1485_v50  ;;  %v1345_v1 = vld [vmem:[%s11521_s1 + $0x2920] sm:$0xff]  ;;  %v1470_v5 = vld [vmem:[%s11521_s1 + $0x2d08] sm:$0xff] }
 0x155   :  { %2993 = vmatprep.subr.mxu0 %v1354_v51  ;;  %3064 = vmatprep.subr.mxu1 %v1482_v53  ;;  %v1473_v2 = vld [vmem:[%s11521_s1 + $0x2d20] sm:$0xff]  ;;  %v1338_v10 = vld [vmem:[%s11521_s1 + $0x28e8] sm:$0xff] }
 0x156   :  { %2994 = vmatpush1.msra.mxu0 %v1353_v55  ;;  %3065 = vmatpush1.msra.mxu1 %v1481_v56  ;;  %v1341_v6 = vld [vmem:[%s11521_s1 + $0x2900] sm:$0xff]  ;;  %v1466_v12 = vld [vmem:[%s11521_s1 + $0x2ce8] sm:$0xff] }
 0x157   :  { %2995 = vmatprep.subr.mxu0 %v1350_v58  ;;  %3066 = vmatprep.subr.mxu1 %v1478_v59  ;;  %v1469_v7 = vld [vmem:[%s11521_s1 + $0x2d00] sm:$0xff]  ;;  %v1334_v17 = vld [vmem:[%s11521_s1 + $0x28c8] sm:$0xff] }
 0x158   :  { %2996 = vmatpush1.msra.mxu0 %v1349_v60  ;;  %3067 = vmatpush1.msra.mxu1 %v1477_v61  ;;  %v1337_v13 = vld [vmem:[%s11521_s1 + $0x28e0] sm:$0xff]  ;;  %v1462_v18 = vld [vmem:[%s11521_s1 + $0x2cc8] sm:$0xff] }
 0x159   :  { %2997 = vmatprep.subr.mxu0 %v1346_v63  ;;  %3068 = vmatprep.subr.mxu1 %v1474_v0  ;;  %v1465_v14 = vld [vmem:[%s11521_s1 + $0x2ce0] sm:$0xff]  ;;  %v1330_v24 = vld [vmem:[%s11521_s1 + $0x28a8] sm:$0xff] }
 0x15a   :  { %2998 = vmatpush1.msra.mxu0 %v1345_v1  ;;  %3069 = vmatpush1.msra.mxu1 %v1473_v2  ;;  %v1333_v20 = vld [vmem:[%s11521_s1 + $0x28c0] sm:$0xff]  ;;  %v1458_v27 = vld [vmem:[%s11521_s1 + $0x2ca8] sm:$0xff] }
 0x15b   :  { %2999 = vmatprep.subr.mxu0 %v1342_v4  ;;  %3070 = vmatprep.subr.mxu1 %v1470_v5  ;;  %v1461_v22 = vld [vmem:[%s11521_s1 + $0x2cc0] sm:$0xff]  ;;  %v1326_v33 = vld [vmem:[%s11521_s1 + $0x2888] sm:$0xff] }
 0x15c   :  { %3000 = vmatpush1.msra.mxu0 %v1341_v6  ;;  %3071 = vmatpush1.msra.mxu1 %v1469_v7  ;;  %v1329_v30 = vld [vmem:[%s11521_s1 + $0x28a0] sm:$0xff]  ;;  %v1454_v34 = vld [vmem:[%s11521_s1 + $0x2c88] sm:$0xff] }
 0x15d   :  { %3001 = vmatprep.subr.mxu0 %v1338_v10  ;;  %3072 = vmatprep.subr.mxu1 %v1466_v12  ;;  %v1457_v31 = vld [vmem:[%s11521_s1 + $0x2ca0] sm:$0xff]  ;;  %v1322_v38 = vld [vmem:[%s11521_s1 + $0x2868] sm:$0xff] }
 0x15e   :  { %3002 = vmatpush1.msra.mxu0 %v1337_v13  ;;  %3073 = vmatpush1.msra.mxu1 %v1465_v14  ;;  %v1325_v36 = vld [vmem:[%s11521_s1 + $0x2880] sm:$0xff]  ;;  %v1450_v39 = vld [vmem:[%s11521_s1 + $0x2c68] sm:$0xff] }
 0x15f   :  { %3003 = vmatprep.subr.mxu0 %v1334_v17  ;;  %3074 = vmatprep.subr.mxu1 %v1462_v18  ;;  %v1453_v37 = vld [vmem:[%s11521_s1 + $0x2c80] sm:$0xff]  ;;  %v1318_v44 = vld [vmem:[%s11521_s1 + $0x2848] sm:$0xff] }
 0x160   :  { %3004 = vmatpush1.msra.mxu0 %v1333_v20  ;;  %3075 = vmatpush1.msra.mxu1 %v1461_v22  ;;  %v1321_v40 = vld [vmem:[%s11521_s1 + $0x2860] sm:$0xff]  ;;  %v1446_v45 = vld [vmem:[%s11521_s1 + $0x2c48] sm:$0xff] }
 0x161   :  { %3005 = vmatprep.subr.mxu0 %v1330_v24  ;;  %3076 = vmatprep.subr.mxu1 %v1458_v27  ;;  %v1449_v42 = vld [vmem:[%s11521_s1 + $0x2c60] sm:$0xff]  ;;  %v1314_v49 = vld [vmem:[%s11521_s1 + $0x2828] sm:$0xff] }
 0x162   :  { %3006 = vmatpush1.msra.mxu0 %v1329_v30  ;;  %3077 = vmatpush1.msra.mxu1 %v1457_v31  ;;  %v1317_v46 = vld [vmem:[%s11521_s1 + $0x2840] sm:$0xff]  ;;  %v1442_v50 = vld [vmem:[%s11521_s1 + $0x2c28] sm:$0xff] }
 0x163   :  { %3007 = vmatprep.subr.mxu0 %v1326_v33  ;;  %3078 = vmatprep.subr.mxu1 %v1454_v34  ;;  %v1445_v47 = vld [vmem:[%s11521_s1 + $0x2c40] sm:$0xff]  ;;  %v1310_v55 = vld [vmem:[%s11521_s1 + $0x2808] sm:$0xff] }
 0x164   :  { %3008 = vmatpush1.msra.mxu0 %v1325_v36  ;;  %3079 = vmatpush1.msra.mxu1 %v1453_v37  ;;  %v1313_v51 = vld [vmem:[%s11521_s1 + $0x2820] sm:$0xff]  ;;  %v1438_v56 = vld [vmem:[%s11521_s1 + $0x2c08] sm:$0xff] }
 0x165   :  { %3009 = vmatprep.subr.mxu0 %v1322_v38  ;;  %3080 = vmatprep.subr.mxu1 %v1450_v39  ;;  %v1441_v53 = vld [vmem:[%s11521_s1 + $0x2c20] sm:$0xff]  ;;  %v1434_v60 = vld [vmem:[%s11521_s1 + $0x2be8] sm:$0xff] }
 0x166   :  { %3010 = vmatpush1.msra.mxu0 %v1321_v40  ;;  %3081 = vmatpush1.msra.mxu1 %v1449_v42  ;;  %v1309_v58 = vld [vmem:[%s11521_s1 + $0x2800] sm:$0xff]  ;;  %v1562_v61 = vld [vmem:[%s11521_s1 + $0x2fe8] sm:$0xff] }
 0x167   :  { %3011 = vmatprep.subr.mxu0 %v1318_v44  ;;  %3082 = vmatprep.subr.mxu1 %v1446_v45  ;;  %v1437_v59 = vld [vmem:[%s11521_s1 + $0x2c00] sm:$0xff]  ;;  %v1430_v1 = vld [vmem:[%s11521_s1 + $0x2bc8] sm:$0xff] }
 0x168   :  { %3012 = vmatpush1.msra.mxu0 %v1317_v46  ;;  %3083 = vmatpush1.msra.mxu1 %v1445_v47  ;;  %v1433_v63 = vld [vmem:[%s11521_s1 + $0x2be0] sm:$0xff]  ;;  %v1558_v2 = vld [vmem:[%s11521_s1 + $0x2fc8] sm:$0xff] }
 0x169   :  { %3013 = vmatprep.subr.mxu0 %v1314_v49  ;;  %3084 = vmatprep.subr.mxu1 %v1442_v50  ;;  %v1561_v0 = vld [vmem:[%s11521_s1 + $0x2fe0] sm:$0xff]  ;;  %v1426_v6 = vld [vmem:[%s11521_s1 + $0x2ba8] sm:$0xff] }
 0x16a   :  { %3014 = vmatpush1.msra.mxu0 %v1313_v51  ;;  %3085 = vmatpush1.msra.mxu1 %v1441_v53  ;;  %v1429_v4 = vld [vmem:[%s11521_s1 + $0x2bc0] sm:$0xff]  ;;  %v1554_v7 = vld [vmem:[%s11521_s1 + $0x2fa8] sm:$0xff] }
 0x16b   :  { %3015 = vmatprep.subr.mxu0 %v1310_v55  ;;  %3086 = vmatprep.subr.mxu1 %v1438_v56  ;;  %v1557_v5 = vld [vmem:[%s11521_s1 + $0x2fc0] sm:$0xff]  ;;  %v1422_v13 = vld [vmem:[%s11521_s1 + $0x2b88] sm:$0xff] }
 0x16c   :  { %3016 = vmatpush1.msra.mxu0 %v1309_v58  ;;  %3087 = vmatpush1.msra.mxu1 %v1437_v59  ;;  %v1425_v10 = vld [vmem:[%s11521_s1 + $0x2ba0] sm:$0xff]  ;;  %v1550_v14 = vld [vmem:[%s11521_s1 + $0x2f88] sm:$0xff] }
 0x16d   :  { %3017 = vmatprep.subr.mxu0 %v1434_v60  ;;  %3088 = vmatprep.subr.mxu1 %v1562_v61  ;;  %v1553_v12 = vld [vmem:[%s11521_s1 + $0x2fa0] sm:$0xff]  ;;  %v1418_v20 = vld [vmem:[%s11521_s1 + $0x2b68] sm:$0xff] }
 0x16e   :  { %3018 = vmatpush2.msra.mxu0 %v1433_v63  ;;  %3089 = vmatpush2.msra.mxu1 %v1561_v0  ;;  %v1421_v17 = vld [vmem:[%s11521_s1 + $0x2b80] sm:$0xff]  ;;  %v1546_v22 = vld [vmem:[%s11521_s1 + $0x2f68] sm:$0xff] }
 0x16f   :  { %3019 = vmatprep.subr.mxu0 %v1430_v1  ;;  %3090 = vmatprep.subr.mxu1 %v1558_v2  ;;  %v1549_v18 = vld [vmem:[%s11521_s1 + $0x2f80] sm:$0xff]  ;;  %v1414_v30 = vld [vmem:[%s11521_s1 + $0x2b48] sm:$0xff] }
 0x170   :  { %3020 = vmatpush2.msra.mxu0 %v1429_v4  ;;  %3091 = vmatpush2.msra.mxu1 %v1557_v5  ;;  %v1417_v24 = vld [vmem:[%s11521_s1 + $0x2b60] sm:$0xff]  ;;  %v1542_v31 = vld [vmem:[%s11521_s1 + $0x2f48] sm:$0xff] }
 0x171   :  { %3021 = vmatprep.subr.mxu0 %v1426_v6  ;;  %3092 = vmatprep.subr.mxu1 %v1554_v7  ;;  %v1545_v27 = vld [vmem:[%s11521_s1 + $0x2f60] sm:$0xff]  ;;  %v1410_v36 = vld [vmem:[%s11521_s1 + $0x2b28] sm:$0xff] }
 0x172   :  { %3022 = vmatpush2.msra.mxu0 %v1425_v10  ;;  %3093 = vmatpush2.msra.mxu1 %v1553_v12  ;;  %v1413_v33 = vld [vmem:[%s11521_s1 + $0x2b40] sm:$0xff]  ;;  %v1538_v37 = vld [vmem:[%s11521_s1 + $0x2f28] sm:$0xff] }
 0x173   :  { %3023 = vmatprep.subr.mxu0 %v1422_v13  ;;  %3094 = vmatprep.subr.mxu1 %v1550_v14  ;;  %v1541_v34 = vld [vmem:[%s11521_s1 + $0x2f40] sm:$0xff]  ;;  %v1406_v40 = vld [vmem:[%s11521_s1 + $0x2b08] sm:$0xff] }
 0x174   :  { %3024 = vmatpush2.msra.mxu0 %v1421_v17  ;;  %3095 = vmatpush2.msra.mxu1 %v1549_v18  ;;  %v1409_v38 = vld [vmem:[%s11521_s1 + $0x2b20] sm:$0xff]  ;;  %v1534_v42 = vld [vmem:[%s11521_s1 + $0x2f08] sm:$0xff] }
 0x175   :  { %3025 = vmatprep.subr.mxu0 %v1418_v20  ;;  %3096 = vmatprep.subr.mxu1 %v1546_v22  ;;  %v1537_v39 = vld [vmem:[%s11521_s1 + $0x2f20] sm:$0xff]  ;;  %v1402_v46 = vld [vmem:[%s11521_s1 + $0x2ae8] sm:$0xff] }
 0x176   :  { %3026 = vmatpush2.msra.mxu0 %v1417_v24  ;;  %3097 = vmatpush2.msra.mxu1 %v1545_v27  ;;  %v1405_v44 = vld [vmem:[%s11521_s1 + $0x2b00] sm:$0xff]  ;;  %v1530_v47 = vld [vmem:[%s11521_s1 + $0x2ee8] sm:$0xff] }
 0x177   :  { %3027 = vmatprep.subr.mxu0 %v1414_v30  ;;  %3098 = vmatprep.subr.mxu1 %v1542_v31  ;;  %v1533_v45 = vld [vmem:[%s11521_s1 + $0x2f00] sm:$0xff]  ;;  %v1398_v51 = vld [vmem:[%s11521_s1 + $0x2ac8] sm:$0xff] }
 0x178   :  { %3028 = vmatpush2.msra.mxu0 %v1413_v33  ;;  %3099 = vmatpush2.msra.mxu1 %v1541_v34  ;;  %v1401_v49 = vld [vmem:[%s11521_s1 + $0x2ae0] sm:$0xff]  ;;  %v1526_v53 = vld [vmem:[%s11521_s1 + $0x2ec8] sm:$0xff] }
 0x179   :  { %3029 = vmatprep.subr.mxu0 %v1410_v36  ;;  %3100 = vmatprep.subr.mxu1 %v1538_v37  ;;  %v1529_v50 = vld [vmem:[%s11521_s1 + $0x2ee0] sm:$0xff]  ;;  %v1394_v58 = vld [vmem:[%s11521_s1 + $0x2aa8] sm:$0xff] }
 0x17a   :  { %3030 = vmatpush2.msra.mxu0 %v1409_v38  ;;  %3101 = vmatpush2.msra.mxu1 %v1537_v39  ;;  %v1397_v55 = vld [vmem:[%s11521_s1 + $0x2ac0] sm:$0xff]  ;;  %v1522_v59 = vld [vmem:[%s11521_s1 + $0x2ea8] sm:$0xff] }
 0x17b   :  { %3031 = vmatprep.subr.mxu0 %v1406_v40  ;;  %3102 = vmatprep.subr.mxu1 %v1534_v42  ;;  %v1525_v56 = vld [vmem:[%s11521_s1 + $0x2ec0] sm:$0xff]  ;;  %v26_v63 = vld [vmem:[%s11520_s0 + $0x28] sm:$0xff] }
 0x17c   :  { %3032 = vmatpush2.msra.mxu0 %v1405_v44  ;;  %3103 = vmatpush2.msra.mxu1 %v1533_v45  ;;  %v1393_v60 = vld [vmem:[%s11521_s1 + $0x2aa0] sm:$0xff]  ;;  %v1390_v0 = vld [vmem:[%s11521_s1 + $0x2a88] sm:$0xff]  ;;  %v2192_v7 = vcombine.high %v26_v63, %v26_v63  ;;  %v7300_v17 = vrot.slane %v26_v63, %v5248_v52 }
 0x17d   :  { %3033 = vmatprep.subr.mxu0 %v1402_v46  ;;  %3104 = vmatprep.subr.mxu1 %v1530_v47  ;;  %v1521_v61 = vld [vmem:[%s11521_s1 + $0x2ea0] sm:$0xff]  ;;  %v1518_v1 = vld [vmem:[%s11521_s1 + $0x2e88] sm:$0xff] }
 0x17e   :  { %3034 = vmatpush2.msra.mxu0 %v1401_v49  ;;  %3105 = vmatpush2.msra.mxu1 %v1529_v50  ;;  %v1389_v2 = vld [vmem:[%s11521_s1 + $0x2a80] sm:$0xff]  ;;  %v1386_v5 = vld [vmem:[%s11521_s1 + $0x2a68] sm:$0xff]  ;;  %v7315_v27 = vrot.slane %v2192_v7, %v5248_v52  ;;  %v7331_v36 = vcombine.high %v7300_v17, %v7300_v17 }
 0x17f   :  { %3035 = vmatprep.subr.mxu0 %v1398_v51  ;;  %3106 = vmatprep.subr.mxu1 %v1526_v53  ;;  %v1517_v4 = vld [vmem:[%s11521_s1 + $0x2e80] sm:$0xff]  ;;  %v1514_v6 = vld [vmem:[%s11521_s1 + $0x2e68] sm:$0xff] }
 0x180   :  { %3036 = vmatpush2.msra.mxu0 %v1397_v55  ;;  %3107 = vmatpush2.msra.mxu1 %v1525_v56  ;;  %v1385_v10 = vld [vmem:[%s11521_s1 + $0x2a60] sm:$0xff]  ;;  %v1382_v13 = vld [vmem:[%s11521_s1 + $0x2a48] sm:$0xff]  ;;  %v7341_v39 = vcombine.high %v7315_v27, %v7315_v27 }
 0x181   :  { %3037 = vmatprep.subr.mxu0 %v1394_v58  ;;  %3108 = vmatprep.subr.mxu1 %v1522_v59  ;;  %v1513_v12 = vld [vmem:[%s11521_s1 + $0x2e60] sm:$0xff]  ;;  %v1510_v14 = vld [vmem:[%s11521_s1 + $0x2e48] sm:$0xff] }
 0x182   :  { %3038 = vmatpush2.msra.mxu0 %v1393_v60  ;;  %3109 = vmatpush2.msra.mxu1 %v1521_v61  ;;  %v1381_v18 = vld [vmem:[%s11521_s1 + $0x2a40] sm:$0xff]  ;;  %v1378_v22 = vld [vmem:[%s11521_s1 + $0x2a28] sm:$0xff] }
 0x183   :  { %3039 = vmatprep.subr.mxu0 %v1390_v0  ;;  %3110 = vmatprep.subr.mxu1 %v1518_v1  ;;  %v1509_v20 = vld [vmem:[%s11521_s1 + $0x2e40] sm:$0xff]  ;;  %v1506_v24 = vld [vmem:[%s11521_s1 + $0x2e28] sm:$0xff] }
 0x184   :  { %3040 = vmatpush2.msra.mxu0 %v1389_v2  ;;  %3111 = vmatpush2.msra.mxu1 %v1517_v4  ;;  %v1377_v30 = vld [vmem:[%s11521_s1 + $0x2a20] sm:$0xff]  ;;  %v1374_v33 = vld [vmem:[%s11521_s1 + $0x2a08] sm:$0xff] }
 0x185   :  { %3041 = vmatprep.subr.mxu0 %v1386_v5  ;;  %3112 = vmatprep.subr.mxu1 %v1514_v6  ;;  %v1505_v31 = vld [vmem:[%s11521_s1 + $0x2e20] sm:$0xff]  ;;  %v1502_v34 = vld [vmem:[%s11521_s1 + $0x2e08] sm:$0xff] }
 0x186   :  { %3042 = vmatpush2.msra.mxu0 %v1385_v10  ;;  %3113 = vmatpush2.msra.mxu1 %v1513_v12  ;;  %v1373_v37 = vld [vmem:[%s11521_s1 + $0x2a00] sm:$0xff]  ;;  %v1626_v40 = vld [vmem:[%s11521_s1 + $0x31e8] sm:$0xff] }
 0x187   :  { %3043 = vmatprep.subr.mxu0 %v1382_v13  ;;  %3114 = vmatprep.subr.mxu1 %v1510_v14  ;;  %v1501_v38 = vld [vmem:[%s11521_s1 + $0x2e00] sm:$0xff]  ;;  %v1754_v42 = vld [vmem:[%s11521_s1 + $0x35e8] sm:$0xff] }
 0x188   :  { %3044 = vmatpush2.msra.mxu0 %v1381_v18  ;;  %3115 = vmatpush2.msra.mxu1 %v1509_v20  ;;  %v1625_v44 = vld [vmem:[%s11521_s1 + $0x31e0] sm:$0xff]  ;;  %v1622_v46 = vld [vmem:[%s11521_s1 + $0x31c8] sm:$0xff] }
 0x189   :  { %3045 = vmatprep.subr.mxu0 %v1378_v22  ;;  %3116 = vmatprep.subr.mxu1 %v1506_v24  ;;  %v1753_v45 = vld [vmem:[%s11521_s1 + $0x35e0] sm:$0xff]  ;;  %v1750_v47 = vld [vmem:[%s11521_s1 + $0x35c8] sm:$0xff] }
 0x18a   :  { %3046 = vmatpush2.msra.mxu0 %v1377_v30  ;;  %3117 = vmatpush2.msra.mxu1 %v1505_v31  ;;  %v1621_v49 = vld [vmem:[%s11521_s1 + $0x31c0] sm:$0xff]  ;;  %v1618_v51 = vld [vmem:[%s11521_s1 + $0x31a8] sm:$0xff] }
 0x18b   :  { %3047 = vmatprep.subr.mxu0 %v1374_v33  ;;  %3118 = vmatprep.subr.mxu1 %v1502_v34  ;;  %v1749_v50 = vld [vmem:[%s11521_s1 + $0x35c0] sm:$0xff]  ;;  %v1746_v53 = vld [vmem:[%s11521_s1 + $0x35a8] sm:$0xff] }
 0x18c   :  { %3048 = vmatpush2.msra.mxu0 %v1373_v37  ;;  %3049 = vmatprep.mubr.f32.mxu0 %v7331_v36  ;;  %v1617_v55 = vld [vmem:[%s11521_s1 + $0x31a0] sm:$0xff]  ;;  %v1614_v58 = vld [vmem:[%s11521_s1 + $0x3188] sm:$0xff] }
 0x18d   :  { %3119 = vmatpush2.msra.mxu1 %v1501_v38  ;;  %3050 = vmatmul.mubr.f32.vlgmr.msra.gmra.mxu0 %v7300_v17  ;;  %v1745_v56 = vld [vmem:[%s11521_s1 + $0x35a0] sm:$0xff]  ;;  %v1742_v59 = vld [vmem:[%s11521_s1 + $0x3588] sm:$0xff] }
 0x18e   :  { %3120 = vmatprep.mubr.f32.mxu1 %v7341_v39  ;;  %3127 = vmatprep.subr.mxu0 %v1626_v40  ;;  %v1613_v60 = vld [vmem:[%s11521_s1 + $0x3180] sm:$0xff]  ;;  %v1610_v63 = vld [vmem:[%s11521_s1 + $0x3168] sm:$0xff] }
 0x18f   :  { %3198 = vmatprep.subr.mxu1 %v1754_v42  ;;  %3121 = vmatmul.mubr.f32.vlgmr.msra.gmra.mxu1 %v7315_v27  ;;  %v1741_v61 = vld [vmem:[%s11521_s1 + $0x3580] sm:$0xff]  ;;  %v1738_v0 = vld [vmem:[%s11521_s1 + $0x3568] sm:$0xff] }
 0x190   :  { %3128 = vmatpush1.msra.mxu0 %v1625_v44  ;;  %3199 = vmatpush1.msra.mxu1 %v1753_v45  ;;  %v1609_v1 = vld [vmem:[%s11521_s1 + $0x3160] sm:$0xff]  ;;  %v1606_v4 = vld [vmem:[%s11521_s1 + $0x3148] sm:$0xff] }
 0x191   :  { %3129 = vmatprep.subr.mxu0 %v1622_v46  ;;  %3200 = vmatprep.subr.mxu1 %v1750_v47  ;;  %v1737_v2 = vld [vmem:[%s11521_s1 + $0x3560] sm:$0xff]  ;;  %v1734_v5 = vld [vmem:[%s11521_s1 + $0x3548] sm:$0xff] }
 0x192   :  { %3130 = vmatpush1.msra.mxu0 %v1621_v49  ;;  %3201 = vmatpush1.msra.mxu1 %v1749_v50  ;;  %v1605_v6 = vld [vmem:[%s11521_s1 + $0x3140] sm:$0xff]  ;;  %v1602_v10 = vld [vmem:[%s11521_s1 + $0x3128] sm:$0xff] }
 0x193   :  { %3131 = vmatprep.subr.mxu0 %v1618_v51  ;;  %3202 = vmatprep.subr.mxu1 %v1746_v53  ;;  %v1733_v7 = vld [vmem:[%s11521_s1 + $0x3540] sm:$0xff]  ;;  %v1730_v12 = vld [vmem:[%s11521_s1 + $0x3528] sm:$0xff] }
 0x194   :  { %3132 = vmatpush1.msra.mxu0 %v1617_v55  ;;  %3203 = vmatpush1.msra.mxu1 %v1745_v56  ;;  %v1601_v13 = vld [vmem:[%s11521_s1 + $0x3120] sm:$0xff]  ;;  %v1598_v18 = vld [vmem:[%s11521_s1 + $0x3108] sm:$0xff] }
 0x195   :  { %3133 = vmatprep.subr.mxu0 %v1614_v58  ;;  %3204 = vmatprep.subr.mxu1 %v1742_v59  ;;  %v1729_v14 = vld [vmem:[%s11521_s1 + $0x3520] sm:$0xff]  ;;  %v1726_v20 = vld [vmem:[%s11521_s1 + $0x3508] sm:$0xff] }
 0x196   :  { %3134 = vmatpush1.msra.mxu0 %v1613_v60  ;;  %3205 = vmatpush1.msra.mxu1 %v1741_v61  ;;  %v1597_v22 = vld [vmem:[%s11521_s1 + $0x3100] sm:$0xff]  ;;  %v1594_v30 = vld [vmem:[%s11521_s1 + $0x30e8] sm:$0xff] }
 0x197   :  { %3135 = vmatprep.subr.mxu0 %v1610_v63  ;;  %3206 = vmatprep.subr.mxu1 %v1738_v0  ;;  %v1725_v24 = vld [vmem:[%s11521_s1 + $0x3500] sm:$0xff]  ;;  %v1722_v31 = vld [vmem:[%s11521_s1 + $0x34e8] sm:$0xff] }
 0x198   :  { %3136 = vmatpush1.msra.mxu0 %v1609_v1  ;;  %3207 = vmatpush1.msra.mxu1 %v1737_v2  ;;  %v1593_v33 = vld [vmem:[%s11521_s1 + $0x30e0] sm:$0xff]  ;;  %v1590_v37 = vld [vmem:[%s11521_s1 + $0x30c8] sm:$0xff] }
 0x199   :  { %3137 = vmatprep.subr.mxu0 %v1606_v4  ;;  %3208 = vmatprep.subr.mxu1 %v1734_v5  ;;  %v1721_v34 = vld [vmem:[%s11521_s1 + $0x34e0] sm:$0xff]  ;;  %v1718_v38 = vld [vmem:[%s11521_s1 + $0x34c8] sm:$0xff] }
 0x19a   :  { %3138 = vmatpush1.msra.mxu0 %v1605_v6  ;;  %3209 = vmatpush1.msra.mxu1 %v1733_v7  ;;  %v1589_v40 = vld [vmem:[%s11521_s1 + $0x30c0] sm:$0xff]  ;;  %v1586_v44 = vld [vmem:[%s11521_s1 + $0x30a8] sm:$0xff] }
 0x19b   :  { %3139 = vmatprep.subr.mxu0 %v1602_v10  ;;  %3210 = vmatprep.subr.mxu1 %v1730_v12  ;;  %v1717_v42 = vld [vmem:[%s11521_s1 + $0x34c0] sm:$0xff]  ;;  %v1714_v45 = vld [vmem:[%s11521_s1 + $0x34a8] sm:$0xff] }
 0x19c   :  { %3140 = vmatpush1.msra.mxu0 %v1601_v13  ;;  %3211 = vmatpush1.msra.mxu1 %v1729_v14  ;;  %v1585_v46 = vld [vmem:[%s11521_s1 + $0x30a0] sm:$0xff]  ;;  %v1582_v49 = vld [vmem:[%s11521_s1 + $0x3088] sm:$0xff] }
 0x19d   :  { %3141 = vmatprep.subr.mxu0 %v1598_v18  ;;  %3212 = vmatprep.subr.mxu1 %v1726_v20  ;;  %v1713_v47 = vld [vmem:[%s11521_s1 + $0x34a0] sm:$0xff]  ;;  %v1710_v50 = vld [vmem:[%s11521_s1 + $0x3488] sm:$0xff] }
 0x19e   :  { %3142 = vmatpush1.msra.mxu0 %v1597_v22  ;;  %3213 = vmatpush1.msra.mxu1 %v1725_v24  ;;  %v1581_v51 = vld [vmem:[%s11521_s1 + $0x3080] sm:$0xff]  ;;  %v1578_v55 = vld [vmem:[%s11521_s1 + $0x3068] sm:$0xff] }
 0x19f   :  { %3143 = vmatprep.subr.mxu0 %v1594_v30  ;;  %3214 = vmatprep.subr.mxu1 %v1722_v31  ;;  %v1709_v53 = vld [vmem:[%s11521_s1 + $0x3480] sm:$0xff]  ;;  %v1706_v56 = vld [vmem:[%s11521_s1 + $0x3468] sm:$0xff] }
 0x1a0   :  { %3144 = vmatpush1.msra.mxu0 %v1593_v33  ;;  %3215 = vmatpush1.msra.mxu1 %v1721_v34  ;;  %v1577_v58 = vld [vmem:[%s11521_s1 + $0x3060] sm:$0xff]  ;;  %v1574_v60 = vld [vmem:[%s11521_s1 + $0x3048] sm:$0xff] }
 0x1a1   :  { %3145 = vmatprep.subr.mxu0 %v1590_v37  ;;  %3216 = vmatprep.subr.mxu1 %v1718_v38  ;;  %v1705_v59 = vld [vmem:[%s11521_s1 + $0x3460] sm:$0xff]  ;;  %v1702_v61 = vld [vmem:[%s11521_s1 + $0x3448] sm:$0xff] }
 0x1a2   :  { %3146 = vmatpush1.msra.mxu0 %v1589_v40  ;;  %3217 = vmatpush1.msra.mxu1 %v1717_v42  ;;  %v1573_v63 = vld [vmem:[%s11521_s1 + $0x3040] sm:$0xff]  ;;  %v1570_v1 = vld [vmem:[%s11521_s1 + $0x3028] sm:$0xff] }
 0x1a3   :  { %3147 = vmatprep.subr.mxu0 %v1586_v44  ;;  %3218 = vmatprep.subr.mxu1 %v1714_v45  ;;  %v1701_v0 = vld [vmem:[%s11521_s1 + $0x3440] sm:$0xff]  ;;  %v1698_v2 = vld [vmem:[%s11521_s1 + $0x3428] sm:$0xff] }
 0x1a4   :  { %3148 = vmatpush1.msra.mxu0 %v1585_v46  ;;  %3219 = vmatpush1.msra.mxu1 %v1713_v47  ;;  %v1569_v4 = vld [vmem:[%s11521_s1 + $0x3020] sm:$0xff]  ;;  %v1566_v6 = vld [vmem:[%s11521_s1 + $0x3008] sm:$0xff] }
 0x1a5   :  { %3149 = vmatprep.subr.mxu0 %v1582_v49  ;;  %3220 = vmatprep.subr.mxu1 %v1710_v50  ;;  %v1697_v5 = vld [vmem:[%s11521_s1 + $0x3420] sm:$0xff]  ;;  %v1694_v7 = vld [vmem:[%s11521_s1 + $0x3408] sm:$0xff] }
 0x1a6   :  { %3150 = vmatpush1.msra.mxu0 %v1581_v51  ;;  %3221 = vmatpush1.msra.mxu1 %v1709_v53  ;;  %v1565_v10 = vld [vmem:[%s11521_s1 + $0x3000] sm:$0xff]  ;;  %v1690_v13 = vld [vmem:[%s11521_s1 + $0x33e8] sm:$0xff] }
 0x1a7   :  { %3151 = vmatprep.subr.mxu0 %v1578_v55  ;;  %3222 = vmatprep.subr.mxu1 %v1706_v56  ;;  %v1693_v12 = vld [vmem:[%s11521_s1 + $0x3400] sm:$0xff]  ;;  %v1818_v14 = vld [vmem:[%s11521_s1 + $0x37e8] sm:$0xff] }
 0x1a8   :  { %3152 = vmatpush1.msra.mxu0 %v1577_v58  ;;  %3223 = vmatpush1.msra.mxu1 %v1705_v59  ;;  %v1689_v18 = vld [vmem:[%s11521_s1 + $0x33e0] sm:$0xff]  ;;  %v1686_v22 = vld [vmem:[%s11521_s1 + $0x33c8] sm:$0xff] }
 0x1a9   :  { %3153 = vmatprep.subr.mxu0 %v1574_v60  ;;  %3224 = vmatprep.subr.mxu1 %v1702_v61  ;;  %v1817_v20 = vld [vmem:[%s11521_s1 + $0x37e0] sm:$0xff]  ;;  %v1814_v24 = vld [vmem:[%s11521_s1 + $0x37c8] sm:$0xff] }
 0x1aa   :  { %3154 = vmatpush1.msra.mxu0 %v1573_v63  ;;  %3225 = vmatpush1.msra.mxu1 %v1701_v0  ;;  %v1685_v30 = vld [vmem:[%s11521_s1 + $0x33c0] sm:$0xff]  ;;  %v1682_v33 = vld [vmem:[%s11521_s1 + $0x33a8] sm:$0xff] }
 0x1ab   :  { %3155 = vmatprep.subr.mxu0 %v1570_v1  ;;  %3226 = vmatprep.subr.mxu1 %v1698_v2  ;;  %v1813_v31 = vld [vmem:[%s11521_s1 + $0x37c0] sm:$0xff]  ;;  %v1810_v34 = vld [vmem:[%s11521_s1 + $0x37a8] sm:$0xff] }
 0x1ac   :  { %3156 = vmatpush1.msra.mxu0 %v1569_v4  ;;  %3227 = vmatpush1.msra.mxu1 %v1697_v5  ;;  %v1681_v37 = vld [vmem:[%s11521_s1 + $0x33a0] sm:$0xff]  ;;  %v1678_v40 = vld [vmem:[%s11521_s1 + $0x3388] sm:$0xff] }
 0x1ad   :  { %3157 = vmatprep.subr.mxu0 %v1566_v6  ;;  %3228 = vmatprep.subr.mxu1 %v1694_v7  ;;  %v1809_v38 = vld [vmem:[%s11521_s1 + $0x37a0] sm:$0xff]  ;;  %v1806_v42 = vld [vmem:[%s11521_s1 + $0x3788] sm:$0xff] }
 0x1ae   :  { %3158 = vmatpush1.msra.mxu0 %v1565_v10  ;;  %3229 = vmatpush1.msra.mxu1 %v1693_v12  ;;  %v1677_v44 = vld [vmem:[%s11521_s1 + $0x3380] sm:$0xff]  ;;  %v1674_v46 = vld [vmem:[%s11521_s1 + $0x3368] sm:$0xff] }
 0x1af   :  { %3159 = vmatprep.subr.mxu0 %v1690_v13  ;;  %3230 = vmatprep.subr.mxu1 %v1818_v14  ;;  %v1805_v45 = vld [vmem:[%s11521_s1 + $0x3780] sm:$0xff]  ;;  %v1802_v47 = vld [vmem:[%s11521_s1 + $0x3768] sm:$0xff] }
 0x1b0   :  { %3160 = vmatpush2.msra.mxu0 %v1689_v18  ;;  %3231 = vmatpush2.msra.mxu1 %v1817_v20  ;;  %v1673_v49 = vld [vmem:[%s11521_s1 + $0x3360] sm:$0xff]  ;;  %v1670_v51 = vld [vmem:[%s11521_s1 + $0x3348] sm:$0xff] }
 0x1b1   :  { %3161 = vmatprep.subr.mxu0 %v1686_v22  ;;  %3232 = vmatprep.subr.mxu1 %v1814_v24  ;;  %v1801_v50 = vld [vmem:[%s11521_s1 + $0x3760] sm:$0xff]  ;;  %v1798_v53 = vld [vmem:[%s11521_s1 + $0x3748] sm:$0xff] }
 0x1b2   :  { %3162 = vmatpush2.msra.mxu0 %v1685_v30  ;;  %3233 = vmatpush2.msra.mxu1 %v1813_v31  ;;  %v1669_v55 = vld [vmem:[%s11521_s1 + $0x3340] sm:$0xff]  ;;  %v1666_v58 = vld [vmem:[%s11521_s1 + $0x3328] sm:$0xff]  ;;  %v27_v30 = vld [vmem:[%s11520_s0 + $0x30] sm:$0xff] }
 0x1b3   :  { %3163 = vmatprep.subr.mxu0 %v1682_v33  ;;  %3234 = vmatprep.subr.mxu1 %v1810_v34  ;;  %v1797_v56 = vld [vmem:[%s11521_s1 + $0x3740] sm:$0xff]  ;;  %v1794_v59 = vld [vmem:[%s11521_s1 + $0x3728] sm:$0xff] }
 0x1b4   :  { %3164 = vmatpush2.msra.mxu0 %v1681_v37  ;;  %3235 = vmatpush2.msra.mxu1 %v1809_v38  ;;  %v1665_v60 = vld [vmem:[%s11521_s1 + $0x3320] sm:$0xff]  ;;  %v1662_v63 = vld [vmem:[%s11521_s1 + $0x3308] sm:$0xff] }
 0x1b5   :  { %3165 = vmatprep.subr.mxu0 %v1678_v40  ;;  %3236 = vmatprep.subr.mxu1 %v1806_v42  ;;  %v1793_v61 = vld [vmem:[%s11521_s1 + $0x3720] sm:$0xff]  ;;  %v1790_v0 = vld [vmem:[%s11521_s1 + $0x3708] sm:$0xff]  ;;  %v2209_v42 = vcombine.high %v27_v30, %v27_v30 }
 0x1b6   :  { %3166 = vmatpush2.msra.mxu0 %v1677_v44  ;;  %3237 = vmatpush2.msra.mxu1 %v1805_v45  ;;  %v1661_v1 = vld [vmem:[%s11521_s1 + $0x3300] sm:$0xff]  ;;  %v1658_v4 = vld [vmem:[%s11521_s1 + $0x32e8] sm:$0xff] }
 0x1b7   :  { %3167 = vmatprep.subr.mxu0 %v1674_v46  ;;  %3238 = vmatprep.subr.mxu1 %v1802_v47  ;;  %v1789_v2 = vld [vmem:[%s11521_s1 + $0x3700] sm:$0xff]  ;;  %v1786_v5 = vld [vmem:[%s11521_s1 + $0x36e8] sm:$0xff] }
 0x1b8   :  { %3168 = vmatpush2.msra.mxu0 %v1673_v49  ;;  %3239 = vmatpush2.msra.mxu1 %v1801_v50  ;;  %v1657_v6 = vld [vmem:[%s11521_s1 + $0x32e0] sm:$0xff]  ;;  %v1654_v10 = vld [vmem:[%s11521_s1 + $0x32c8] sm:$0xff]  ;;  %v7705_v49 = vrot.slane %v27_v30, %v5248_v52 }
 0x1b9   :  { %3169 = vmatprep.subr.mxu0 %v1670_v51  ;;  %3240 = vmatprep.subr.mxu1 %v1798_v53  ;;  %v1785_v7 = vld [vmem:[%s11521_s1 + $0x36e0] sm:$0xff]  ;;  %v1782_v12 = vld [vmem:[%s11521_s1 + $0x36c8] sm:$0xff] }
 0x1ba   :  { %3170 = vmatpush2.msra.mxu0 %v1669_v55  ;;  %3241 = vmatpush2.msra.mxu1 %v1797_v56  ;;  %v1653_v13 = vld [vmem:[%s11521_s1 + $0x32c0] sm:$0xff]  ;;  %v1650_v18 = vld [vmem:[%s11521_s1 + $0x32a8] sm:$0xff]  ;;  %v7720_v56 = vrot.slane %v2209_v42, %v5248_v52 }
 0x1bb   :  { %3171 = vmatprep.subr.mxu0 %v1666_v58  ;;  %3242 = vmatprep.subr.mxu1 %v1794_v59  ;;  %v1781_v14 = vld [vmem:[%s11521_s1 + $0x36c0] sm:$0xff]  ;;  %v1778_v20 = vld [vmem:[%s11521_s1 + $0x36a8] sm:$0xff] }
 0x1bc   :  { %3172 = vmatpush2.msra.mxu0 %v1665_v60  ;;  %3243 = vmatpush2.msra.mxu1 %v1793_v61  ;;  %v1649_v22 = vld [vmem:[%s11521_s1 + $0x32a0] sm:$0xff]  ;;  %v1646_v31 = vld [vmem:[%s11521_s1 + $0x3288] sm:$0xff] }
 0x1bd   :  { %3173 = vmatprep.subr.mxu0 %v1662_v63  ;;  %3244 = vmatprep.subr.mxu1 %v1790_v0  ;;  %v1777_v24 = vld [vmem:[%s11521_s1 + $0x36a0] sm:$0xff]  ;;  %v1774_v33 = vld [vmem:[%s11521_s1 + $0x3688] sm:$0xff]  ;;  %v7736_v63 = vcombine.high %v7705_v49, %v7705_v49 }
 0x1be   :  { %3174 = vmatpush2.msra.mxu0 %v1661_v1  ;;  %3245 = vmatpush2.msra.mxu1 %v1789_v2  ;;  %v1645_v34 = vld [vmem:[%s11521_s1 + $0x3280] sm:$0xff]  ;;  %v1642_v38 = vld [vmem:[%s11521_s1 + $0x3268] sm:$0xff]  ;;  %v7746_v2 = vcombine.high %v7720_v56, %v7720_v56 }
 0x1bf   :  { %3175 = vmatprep.subr.mxu0 %v1658_v4  ;;  %3246 = vmatprep.subr.mxu1 %v1786_v5  ;;  %v1773_v37 = vld [vmem:[%s11521_s1 + $0x3680] sm:$0xff]  ;;  %v1770_v40 = vld [vmem:[%s11521_s1 + $0x3668] sm:$0xff] }
 0x1c0   :  { %3176 = vmatpush2.msra.mxu0 %v1657_v6  ;;  %3247 = vmatpush2.msra.mxu1 %v1785_v7  ;;  %v1641_v44 = vld [vmem:[%s11521_s1 + $0x3260] sm:$0xff]  ;;  %v1638_v46 = vld [vmem:[%s11521_s1 + $0x3248] sm:$0xff] }
 0x1c1   :  { %3177 = vmatprep.subr.mxu0 %v1654_v10  ;;  %3248 = vmatprep.subr.mxu1 %v1782_v12  ;;  %v1769_v45 = vld [vmem:[%s11521_s1 + $0x3660] sm:$0xff]  ;;  %v1766_v47 = vld [vmem:[%s11521_s1 + $0x3648] sm:$0xff] }
 0x1c2   :  { %3178 = vmatpush2.msra.mxu0 %v1653_v13  ;;  %3249 = vmatpush2.msra.mxu1 %v1781_v14  ;;  %v1637_v50 = vld [vmem:[%s11521_s1 + $0x3240] sm:$0xff]  ;;  %v1634_v53 = vld [vmem:[%s11521_s1 + $0x3228] sm:$0xff] }
 0x1c3   :  { %3179 = vmatprep.subr.mxu0 %v1650_v18  ;;  %3250 = vmatprep.subr.mxu1 %v1778_v20  ;;  %v1765_v51 = vld [vmem:[%s11521_s1 + $0x3640] sm:$0xff]  ;;  %v1762_v55 = vld [vmem:[%s11521_s1 + $0x3628] sm:$0xff] }
 0x1c4   :  { %3180 = vmatpush2.msra.mxu0 %v1649_v22  ;;  %3251 = vmatpush2.msra.mxu1 %v1777_v24  ;;  %v1633_v58 = vld [vmem:[%s11521_s1 + $0x3220] sm:$0xff]  ;;  %v1630_v60 = vld [vmem:[%s11521_s1 + $0x3208] sm:$0xff] }
 0x1c5   :  { %3181 = vmatprep.subr.mxu0 %v1646_v31  ;;  %3252 = vmatprep.subr.mxu1 %v1774_v33  ;;  %v1761_v59 = vld [vmem:[%s11521_s1 + $0x3620] sm:$0xff]  ;;  %v1758_v61 = vld [vmem:[%s11521_s1 + $0x3608] sm:$0xff] }
 0x1c6   :  { %3182 = vmatpush2.msra.mxu0 %v1645_v34  ;;  %3253 = vmatpush2.msra.mxu1 %v1773_v37  ;;  %v1629_v0 = vld [vmem:[%s11521_s1 + $0x3200] sm:$0xff]  ;;  %v1882_v4 = vld [vmem:[%s11521_s1 + $0x39e8] sm:$0xff] }
 0x1c7   :  { %3183 = vmatprep.subr.mxu0 %v1642_v38  ;;  %3254 = vmatprep.subr.mxu1 %v1770_v40  ;;  %v1757_v1 = vld [vmem:[%s11521_s1 + $0x3600] sm:$0xff]  ;;  %v2010_v5 = vld [vmem:[%s11521_s1 + $0x3de8] sm:$0xff] }
 0x1c8   :  { %3184 = vmatpush2.msra.mxu0 %v1641_v44  ;;  %3255 = vmatpush2.msra.mxu1 %v1769_v45  ;;  %v1881_v6 = vld [vmem:[%s11521_s1 + $0x39e0] sm:$0xff]  ;;  %v1878_v10 = vld [vmem:[%s11521_s1 + $0x39c8] sm:$0xff] }
 0x1c9   :  { %3185 = vmatprep.subr.mxu0 %v1638_v46  ;;  %3256 = vmatprep.subr.mxu1 %v1766_v47  ;;  %v2009_v7 = vld [vmem:[%s11521_s1 + $0x3de0] sm:$0xff]  ;;  %v2006_v12 = vld [vmem:[%s11521_s1 + $0x3dc8] sm:$0xff] }
 0x1ca   :  { %3186 = vmatpush2.msra.mxu0 %v1637_v50  ;;  %3257 = vmatpush2.msra.mxu1 %v1765_v51  ;;  %v1877_v13 = vld [vmem:[%s11521_s1 + $0x39c0] sm:$0xff]  ;;  %v1874_v18 = vld [vmem:[%s11521_s1 + $0x39a8] sm:$0xff] }
 0x1cb   :  { %3187 = vmatprep.subr.mxu0 %v1634_v53  ;;  %3258 = vmatprep.subr.mxu1 %v1762_v55  ;;  %v2005_v14 = vld [vmem:[%s11521_s1 + $0x3dc0] sm:$0xff]  ;;  %v2002_v20 = vld [vmem:[%s11521_s1 + $0x3da8] sm:$0xff] }
 0x1cc   :  { %3188 = vmatpush2.msra.mxu0 %v1633_v58  ;;  %3259 = vmatpush2.msra.mxu1 %v1761_v59  ;;  %v1873_v22 = vld [vmem:[%s11521_s1 + $0x39a0] sm:$0xff]  ;;  %v1870_v30 = vld [vmem:[%s11521_s1 + $0x3988] sm:$0xff] }
 0x1cd   :  { %3189 = vmatprep.subr.mxu0 %v1630_v60  ;;  %3260 = vmatprep.subr.mxu1 %v1758_v61  ;;  %v2001_v24 = vld [vmem:[%s11521_s1 + $0x3da0] sm:$0xff]  ;;  %v1998_v31 = vld [vmem:[%s11521_s1 + $0x3d88] sm:$0xff] }
 0x1ce   :  { %3190 = vmatpush2.msra.mxu0 %v1629_v0  ;;  %3191 = vmatprep.mubr.f32.mxu0 %v7736_v63  ;;  %v1869_v33 = vld [vmem:[%s11521_s1 + $0x3980] sm:$0xff]  ;;  %v1866_v37 = vld [vmem:[%s11521_s1 + $0x3968] sm:$0xff] }
 0x1cf   :  { %3261 = vmatpush2.msra.mxu1 %v1757_v1  ;;  %3192 = vmatmul.mubr.f32.vlgmr.msra.gmra.mxu0 %v7705_v49  ;;  %v1997_v34 = vld [vmem:[%s11521_s1 + $0x3d80] sm:$0xff]  ;;  %v1994_v38 = vld [vmem:[%s11521_s1 + $0x3d68] sm:$0xff] }
 0x1d0   :  { %3262 = vmatprep.mubr.f32.mxu1 %v7746_v2  ;;  %3269 = vmatprep.subr.mxu0 %v1882_v4  ;;  %v1865_v40 = vld [vmem:[%s11521_s1 + $0x3960] sm:$0xff]  ;;  %v1862_v44 = vld [vmem:[%s11521_s1 + $0x3948] sm:$0xff] }
 0x1d1   :  { %3340 = vmatprep.subr.mxu1 %v2010_v5  ;;  %3263 = vmatmul.mubr.f32.vlgmr.msra.gmra.mxu1 %v7720_v56  ;;  %v1993_v42 = vld [vmem:[%s11521_s1 + $0x3d60] sm:$0xff]  ;;  %v1990_v45 = vld [vmem:[%s11521_s1 + $0x3d48] sm:$0xff] }
 0x1d2   :  { %3270 = vmatpush1.msra.mxu0 %v1881_v6  ;;  %3341 = vmatpush1.msra.mxu1 %v2009_v7  ;;  %v1861_v46 = vld [vmem:[%s11521_s1 + $0x3940] sm:$0xff]  ;;  %v1858_v50 = vld [vmem:[%s11521_s1 + $0x3928] sm:$0xff] }
 0x1d3   :  { %3271 = vmatprep.subr.mxu0 %v1878_v10  ;;  %3342 = vmatprep.subr.mxu1 %v2006_v12  ;;  %v1989_v47 = vld [vmem:[%s11521_s1 + $0x3d40] sm:$0xff]  ;;  %v1986_v51 = vld [vmem:[%s11521_s1 + $0x3d28] sm:$0xff] }
 0x1d4   :  { %3272 = vmatpush1.msra.mxu0 %v1877_v13  ;;  %3343 = vmatpush1.msra.mxu1 %v2005_v14  ;;  %v1857_v53 = vld [vmem:[%s11521_s1 + $0x3920] sm:$0xff]  ;;  %v1854_v58 = vld [vmem:[%s11521_s1 + $0x3908] sm:$0xff] }
 0x1d5   :  { %3273 = vmatprep.subr.mxu0 %v1874_v18  ;;  %3344 = vmatprep.subr.mxu1 %v2002_v20  ;;  %v1985_v55 = vld [vmem:[%s11521_s1 + $0x3d20] sm:$0xff]  ;;  %v1982_v59 = vld [vmem:[%s11521_s1 + $0x3d08] sm:$0xff] }
 0x1d6   :  { %3274 = vmatpush1.msra.mxu0 %v1873_v22  ;;  %3345 = vmatpush1.msra.mxu1 %v2001_v24  ;;  %v1853_v60 = vld [vmem:[%s11521_s1 + $0x3900] sm:$0xff]  ;;  %v1850_v0 = vld [vmem:[%s11521_s1 + $0x38e8] sm:$0xff] }
 0x1d7   :  { %3275 = vmatprep.subr.mxu0 %v1870_v30  ;;  %3346 = vmatprep.subr.mxu1 %v1998_v31  ;;  %v1981_v61 = vld [vmem:[%s11521_s1 + $0x3d00] sm:$0xff]  ;;  %v1978_v1 = vld [vmem:[%s11521_s1 + $0x3ce8] sm:$0xff] }
 0x1d8   :  { %3276 = vmatpush1.msra.mxu0 %v1869_v33  ;;  %3347 = vmatpush1.msra.mxu1 %v1997_v34  ;;  %v1849_v4 = vld [vmem:[%s11521_s1 + $0x38e0] sm:$0xff]  ;;  %v1846_v6 = vld [vmem:[%s11521_s1 + $0x38c8] sm:$0xff] }
 0x1d9   :  { %3277 = vmatprep.subr.mxu0 %v1866_v37  ;;  %3348 = vmatprep.subr.mxu1 %v1994_v38  ;;  %v1977_v5 = vld [vmem:[%s11521_s1 + $0x3ce0] sm:$0xff]  ;;  %v1974_v7 = vld [vmem:[%s11521_s1 + $0x3cc8] sm:$0xff] }
 0x1da   :  { %3278 = vmatpush1.msra.mxu0 %v1865_v40  ;;  %3349 = vmatpush1.msra.mxu1 %v1993_v42  ;;  %v1845_v10 = vld [vmem:[%s11521_s1 + $0x38c0] sm:$0xff]  ;;  %v1842_v13 = vld [vmem:[%s11521_s1 + $0x38a8] sm:$0xff] }
 0x1db   :  { %3279 = vmatprep.subr.mxu0 %v1862_v44  ;;  %3350 = vmatprep.subr.mxu1 %v1990_v45  ;;  %v1973_v12 = vld [vmem:[%s11521_s1 + $0x3cc0] sm:$0xff]  ;;  %v1970_v14 = vld [vmem:[%s11521_s1 + $0x3ca8] sm:$0xff] }
 0x1dc   :  { %3280 = vmatpush1.msra.mxu0 %v1861_v46  ;;  %3351 = vmatpush1.msra.mxu1 %v1989_v47  ;;  %v1841_v18 = vld [vmem:[%s11521_s1 + $0x38a0] sm:$0xff]  ;;  %v1838_v22 = vld [vmem:[%s11521_s1 + $0x3888] sm:$0xff] }
 0x1dd   :  { %3281 = vmatprep.subr.mxu0 %v1858_v50  ;;  %3352 = vmatprep.subr.mxu1 %v1986_v51  ;;  %v1969_v20 = vld [vmem:[%s11521_s1 + $0x3ca0] sm:$0xff]  ;;  %v1966_v24 = vld [vmem:[%s11521_s1 + $0x3c88] sm:$0xff] }
 0x1de   :  { %3282 = vmatpush1.msra.mxu0 %v1857_v53  ;;  %3353 = vmatpush1.msra.mxu1 %v1985_v55  ;;  %v1837_v30 = vld [vmem:[%s11521_s1 + $0x3880] sm:$0xff]  ;;  %v1834_v33 = vld [vmem:[%s11521_s1 + $0x3868] sm:$0xff] }
 0x1df   :  { %3283 = vmatprep.subr.mxu0 %v1854_v58  ;;  %3354 = vmatprep.subr.mxu1 %v1982_v59  ;;  %v1965_v31 = vld [vmem:[%s11521_s1 + $0x3c80] sm:$0xff]  ;;  %v1962_v34 = vld [vmem:[%s11521_s1 + $0x3c68] sm:$0xff] }
 0x1e0   :  { %3284 = vmatpush1.msra.mxu0 %v1853_v60  ;;  %3355 = vmatpush1.msra.mxu1 %v1981_v61  ;;  %v1833_v37 = vld [vmem:[%s11521_s1 + $0x3860] sm:$0xff]  ;;  %v1830_v40 = vld [vmem:[%s11521_s1 + $0x3848] sm:$0xff] }
 0x1e1   :  { %3285 = vmatprep.subr.mxu0 %v1850_v0  ;;  %3356 = vmatprep.subr.mxu1 %v1978_v1  ;;  %v1961_v38 = vld [vmem:[%s11521_s1 + $0x3c60] sm:$0xff]  ;;  %v1958_v42 = vld [vmem:[%s11521_s1 + $0x3c48] sm:$0xff] }
 0x1e2   :  { %3286 = vmatpush1.msra.mxu0 %v1849_v4  ;;  %3357 = vmatpush1.msra.mxu1 %v1977_v5  ;;  %v1829_v44 = vld [vmem:[%s11521_s1 + $0x3840] sm:$0xff]  ;;  %v1826_v46 = vld [vmem:[%s11521_s1 + $0x3828] sm:$0xff] }
 0x1e3   :  { %3287 = vmatprep.subr.mxu0 %v1846_v6  ;;  %3358 = vmatprep.subr.mxu1 %v1974_v7  ;;  %v1957_v45 = vld [vmem:[%s11521_s1 + $0x3c40] sm:$0xff]  ;;  %v1954_v47 = vld [vmem:[%s11521_s1 + $0x3c28] sm:$0xff] }
 0x1e4   :  { %3288 = vmatpush1.msra.mxu0 %v1845_v10  ;;  %3359 = vmatpush1.msra.mxu1 %v1973_v12  ;;  %v1825_v50 = vld [vmem:[%s11521_s1 + $0x3820] sm:$0xff]  ;;  %v1822_v53 = vld [vmem:[%s11521_s1 + $0x3808] sm:$0xff] }
 0x1e5   :  { %3289 = vmatprep.subr.mxu0 %v1842_v13  ;;  %3360 = vmatprep.subr.mxu1 %v1970_v14  ;;  %v1953_v51 = vld [vmem:[%s11521_s1 + $0x3c20] sm:$0xff]  ;;  %v1950_v55 = vld [vmem:[%s11521_s1 + $0x3c08] sm:$0xff] }
 0x1e6   :  { %3290 = vmatpush1.msra.mxu0 %v1841_v18  ;;  %3361 = vmatpush1.msra.mxu1 %v1969_v20  ;;  %v1821_v58 = vld [vmem:[%s11521_s1 + $0x3800] sm:$0xff]  ;;  %v1946_v60 = vld [vmem:[%s11521_s1 + $0x3be8] sm:$0xff] }
 0x1e7   :  { %3291 = vmatprep.subr.mxu0 %v1838_v22  ;;  %3362 = vmatprep.subr.mxu1 %v1966_v24  ;;  %v1949_v59 = vld [vmem:[%s11521_s1 + $0x3c00] sm:$0xff]  ;;  %v2074_v61 = vld [vmem:[%s11521_s1 + $0x3fe8] sm:$0xff] }
 0x1e8   :  { %3292 = vmatpush1.msra.mxu0 %v1837_v30  ;;  %3363 = vmatpush1.msra.mxu1 %v1965_v31  ;;  %v1945_v0 = vld [vmem:[%s11521_s1 + $0x3be0] sm:$0xff]  ;;  %v1942_v4 = vld [vmem:[%s11521_s1 + $0x3bc8] sm:$0xff] }
 0x1e9   :  { %3293 = vmatprep.subr.mxu0 %v1834_v33  ;;  %3364 = vmatprep.subr.mxu1 %v1962_v34  ;;  %v2073_v1 = vld [vmem:[%s11521_s1 + $0x3fe0] sm:$0xff]  ;;  %v2070_v5 = vld [vmem:[%s11521_s1 + $0x3fc8] sm:$0xff] }
 0x1ea   :  { %3294 = vmatpush1.msra.mxu0 %v1833_v37  ;;  %3365 = vmatpush1.msra.mxu1 %v1961_v38  ;;  %v1941_v6 = vld [vmem:[%s11521_s1 + $0x3bc0] sm:$0xff]  ;;  %v1938_v10 = vld [vmem:[%s11521_s1 + $0x3ba8] sm:$0xff] }
 0x1eb   :  { %3295 = vmatprep.subr.mxu0 %v1830_v40  ;;  %3366 = vmatprep.subr.mxu1 %v1958_v42  ;;  %v2069_v7 = vld [vmem:[%s11521_s1 + $0x3fc0] sm:$0xff]  ;;  %v2066_v12 = vld [vmem:[%s11521_s1 + $0x3fa8] sm:$0xff] }
 0x1ec   :  { %3296 = vmatpush1.msra.mxu0 %v1829_v44  ;;  %3367 = vmatpush1.msra.mxu1 %v1957_v45  ;;  %v1937_v13 = vld [vmem:[%s11521_s1 + $0x3ba0] sm:$0xff]  ;;  %v1934_v18 = vld [vmem:[%s11521_s1 + $0x3b88] sm:$0xff] }
 0x1ed   :  { %3297 = vmatprep.subr.mxu0 %v1826_v46  ;;  %3368 = vmatprep.subr.mxu1 %v1954_v47  ;;  %v2065_v14 = vld [vmem:[%s11521_s1 + $0x3fa0] sm:$0xff]  ;;  %v2062_v20 = vld [vmem:[%s11521_s1 + $0x3f88] sm:$0xff] }
 0x1ee   :  { %3298 = vmatpush1.msra.mxu0 %v1825_v50  ;;  %3369 = vmatpush1.msra.mxu1 %v1953_v51  ;;  %v1933_v22 = vld [vmem:[%s11521_s1 + $0x3b80] sm:$0xff]  ;;  %v1930_v30 = vld [vmem:[%s11521_s1 + $0x3b68] sm:$0xff] }
 0x1ef   :  { %3299 = vmatprep.subr.mxu0 %v1822_v53  ;;  %3370 = vmatprep.subr.mxu1 %v1950_v55  ;;  %v2061_v24 = vld [vmem:[%s11521_s1 + $0x3f80] sm:$0xff]  ;;  %v2058_v31 = vld [vmem:[%s11521_s1 + $0x3f68] sm:$0xff] }
 0x1f0   :  { %3300 = vmatpush1.msra.mxu0 %v1821_v58  ;;  %3371 = vmatpush1.msra.mxu1 %v1949_v59  ;;  %v1929_v33 = vld [vmem:[%s11521_s1 + $0x3b60] sm:$0xff]  ;;  %v1926_v37 = vld [vmem:[%s11521_s1 + $0x3b48] sm:$0xff] }
 0x1f1   :  { %3301 = vmatprep.subr.mxu0 %v1946_v60  ;;  %3372 = vmatprep.subr.mxu1 %v2074_v61  ;;  %v2057_v34 = vld [vmem:[%s11521_s1 + $0x3f60] sm:$0xff]  ;;  %v2054_v38 = vld [vmem:[%s11521_s1 + $0x3f48] sm:$0xff] }
 0x1f2   :  { %3302 = vmatpush2.msra.mxu0 %v1945_v0  ;;  %3373 = vmatpush2.msra.mxu1 %v2073_v1  ;;  %v1925_v40 = vld [vmem:[%s11521_s1 + $0x3b40] sm:$0xff]  ;;  %v1922_v44 = vld [vmem:[%s11521_s1 + $0x3b28] sm:$0xff] }
 0x1f3   :  { %3303 = vmatprep.subr.mxu0 %v1942_v4  ;;  %3374 = vmatprep.subr.mxu1 %v2070_v5  ;;  %v2053_v42 = vld [vmem:[%s11521_s1 + $0x3f40] sm:$0xff]  ;;  %v2050_v45 = vld [vmem:[%s11521_s1 + $0x3f28] sm:$0xff] }
 0x1f4   :  { %3304 = vmatpush2.msra.mxu0 %v1941_v6  ;;  %3375 = vmatpush2.msra.mxu1 %v2069_v7  ;;  %v1921_v46 = vld [vmem:[%s11521_s1 + $0x3b20] sm:$0xff]  ;;  %v1918_v50 = vld [vmem:[%s11521_s1 + $0x3b08] sm:$0xff] }
 0x1f5   :  { %3305 = vmatprep.subr.mxu0 %v1938_v10  ;;  %3376 = vmatprep.subr.mxu1 %v2066_v12  ;;  %v2049_v47 = vld [vmem:[%s11521_s1 + $0x3f20] sm:$0xff]  ;;  %v2046_v51 = vld [vmem:[%s11521_s1 + $0x3f08] sm:$0xff] }
 0x1f6   :  { %3306 = vmatpush2.msra.mxu0 %v1937_v13  ;;  %3377 = vmatpush2.msra.mxu1 %v2065_v14  ;;  %v1917_v53 = vld [vmem:[%s11521_s1 + $0x3b00] sm:$0xff]  ;;  %v1914_v58 = vld [vmem:[%s11521_s1 + $0x3ae8] sm:$0xff]  ;;  %v28_v13 = vld [vmem:[%s11520_s0 + $0x38] sm:$0xff] }
 0x1f7   :  { %3307 = vmatprep.subr.mxu0 %v1934_v18  ;;  %3378 = vmatprep.subr.mxu1 %v2062_v20  ;;  %v2045_v55 = vld [vmem:[%s11521_s1 + $0x3f00] sm:$0xff]  ;;  %v2042_v59 = vld [vmem:[%s11521_s1 + $0x3ee8] sm:$0xff] }
 0x1f8   :  { %3308 = vmatpush2.msra.mxu0 %v1933_v22  ;;  %3379 = vmatpush2.msra.mxu1 %v2061_v24  ;;  %v1913_v60 = vld [vmem:[%s11521_s1 + $0x3ae0] sm:$0xff]  ;;  %v1910_v0 = vld [vmem:[%s11521_s1 + $0x3ac8] sm:$0xff] }
 0x1f9   :  { %3309 = vmatprep.subr.mxu0 %v1930_v30  ;;  %3380 = vmatprep.subr.mxu1 %v2058_v31  ;;  %v2041_v61 = vld [vmem:[%s11521_s1 + $0x3ee0] sm:$0xff]  ;;  %v2038_v1 = vld [vmem:[%s11521_s1 + $0x3ec8] sm:$0xff]  ;;  %v2226_v31 = vcombine.high %v28_v13, %v28_v13 }
 0x1fa   :  { %3310 = vmatpush2.msra.mxu0 %v1929_v33  ;;  %3381 = vmatpush2.msra.mxu1 %v2057_v34  ;;  %v1909_v4 = vld [vmem:[%s11521_s1 + $0x3ac0] sm:$0xff]  ;;  %v1906_v6 = vld [vmem:[%s11521_s1 + $0x3aa8] sm:$0xff] }
 0x1fb   :  { %3311 = vmatprep.subr.mxu0 %v1926_v37  ;;  %3382 = vmatprep.subr.mxu1 %v2054_v38  ;;  %v2037_v5 = vld [vmem:[%s11521_s1 + $0x3ec0] sm:$0xff]  ;;  %v2034_v7 = vld [vmem:[%s11521_s1 + $0x3ea8] sm:$0xff] }
 0x1fc   :  { %3312 = vmatpush2.msra.mxu0 %v1925_v40  ;;  %3383 = vmatpush2.msra.mxu1 %v2053_v42  ;;  %v1905_v10 = vld [vmem:[%s11521_s1 + $0x3aa0] sm:$0xff]  ;;  %v1902_v14 = vld [vmem:[%s11521_s1 + $0x3a88] sm:$0xff]  ;;  %v8110_v40 = vrot.slane %v28_v13, %v5248_v52  ;;  %v212_v13 = vld [vmem:[%s11521_s1 + $0x5b8] sm:$0xff] }
 0x1fd   :  { %3313 = vmatprep.subr.mxu0 %v1922_v44  ;;  %3384 = vmatprep.subr.mxu1 %v2050_v45  ;;  %v2033_v12 = vld [vmem:[%s11521_s1 + $0x3ea0] sm:$0xff]  ;;  %v2030_v18 = vld [vmem:[%s11521_s1 + $0x3e88] sm:$0xff] }
 0x1fe   :  { %3314 = vmatpush2.msra.mxu0 %v1921_v46  ;;  %3385 = vmatpush2.msra.mxu1 %v2049_v47  ;;  %v1901_v20 = vld [vmem:[%s11521_s1 + $0x3a80] sm:$0xff]  ;;  %v1898_v24 = vld [vmem:[%s11521_s1 + $0x3a68] sm:$0xff]  ;;  %v8125_v47 = vrot.slane %v2226_v31, %v5248_v52  ;;  %v76_v31 = vld [vmem:[%s11521_s1 + $0x178] sm:$0xff] }
 0x1ff   :  { %3315 = vmatprep.subr.mxu0 %v1918_v50  ;;  %3386 = vmatprep.subr.mxu1 %v2046_v51  ;;  %v2029_v22 = vld [vmem:[%s11521_s1 + $0x3e80] sm:$0xff]  ;;  %v2026_v30 = vld [vmem:[%s11521_s1 + $0x3e68] sm:$0xff] }
 0x200   :  { %3316 = vmatpush2.msra.mxu0 %v1917_v53  ;;  %3387 = vmatpush2.msra.mxu1 %v2045_v55  ;;  %v1897_v33 = vld [vmem:[%s11521_s1 + $0x3a60] sm:$0xff]  ;;  %v1894_v37 = vld [vmem:[%s11521_s1 + $0x3a48] sm:$0xff]  ;;  %v8141_v55 = vcombine.high %v8110_v40, %v8110_v40 }
 0x201   :  { %3317 = vmatprep.subr.mxu0 %v1914_v58  ;;  %3388 = vmatprep.subr.mxu1 %v2042_v59  ;;  %v2025_v34 = vld [vmem:[%s11521_s1 + $0x3e60] sm:$0xff]  ;;  %v2022_v38 = vld [vmem:[%s11521_s1 + $0x3e48] sm:$0xff] }
 0x202   :  { %3318 = vmatpush2.msra.mxu0 %v1913_v60  ;;  %3389 = vmatpush2.msra.mxu1 %v2041_v61  ;;  %v1893_v42 = vld [vmem:[%s11521_s1 + $0x3a40] sm:$0xff]  ;;  %v1890_v45 = vld [vmem:[%s11521_s1 + $0x3a28] sm:$0xff]  ;;  %v8151_v60 = vcombine.high %v8125_v47, %v8125_v47  ;;  %v92_v61 = vld [vmem:[%s11521_s1 + $0x1f8] sm:$0xff] }
 0x203   :  { %3319 = vmatprep.subr.mxu0 %v1910_v0  ;;  %3390 = vmatprep.subr.mxu1 %v2038_v1  ;;  %v2021_v44 = vld [vmem:[%s11521_s1 + $0x3e40] sm:$0xff]  ;;  %v2018_v46 = vld [vmem:[%s11521_s1 + $0x3e28] sm:$0xff]  ;;  %v220_v0 = vld [vmem:[%s11521_s1 + $0x5f8] sm:$0xff] }
 0x204   :  { %3320 = vmatpush2.msra.mxu0 %v1909_v4  ;;  %3391 = vmatpush2.msra.mxu1 %v2037_v5  ;;  %v1889_v50 = vld [vmem:[%s11521_s1 + $0x3a20] sm:$0xff]  ;;  %v1886_v53 = vld [vmem:[%s11521_s1 + $0x3a08] sm:$0xff]  ;;  %v91_v1 = vld [vmem:[%s11521_s1 + $0x1f0] sm:$0xff] }
 0x205   :  { %3321 = vmatprep.subr.mxu0 %v1906_v6  ;;  %3392 = vmatprep.subr.mxu1 %v2034_v7  ;;  %v2017_v51 = vld [vmem:[%s11521_s1 + $0x3e20] sm:$0xff]  ;;  %v2014_v52 = vld [vmem:[%s11521_s1 + $0x3e08] sm:$0xff]  ;;  %v219_v4 = vld [vmem:[%s11521_s1 + $0x5f0] sm:$0xff] }
 0x206   :  { %3322 = vmatpush2.msra.mxu0 %v1905_v10  ;;  %3393 = vmatpush2.msra.mxu1 %v2033_v12  ;;  %v1885_v58 = vld [vmem:[%s11521_s1 + $0x3a00] sm:$0xff]  ;;  %v88_v5 = vld [vmem:[%s11521_s1 + $0x1d8] sm:$0xff]  ;;  %v87_v7 = vld [vmem:[%s11521_s1 + $0x1d0] sm:$0xff] }
 0x207   :  { %3323 = vmatprep.subr.mxu0 %v1902_v14  ;;  %3394 = vmatprep.subr.mxu1 %v2030_v18  ;;  %v2013_v59 = vld [vmem:[%s11521_s1 + $0x3e00] sm:$0xff]  ;;  %v216_v6 = vld [vmem:[%s11521_s1 + $0x5d8] sm:$0xff]  ;;  %v215_v10 = vld [vmem:[%s11521_s1 + $0x5d0] sm:$0xff] }
 0x208   :  { %3324 = vmatpush2.msra.mxu0 %v1901_v20  ;;  %3395 = vmatpush2.msra.mxu1 %v2029_v22  ;;  %v84_v12 = vld [vmem:[%s11521_s1 + $0x1b8] sm:$0xff]  ;;  %v83_v14 = vld [vmem:[%s11521_s1 + $0x1b0] sm:$0xff] }
 0x209   :  { %3325 = vmatprep.subr.mxu0 %v1898_v24  ;;  %3396 = vmatprep.subr.mxu1 %v2026_v30  ;;  %v211_v18 = vld [vmem:[%s11521_s1 + $0x5b0] sm:$0xff]  ;;  %v80_v20 = vld [vmem:[%s11521_s1 + $0x198] sm:$0xff] }
 0x20a   :  { %3326 = vmatpush2.msra.mxu0 %v1897_v33  ;;  %3397 = vmatpush2.msra.mxu1 %v2025_v34  ;;  %v208_v22 = vld [vmem:[%s11521_s1 + $0x598] sm:$0xff]  ;;  %v79_v24 = vld [vmem:[%s11521_s1 + $0x190] sm:$0xff] }
 0x20b   :  { %3327 = vmatprep.subr.mxu0 %v1894_v37  ;;  %3398 = vmatprep.subr.mxu1 %v2022_v38  ;;  %v207_v30 = vld [vmem:[%s11521_s1 + $0x590] sm:$0xff]  ;;  %v204_v33 = vld [vmem:[%s11521_s1 + $0x578] sm:$0xff] }
 0x20c   :  { %3328 = vmatpush2.msra.mxu0 %v1893_v42  ;;  %3399 = vmatpush2.msra.mxu1 %v2021_v44  ;;  %v75_v34 = vld [vmem:[%s11521_s1 + $0x170] sm:$0xff]  ;;  %v72_v38 = vld [vmem:[%s11521_s1 + $0x158] sm:$0xff] }
 0x20d   :  { %3329 = vmatprep.subr.mxu0 %v1890_v45  ;;  %3400 = vmatprep.subr.mxu1 %v2018_v46  ;;  %v203_v37 = vld [vmem:[%s11521_s1 + $0x570] sm:$0xff]  ;;  %v200_v42 = vld [vmem:[%s11521_s1 + $0x558] sm:$0xff] }
 0x20e   :  { %3330 = vmatpush2.msra.mxu0 %v1889_v50  ;;  %3401 = vmatpush2.msra.mxu1 %v2017_v51  ;;  %v71_v44 = vld [vmem:[%s11521_s1 + $0x150] sm:$0xff]  ;;  %v68_v46 = vld [vmem:[%s11521_s1 + $0x138] sm:$0xff] }
 0x20f   :  { %3331 = vmatprep.subr.mxu0 %v1886_v53  ;;  %3402 = vmatprep.subr.mxu1 %v2014_v52  ;;  %v199_v45 = vld [vmem:[%s11521_s1 + $0x550] sm:$0xff]  ;;  %v196_v50 = vld [vmem:[%s11521_s1 + $0x538] sm:$0xff] }
 0x210   :  { %3332 = vmatpush2.msra.mxu0 %v1885_v58  ;;  %3333 = vmatprep.mubr.f32.mxu0 %v8141_v55  ;;  %v67_v51 = vld [vmem:[%s11521_s1 + $0x130] sm:$0xff]  ;;  %v64_v52 = vld [vmem:[%s11521_s1 + $0x118] sm:$0xff] }
 0x211   :  { %3403 = vmatpush2.msra.mxu1 %v2013_v59  ;;  %3334 = vmatmul.mubr.f32.vlgmr.msra.gmra.mxu0 %v8110_v40  ;;  %v195_v53 = vld [vmem:[%s11521_s1 + $0x530] sm:$0xff]  ;;  %v192_v58 = vld [vmem:[%s11521_s1 + $0x518] sm:$0xff] }
 0x212   :  { %3404 = vmatprep.mubr.f32.mxu1 %v8151_v60  ;;  %3411 = vmatprep.subr.mxu0 %v92_v61  ;;  %v63_v59 = vld [vmem:[%s11521_s1 + $0x110] sm:$0xff] }
 0x213   :  { %3482 = vmatprep.subr.mxu1 %v220_v0  ;;  %3405 = vmatmul.mubr.f32.vlgmr.msra.gmra.mxu1 %v8125_v47  ;;  %v191_v61 = vld [vmem:[%s11521_s1 + $0x510] sm:$0xff]  ;;  %v60_v0 = vld [vmem:[%s11521_s1 + $0xf8] sm:$0xff] }
 0x214   :  { %3412 = vmatpush1.msra.mxu0 %v91_v1  ;;  %3483 = vmatpush1.msra.mxu1 %v219_v4  ;;  %v188_v1 = vld [vmem:[%s11521_s1 + $0x4f8] sm:$0xff]  ;;  %v59_v4 = vld [vmem:[%s11521_s1 + $0xf0] sm:$0xff] }
 0x215   :  { %3413 = vmatprep.subr.mxu0 %v88_v5  ;;  %3484 = vmatprep.subr.mxu1 %v216_v6  ;;  %v187_v5 = vld [vmem:[%s11521_s1 + $0x4f0] sm:$0xff]  ;;  %v56_v6 = vld [vmem:[%s11521_s1 + $0xd8] sm:$0xff] }
 0x216   :  { %3414 = vmatpush1.msra.mxu0 %v87_v7  ;;  %3485 = vmatpush1.msra.mxu1 %v215_v10  ;;  %v184_v7 = vld [vmem:[%s11521_s1 + $0x4d8] sm:$0xff]  ;;  %v55_v10 = vld [vmem:[%s11521_s1 + $0xd0] sm:$0xff] }
 0x217   :  { %3415 = vmatprep.subr.mxu0 %v84_v12  ;;  %3486 = vmatprep.subr.mxu1 %v212_v13  ;;  %v183_v12 = vld [vmem:[%s11521_s1 + $0x4d0] sm:$0xff]  ;;  %v52_v13 = vld [vmem:[%s11521_s1 + $0xb8] sm:$0xff] }
 0x218   :  { %3416 = vmatpush1.msra.mxu0 %v83_v14  ;;  %3487 = vmatpush1.msra.mxu1 %v211_v18  ;;  %v180_v14 = vld [vmem:[%s11521_s1 + $0x4b8] sm:$0xff]  ;;  %v51_v18 = vld [vmem:[%s11521_s1 + $0xb0] sm:$0xff] }
 0x219   :  { %3417 = vmatprep.subr.mxu0 %v80_v20  ;;  %3488 = vmatprep.subr.mxu1 %v208_v22  ;;  %v179_v20 = vld [vmem:[%s11521_s1 + $0x4b0] sm:$0xff]  ;;  %v48_v22 = vld [vmem:[%s11521_s1 + $0x98] sm:$0xff] }
 0x21a   :  { %3418 = vmatpush1.msra.mxu0 %v79_v24  ;;  %3489 = vmatpush1.msra.mxu1 %v207_v30  ;;  %v176_v24 = vld [vmem:[%s11521_s1 + $0x498] sm:$0xff]  ;;  %v47_v30 = vld [vmem:[%s11521_s1 + $0x90] sm:$0xff] }
 0x21b   :  { %3419 = vmatprep.subr.mxu0 %v76_v31  ;;  %3490 = vmatprep.subr.mxu1 %v204_v33  ;;  %v175_v31 = vld [vmem:[%s11521_s1 + $0x490] sm:$0xff]  ;;  %v44_v33 = vld [vmem:[%s11521_s1 + $0x78] sm:$0xff] }
 0x21c   :  { %3420 = vmatpush1.msra.mxu0 %v75_v34  ;;  %3491 = vmatpush1.msra.mxu1 %v203_v37  ;;  %v172_v34 = vld [vmem:[%s11521_s1 + $0x478] sm:$0xff]  ;;  %v43_v37 = vld [vmem:[%s11521_s1 + $0x70] sm:$0xff] }
 0x21d   :  { %3421 = vmatprep.subr.mxu0 %v72_v38  ;;  %3492 = vmatprep.subr.mxu1 %v200_v42  ;;  %v171_v38 = vld [vmem:[%s11521_s1 + $0x470] sm:$0xff]  ;;  %v40_v42 = vld [vmem:[%s11521_s1 + $0x58] sm:$0xff] }
 0x21e   :  { %3422 = vmatpush1.msra.mxu0 %v71_v44  ;;  %3493 = vmatpush1.msra.mxu1 %v199_v45  ;;  %v168_v44 = vld [vmem:[%s11521_s1 + $0x458] sm:$0xff]  ;;  %v39_v45 = vld [vmem:[%s11521_s1 + $0x50] sm:$0xff] }
 0x21f   :  { %3423 = vmatprep.subr.mxu0 %v68_v46  ;;  %3494 = vmatprep.subr.mxu1 %v196_v50  ;;  %v167_v46 = vld [vmem:[%s11521_s1 + $0x450] sm:$0xff]  ;;  %v36_v50 = vld [vmem:[%s11521_s1 + $0x38] sm:$0xff] }
 0x220   :  { %3424 = vmatpush1.msra.mxu0 %v67_v51  ;;  %3495 = vmatpush1.msra.mxu1 %v195_v53  ;;  %v164_v51 = vld [vmem:[%s11521_s1 + $0x438] sm:$0xff]  ;;  %v35_v53 = vld [vmem:[%s11521_s1 + $0x30] sm:$0xff] }
 0x221   :  { %3425 = vmatprep.subr.mxu0 %v64_v52  ;;  %3496 = vmatprep.subr.mxu1 %v192_v58  ;;  %v163_v52 = vld [vmem:[%s11521_s1 + $0x430] sm:$0xff]  ;;  %v32_v58 = vld [vmem:[%s11521_s1 + $0x18] sm:$0xff] }
 0x222   :  { %3426 = vmatpush1.msra.mxu0 %v63_v59  ;;  %3497 = vmatpush1.msra.mxu1 %v191_v61  ;;  %v160_v59 = vld [vmem:[%s11521_s1 + $0x418] sm:$0xff]  ;;  %v31_v61 = vld [vmem:[%s11521_s1 + $0x10] sm:$0xff] }
 0x223   :  { %3427 = vmatprep.subr.mxu0 %v60_v0  ;;  %3498 = vmatprep.subr.mxu1 %v188_v1  ;;  %v159_v0 = vld [vmem:[%s11521_s1 + $0x410] sm:$0xff]  ;;  %v156_v1 = vld [vmem:[%s11521_s1 + $0x3f8] sm:$0xff] }
 0x224   :  { %3428 = vmatpush1.msra.mxu0 %v59_v4  ;;  %3499 = vmatpush1.msra.mxu1 %v187_v5  ;;  %v284_v4 = vld [vmem:[%s11521_s1 + $0x7f8] sm:$0xff]  ;;  %v155_v5 = vld [vmem:[%s11521_s1 + $0x3f0] sm:$0xff] }
 0x225   :  { %3429 = vmatprep.subr.mxu0 %v56_v6  ;;  %3500 = vmatprep.subr.mxu1 %v184_v7  ;;  %v283_v6 = vld [vmem:[%s11521_s1 + $0x7f0] sm:$0xff]  ;;  %v152_v7 = vld [vmem:[%s11521_s1 + $0x3d8] sm:$0xff] }
 0x226   :  { %3430 = vmatpush1.msra.mxu0 %v55_v10  ;;  %3501 = vmatpush1.msra.mxu1 %v183_v12  ;;  %v280_v10 = vld [vmem:[%s11521_s1 + $0x7d8] sm:$0xff]  ;;  %v151_v12 = vld [vmem:[%s11521_s1 + $0x3d0] sm:$0xff] }
 0x227   :  { %3431 = vmatprep.subr.mxu0 %v52_v13  ;;  %3502 = vmatprep.subr.mxu1 %v180_v14  ;;  %v279_v13 = vld [vmem:[%s11521_s1 + $0x7d0] sm:$0xff]  ;;  %v148_v14 = vld [vmem:[%s11521_s1 + $0x3b8] sm:$0xff] }
 0x228   :  { %3432 = vmatpush1.msra.mxu0 %v51_v18  ;;  %3503 = vmatpush1.msra.mxu1 %v179_v20  ;;  %v276_v18 = vld [vmem:[%s11521_s1 + $0x7b8] sm:$0xff]  ;;  %v147_v20 = vld [vmem:[%s11521_s1 + $0x3b0] sm:$0xff] }
 0x229   :  { %3433 = vmatprep.subr.mxu0 %v48_v22  ;;  %3504 = vmatprep.subr.mxu1 %v176_v24  ;;  %v275_v22 = vld [vmem:[%s11521_s1 + $0x7b0] sm:$0xff]  ;;  %v144_v24 = vld [vmem:[%s11521_s1 + $0x398] sm:$0xff] }
 0x22a   :  { %3434 = vmatpush1.msra.mxu0 %v47_v30  ;;  %3505 = vmatpush1.msra.mxu1 %v175_v31  ;;  %v272_v30 = vld [vmem:[%s11521_s1 + $0x798] sm:$0xff]  ;;  %v143_v31 = vld [vmem:[%s11521_s1 + $0x390] sm:$0xff] }
 0x22b   :  { %3435 = vmatprep.subr.mxu0 %v44_v33  ;;  %3506 = vmatprep.subr.mxu1 %v172_v34  ;;  %v271_v33 = vld [vmem:[%s11521_s1 + $0x790] sm:$0xff]  ;;  %v140_v34 = vld [vmem:[%s11521_s1 + $0x378] sm:$0xff] }
 0x22c   :  { %3436 = vmatpush1.msra.mxu0 %v43_v37  ;;  %3507 = vmatpush1.msra.mxu1 %v171_v38  ;;  %v268_v37 = vld [vmem:[%s11521_s1 + $0x778] sm:$0xff]  ;;  %v139_v38 = vld [vmem:[%s11521_s1 + $0x370] sm:$0xff] }
 0x22d   :  { %3437 = vmatprep.subr.mxu0 %v40_v42  ;;  %3508 = vmatprep.subr.mxu1 %v168_v44  ;;  %v267_v42 = vld [vmem:[%s11521_s1 + $0x770] sm:$0xff]  ;;  %v136_v44 = vld [vmem:[%s11521_s1 + $0x358] sm:$0xff] }
 0x22e   :  { %3438 = vmatpush1.msra.mxu0 %v39_v45  ;;  %3509 = vmatpush1.msra.mxu1 %v167_v46  ;;  %v264_v45 = vld [vmem:[%s11521_s1 + $0x758] sm:$0xff]  ;;  %v135_v46 = vld [vmem:[%s11521_s1 + $0x350] sm:$0xff] }
 0x22f   :  { %3439 = vmatprep.subr.mxu0 %v36_v50  ;;  %3510 = vmatprep.subr.mxu1 %v164_v51  ;;  %v263_v50 = vld [vmem:[%s11521_s1 + $0x750] sm:$0xff]  ;;  %v132_v51 = vld [vmem:[%s11521_s1 + $0x338] sm:$0xff] }
 0x230   :  { %3440 = vmatpush1.msra.mxu0 %v35_v53  ;;  %3511 = vmatpush1.msra.mxu1 %v163_v52  ;;  %v260_v53 = vld [vmem:[%s11521_s1 + $0x738] sm:$0xff]  ;;  %v131_v52 = vld [vmem:[%s11521_s1 + $0x330] sm:$0xff] }
 0x231   :  { %3441 = vmatprep.subr.mxu0 %v32_v58  ;;  %3512 = vmatprep.subr.mxu1 %v160_v59  ;;  %v259_v58 = vld [vmem:[%s11521_s1 + $0x730] sm:$0xff]  ;;  %v128_v59 = vld [vmem:[%s11521_s1 + $0x318] sm:$0xff] }
 0x232   :  { %3442 = vmatpush1.msra.mxu0 %v31_v61  ;;  %3513 = vmatpush1.msra.mxu1 %v159_v0  ;;  %v256_v61 = vld [vmem:[%s11521_s1 + $0x718] sm:$0xff]  ;;  %v127_v0 = vld [vmem:[%s11521_s1 + $0x310] sm:$0xff] }
 0x233   :  { %3443 = vmatprep.subr.mxu0 %v156_v1  ;;  %3514 = vmatprep.subr.mxu1 %v284_v4  ;;  %v255_v1 = vld [vmem:[%s11521_s1 + $0x710] sm:$0xff]  ;;  %v124_v4 = vld [vmem:[%s11521_s1 + $0x2f8] sm:$0xff] }
 0x234   :  { %3444 = vmatpush2.msra.mxu0 %v155_v5  ;;  %3515 = vmatpush2.msra.mxu1 %v283_v6  ;;  %v252_v5 = vld [vmem:[%s11521_s1 + $0x6f8] sm:$0xff]  ;;  %v123_v6 = vld [vmem:[%s11521_s1 + $0x2f0] sm:$0xff] }
 0x235   :  { %3445 = vmatprep.subr.mxu0 %v152_v7  ;;  %3516 = vmatprep.subr.mxu1 %v280_v10  ;;  %v251_v7 = vld [vmem:[%s11521_s1 + $0x6f0] sm:$0xff]  ;;  %v120_v10 = vld [vmem:[%s11521_s1 + $0x2d8] sm:$0xff] }
 0x236   :  { %3446 = vmatpush2.msra.mxu0 %v151_v12  ;;  %3517 = vmatpush2.msra.mxu1 %v279_v13  ;;  %v248_v12 = vld [vmem:[%s11521_s1 + $0x6d8] sm:$0xff]  ;;  %v119_v13 = vld [vmem:[%s11521_s1 + $0x2d0] sm:$0xff] }
 0x237   :  { %3447 = vmatprep.subr.mxu0 %v148_v14  ;;  %3518 = vmatprep.subr.mxu1 %v276_v18  ;;  %v247_v14 = vld [vmem:[%s11521_s1 + $0x6d0] sm:$0xff]  ;;  %v116_v18 = vld [vmem:[%s11521_s1 + $0x2b8] sm:$0xff] }
 0x238   :  { %3448 = vmatpush2.msra.mxu0 %v147_v20  ;;  %3519 = vmatpush2.msra.mxu1 %v275_v22  ;;  %v244_v20 = vld [vmem:[%s11521_s1 + $0x6b8] sm:$0xff]  ;;  %v115_v22 = vld [vmem:[%s11521_s1 + $0x2b0] sm:$0xff] }
 0x239   :  { %3449 = vmatprep.subr.mxu0 %v144_v24  ;;  %3520 = vmatprep.subr.mxu1 %v272_v30  ;;  %v243_v24 = vld [vmem:[%s11521_s1 + $0x6b0] sm:$0xff]  ;;  %v112_v30 = vld [vmem:[%s11521_s1 + $0x298] sm:$0xff] }
 0x23a   :  { %3450 = vmatpush2.msra.mxu0 %v143_v31  ;;  %3521 = vmatpush2.msra.mxu1 %v271_v33  ;;  %v240_v31 = vld [vmem:[%s11521_s1 + $0x698] sm:$0xff]  ;;  %v111_v33 = vld [vmem:[%s11521_s1 + $0x290] sm:$0xff] }
 0x23b   :  { %3451 = vmatprep.subr.mxu0 %v140_v34  ;;  %3522 = vmatprep.subr.mxu1 %v268_v37  ;;  %v239_v34 = vld [vmem:[%s11521_s1 + $0x690] sm:$0xff]  ;;  %v108_v37 = vld [vmem:[%s11521_s1 + $0x278] sm:$0xff] }
 0x23c   :  { %3452 = vmatpush2.msra.mxu0 %v139_v38  ;;  %3523 = vmatpush2.msra.mxu1 %v267_v42  ;;  %v236_v38 = vld [vmem:[%s11521_s1 + $0x678] sm:$0xff]  ;;  %v107_v42 = vld [vmem:[%s11521_s1 + $0x270] sm:$0xff] }
 0x23d   :  { %3453 = vmatprep.subr.mxu0 %v136_v44  ;;  %3524 = vmatprep.subr.mxu1 %v264_v45  ;;  %v235_v44 = vld [vmem:[%s11521_s1 + $0x670] sm:$0xff]  ;;  %v104_v45 = vld [vmem:[%s11521_s1 + $0x258] sm:$0xff] }
 0x23e   :  { %3454 = vmatpush2.msra.mxu0 %v135_v46  ;;  %3525 = vmatpush2.msra.mxu1 %v263_v50  ;;  %v232_v46 = vld [vmem:[%s11521_s1 + $0x658] sm:$0xff]  ;;  %v103_v50 = vld [vmem:[%s11521_s1 + $0x250] sm:$0xff] }
 0x23f   :  { %3455 = vmatprep.subr.mxu0 %v132_v51  ;;  %3526 = vmatprep.subr.mxu1 %v260_v53  ;;  %v231_v51 = vld [vmem:[%s11521_s1 + $0x650] sm:$0xff]  ;;  %v100_v53 = vld [vmem:[%s11521_s1 + $0x238] sm:$0xff] }
 0x240   :  { %3456 = vmatpush2.msra.mxu0 %v131_v52  ;;  %3527 = vmatpush2.msra.mxu1 %v259_v58  ;;  %v228_v52 = vld [vmem:[%s11521_s1 + $0x638] sm:$0xff]  ;;  %v99_v58 = vld [vmem:[%s11521_s1 + $0x230] sm:$0xff] }
 0x241   :  { %3457 = vmatprep.subr.mxu0 %v128_v59  ;;  %3528 = vmatprep.subr.mxu1 %v256_v61  ;;  %v227_v59 = vld [vmem:[%s11521_s1 + $0x630] sm:$0xff]  ;;  %v96_v61 = vld [vmem:[%s11521_s1 + $0x218] sm:$0xff] }
 0x242   :  { %3458 = vmatpush2.msra.mxu0 %v127_v0  ;;  %3529 = vmatpush2.msra.mxu1 %v255_v1  ;;  %v224_v0 = vld [vmem:[%s11521_s1 + $0x618] sm:$0xff]  ;;  %v95_v1 = vld [vmem:[%s11521_s1 + $0x210] sm:$0xff] }
 0x243   :  { %3459 = vmatprep.subr.mxu0 %v124_v4  ;;  %3530 = vmatprep.subr.mxu1 %v252_v5  ;;  %v223_v4 = vld [vmem:[%s11521_s1 + $0x610] sm:$0xff]  ;;  %v348_v5 = vld [vmem:[%s11521_s1 + $0x9f8] sm:$0xff] }
 0x244   :  { %3460 = vmatpush2.msra.mxu0 %v123_v6  ;;  %3531 = vmatpush2.msra.mxu1 %v251_v7  ;;  %v476_v6 = vld [vmem:[%s11521_s1 + $0xdf8] sm:$0xff]  ;;  %v347_v7 = vld [vmem:[%s11521_s1 + $0x9f0] sm:$0xff] }
 0x245   :  { %3461 = vmatprep.subr.mxu0 %v120_v10  ;;  %3532 = vmatprep.subr.mxu1 %v248_v12  ;;  %v475_v10 = vld [vmem:[%s11521_s1 + $0xdf0] sm:$0xff]  ;;  %v472_v12 = vld [vmem:[%s11521_s1 + $0xdd8] sm:$0xff] }
 0x246   :  { %3462 = vmatpush2.msra.mxu0 %v119_v13  ;;  %3533 = vmatpush2.msra.mxu1 %v247_v14  ;;  %v340_v13 = vld [vmem:[%s11521_s1 + $0x9b8] sm:$0xff] }
 0x247   :  { %3463 = vmatprep.subr.mxu0 %v116_v18  ;;  %3534 = vmatprep.subr.mxu1 %v244_v20  ;;  %v468_v14 = vld [vmem:[%s11521_s1 + $0xdb8] sm:$0xff]  ;;  %v467_v18 = vld [vmem:[%s11521_s1 + $0xdb0] sm:$0xff] }
 0x248   :  { %3464 = vmatpush2.msra.mxu0 %v115_v22  ;;  %3535 = vmatpush2.msra.mxu1 %v243_v24  ;;  %v336_v20 = vld [vmem:[%s11521_s1 + $0x998] sm:$0xff]  ;;  %v335_v24 = vld [vmem:[%s11521_s1 + $0x990] sm:$0xff] }
 0x249   :  { %3465 = vmatprep.subr.mxu0 %v112_v30  ;;  %3536 = vmatprep.subr.mxu1 %v240_v31  ;;  %v464_v22 = vld [vmem:[%s11521_s1 + $0xd98] sm:$0xff]  ;;  %v463_v30 = vld [vmem:[%s11521_s1 + $0xd90] sm:$0xff] }
 0x24a   :  { %3466 = vmatpush2.msra.mxu0 %v111_v33  ;;  %3537 = vmatpush2.msra.mxu1 %v239_v34  ;;  %v332_v31 = vld [vmem:[%s11521_s1 + $0x978] sm:$0xff]  ;;  %v331_v34 = vld [vmem:[%s11521_s1 + $0x970] sm:$0xff] }
 0x24b   :  { %3467 = vmatprep.subr.mxu0 %v108_v37  ;;  %3538 = vmatprep.subr.mxu1 %v236_v38  ;;  %v460_v33 = vld [vmem:[%s11521_s1 + $0xd78] sm:$0xff]  ;;  %v459_v37 = vld [vmem:[%s11521_s1 + $0xd70] sm:$0xff] }
 0x24c   :  { %3468 = vmatpush2.msra.mxu0 %v107_v42  ;;  %3539 = vmatpush2.msra.mxu1 %v235_v44  ;;  %v328_v38 = vld [vmem:[%s11521_s1 + $0x958] sm:$0xff]  ;;  %v327_v44 = vld [vmem:[%s11521_s1 + $0x950] sm:$0xff] }
 0x24d   :  { %3469 = vmatprep.subr.mxu0 %v104_v45  ;;  %3540 = vmatprep.subr.mxu1 %v232_v46  ;;  %v456_v42 = vld [vmem:[%s11521_s1 + $0xd58] sm:$0xff]  ;;  %v455_v45 = vld [vmem:[%s11521_s1 + $0xd50] sm:$0xff] }
 0x24e   :  { %3470 = vmatpush2.msra.mxu0 %v103_v50  ;;  %3541 = vmatpush2.msra.mxu1 %v231_v51  ;;  %v324_v46 = vld [vmem:[%s11521_s1 + $0x938] sm:$0xff]  ;;  %v323_v51 = vld [vmem:[%s11521_s1 + $0x930] sm:$0xff] }
 0x24f   :  { %3471 = vmatprep.subr.mxu0 %v100_v53  ;;  %3542 = vmatprep.subr.mxu1 %v228_v52  ;;  %v452_v50 = vld [vmem:[%s11521_s1 + $0xd38] sm:$0xff]  ;;  %v451_v53 = vld [vmem:[%s11521_s1 + $0xd30] sm:$0xff] }
 0x250   :  { %3472 = vmatpush2.msra.mxu0 %v99_v58  ;;  %3543 = vmatpush2.msra.mxu1 %v227_v59  ;;  %v320_v52 = vld [vmem:[%s11521_s1 + $0x918] sm:$0xff]  ;;  %v319_v59 = vld [vmem:[%s11521_s1 + $0x910] sm:$0xff] }
 0x251   :  { %3473 = vmatprep.subr.mxu0 %v96_v61  ;;  %3544 = vmatprep.subr.mxu1 %v224_v0  ;;  %v448_v58 = vld [vmem:[%s11521_s1 + $0xd18] sm:$0xff]  ;;  %v447_v61 = vld [vmem:[%s11521_s1 + $0xd10] sm:$0xff] }
 0x252   :  { %3474 = vmatpush2.msra.mxu0 %v95_v1  ;;  %3475 = vmatprep.mubr.f32.mxu0 %v5306_v8  ;;  %v344_v8 = vld [vmem:[%s11521_s1 + $0x9d8] sm:$0xff] }
 0x253   :  { %3545 = vmatpush2.msra.mxu1 %v223_v4  ;;  %3476 = vmatmul.mubr.f32.vlgmr.msra.gmra.mxu0 %v5275_v62  ;;  %v343_v62 = vld [vmem:[%s11521_s1 + $0x9d0] sm:$0xff]  ;;  %v316_v0 = vld [vmem:[%s11521_s1 + $0x8f8] sm:$0xff] }
 0x254   :  { %3546 = vmatprep.mubr.f32.mxu1 %v5316_v11  ;;  %3553 = vmatprep.subr.mxu0 %v348_v5  ;;  %v471_v11 = vld [vmem:[%s11521_s1 + $0xdd0] sm:$0xff]  ;;  %v444_v1 = vld [vmem:[%s11521_s1 + $0xcf8] sm:$0xff] }
 0x255   :  { %3624 = vmatprep.subr.mxu1 %v476_v6  ;;  %3547 = vmatmul.mubr.f32.vlgmr.msra.gmra.mxu1 %v5290_v3  ;;  %v339_v3 = vld [vmem:[%s11521_s1 + $0x9b0] sm:$0xff]  ;;  %v312_v6 = vld [vmem:[%s11521_s1 + $0x8d8] sm:$0xff] }
 0x256   :  { %3554 = vmatpush1.msra.mxu0 %v347_v7  ;;  %3625 = vmatpush1.msra.mxu1 %v475_v10  ;;  %v315_v4 = vld [vmem:[%s11521_s1 + $0x8f0] sm:$0xff]  ;;  %v440_v7 = vld [vmem:[%s11521_s1 + $0xcd8] sm:$0xff] }
 0x257   :  { %3555 = vmatprep.subr.mxu0 %v344_v8  ;;  %3626 = vmatprep.subr.mxu1 %v472_v12  ;;  %v443_v5 = vld [vmem:[%s11521_s1 + $0xcf0] sm:$0xff]  ;;  %v308_v12 = vld [vmem:[%s11521_s1 + $0x8b8] sm:$0xff] }
 0x258   :  { %3556 = vmatpush1.msra.mxu0 %v343_v62  ;;  %3627 = vmatpush1.msra.mxu1 %v471_v11  ;;  %v311_v10 = vld [vmem:[%s11521_s1 + $0x8d0] sm:$0xff]  ;;  %v436_v62 = vld [vmem:[%s11521_s1 + $0xcb8] sm:$0xff] }
 0x259   :  { %3557 = vmatprep.subr.mxu0 %v340_v13  ;;  %3628 = vmatprep.subr.mxu1 %v468_v14  ;;  %v439_v8 = vld [vmem:[%s11521_s1 + $0xcd0] sm:$0xff]  ;;  %v304_v14 = vld [vmem:[%s11521_s1 + $0x898] sm:$0xff] }
 0x25a   :  { %3558 = vmatpush1.msra.mxu0 %v339_v3  ;;  %3629 = vmatpush1.msra.mxu1 %v467_v18  ;;  %v307_v11 = vld [vmem:[%s11521_s1 + $0x8b0] sm:$0xff]  ;;  %v432_v3 = vld [vmem:[%s11521_s1 + $0xc98] sm:$0xff] }
 0x25b   :  { %3559 = vmatprep.subr.mxu0 %v336_v20  ;;  %3630 = vmatprep.subr.mxu1 %v464_v22  ;;  %v435_v13 = vld [vmem:[%s11521_s1 + $0xcb0] sm:$0xff]  ;;  %v300_v22 = vld [vmem:[%s11521_s1 + $0x878] sm:$0xff] }
 0x25c   :  { %3560 = vmatpush1.msra.mxu0 %v335_v24  ;;  %3631 = vmatpush1.msra.mxu1 %v463_v30  ;;  %v303_v18 = vld [vmem:[%s11521_s1 + $0x890] sm:$0xff]  ;;  %v428_v24 = vld [vmem:[%s11521_s1 + $0xc78] sm:$0xff] }
 0x25d   :  { %3561 = vmatprep.subr.mxu0 %v332_v31  ;;  %3632 = vmatprep.subr.mxu1 %v460_v33  ;;  %v431_v20 = vld [vmem:[%s11521_s1 + $0xc90] sm:$0xff]  ;;  %v296_v33 = vld [vmem:[%s11521_s1 + $0x858] sm:$0xff] }
 0x25e   :  { %3562 = vmatpush1.msra.mxu0 %v331_v34  ;;  %3633 = vmatpush1.msra.mxu1 %v459_v37  ;;  %v299_v30 = vld [vmem:[%s11521_s1 + $0x870] sm:$0xff]  ;;  %v424_v34 = vld [vmem:[%s11521_s1 + $0xc58] sm:$0xff] }
 0x25f   :  { %3563 = vmatprep.subr.mxu0 %v328_v38  ;;  %3634 = vmatprep.subr.mxu1 %v456_v42  ;;  %v427_v31 = vld [vmem:[%s11521_s1 + $0xc70] sm:$0xff]  ;;  %v292_v42 = vld [vmem:[%s11521_s1 + $0x838] sm:$0xff] }
 0x260   :  { %3564 = vmatpush1.msra.mxu0 %v327_v44  ;;  %3635 = vmatpush1.msra.mxu1 %v455_v45  ;;  %v295_v37 = vld [vmem:[%s11521_s1 + $0x850] sm:$0xff]  ;;  %v420_v44 = vld [vmem:[%s11521_s1 + $0xc38] sm:$0xff] }
 0x261   :  { %3565 = vmatprep.subr.mxu0 %v324_v46  ;;  %3636 = vmatprep.subr.mxu1 %v452_v50  ;;  %v423_v38 = vld [vmem:[%s11521_s1 + $0xc50] sm:$0xff]  ;;  %v288_v50 = vld [vmem:[%s11521_s1 + $0x818] sm:$0xff] }
 0x262   :  { %3566 = vmatpush1.msra.mxu0 %v323_v51  ;;  %3637 = vmatpush1.msra.mxu1 %v451_v53  ;;  %v291_v45 = vld [vmem:[%s11521_s1 + $0x830] sm:$0xff]  ;;  %v416_v51 = vld [vmem:[%s11521_s1 + $0xc18] sm:$0xff] }
 0x263   :  { %3567 = vmatprep.subr.mxu0 %v320_v52  ;;  %3638 = vmatprep.subr.mxu1 %v448_v58  ;;  %v419_v46 = vld [vmem:[%s11521_s1 + $0xc30] sm:$0xff]  ;;  %v412_v58 = vld [vmem:[%s11521_s1 + $0xbf8] sm:$0xff] }
 0x264   :  { %3568 = vmatpush1.msra.mxu0 %v319_v59  ;;  %3639 = vmatpush1.msra.mxu1 %v447_v61  ;;  %v287_v53 = vld [vmem:[%s11521_s1 + $0x810] sm:$0xff]  ;;  %v540_v59 = vld [vmem:[%s11521_s1 + $0xff8] sm:$0xff] }
 0x265   :  { %3569 = vmatprep.subr.mxu0 %v316_v0  ;;  %3640 = vmatprep.subr.mxu1 %v444_v1  ;;  %v415_v52 = vld [vmem:[%s11521_s1 + $0xc10] sm:$0xff]  ;;  %v408_v1 = vld [vmem:[%s11521_s1 + $0xbd8] sm:$0xff] }
 0x266   :  { %3570 = vmatpush1.msra.mxu0 %v315_v4  ;;  %3641 = vmatpush1.msra.mxu1 %v443_v5  ;;  %v411_v61 = vld [vmem:[%s11521_s1 + $0xbf0] sm:$0xff]  ;;  %v536_v4 = vld [vmem:[%s11521_s1 + $0xfd8] sm:$0xff] }
 0x267   :  { %3571 = vmatprep.subr.mxu0 %v312_v6  ;;  %3642 = vmatprep.subr.mxu1 %v440_v7  ;;  %v539_v0 = vld [vmem:[%s11521_s1 + $0xff0] sm:$0xff]  ;;  %v404_v7 = vld [vmem:[%s11521_s1 + $0xbb8] sm:$0xff] }
 0x268   :  { %3572 = vmatpush1.msra.mxu0 %v311_v10  ;;  %3643 = vmatpush1.msra.mxu1 %v439_v8  ;;  %v407_v5 = vld [vmem:[%s11521_s1 + $0xbd0] sm:$0xff]  ;;  %v532_v10 = vld [vmem:[%s11521_s1 + $0xfb8] sm:$0xff] }
 0x269   :  { %3573 = vmatprep.subr.mxu0 %v308_v12  ;;  %3644 = vmatprep.subr.mxu1 %v436_v62  ;;  %v535_v6 = vld [vmem:[%s11521_s1 + $0xfd0] sm:$0xff]  ;;  %v400_v62 = vld [vmem:[%s11521_s1 + $0xb98] sm:$0xff] }
 0x26a   :  { %3574 = vmatpush1.msra.mxu0 %v307_v11  ;;  %3645 = vmatpush1.msra.mxu1 %v435_v13  ;;  %v403_v8 = vld [vmem:[%s11521_s1 + $0xbb0] sm:$0xff]  ;;  %v528_v11 = vld [vmem:[%s11521_s1 + $0xf98] sm:$0xff] }
 0x26b   :  { %3575 = vmatprep.subr.mxu0 %v304_v14  ;;  %3646 = vmatprep.subr.mxu1 %v432_v3  ;;  %v531_v12 = vld [vmem:[%s11521_s1 + $0xfb0] sm:$0xff]  ;;  %v396_v3 = vld [vmem:[%s11521_s1 + $0xb78] sm:$0xff] }
 0x26c   :  { %3576 = vmatpush1.msra.mxu0 %v303_v18  ;;  %3647 = vmatpush1.msra.mxu1 %v431_v20  ;;  %v399_v13 = vld [vmem:[%s11521_s1 + $0xb90] sm:$0xff]  ;;  %v524_v18 = vld [vmem:[%s11521_s1 + $0xf78] sm:$0xff] }
 0x26d   :  { %3577 = vmatprep.subr.mxu0 %v300_v22  ;;  %3648 = vmatprep.subr.mxu1 %v428_v24  ;;  %v527_v14 = vld [vmem:[%s11521_s1 + $0xf90] sm:$0xff]  ;;  %v392_v24 = vld [vmem:[%s11521_s1 + $0xb58] sm:$0xff] }
 0x26e   :  { %3578 = vmatpush1.msra.mxu0 %v299_v30  ;;  %3649 = vmatpush1.msra.mxu1 %v427_v31  ;;  %v395_v20 = vld [vmem:[%s11521_s1 + $0xb70] sm:$0xff]  ;;  %v520_v30 = vld [vmem:[%s11521_s1 + $0xf58] sm:$0xff] }
 0x26f   :  { %3579 = vmatprep.subr.mxu0 %v296_v33  ;;  %3650 = vmatprep.subr.mxu1 %v424_v34  ;;  %v523_v22 = vld [vmem:[%s11521_s1 + $0xf70] sm:$0xff]  ;;  %v388_v34 = vld [vmem:[%s11521_s1 + $0xb38] sm:$0xff] }
 0x270   :  { %3580 = vmatpush1.msra.mxu0 %v295_v37  ;;  %3651 = vmatpush1.msra.mxu1 %v423_v38  ;;  %v391_v31 = vld [vmem:[%s11521_s1 + $0xb50] sm:$0xff]  ;;  %v516_v37 = vld [vmem:[%s11521_s1 + $0xf38] sm:$0xff] }
 0x271   :  { %3581 = vmatprep.subr.mxu0 %v292_v42  ;;  %3652 = vmatprep.subr.mxu1 %v420_v44  ;;  %v519_v33 = vld [vmem:[%s11521_s1 + $0xf50] sm:$0xff]  ;;  %v384_v44 = vld [vmem:[%s11521_s1 + $0xb18] sm:$0xff] }
 0x272   :  { %3582 = vmatpush1.msra.mxu0 %v291_v45  ;;  %3653 = vmatpush1.msra.mxu1 %v419_v46  ;;  %v387_v38 = vld [vmem:[%s11521_s1 + $0xb30] sm:$0xff]  ;;  %v512_v45 = vld [vmem:[%s11521_s1 + $0xf18] sm:$0xff] }
 0x273   :  { %3583 = vmatprep.subr.mxu0 %v288_v50  ;;  %3654 = vmatprep.subr.mxu1 %v416_v51  ;;  %v515_v42 = vld [vmem:[%s11521_s1 + $0xf30] sm:$0xff]  ;;  %v380_v51 = vld [vmem:[%s11521_s1 + $0xaf8] sm:$0xff] }
 0x274   :  { %3584 = vmatpush1.msra.mxu0 %v287_v53  ;;  %3655 = vmatpush1.msra.mxu1 %v415_v52  ;;  %v383_v46 = vld [vmem:[%s11521_s1 + $0xb10] sm:$0xff]  ;;  %v508_v53 = vld [vmem:[%s11521_s1 + $0xef8] sm:$0xff] }
 0x275   :  { %3585 = vmatprep.subr.mxu0 %v412_v58  ;;  %3656 = vmatprep.subr.mxu1 %v540_v59  ;;  %v511_v50 = vld [vmem:[%s11521_s1 + $0xf10] sm:$0xff]  ;;  %v376_v59 = vld [vmem:[%s11521_s1 + $0xad8] sm:$0xff] }
 0x276   :  { %3586 = vmatpush2.msra.mxu0 %v411_v61  ;;  %3657 = vmatpush2.msra.mxu1 %v539_v0  ;;  %v379_v52 = vld [vmem:[%s11521_s1 + $0xaf0] sm:$0xff]  ;;  %v504_v61 = vld [vmem:[%s11521_s1 + $0xed8] sm:$0xff] }
 0x277   :  { %3587 = vmatprep.subr.mxu0 %v408_v1  ;;  %3658 = vmatprep.subr.mxu1 %v536_v4  ;;  %v507_v58 = vld [vmem:[%s11521_s1 + $0xef0] sm:$0xff]  ;;  %v372_v4 = vld [vmem:[%s11521_s1 + $0xab8] sm:$0xff] }
 0x278   :  { %3588 = vmatpush2.msra.mxu0 %v407_v5  ;;  %3659 = vmatpush2.msra.mxu1 %v535_v6  ;;  %v375_v0 = vld [vmem:[%s11521_s1 + $0xad0] sm:$0xff]  ;;  %v500_v5 = vld [vmem:[%s11521_s1 + $0xeb8] sm:$0xff] }
 0x279   :  { %3589 = vmatprep.subr.mxu0 %v404_v7  ;;  %3660 = vmatprep.subr.mxu1 %v532_v10  ;;  %v503_v1 = vld [vmem:[%s11521_s1 + $0xed0] sm:$0xff]  ;;  %v368_v10 = vld [vmem:[%s11521_s1 + $0xa98] sm:$0xff] }
 0x27a   :  { %3590 = vmatpush2.msra.mxu0 %v403_v8  ;;  %3661 = vmatpush2.msra.mxu1 %v531_v12  ;;  %v371_v6 = vld [vmem:[%s11521_s1 + $0xab0] sm:$0xff]  ;;  %v496_v8 = vld [vmem:[%s11521_s1 + $0xe98] sm:$0xff] }
 0x27b   :  { %3591 = vmatprep.subr.mxu0 %v400_v62  ;;  %3662 = vmatprep.subr.mxu1 %v528_v11  ;;  %v499_v7 = vld [vmem:[%s11521_s1 + $0xeb0] sm:$0xff]  ;;  %v364_v11 = vld [vmem:[%s11521_s1 + $0xa78] sm:$0xff] }
 0x27c   :  { %3592 = vmatpush2.msra.mxu0 %v399_v13  ;;  %3663 = vmatpush2.msra.mxu1 %v527_v14  ;;  %v367_v12 = vld [vmem:[%s11521_s1 + $0xa90] sm:$0xff]  ;;  %v492_v13 = vld [vmem:[%s11521_s1 + $0xe78] sm:$0xff] }
 0x27d   :  { %3593 = vmatprep.subr.mxu0 %v396_v3  ;;  %3664 = vmatprep.subr.mxu1 %v524_v18  ;;  %v495_v62 = vld [vmem:[%s11521_s1 + $0xe90] sm:$0xff]  ;;  %v360_v18 = vld [vmem:[%s11521_s1 + $0xa58] sm:$0xff] }
 0x27e   :  { %3594 = vmatpush2.msra.mxu0 %v395_v20  ;;  %3665 = vmatpush2.msra.mxu1 %v523_v22  ;;  %v363_v14 = vld [vmem:[%s11521_s1 + $0xa70] sm:$0xff]  ;;  %v488_v20 = vld [vmem:[%s11521_s1 + $0xe58] sm:$0xff] }
 0x27f   :  { %3595 = vmatprep.subr.mxu0 %v392_v24  ;;  %3666 = vmatprep.subr.mxu1 %v520_v30  ;;  %v491_v3 = vld [vmem:[%s11521_s1 + $0xe70] sm:$0xff]  ;;  %v356_v30 = vld [vmem:[%s11521_s1 + $0xa38] sm:$0xff] }
 0x280   :  { %3596 = vmatpush2.msra.mxu0 %v391_v31  ;;  %3667 = vmatpush2.msra.mxu1 %v519_v33  ;;  %v359_v22 = vld [vmem:[%s11521_s1 + $0xa50] sm:$0xff]  ;;  %v484_v31 = vld [vmem:[%s11521_s1 + $0xe38] sm:$0xff] }
 0x281   :  { %3597 = vmatprep.subr.mxu0 %v388_v34  ;;  %3668 = vmatprep.subr.mxu1 %v516_v37  ;;  %v487_v24 = vld [vmem:[%s11521_s1 + $0xe50] sm:$0xff]  ;;  %v352_v37 = vld [vmem:[%s11521_s1 + $0xa18] sm:$0xff] }
 0x282   :  { %3598 = vmatpush2.msra.mxu0 %v387_v38  ;;  %3669 = vmatpush2.msra.mxu1 %v515_v42  ;;  %v355_v33 = vld [vmem:[%s11521_s1 + $0xa30] sm:$0xff]  ;;  %v480_v38 = vld [vmem:[%s11521_s1 + $0xe18] sm:$0xff] }
 0x283   :  { %3599 = vmatprep.subr.mxu0 %v384_v44  ;;  %3670 = vmatprep.subr.mxu1 %v512_v45  ;;  %v483_v34 = vld [vmem:[%s11521_s1 + $0xe30] sm:$0xff]  ;;  %v604_v45 = vld [vmem:[%s11521_s1 + $0x11f8] sm:$0xff] }
 0x284   :  { %3600 = vmatpush2.msra.mxu0 %v383_v46  ;;  %3671 = vmatpush2.msra.mxu1 %v511_v50  ;;  %v351_v42 = vld [vmem:[%s11521_s1 + $0xa10] sm:$0xff]  ;;  %v732_v46 = vld [vmem:[%s11521_s1 + $0x15f8] sm:$0xff] }
 0x285   :  { %3601 = vmatprep.subr.mxu0 %v380_v51  ;;  %3672 = vmatprep.subr.mxu1 %v508_v53  ;;  %v479_v44 = vld [vmem:[%s11521_s1 + $0xe10] sm:$0xff]  ;;  %v728_v53 = vld [vmem:[%s11521_s1 + $0x15d8] sm:$0xff] }
 0x286   :  { %3602 = vmatpush2.msra.mxu0 %v379_v52  ;;  %3673 = vmatpush2.msra.mxu1 %v507_v58  ;;  %v603_v50 = vld [vmem:[%s11521_s1 + $0x11f0] sm:$0xff]  ;;  %v596_v52 = vld [vmem:[%s11521_s1 + $0x11b8] sm:$0xff] }
 0x287   :  { %3603 = vmatprep.subr.mxu0 %v376_v59  ;;  %3674 = vmatprep.subr.mxu1 %v504_v61  ;;  %v731_v51 = vld [vmem:[%s11521_s1 + $0x15f0] sm:$0xff]  ;;  %v724_v58 = vld [vmem:[%s11521_s1 + $0x15b8] sm:$0xff] }
 0x288   :  { %3604 = vmatpush2.msra.mxu0 %v375_v0  ;;  %3675 = vmatpush2.msra.mxu1 %v503_v1  ;;  %v723_v59 = vld [vmem:[%s11521_s1 + $0x15b0] sm:$0xff]  ;;  %v592_v61 = vld [vmem:[%s11521_s1 + $0x1198] sm:$0xff] }
 0x289   :  { %3605 = vmatprep.subr.mxu0 %v372_v4  ;;  %3676 = vmatprep.subr.mxu1 %v500_v5  ;;  %v720_v0 = vld [vmem:[%s11521_s1 + $0x1598] sm:$0xff]  ;;  %v591_v1 = vld [vmem:[%s11521_s1 + $0x1190] sm:$0xff] }
 0x28a   :  { %3606 = vmatpush2.msra.mxu0 %v371_v6  ;;  %3677 = vmatpush2.msra.mxu1 %v499_v7  ;;  %v719_v4 = vld [vmem:[%s11521_s1 + $0x1590] sm:$0xff]  ;;  %v588_v5 = vld [vmem:[%s11521_s1 + $0x1178] sm:$0xff] }
 0x28b   :  { %3607 = vmatprep.subr.mxu0 %v368_v10  ;;  %3678 = vmatprep.subr.mxu1 %v496_v8  ;;  %v716_v6 = vld [vmem:[%s11521_s1 + $0x1578] sm:$0xff]  ;;  %v587_v7 = vld [vmem:[%s11521_s1 + $0x1170] sm:$0xff] }
 0x28c   :  { %3608 = vmatpush2.msra.mxu0 %v367_v12  ;;  %3679 = vmatpush2.msra.mxu1 %v495_v62  ;;  %v715_v10 = vld [vmem:[%s11521_s1 + $0x1570] sm:$0xff]  ;;  %v584_v8 = vld [vmem:[%s11521_s1 + $0x1158] sm:$0xff] }
 0x28d   :  { %3609 = vmatprep.subr.mxu0 %v364_v11  ;;  %3680 = vmatprep.subr.mxu1 %v492_v13  ;;  %v712_v12 = vld [vmem:[%s11521_s1 + $0x1558] sm:$0xff]  ;;  %v583_v62 = vld [vmem:[%s11521_s1 + $0x1150] sm:$0xff] }
 0x28e   :  { %3610 = vmatpush2.msra.mxu0 %v363_v14  ;;  %3681 = vmatpush2.msra.mxu1 %v491_v3  ;;  %v711_v11 = vld [vmem:[%s11521_s1 + $0x1550] sm:$0xff]  ;;  %v580_v13 = vld [vmem:[%s11521_s1 + $0x1138] sm:$0xff] }
 0x28f   :  { %3611 = vmatprep.subr.mxu0 %v360_v18  ;;  %3682 = vmatprep.subr.mxu1 %v488_v20  ;;  %v708_v14 = vld [vmem:[%s11521_s1 + $0x1538] sm:$0xff]  ;;  %v579_v3 = vld [vmem:[%s11521_s1 + $0x1130] sm:$0xff] }
 0x290   :  { %3612 = vmatpush2.msra.mxu0 %v359_v22  ;;  %3683 = vmatpush2.msra.mxu1 %v487_v24  ;;  %v707_v18 = vld [vmem:[%s11521_s1 + $0x1530] sm:$0xff]  ;;  %v576_v20 = vld [vmem:[%s11521_s1 + $0x1118] sm:$0xff] }
 0x291   :  { %3613 = vmatprep.subr.mxu0 %v356_v30  ;;  %3684 = vmatprep.subr.mxu1 %v484_v31  ;;  %v704_v22 = vld [vmem:[%s11521_s1 + $0x1518] sm:$0xff]  ;;  %v575_v24 = vld [vmem:[%s11521_s1 + $0x1110] sm:$0xff] }
 0x292   :  { %3614 = vmatpush2.msra.mxu0 %v355_v33  ;;  %3685 = vmatpush2.msra.mxu1 %v483_v34  ;;  %v703_v30 = vld [vmem:[%s11521_s1 + $0x1510] sm:$0xff]  ;;  %v572_v31 = vld [vmem:[%s11521_s1 + $0x10f8] sm:$0xff] }
 0x293   :  { %3615 = vmatprep.subr.mxu0 %v352_v37  ;;  %3686 = vmatprep.subr.mxu1 %v480_v38  ;;  %v700_v33 = vld [vmem:[%s11521_s1 + $0x14f8] sm:$0xff]  ;;  %v571_v34 = vld [vmem:[%s11521_s1 + $0x10f0] sm:$0xff] }
 0x294   :  { %3616 = vmatpush2.msra.mxu0 %v351_v42  ;;  %3617 = vmatprep.mubr.f32.mxu0 %v5711_v26  ;;  %v600_v26 = vld [vmem:[%s11521_s1 + $0x11d8] sm:$0xff]  ;;  %v699_v37 = vld [vmem:[%s11521_s1 + $0x14f0] sm:$0xff] }
 0x295   :  { %3687 = vmatpush2.msra.mxu1 %v479_v44  ;;  %3618 = vmatmul.mubr.f32.vlgmr.msra.gmra.mxu0 %v5680_v16  ;;  %v599_v16 = vld [vmem:[%s11521_s1 + $0x11d0] sm:$0xff]  ;;  %v568_v38 = vld [vmem:[%s11521_s1 + $0x10d8] sm:$0xff] }
 0x296   :  { %3688 = vmatprep.mubr.f32.mxu1 %v5721_v29  ;;  %3695 = vmatprep.subr.mxu0 %v604_v45  ;;  %v727_v29 = vld [vmem:[%s11521_s1 + $0x15d0] sm:$0xff]  ;;  %v696_v42 = vld [vmem:[%s11521_s1 + $0x14d8] sm:$0xff] }
 0x297   :  { %3766 = vmatprep.subr.mxu1 %v732_v46  ;;  %3689 = vmatmul.mubr.f32.vlgmr.msra.gmra.mxu1 %v5695_v21  ;;  %v595_v21 = vld [vmem:[%s11521_s1 + $0x11b0] sm:$0xff]  ;;  %v564_v46 = vld [vmem:[%s11521_s1 + $0x10b8] sm:$0xff] }
 0x298   :  { %3696 = vmatpush1.msra.mxu0 %v603_v50  ;;  %3767 = vmatpush1.msra.mxu1 %v731_v51  ;;  %v567_v44 = vld [vmem:[%s11521_s1 + $0x10d0] sm:$0xff]  ;;  %v692_v50 = vld [vmem:[%s11521_s1 + $0x14b8] sm:$0xff] }
 0x299   :  { %3697 = vmatprep.subr.mxu0 %v600_v26  ;;  %3768 = vmatprep.subr.mxu1 %v728_v53  ;;  %v695_v45 = vld [vmem:[%s11521_s1 + $0x14d0] sm:$0xff]  ;;  %v560_v53 = vld [vmem:[%s11521_s1 + $0x1098] sm:$0xff] }
 0x29a   :  { %3698 = vmatpush1.msra.mxu0 %v599_v16  ;;  %3769 = vmatpush1.msra.mxu1 %v727_v29  ;;  %v563_v51 = vld [vmem:[%s11521_s1 + $0x10b0] sm:$0xff]  ;;  %v688_v16 = vld [vmem:[%s11521_s1 + $0x1498] sm:$0xff] }
 0x29b   :  { %3699 = vmatprep.subr.mxu0 %v596_v52  ;;  %3770 = vmatprep.subr.mxu1 %v724_v58  ;;  %v691_v26 = vld [vmem:[%s11521_s1 + $0x14b0] sm:$0xff]  ;;  %v556_v58 = vld [vmem:[%s11521_s1 + $0x1078] sm:$0xff] }
 0x29c   :  { %3700 = vmatpush1.msra.mxu0 %v595_v21  ;;  %3771 = vmatpush1.msra.mxu1 %v723_v59  ;;  %v559_v29 = vld [vmem:[%s11521_s1 + $0x1090] sm:$0xff]  ;;  %v684_v21 = vld [vmem:[%s11521_s1 + $0x1478] sm:$0xff] }
 0x29d   :  { %3701 = vmatprep.subr.mxu0 %v592_v61  ;;  %3772 = vmatprep.subr.mxu1 %v720_v0  ;;  %v687_v52 = vld [vmem:[%s11521_s1 + $0x1490] sm:$0xff]  ;;  %v552_v0 = vld [vmem:[%s11521_s1 + $0x1058] sm:$0xff] }
 0x29e   :  { %3702 = vmatpush1.msra.mxu0 %v591_v1  ;;  %3773 = vmatpush1.msra.mxu1 %v719_v4  ;;  %v555_v59 = vld [vmem:[%s11521_s1 + $0x1070] sm:$0xff]  ;;  %v680_v1 = vld [vmem:[%s11521_s1 + $0x1458] sm:$0xff] }
 0x29f   :  { %3703 = vmatprep.subr.mxu0 %v588_v5  ;;  %3774 = vmatprep.subr.mxu1 %v716_v6  ;;  %v683_v61 = vld [vmem:[%s11521_s1 + $0x1470] sm:$0xff]  ;;  %v548_v6 = vld [vmem:[%s11521_s1 + $0x1038] sm:$0xff] }
 0x2a0   :  { %3704 = vmatpush1.msra.mxu0 %v587_v7  ;;  %3775 = vmatpush1.msra.mxu1 %v715_v10  ;;  %v551_v4 = vld [vmem:[%s11521_s1 + $0x1050] sm:$0xff]  ;;  %v676_v7 = vld [vmem:[%s11521_s1 + $0x1438] sm:$0xff] }
 0x2a1   :  { %3705 = vmatprep.subr.mxu0 %v584_v8  ;;  %3776 = vmatprep.subr.mxu1 %v712_v12  ;;  %v679_v5 = vld [vmem:[%s11521_s1 + $0x1450] sm:$0xff]  ;;  %v544_v12 = vld [vmem:[%s11521_s1 + $0x1018] sm:$0xff] }
 0x2a2   :  { %3706 = vmatpush1.msra.mxu0 %v583_v62  ;;  %3777 = vmatpush1.msra.mxu1 %v711_v11  ;;  %v547_v10 = vld [vmem:[%s11521_s1 + $0x1030] sm:$0xff]  ;;  %v672_v62 = vld [vmem:[%s11521_s1 + $0x1418] sm:$0xff] }
 0x2a3   :  { %3707 = vmatprep.subr.mxu0 %v580_v13  ;;  %3778 = vmatprep.subr.mxu1 %v708_v14  ;;  %v675_v8 = vld [vmem:[%s11521_s1 + $0x1430] sm:$0xff]  ;;  %v668_v14 = vld [vmem:[%s11521_s1 + $0x13f8] sm:$0xff] }
 0x2a4   :  { %3708 = vmatpush1.msra.mxu0 %v579_v3  ;;  %3779 = vmatpush1.msra.mxu1 %v707_v18  ;;  %v543_v11 = vld [vmem:[%s11521_s1 + $0x1010] sm:$0xff]  ;;  %v796_v3 = vld [vmem:[%s11521_s1 + $0x17f8] sm:$0xff] }
 0x2a5   :  { %3709 = vmatprep.subr.mxu0 %v576_v20  ;;  %3780 = vmatprep.subr.mxu1 %v704_v22  ;;  %v671_v13 = vld [vmem:[%s11521_s1 + $0x1410] sm:$0xff]  ;;  %v664_v22 = vld [vmem:[%s11521_s1 + $0x13d8] sm:$0xff] }
 0x2a6   :  { %3710 = vmatpush1.msra.mxu0 %v575_v24  ;;  %3781 = vmatpush1.msra.mxu1 %v703_v30  ;;  %v667_v18 = vld [vmem:[%s11521_s1 + $0x13f0] sm:$0xff]  ;;  %v792_v24 = vld [vmem:[%s11521_s1 + $0x17d8] sm:$0xff] }
 0x2a7   :  { %3711 = vmatprep.subr.mxu0 %v572_v31  ;;  %3782 = vmatprep.subr.mxu1 %v700_v33  ;;  %v795_v20 = vld [vmem:[%s11521_s1 + $0x17f0] sm:$0xff]  ;;  %v660_v33 = vld [vmem:[%s11521_s1 + $0x13b8] sm:$0xff] }
 0x2a8   :  { %3712 = vmatpush1.msra.mxu0 %v571_v34  ;;  %3783 = vmatpush1.msra.mxu1 %v699_v37  ;;  %v663_v30 = vld [vmem:[%s11521_s1 + $0x13d0] sm:$0xff]  ;;  %v788_v34 = vld [vmem:[%s11521_s1 + $0x17b8] sm:$0xff] }
 0x2a9   :  { %3713 = vmatprep.subr.mxu0 %v568_v38  ;;  %3784 = vmatprep.subr.mxu1 %v696_v42  ;;  %v791_v31 = vld [vmem:[%s11521_s1 + $0x17d0] sm:$0xff]  ;;  %v656_v42 = vld [vmem:[%s11521_s1 + $0x1398] sm:$0xff] }
 0x2aa   :  { %3714 = vmatpush1.msra.mxu0 %v567_v44  ;;  %3785 = vmatpush1.msra.mxu1 %v695_v45  ;;  %v659_v37 = vld [vmem:[%s11521_s1 + $0x13b0] sm:$0xff]  ;;  %v784_v44 = vld [vmem:[%s11521_s1 + $0x1798] sm:$0xff] }
 0x2ab   :  { %3715 = vmatprep.subr.mxu0 %v564_v46  ;;  %3786 = vmatprep.subr.mxu1 %v692_v50  ;;  %v787_v38 = vld [vmem:[%s11521_s1 + $0x17b0] sm:$0xff]  ;;  %v652_v50 = vld [vmem:[%s11521_s1 + $0x1378] sm:$0xff] }
 0x2ac   :  { %3716 = vmatpush1.msra.mxu0 %v563_v51  ;;  %3787 = vmatpush1.msra.mxu1 %v691_v26  ;;  %v655_v45 = vld [vmem:[%s11521_s1 + $0x1390] sm:$0xff]  ;;  %v780_v51 = vld [vmem:[%s11521_s1 + $0x1778] sm:$0xff] }
 0x2ad   :  { %3717 = vmatprep.subr.mxu0 %v560_v53  ;;  %3788 = vmatprep.subr.mxu1 %v688_v16  ;;  %v783_v46 = vld [vmem:[%s11521_s1 + $0x1790] sm:$0xff]  ;;  %v648_v16 = vld [vmem:[%s11521_s1 + $0x1358] sm:$0xff] }
 0x2ae   :  { %3718 = vmatpush1.msra.mxu0 %v559_v29  ;;  %3789 = vmatpush1.msra.mxu1 %v687_v52  ;;  %v651_v26 = vld [vmem:[%s11521_s1 + $0x1370] sm:$0xff]  ;;  %v776_v29 = vld [vmem:[%s11521_s1 + $0x1758] sm:$0xff] }
 0x2af   :  { %3719 = vmatprep.subr.mxu0 %v556_v58  ;;  %3790 = vmatprep.subr.mxu1 %v684_v21  ;;  %v779_v53 = vld [vmem:[%s11521_s1 + $0x1770] sm:$0xff]  ;;  %v644_v21 = vld [vmem:[%s11521_s1 + $0x1338] sm:$0xff] }
 0x2b0   :  { %3720 = vmatpush1.msra.mxu0 %v555_v59  ;;  %3791 = vmatpush1.msra.mxu1 %v683_v61  ;;  %v647_v52 = vld [vmem:[%s11521_s1 + $0x1350] sm:$0xff]  ;;  %v772_v59 = vld [vmem:[%s11521_s1 + $0x1738] sm:$0xff] }
 0x2b1   :  { %3721 = vmatprep.subr.mxu0 %v552_v0  ;;  %3792 = vmatprep.subr.mxu1 %v680_v1  ;;  %v775_v58 = vld [vmem:[%s11521_s1 + $0x1750] sm:$0xff]  ;;  %v640_v1 = vld [vmem:[%s11521_s1 + $0x1318] sm:$0xff] }
 0x2b2   :  { %3722 = vmatpush1.msra.mxu0 %v551_v4  ;;  %3793 = vmatpush1.msra.mxu1 %v679_v5  ;;  %v643_v61 = vld [vmem:[%s11521_s1 + $0x1330] sm:$0xff]  ;;  %v768_v4 = vld [vmem:[%s11521_s1 + $0x1718] sm:$0xff] }
 0x2b3   :  { %3723 = vmatprep.subr.mxu0 %v548_v6  ;;  %3794 = vmatprep.subr.mxu1 %v676_v7  ;;  %v771_v0 = vld [vmem:[%s11521_s1 + $0x1730] sm:$0xff]  ;;  %v636_v7 = vld [vmem:[%s11521_s1 + $0x12f8] sm:$0xff] }
 0x2b4   :  { %3724 = vmatpush1.msra.mxu0 %v547_v10  ;;  %3795 = vmatpush1.msra.mxu1 %v675_v8  ;;  %v639_v5 = vld [vmem:[%s11521_s1 + $0x1310] sm:$0xff]  ;;  %v764_v10 = vld [vmem:[%s11521_s1 + $0x16f8] sm:$0xff] }
 0x2b5   :  { %3725 = vmatprep.subr.mxu0 %v544_v12  ;;  %3796 = vmatprep.subr.mxu1 %v672_v62  ;;  %v767_v6 = vld [vmem:[%s11521_s1 + $0x1710] sm:$0xff]  ;;  %v632_v62 = vld [vmem:[%s11521_s1 + $0x12d8] sm:$0xff] }
 0x2b6   :  { %3726 = vmatpush1.msra.mxu0 %v543_v11  ;;  %3797 = vmatpush1.msra.mxu1 %v671_v13  ;;  %v635_v8 = vld [vmem:[%s11521_s1 + $0x12f0] sm:$0xff]  ;;  %v760_v11 = vld [vmem:[%s11521_s1 + $0x16d8] sm:$0xff] }
 0x2b7   :  { %3727 = vmatprep.subr.mxu0 %v668_v14  ;;  %3798 = vmatprep.subr.mxu1 %v796_v3  ;;  %v763_v12 = vld [vmem:[%s11521_s1 + $0x16f0] sm:$0xff]  ;;  %v628_v3 = vld [vmem:[%s11521_s1 + $0x12b8] sm:$0xff] }
 0x2b8   :  { %3728 = vmatpush2.msra.mxu0 %v667_v18  ;;  %3799 = vmatpush2.msra.mxu1 %v795_v20  ;;  %v631_v13 = vld [vmem:[%s11521_s1 + $0x12d0] sm:$0xff]  ;;  %v756_v18 = vld [vmem:[%s11521_s1 + $0x16b8] sm:$0xff] }
 0x2b9   :  { %3729 = vmatprep.subr.mxu0 %v664_v22  ;;  %3800 = vmatprep.subr.mxu1 %v792_v24  ;;  %v759_v14 = vld [vmem:[%s11521_s1 + $0x16d0] sm:$0xff]  ;;  %v624_v24 = vld [vmem:[%s11521_s1 + $0x1298] sm:$0xff] }
 0x2ba   :  { %3730 = vmatpush2.msra.mxu0 %v663_v30  ;;  %3801 = vmatpush2.msra.mxu1 %v791_v31  ;;  %v627_v20 = vld [vmem:[%s11521_s1 + $0x12b0] sm:$0xff]  ;;  %v752_v30 = vld [vmem:[%s11521_s1 + $0x1698] sm:$0xff] }
 0x2bb   :  { %3731 = vmatprep.subr.mxu0 %v660_v33  ;;  %3802 = vmatprep.subr.mxu1 %v788_v34  ;;  %v755_v22 = vld [vmem:[%s11521_s1 + $0x16b0] sm:$0xff]  ;;  %v620_v34 = vld [vmem:[%s11521_s1 + $0x1278] sm:$0xff] }
 0x2bc   :  { %3732 = vmatpush2.msra.mxu0 %v659_v37  ;;  %3803 = vmatpush2.msra.mxu1 %v787_v38  ;;  %v623_v31 = vld [vmem:[%s11521_s1 + $0x1290] sm:$0xff]  ;;  %v748_v37 = vld [vmem:[%s11521_s1 + $0x1678] sm:$0xff] }
 0x2bd   :  { %3733 = vmatprep.subr.mxu0 %v656_v42  ;;  %3804 = vmatprep.subr.mxu1 %v784_v44  ;;  %v751_v33 = vld [vmem:[%s11521_s1 + $0x1690] sm:$0xff]  ;;  %v616_v44 = vld [vmem:[%s11521_s1 + $0x1258] sm:$0xff] }
 0x2be   :  { %3734 = vmatpush2.msra.mxu0 %v655_v45  ;;  %3805 = vmatpush2.msra.mxu1 %v783_v46  ;;  %v619_v38 = vld [vmem:[%s11521_s1 + $0x1270] sm:$0xff]  ;;  %v744_v45 = vld [vmem:[%s11521_s1 + $0x1658] sm:$0xff] }
 0x2bf   :  { %3735 = vmatprep.subr.mxu0 %v652_v50  ;;  %3806 = vmatprep.subr.mxu1 %v780_v51  ;;  %v747_v42 = vld [vmem:[%s11521_s1 + $0x1670] sm:$0xff]  ;;  %v612_v51 = vld [vmem:[%s11521_s1 + $0x1238] sm:$0xff] }
 0x2c0   :  { %3736 = vmatpush2.msra.mxu0 %v651_v26  ;;  %3807 = vmatpush2.msra.mxu1 %v779_v53  ;;  %v615_v46 = vld [vmem:[%s11521_s1 + $0x1250] sm:$0xff]  ;;  %v740_v26 = vld [vmem:[%s11521_s1 + $0x1638] sm:$0xff] }
 0x2c1   :  { %3737 = vmatprep.subr.mxu0 %v648_v16  ;;  %3808 = vmatprep.subr.mxu1 %v776_v29  ;;  %v743_v50 = vld [vmem:[%s11521_s1 + $0x1650] sm:$0xff]  ;;  %v608_v29 = vld [vmem:[%s11521_s1 + $0x1218] sm:$0xff] }
 0x2c2   :  { %3738 = vmatpush2.msra.mxu0 %v647_v52  ;;  %3809 = vmatpush2.msra.mxu1 %v775_v58  ;;  %v611_v53 = vld [vmem:[%s11521_s1 + $0x1230] sm:$0xff]  ;;  %v736_v52 = vld [vmem:[%s11521_s1 + $0x1618] sm:$0xff] }
 0x2c3   :  { %3739 = vmatprep.subr.mxu0 %v644_v21  ;;  %3810 = vmatprep.subr.mxu1 %v772_v59  ;;  %v739_v16 = vld [vmem:[%s11521_s1 + $0x1630] sm:$0xff]  ;;  %v860_v59 = vld [vmem:[%s11521_s1 + $0x19f8] sm:$0xff] }
 0x2c4   :  { %3740 = vmatpush2.msra.mxu0 %v643_v61  ;;  %3811 = vmatpush2.msra.mxu1 %v771_v0  ;;  %v607_v58 = vld [vmem:[%s11521_s1 + $0x1210] sm:$0xff]  ;;  %v988_v61 = vld [vmem:[%s11521_s1 + $0x1df8] sm:$0xff] }
 0x2c5   :  { %3741 = vmatprep.subr.mxu0 %v640_v1  ;;  %3812 = vmatprep.subr.mxu1 %v768_v4  ;;  %v735_v21 = vld [vmem:[%s11521_s1 + $0x1610] sm:$0xff]  ;;  %v984_v4 = vld [vmem:[%s11521_s1 + $0x1dd8] sm:$0xff] }
 0x2c6   :  { %3742 = vmatpush2.msra.mxu0 %v639_v5  ;;  %3813 = vmatpush2.msra.mxu1 %v767_v6  ;;  %v859_v0 = vld [vmem:[%s11521_s1 + $0x19f0] sm:$0xff]  ;;  %v852_v5 = vld [vmem:[%s11521_s1 + $0x19b8] sm:$0xff] }
 0x2c7   :  { %3743 = vmatprep.subr.mxu0 %v636_v7  ;;  %3814 = vmatprep.subr.mxu1 %v764_v10  ;;  %v987_v1 = vld [vmem:[%s11521_s1 + $0x1df0] sm:$0xff]  ;;  %v980_v6 = vld [vmem:[%s11521_s1 + $0x1db8] sm:$0xff] }
 0x2c8   :  { %3744 = vmatpush2.msra.mxu0 %v635_v8  ;;  %3815 = vmatpush2.msra.mxu1 %v763_v12  ;;  %v979_v7 = vld [vmem:[%s11521_s1 + $0x1db0] sm:$0xff]  ;;  %v848_v10 = vld [vmem:[%s11521_s1 + $0x1998] sm:$0xff] }
 0x2c9   :  { %3745 = vmatprep.subr.mxu0 %v632_v62  ;;  %3816 = vmatprep.subr.mxu1 %v760_v11  ;;  %v976_v8 = vld [vmem:[%s11521_s1 + $0x1d98] sm:$0xff]  ;;  %v847_v12 = vld [vmem:[%s11521_s1 + $0x1990] sm:$0xff] }
 0x2ca   :  { %3746 = vmatpush2.msra.mxu0 %v631_v13  ;;  %3817 = vmatpush2.msra.mxu1 %v759_v14  ;;  %v975_v62 = vld [vmem:[%s11521_s1 + $0x1d90] sm:$0xff]  ;;  %v844_v11 = vld [vmem:[%s11521_s1 + $0x1978] sm:$0xff] }
 0x2cb   :  { %3747 = vmatprep.subr.mxu0 %v628_v3  ;;  %3818 = vmatprep.subr.mxu1 %v756_v18  ;;  %v972_v13 = vld [vmem:[%s11521_s1 + $0x1d78] sm:$0xff]  ;;  %v843_v14 = vld [vmem:[%s11521_s1 + $0x1970] sm:$0xff] }
 0x2cc   :  { %3748 = vmatpush2.msra.mxu0 %v627_v20  ;;  %3819 = vmatpush2.msra.mxu1 %v755_v22  ;;  %v971_v3 = vld [vmem:[%s11521_s1 + $0x1d70] sm:$0xff]  ;;  %v840_v18 = vld [vmem:[%s11521_s1 + $0x1958] sm:$0xff] }
 0x2cd   :  { %3749 = vmatprep.subr.mxu0 %v624_v24  ;;  %3820 = vmatprep.subr.mxu1 %v752_v30  ;;  %v968_v20 = vld [vmem:[%s11521_s1 + $0x1d58] sm:$0xff]  ;;  %v839_v22 = vld [vmem:[%s11521_s1 + $0x1950] sm:$0xff] }
 0x2ce   :  { %3750 = vmatpush2.msra.mxu0 %v623_v31  ;;  %3821 = vmatpush2.msra.mxu1 %v751_v33  ;;  %v967_v24 = vld [vmem:[%s11521_s1 + $0x1d50] sm:$0xff]  ;;  %v836_v30 = vld [vmem:[%s11521_s1 + $0x1938] sm:$0xff] }
 0x2cf   :  { %3751 = vmatprep.subr.mxu0 %v620_v34  ;;  %3822 = vmatprep.subr.mxu1 %v748_v37  ;;  %v964_v31 = vld [vmem:[%s11521_s1 + $0x1d38] sm:$0xff]  ;;  %v835_v33 = vld [vmem:[%s11521_s1 + $0x1930] sm:$0xff] }
 0x2d0   :  { %3752 = vmatpush2.msra.mxu0 %v619_v38  ;;  %3823 = vmatpush2.msra.mxu1 %v747_v42  ;;  %v963_v34 = vld [vmem:[%s11521_s1 + $0x1d30] sm:$0xff]  ;;  %v832_v37 = vld [vmem:[%s11521_s1 + $0x1918] sm:$0xff] }
 0x2d1   :  { %3753 = vmatprep.subr.mxu0 %v616_v44  ;;  %3824 = vmatprep.subr.mxu1 %v744_v45  ;;  %v960_v38 = vld [vmem:[%s11521_s1 + $0x1d18] sm:$0xff]  ;;  %v831_v42 = vld [vmem:[%s11521_s1 + $0x1910] sm:$0xff] }
 0x2d2   :  { %3754 = vmatpush2.msra.mxu0 %v615_v46  ;;  %3825 = vmatpush2.msra.mxu1 %v743_v50  ;;  %v959_v44 = vld [vmem:[%s11521_s1 + $0x1d10] sm:$0xff]  ;;  %v828_v45 = vld [vmem:[%s11521_s1 + $0x18f8] sm:$0xff] }
 0x2d3   :  { %3755 = vmatprep.subr.mxu0 %v612_v51  ;;  %3826 = vmatprep.subr.mxu1 %v740_v26  ;;  %v956_v46 = vld [vmem:[%s11521_s1 + $0x1cf8] sm:$0xff]  ;;  %v827_v50 = vld [vmem:[%s11521_s1 + $0x18f0] sm:$0xff] }
 0x2d4   :  { %3756 = vmatpush2.msra.mxu0 %v611_v53  ;;  %3827 = vmatpush2.msra.mxu1 %v739_v16  ;;  %v955_v51 = vld [vmem:[%s11521_s1 + $0x1cf0] sm:$0xff]  ;;  %v824_v26 = vld [vmem:[%s11521_s1 + $0x18d8] sm:$0xff] }
 0x2d5   :  { %3757 = vmatprep.subr.mxu0 %v608_v29  ;;  %3828 = vmatprep.subr.mxu1 %v736_v52  ;;  %v952_v53 = vld [vmem:[%s11521_s1 + $0x1cd8] sm:$0xff]  ;;  %v823_v16 = vld [vmem:[%s11521_s1 + $0x18d0] sm:$0xff] }
 0x2d6   :  { %3758 = vmatpush2.msra.mxu0 %v607_v58  ;;  %3759 = vmatprep.mubr.f32.mxu0 %v6116_v54  ;;  %v856_v54 = vld [vmem:[%s11521_s1 + $0x19d8] sm:$0xff]  ;;  %v951_v29 = vld [vmem:[%s11521_s1 + $0x1cd0] sm:$0xff] }
 0x2d7   :  { %3829 = vmatpush2.msra.mxu1 %v735_v21  ;;  %3760 = vmatmul.mubr.f32.vlgmr.msra.gmra.mxu0 %v6085_v43  ;;  %v855_v43 = vld [vmem:[%s11521_s1 + $0x19d0] sm:$0xff]  ;;  %v820_v52 = vld [vmem:[%s11521_s1 + $0x18b8] sm:$0xff] }
 0x2d8   :  { %3830 = vmatprep.mubr.f32.mxu1 %v6126_v57  ;;  %3837 = vmatprep.subr.mxu0 %v860_v59  ;;  %v983_v57 = vld [vmem:[%s11521_s1 + $0x1dd0] sm:$0xff]  ;;  %v948_v58 = vld [vmem:[%s11521_s1 + $0x1cb8] sm:$0xff] }
 0x2d9   :  { %3908 = vmatprep.subr.mxu1 %v988_v61  ;;  %3831 = vmatmul.mubr.f32.vlgmr.msra.gmra.mxu1 %v6100_v48  ;;  %v851_v48 = vld [vmem:[%s11521_s1 + $0x19b0] sm:$0xff]  ;;  %v816_v61 = vld [vmem:[%s11521_s1 + $0x1898] sm:$0xff] }
 0x2da   :  { %3838 = vmatpush1.msra.mxu0 %v859_v0  ;;  %3909 = vmatpush1.msra.mxu1 %v987_v1  ;;  %v819_v21 = vld [vmem:[%s11521_s1 + $0x18b0] sm:$0xff]  ;;  %v944_v0 = vld [vmem:[%s11521_s1 + $0x1c98] sm:$0xff] }
 0x2db   :  { %3839 = vmatprep.subr.mxu0 %v856_v54  ;;  %3910 = vmatprep.subr.mxu1 %v984_v4  ;;  %v947_v59 = vld [vmem:[%s11521_s1 + $0x1cb0] sm:$0xff]  ;;  %v812_v4 = vld [vmem:[%s11521_s1 + $0x1878] sm:$0xff] }
 0x2dc   :  { %3840 = vmatpush1.msra.mxu0 %v855_v43  ;;  %3911 = vmatpush1.msra.mxu1 %v983_v57  ;;  %v815_v1 = vld [vmem:[%s11521_s1 + $0x1890] sm:$0xff]  ;;  %v940_v43 = vld [vmem:[%s11521_s1 + $0x1c78] sm:$0xff] }
 0x2dd   :  { %3841 = vmatprep.subr.mxu0 %v852_v5  ;;  %3912 = vmatprep.subr.mxu1 %v980_v6  ;;  %v943_v54 = vld [vmem:[%s11521_s1 + $0x1c90] sm:$0xff]  ;;  %v808_v6 = vld [vmem:[%s11521_s1 + $0x1858] sm:$0xff] }
 0x2de   :  { %3842 = vmatpush1.msra.mxu0 %v851_v48  ;;  %3913 = vmatpush1.msra.mxu1 %v979_v7  ;;  %v811_v57 = vld [vmem:[%s11521_s1 + $0x1870] sm:$0xff]  ;;  %v936_v48 = vld [vmem:[%s11521_s1 + $0x1c58] sm:$0xff] }
 0x2df   :  { %3843 = vmatprep.subr.mxu0 %v848_v10  ;;  %3914 = vmatprep.subr.mxu1 %v976_v8  ;;  %v939_v5 = vld [vmem:[%s11521_s1 + $0x1c70] sm:$0xff]  ;;  %v804_v8 = vld [vmem:[%s11521_s1 + $0x1838] sm:$0xff] }
 0x2e0   :  { %3844 = vmatpush1.msra.mxu0 %v847_v12  ;;  %3915 = vmatpush1.msra.mxu1 %v975_v62  ;;  %v807_v7 = vld [vmem:[%s11521_s1 + $0x1850] sm:$0xff]  ;;  %v932_v12 = vld [vmem:[%s11521_s1 + $0x1c38] sm:$0xff] }
 0x2e1   :  { %3845 = vmatprep.subr.mxu0 %v844_v11  ;;  %3916 = vmatprep.subr.mxu1 %v972_v13  ;;  %v935_v10 = vld [vmem:[%s11521_s1 + $0x1c50] sm:$0xff]  ;;  %v800_v13 = vld [vmem:[%s11521_s1 + $0x1818] sm:$0xff] }
 0x2e2   :  { %3846 = vmatpush1.msra.mxu0 %v843_v14  ;;  %3917 = vmatpush1.msra.mxu1 %v971_v3  ;;  %v803_v62 = vld [vmem:[%s11521_s1 + $0x1830] sm:$0xff]  ;;  %v928_v14 = vld [vmem:[%s11521_s1 + $0x1c18] sm:$0xff] }
 0x2e3   :  { %3847 = vmatprep.subr.mxu0 %v840_v18  ;;  %3918 = vmatprep.subr.mxu1 %v968_v20  ;;  %v931_v11 = vld [vmem:[%s11521_s1 + $0x1c30] sm:$0xff]  ;;  %v924_v20 = vld [vmem:[%s11521_s1 + $0x1bf8] sm:$0xff] }
 0x2e4   :  { %3848 = vmatpush1.msra.mxu0 %v839_v22  ;;  %3919 = vmatpush1.msra.mxu1 %v967_v24  ;;  %v799_v3 = vld [vmem:[%s11521_s1 + $0x1810] sm:$0xff]  ;;  %v1052_v22 = vld [vmem:[%s11521_s1 + $0x1ff8] sm:$0xff] }
 0x2e5   :  { %3849 = vmatprep.subr.mxu0 %v836_v30  ;;  %3920 = vmatprep.subr.mxu1 %v964_v31  ;;  %v927_v18 = vld [vmem:[%s11521_s1 + $0x1c10] sm:$0xff]  ;;  %v920_v31 = vld [vmem:[%s11521_s1 + $0x1bd8] sm:$0xff] }
 0x2e6   :  { %3850 = vmatpush1.msra.mxu0 %v835_v33  ;;  %3921 = vmatpush1.msra.mxu1 %v963_v34  ;;  %v923_v24 = vld [vmem:[%s11521_s1 + $0x1bf0] sm:$0xff]  ;;  %v1048_v33 = vld [vmem:[%s11521_s1 + $0x1fd8] sm:$0xff] }
 0x2e7   :  { %3851 = vmatprep.subr.mxu0 %v832_v37  ;;  %3922 = vmatprep.subr.mxu1 %v960_v38  ;;  %v1051_v30 = vld [vmem:[%s11521_s1 + $0x1ff0] sm:$0xff]  ;;  %v916_v38 = vld [vmem:[%s11521_s1 + $0x1bb8] sm:$0xff] }
 0x2e8   :  { %3852 = vmatpush1.msra.mxu0 %v831_v42  ;;  %3923 = vmatpush1.msra.mxu1 %v959_v44  ;;  %v919_v34 = vld [vmem:[%s11521_s1 + $0x1bd0] sm:$0xff]  ;;  %v1044_v42 = vld [vmem:[%s11521_s1 + $0x1fb8] sm:$0xff] }
 0x2e9   :  { %3853 = vmatprep.subr.mxu0 %v828_v45  ;;  %3924 = vmatprep.subr.mxu1 %v956_v46  ;;  %v1047_v37 = vld [vmem:[%s11521_s1 + $0x1fd0] sm:$0xff]  ;;  %v912_v46 = vld [vmem:[%s11521_s1 + $0x1b98] sm:$0xff] }
 0x2ea   :  { %3854 = vmatpush1.msra.mxu0 %v827_v50  ;;  %3925 = vmatpush1.msra.mxu1 %v955_v51  ;;  %v915_v44 = vld [vmem:[%s11521_s1 + $0x1bb0] sm:$0xff]  ;;  %v1040_v50 = vld [vmem:[%s11521_s1 + $0x1f98] sm:$0xff] }
 0x2eb   :  { %3855 = vmatprep.subr.mxu0 %v824_v26  ;;  %3926 = vmatprep.subr.mxu1 %v952_v53  ;;  %v1043_v45 = vld [vmem:[%s11521_s1 + $0x1fb0] sm:$0xff]  ;;  %v908_v53 = vld [vmem:[%s11521_s1 + $0x1b78] sm:$0xff] }
 0x2ec   :  { %3856 = vmatpush1.msra.mxu0 %v823_v16  ;;  %3927 = vmatpush1.msra.mxu1 %v951_v29  ;;  %v911_v51 = vld [vmem:[%s11521_s1 + $0x1b90] sm:$0xff]  ;;  %v1036_v16 = vld [vmem:[%s11521_s1 + $0x1f78] sm:$0xff] }
 0x2ed   :  { %3857 = vmatprep.subr.mxu0 %v820_v52  ;;  %3928 = vmatprep.subr.mxu1 %v948_v58  ;;  %v1039_v26 = vld [vmem:[%s11521_s1 + $0x1f90] sm:$0xff]  ;;  %v904_v58 = vld [vmem:[%s11521_s1 + $0x1b58] sm:$0xff] }
 0x2ee   :  { %3858 = vmatpush1.msra.mxu0 %v819_v21  ;;  %3929 = vmatpush1.msra.mxu1 %v947_v59  ;;  %v907_v29 = vld [vmem:[%s11521_s1 + $0x1b70] sm:$0xff]  ;;  %v1032_v21 = vld [vmem:[%s11521_s1 + $0x1f58] sm:$0xff] }
 0x2ef   :  { %3859 = vmatprep.subr.mxu0 %v816_v61  ;;  %3930 = vmatprep.subr.mxu1 %v944_v0  ;;  %v1035_v52 = vld [vmem:[%s11521_s1 + $0x1f70] sm:$0xff]  ;;  %v900_v0 = vld [vmem:[%s11521_s1 + $0x1b38] sm:$0xff] }
 0x2f0   :  { %3860 = vmatpush1.msra.mxu0 %v815_v1  ;;  %3931 = vmatpush1.msra.mxu1 %v943_v54  ;;  %v903_v59 = vld [vmem:[%s11521_s1 + $0x1b50] sm:$0xff]  ;;  %v1028_v1 = vld [vmem:[%s11521_s1 + $0x1f38] sm:$0xff] }
 0x2f1   :  { %3861 = vmatprep.subr.mxu0 %v812_v4  ;;  %3932 = vmatprep.subr.mxu1 %v940_v43  ;;  %v1031_v61 = vld [vmem:[%s11521_s1 + $0x1f50] sm:$0xff]  ;;  %v896_v43 = vld [vmem:[%s11521_s1 + $0x1b18] sm:$0xff] }
 0x2f2   :  { %3862 = vmatpush1.msra.mxu0 %v811_v57  ;;  %3933 = vmatpush1.msra.mxu1 %v939_v5  ;;  %v899_v54 = vld [vmem:[%s11521_s1 + $0x1b30] sm:$0xff]  ;;  %v1024_v57 = vld [vmem:[%s11521_s1 + $0x1f18] sm:$0xff] }
 0x2f3   :  { %3863 = vmatprep.subr.mxu0 %v808_v6  ;;  %3934 = vmatprep.subr.mxu1 %v936_v48  ;;  %v1027_v4 = vld [vmem:[%s11521_s1 + $0x1f30] sm:$0xff]  ;;  %v892_v48 = vld [vmem:[%s11521_s1 + $0x1af8] sm:$0xff] }
 0x2f4   :  { %3864 = vmatpush1.msra.mxu0 %v807_v7  ;;  %3935 = vmatpush1.msra.mxu1 %v935_v10  ;;  %v895_v5 = vld [vmem:[%s11521_s1 + $0x1b10] sm:$0xff]  ;;  %v1020_v7 = vld [vmem:[%s11521_s1 + $0x1ef8] sm:$0xff] }
 0x2f5   :  { %3865 = vmatprep.subr.mxu0 %v804_v8  ;;  %3936 = vmatprep.subr.mxu1 %v932_v12  ;;  %v1023_v6 = vld [vmem:[%s11521_s1 + $0x1f10] sm:$0xff]  ;;  %v888_v12 = vld [vmem:[%s11521_s1 + $0x1ad8] sm:$0xff] }
 0x2f6   :  { %3866 = vmatpush1.msra.mxu0 %v803_v62  ;;  %3937 = vmatpush1.msra.mxu1 %v931_v11  ;;  %v891_v10 = vld [vmem:[%s11521_s1 + $0x1af0] sm:$0xff]  ;;  %v1016_v62 = vld [vmem:[%s11521_s1 + $0x1ed8] sm:$0xff] }
 0x2f7   :  { %3867 = vmatprep.subr.mxu0 %v800_v13  ;;  %3938 = vmatprep.subr.mxu1 %v928_v14  ;;  %v1019_v8 = vld [vmem:[%s11521_s1 + $0x1ef0] sm:$0xff]  ;;  %v884_v14 = vld [vmem:[%s11521_s1 + $0x1ab8] sm:$0xff] }
 0x2f8   :  { %3868 = vmatpush1.msra.mxu0 %v799_v3  ;;  %3939 = vmatpush1.msra.mxu1 %v927_v18  ;;  %v887_v11 = vld [vmem:[%s11521_s1 + $0x1ad0] sm:$0xff]  ;;  %v1012_v3 = vld [vmem:[%s11521_s1 + $0x1eb8] sm:$0xff] }
 0x2f9   :  { %3869 = vmatprep.subr.mxu0 %v924_v20  ;;  %3940 = vmatprep.subr.mxu1 %v1052_v22  ;;  %v1015_v13 = vld [vmem:[%s11521_s1 + $0x1ed0] sm:$0xff]  ;;  %v880_v22 = vld [vmem:[%s11521_s1 + $0x1a98] sm:$0xff] }
 0x2fa   :  { %3870 = vmatpush2.msra.mxu0 %v923_v24  ;;  %3941 = vmatpush2.msra.mxu1 %v1051_v30  ;;  %v883_v18 = vld [vmem:[%s11521_s1 + $0x1ab0] sm:$0xff]  ;;  %v1008_v24 = vld [vmem:[%s11521_s1 + $0x1e98] sm:$0xff] }
 0x2fb   :  { %3871 = vmatprep.subr.mxu0 %v920_v31  ;;  %3942 = vmatprep.subr.mxu1 %v1048_v33  ;;  %v1011_v20 = vld [vmem:[%s11521_s1 + $0x1eb0] sm:$0xff]  ;;  %v876_v33 = vld [vmem:[%s11521_s1 + $0x1a78] sm:$0xff] }
 0x2fc   :  { %3872 = vmatpush2.msra.mxu0 %v919_v34  ;;  %3943 = vmatpush2.msra.mxu1 %v1047_v37  ;;  %v879_v30 = vld [vmem:[%s11521_s1 + $0x1a90] sm:$0xff]  ;;  %v1004_v34 = vld [vmem:[%s11521_s1 + $0x1e78] sm:$0xff] }
 0x2fd   :  { %3873 = vmatprep.subr.mxu0 %v916_v38  ;;  %3944 = vmatprep.subr.mxu1 %v1044_v42  ;;  %v1007_v31 = vld [vmem:[%s11521_s1 + $0x1e90] sm:$0xff]  ;;  %v872_v42 = vld [vmem:[%s11521_s1 + $0x1a58] sm:$0xff] }
 0x2fe   :  { %3874 = vmatpush2.msra.mxu0 %v915_v44  ;;  %3945 = vmatpush2.msra.mxu1 %v1043_v45  ;;  %v875_v37 = vld [vmem:[%s11521_s1 + $0x1a70] sm:$0xff]  ;;  %v1000_v44 = vld [vmem:[%s11521_s1 + $0x1e58] sm:$0xff] }
 0x2ff   :  { %3875 = vmatprep.subr.mxu0 %v912_v46  ;;  %3946 = vmatprep.subr.mxu1 %v1040_v50  ;;  %v1003_v38 = vld [vmem:[%s11521_s1 + $0x1e70] sm:$0xff]  ;;  %v868_v50 = vld [vmem:[%s11521_s1 + $0x1a38] sm:$0xff] }
 0x300   :  { %3876 = vmatpush2.msra.mxu0 %v911_v51  ;;  %3947 = vmatpush2.msra.mxu1 %v1039_v26  ;;  %v871_v45 = vld [vmem:[%s11521_s1 + $0x1a50] sm:$0xff]  ;;  %v996_v51 = vld [vmem:[%s11521_s1 + $0x1e38] sm:$0xff] }
 0x301   :  { %3877 = vmatprep.subr.mxu0 %v908_v53  ;;  %3948 = vmatprep.subr.mxu1 %v1036_v16  ;;  %v999_v46 = vld [vmem:[%s11521_s1 + $0x1e50] sm:$0xff]  ;;  %v864_v16 = vld [vmem:[%s11521_s1 + $0x1a18] sm:$0xff] }
 0x302   :  { %3878 = vmatpush2.msra.mxu0 %v907_v29  ;;  %3949 = vmatpush2.msra.mxu1 %v1035_v52  ;;  %v867_v26 = vld [vmem:[%s11521_s1 + $0x1a30] sm:$0xff]  ;;  %v992_v29 = vld [vmem:[%s11521_s1 + $0x1e18] sm:$0xff] }
 0x303   :  { %3879 = vmatprep.subr.mxu0 %v904_v58  ;;  %3950 = vmatprep.subr.mxu1 %v1032_v21  ;;  %v995_v53 = vld [vmem:[%s11521_s1 + $0x1e30] sm:$0xff]  ;;  %v1116_v21 = vld [vmem:[%s11521_s1 + $0x21f8] sm:$0xff] }
 0x304   :  { %3880 = vmatpush2.msra.mxu0 %v903_v59  ;;  %3951 = vmatpush2.msra.mxu1 %v1031_v61  ;;  %v863_v52 = vld [vmem:[%s11521_s1 + $0x1a10] sm:$0xff]  ;;  %v1244_v59 = vld [vmem:[%s11521_s1 + $0x25f8] sm:$0xff] }
 0x305   :  { %3881 = vmatprep.subr.mxu0 %v900_v0  ;;  %3952 = vmatprep.subr.mxu1 %v1028_v1  ;;  %v991_v58 = vld [vmem:[%s11521_s1 + $0x1e10] sm:$0xff]  ;;  %v1240_v1 = vld [vmem:[%s11521_s1 + $0x25d8] sm:$0xff] }
 0x306   :  { %3882 = vmatpush2.msra.mxu0 %v899_v54  ;;  %3953 = vmatpush2.msra.mxu1 %v1027_v4  ;;  %v1115_v61 = vld [vmem:[%s11521_s1 + $0x21f0] sm:$0xff]  ;;  %v1108_v54 = vld [vmem:[%s11521_s1 + $0x21b8] sm:$0xff] }
 0x307   :  { %3883 = vmatprep.subr.mxu0 %v896_v43  ;;  %3954 = vmatprep.subr.mxu1 %v1024_v57  ;;  %v1243_v0 = vld [vmem:[%s11521_s1 + $0x25f0] sm:$0xff]  ;;  %v1236_v4 = vld [vmem:[%s11521_s1 + $0x25b8] sm:$0xff] }
 0x308   :  { %3884 = vmatpush2.msra.mxu0 %v895_v5  ;;  %3955 = vmatpush2.msra.mxu1 %v1023_v6  ;;  %v1235_v43 = vld [vmem:[%s11521_s1 + $0x25b0] sm:$0xff]  ;;  %v1104_v57 = vld [vmem:[%s11521_s1 + $0x2198] sm:$0xff] }
 0x309   :  { %3885 = vmatprep.subr.mxu0 %v892_v48  ;;  %3956 = vmatprep.subr.mxu1 %v1020_v7  ;;  %v1232_v5 = vld [vmem:[%s11521_s1 + $0x2598] sm:$0xff]  ;;  %v1103_v6 = vld [vmem:[%s11521_s1 + $0x2190] sm:$0xff] }
 0x30a   :  { %3886 = vmatpush2.msra.mxu0 %v891_v10  ;;  %3957 = vmatpush2.msra.mxu1 %v1019_v8  ;;  %v1231_v48 = vld [vmem:[%s11521_s1 + $0x2590] sm:$0xff]  ;;  %v1100_v7 = vld [vmem:[%s11521_s1 + $0x2178] sm:$0xff] }
 0x30b   :  { %3887 = vmatprep.subr.mxu0 %v888_v12  ;;  %3958 = vmatprep.subr.mxu1 %v1016_v62  ;;  %v1228_v10 = vld [vmem:[%s11521_s1 + $0x2578] sm:$0xff]  ;;  %v1099_v8 = vld [vmem:[%s11521_s1 + $0x2170] sm:$0xff] }
 0x30c   :  { %3888 = vmatpush2.msra.mxu0 %v887_v11  ;;  %3959 = vmatpush2.msra.mxu1 %v1015_v13  ;;  %v1227_v12 = vld [vmem:[%s11521_s1 + $0x2570] sm:$0xff]  ;;  %v1096_v62 = vld [vmem:[%s11521_s1 + $0x2158] sm:$0xff] }
 0x30d   :  { %3889 = vmatprep.subr.mxu0 %v884_v14  ;;  %3960 = vmatprep.subr.mxu1 %v1012_v3  ;;  %v1224_v11 = vld [vmem:[%s11521_s1 + $0x2558] sm:$0xff]  ;;  %v1095_v13 = vld [vmem:[%s11521_s1 + $0x2150] sm:$0xff] }
 0x30e   :  { %3890 = vmatpush2.msra.mxu0 %v883_v18  ;;  %3961 = vmatpush2.msra.mxu1 %v1011_v20  ;;  %v1223_v14 = vld [vmem:[%s11521_s1 + $0x2550] sm:$0xff]  ;;  %v1092_v3 = vld [vmem:[%s11521_s1 + $0x2138] sm:$0xff] }
 0x30f   :  { %3891 = vmatprep.subr.mxu0 %v880_v22  ;;  %3962 = vmatprep.subr.mxu1 %v1008_v24  ;;  %v1220_v18 = vld [vmem:[%s11521_s1 + $0x2538] sm:$0xff]  ;;  %v1091_v20 = vld [vmem:[%s11521_s1 + $0x2130] sm:$0xff] }
 0x310   :  { %3892 = vmatpush2.msra.mxu0 %v879_v30  ;;  %3963 = vmatpush2.msra.mxu1 %v1007_v31  ;;  %v1219_v22 = vld [vmem:[%s11521_s1 + $0x2530] sm:$0xff]  ;;  %v1088_v24 = vld [vmem:[%s11521_s1 + $0x2118] sm:$0xff] }
 0x311   :  { %3893 = vmatprep.subr.mxu0 %v876_v33  ;;  %3964 = vmatprep.subr.mxu1 %v1004_v34  ;;  %v1216_v30 = vld [vmem:[%s11521_s1 + $0x2518] sm:$0xff]  ;;  %v1087_v31 = vld [vmem:[%s11521_s1 + $0x2110] sm:$0xff] }
 0x312   :  { %3894 = vmatpush2.msra.mxu0 %v875_v37  ;;  %3965 = vmatpush2.msra.mxu1 %v1003_v38  ;;  %v1215_v33 = vld [vmem:[%s11521_s1 + $0x2510] sm:$0xff]  ;;  %v1084_v34 = vld [vmem:[%s11521_s1 + $0x20f8] sm:$0xff] }
 0x313   :  { %3895 = vmatprep.subr.mxu0 %v872_v42  ;;  %3966 = vmatprep.subr.mxu1 %v1000_v44  ;;  %v1212_v37 = vld [vmem:[%s11521_s1 + $0x24f8] sm:$0xff]  ;;  %v1083_v38 = vld [vmem:[%s11521_s1 + $0x20f0] sm:$0xff] }
 0x314   :  { %3896 = vmatpush2.msra.mxu0 %v871_v45  ;;  %3967 = vmatpush2.msra.mxu1 %v999_v46  ;;  %v1211_v42 = vld [vmem:[%s11521_s1 + $0x24f0] sm:$0xff]  ;;  %v1080_v44 = vld [vmem:[%s11521_s1 + $0x20d8] sm:$0xff] }
 0x315   :  { %3897 = vmatprep.subr.mxu0 %v868_v50  ;;  %3968 = vmatprep.subr.mxu1 %v996_v51  ;;  %v1208_v45 = vld [vmem:[%s11521_s1 + $0x24d8] sm:$0xff]  ;;  %v1079_v46 = vld [vmem:[%s11521_s1 + $0x20d0] sm:$0xff] }
 0x316   :  { %3898 = vmatpush2.msra.mxu0 %v867_v26  ;;  %3969 = vmatpush2.msra.mxu1 %v995_v53  ;;  %v1207_v50 = vld [vmem:[%s11521_s1 + $0x24d0] sm:$0xff]  ;;  %v1076_v51 = vld [vmem:[%s11521_s1 + $0x20b8] sm:$0xff] }
 0x317   :  { %3899 = vmatprep.subr.mxu0 %v864_v16  ;;  %3970 = vmatprep.subr.mxu1 %v992_v29  ;;  %v1204_v26 = vld [vmem:[%s11521_s1 + $0x24b8] sm:$0xff]  ;;  %v1075_v53 = vld [vmem:[%s11521_s1 + $0x20b0] sm:$0xff] }
 0x318   :  { %3900 = vmatpush2.msra.mxu0 %v863_v52  ;;  %3901 = vmatprep.mubr.f32.mxu0 %v6521_v32  ;;  %v1112_v32 = vld [vmem:[%s11521_s1 + $0x21d8] sm:$0xff]  ;;  %v1203_v16 = vld [vmem:[%s11521_s1 + $0x24b0] sm:$0xff] }
 0x319   :  { %3971 = vmatpush2.msra.mxu1 %v991_v58  ;;  %3902 = vmatmul.mubr.f32.vlgmr.msra.gmra.mxu0 %v6490_v19  ;;  %v1111_v19 = vld [vmem:[%s11521_s1 + $0x21d0] sm:$0xff]  ;;  %v1072_v29 = vld [vmem:[%s11521_s1 + $0x2098] sm:$0xff] }
 0x31a   :  { %3972 = vmatprep.mubr.f32.mxu1 %v6531_v35  ;;  %3979 = vmatprep.subr.mxu0 %v1116_v21  ;;  %v1239_v35 = vld [vmem:[%s11521_s1 + $0x25d0] sm:$0xff]  ;;  %v1200_v52 = vld [vmem:[%s11521_s1 + $0x2498] sm:$0xff] }
 0x31b   :  { %4050 = vmatprep.subr.mxu1 %v1244_v59  ;;  %3973 = vmatmul.mubr.f32.vlgmr.msra.gmra.mxu1 %v6505_v25  ;;  %v1107_v25 = vld [vmem:[%s11521_s1 + $0x21b0] sm:$0xff]  ;;  %v1068_v59 = vld [vmem:[%s11521_s1 + $0x2078] sm:$0xff] }
 0x31c   :  { %3980 = vmatpush1.msra.mxu0 %v1115_v61  ;;  %4051 = vmatpush1.msra.mxu1 %v1243_v0  ;;  %v1071_v58 = vld [vmem:[%s11521_s1 + $0x2090] sm:$0xff]  ;;  %v1196_v61 = vld [vmem:[%s11521_s1 + $0x2478] sm:$0xff] }
 0x31d   :  { %3981 = vmatprep.subr.mxu0 %v1112_v32  ;;  %4052 = vmatprep.subr.mxu1 %v1240_v1  ;;  %v1199_v21 = vld [vmem:[%s11521_s1 + $0x2490] sm:$0xff]  ;;  %v1064_v1 = vld [vmem:[%s11521_s1 + $0x2058] sm:$0xff] }
 0x31e   :  { %3982 = vmatpush1.msra.mxu0 %v1111_v19  ;;  %4053 = vmatpush1.msra.mxu1 %v1239_v35  ;;  %v1067_v0 = vld [vmem:[%s11521_s1 + $0x2070] sm:$0xff]  ;;  %v1192_v19 = vld [vmem:[%s11521_s1 + $0x2458] sm:$0xff] }
 0x31f   :  { %3983 = vmatprep.subr.mxu0 %v1108_v54  ;;  %4054 = vmatprep.subr.mxu1 %v1236_v4  ;;  %v1195_v32 = vld [vmem:[%s11521_s1 + $0x2470] sm:$0xff]  ;;  %v1060_v4 = vld [vmem:[%s11521_s1 + $0x2038] sm:$0xff] }
 0x320   :  { %3984 = vmatpush1.msra.mxu0 %v1107_v25  ;;  %4055 = vmatpush1.msra.mxu1 %v1235_v43  ;;  %v1063_v35 = vld [vmem:[%s11521_s1 + $0x2050] sm:$0xff]  ;;  %v1188_v25 = vld [vmem:[%s11521_s1 + $0x2438] sm:$0xff] }
 0x321   :  { %3985 = vmatprep.subr.mxu0 %v1104_v57  ;;  %4056 = vmatprep.subr.mxu1 %v1232_v5  ;;  %v1191_v54 = vld [vmem:[%s11521_s1 + $0x2450] sm:$0xff]  ;;  %v1056_v5 = vld [vmem:[%s11521_s1 + $0x2018] sm:$0xff] }
 0x322   :  { %3986 = vmatpush1.msra.mxu0 %v1103_v6  ;;  %4057 = vmatpush1.msra.mxu1 %v1231_v48  ;;  %v1059_v43 = vld [vmem:[%s11521_s1 + $0x2030] sm:$0xff]  ;;  %v1184_v6 = vld [vmem:[%s11521_s1 + $0x2418] sm:$0xff] }
 0x323   :  { %3987 = vmatprep.subr.mxu0 %v1100_v7  ;;  %4058 = vmatprep.subr.mxu1 %v1228_v10  ;;  %v1187_v57 = vld [vmem:[%s11521_s1 + $0x2430] sm:$0xff]  ;;  %v1180_v10 = vld [vmem:[%s11521_s1 + $0x23f8] sm:$0xff] }
 0x324   :  { %3988 = vmatpush1.msra.mxu0 %v1099_v8  ;;  %4059 = vmatpush1.msra.mxu1 %v1227_v12  ;;  %v1055_v48 = vld [vmem:[%s11521_s1 + $0x2010] sm:$0xff]  ;;  %v1308_v8 = vld [vmem:[%s11521_s1 + $0x27f8] sm:$0xff] }
 0x325   :  { %3989 = vmatprep.subr.mxu0 %v1096_v62  ;;  %4060 = vmatprep.subr.mxu1 %v1224_v11  ;;  %v1183_v7 = vld [vmem:[%s11521_s1 + $0x2410] sm:$0xff]  ;;  %v1176_v11 = vld [vmem:[%s11521_s1 + $0x23d8] sm:$0xff] }
 0x326   :  { %3990 = vmatpush1.msra.mxu0 %v1095_v13  ;;  %4061 = vmatpush1.msra.mxu1 %v1223_v14  ;;  %v1179_v12 = vld [vmem:[%s11521_s1 + $0x23f0] sm:$0xff]  ;;  %v1304_v13 = vld [vmem:[%s11521_s1 + $0x27d8] sm:$0xff] }
 0x327   :  { %3991 = vmatprep.subr.mxu0 %v1092_v3  ;;  %4062 = vmatprep.subr.mxu1 %v1220_v18  ;;  %v1307_v62 = vld [vmem:[%s11521_s1 + $0x27f0] sm:$0xff]  ;;  %v1172_v18 = vld [vmem:[%s11521_s1 + $0x23b8] sm:$0xff] }
 0x328   :  { %3992 = vmatpush1.msra.mxu0 %v1091_v20  ;;  %4063 = vmatpush1.msra.mxu1 %v1219_v22  ;;  %v1175_v14 = vld [vmem:[%s11521_s1 + $0x23d0] sm:$0xff]  ;;  %v1300_v20 = vld [vmem:[%s11521_s1 + $0x27b8] sm:$0xff] }
 0x329   :  { %3993 = vmatprep.subr.mxu0 %v1088_v24  ;;  %4064 = vmatprep.subr.mxu1 %v1216_v30  ;;  %v1303_v3 = vld [vmem:[%s11521_s1 + $0x27d0] sm:$0xff]  ;;  %v1168_v30 = vld [vmem:[%s11521_s1 + $0x2398] sm:$0xff] }
 0x32a   :  { %3994 = vmatpush1.msra.mxu0 %v1087_v31  ;;  %4065 = vmatpush1.msra.mxu1 %v1215_v33  ;;  %v1171_v22 = vld [vmem:[%s11521_s1 + $0x23b0] sm:$0xff]  ;;  %v1296_v31 = vld [vmem:[%s11521_s1 + $0x2798] sm:$0xff] }
 0x32b   :  { %3995 = vmatprep.subr.mxu0 %v1084_v34  ;;  %4066 = vmatprep.subr.mxu1 %v1212_v37  ;;  %v1299_v24 = vld [vmem:[%s11521_s1 + $0x27b0] sm:$0xff]  ;;  %v1164_v37 = vld [vmem:[%s11521_s1 + $0x2378] sm:$0xff] }
 0x32c   :  { %3996 = vmatpush1.msra.mxu0 %v1083_v38  ;;  %4067 = vmatpush1.msra.mxu1 %v1211_v42  ;;  %v1167_v33 = vld [vmem:[%s11521_s1 + $0x2390] sm:$0xff]  ;;  %v1292_v38 = vld [vmem:[%s11521_s1 + $0x2778] sm:$0xff] }
 0x32d   :  { %3997 = vmatprep.subr.mxu0 %v1080_v44  ;;  %4068 = vmatprep.subr.mxu1 %v1208_v45  ;;  %v1295_v34 = vld [vmem:[%s11521_s1 + $0x2790] sm:$0xff]  ;;  %v1160_v45 = vld [vmem:[%s11521_s1 + $0x2358] sm:$0xff] }
 0x32e   :  { %3998 = vmatpush1.msra.mxu0 %v1079_v46  ;;  %4069 = vmatpush1.msra.mxu1 %v1207_v50  ;;  %v1163_v42 = vld [vmem:[%s11521_s1 + $0x2370] sm:$0xff]  ;;  %v1288_v46 = vld [vmem:[%s11521_s1 + $0x2758] sm:$0xff] }
 0x32f   :  { %3999 = vmatprep.subr.mxu0 %v1076_v51  ;;  %4070 = vmatprep.subr.mxu1 %v1204_v26  ;;  %v1291_v44 = vld [vmem:[%s11521_s1 + $0x2770] sm:$0xff]  ;;  %v1156_v26 = vld [vmem:[%s11521_s1 + $0x2338] sm:$0xff] }
 0x330   :  { %4000 = vmatpush1.msra.mxu0 %v1075_v53  ;;  %4071 = vmatpush1.msra.mxu1 %v1203_v16  ;;  %v1159_v50 = vld [vmem:[%s11521_s1 + $0x2350] sm:$0xff]  ;;  %v1284_v53 = vld [vmem:[%s11521_s1 + $0x2738] sm:$0xff] }
 0x331   :  { %4001 = vmatprep.subr.mxu0 %v1072_v29  ;;  %4072 = vmatprep.subr.mxu1 %v1200_v52  ;;  %v1287_v51 = vld [vmem:[%s11521_s1 + $0x2750] sm:$0xff]  ;;  %v1152_v52 = vld [vmem:[%s11521_s1 + $0x2318] sm:$0xff] }
 0x332   :  { %4002 = vmatpush1.msra.mxu0 %v1071_v58  ;;  %4073 = vmatpush1.msra.mxu1 %v1199_v21  ;;  %v1155_v16 = vld [vmem:[%s11521_s1 + $0x2330] sm:$0xff]  ;;  %v1280_v58 = vld [vmem:[%s11521_s1 + $0x2718] sm:$0xff] }
 0x333   :  { %4003 = vmatprep.subr.mxu0 %v1068_v59  ;;  %4074 = vmatprep.subr.mxu1 %v1196_v61  ;;  %v1283_v29 = vld [vmem:[%s11521_s1 + $0x2730] sm:$0xff]  ;;  %v1148_v61 = vld [vmem:[%s11521_s1 + $0x22f8] sm:$0xff] }
 0x334   :  { %4004 = vmatpush1.msra.mxu0 %v1067_v0  ;;  %4075 = vmatpush1.msra.mxu1 %v1195_v32  ;;  %v1151_v21 = vld [vmem:[%s11521_s1 + $0x2310] sm:$0xff]  ;;  %v1276_v0 = vld [vmem:[%s11521_s1 + $0x26f8] sm:$0xff] }
 0x335   :  { %4005 = vmatprep.subr.mxu0 %v1064_v1  ;;  %4076 = vmatprep.subr.mxu1 %v1192_v19  ;;  %v1279_v59 = vld [vmem:[%s11521_s1 + $0x2710] sm:$0xff]  ;;  %v1144_v19 = vld [vmem:[%s11521_s1 + $0x22d8] sm:$0xff] }
 0x336   :  { %4006 = vmatpush1.msra.mxu0 %v1063_v35  ;;  %4077 = vmatpush1.msra.mxu1 %v1191_v54  ;;  %v1147_v32 = vld [vmem:[%s11521_s1 + $0x22f0] sm:$0xff]  ;;  %v1272_v35 = vld [vmem:[%s11521_s1 + $0x26d8] sm:$0xff] }
 0x337   :  { %4007 = vmatprep.subr.mxu0 %v1060_v4  ;;  %4078 = vmatprep.subr.mxu1 %v1188_v25  ;;  %v1275_v1 = vld [vmem:[%s11521_s1 + $0x26f0] sm:$0xff]  ;;  %v1140_v25 = vld [vmem:[%s11521_s1 + $0x22b8] sm:$0xff] }
 0x338   :  { %4008 = vmatpush1.msra.mxu0 %v1059_v43  ;;  %4079 = vmatpush1.msra.mxu1 %v1187_v57  ;;  %v1143_v54 = vld [vmem:[%s11521_s1 + $0x22d0] sm:$0xff]  ;;  %v1268_v43 = vld [vmem:[%s11521_s1 + $0x26b8] sm:$0xff] }
 0x339   :  { %4009 = vmatprep.subr.mxu0 %v1056_v5  ;;  %4080 = vmatprep.subr.mxu1 %v1184_v6  ;;  %v1271_v4 = vld [vmem:[%s11521_s1 + $0x26d0] sm:$0xff]  ;;  %v1136_v6 = vld [vmem:[%s11521_s1 + $0x2298] sm:$0xff] }
 0x33a   :  { %4010 = vmatpush1.msra.mxu0 %v1055_v48  ;;  %4081 = vmatpush1.msra.mxu1 %v1183_v7  ;;  %v1139_v57 = vld [vmem:[%s11521_s1 + $0x22b0] sm:$0xff]  ;;  %v1264_v48 = vld [vmem:[%s11521_s1 + $0x2698] sm:$0xff] }
 0x33b   :  { %4011 = vmatprep.subr.mxu0 %v1180_v10  ;;  %4082 = vmatprep.subr.mxu1 %v1308_v8  ;;  %v1267_v5 = vld [vmem:[%s11521_s1 + $0x26b0] sm:$0xff]  ;;  %v1132_v8 = vld [vmem:[%s11521_s1 + $0x2278] sm:$0xff] }
 0x33c   :  { %4012 = vmatpush2.msra.mxu0 %v1179_v12  ;;  %4083 = vmatpush2.msra.mxu1 %v1307_v62  ;;  %v1135_v7 = vld [vmem:[%s11521_s1 + $0x2290] sm:$0xff]  ;;  %v1260_v12 = vld [vmem:[%s11521_s1 + $0x2678] sm:$0xff] }
 0x33d   :  { %4013 = vmatprep.subr.mxu0 %v1176_v11  ;;  %4084 = vmatprep.subr.mxu1 %v1304_v13  ;;  %v1263_v10 = vld [vmem:[%s11521_s1 + $0x2690] sm:$0xff]  ;;  %v1128_v13 = vld [vmem:[%s11521_s1 + $0x2258] sm:$0xff] }
 0x33e   :  { %4014 = vmatpush2.msra.mxu0 %v1175_v14  ;;  %4085 = vmatpush2.msra.mxu1 %v1303_v3  ;;  %v1131_v62 = vld [vmem:[%s11521_s1 + $0x2270] sm:$0xff]  ;;  %v1256_v14 = vld [vmem:[%s11521_s1 + $0x2658] sm:$0xff] }
 0x33f   :  { %4015 = vmatprep.subr.mxu0 %v1172_v18  ;;  %4086 = vmatprep.subr.mxu1 %v1300_v20  ;;  %v1259_v11 = vld [vmem:[%s11521_s1 + $0x2670] sm:$0xff]  ;;  %v1124_v20 = vld [vmem:[%s11521_s1 + $0x2238] sm:$0xff] }
 0x340   :  { %4016 = vmatpush2.msra.mxu0 %v1171_v22  ;;  %4087 = vmatpush2.msra.mxu1 %v1299_v24  ;;  %v1127_v3 = vld [vmem:[%s11521_s1 + $0x2250] sm:$0xff]  ;;  %v1252_v22 = vld [vmem:[%s11521_s1 + $0x2638] sm:$0xff] }
 0x341   :  { %4017 = vmatprep.subr.mxu0 %v1168_v30  ;;  %4088 = vmatprep.subr.mxu1 %v1296_v31  ;;  %v1255_v18 = vld [vmem:[%s11521_s1 + $0x2650] sm:$0xff]  ;;  %v1120_v31 = vld [vmem:[%s11521_s1 + $0x2218] sm:$0xff] }
 0x342   :  { %4018 = vmatpush2.msra.mxu0 %v1167_v33  ;;  %4089 = vmatpush2.msra.mxu1 %v1295_v34  ;;  %v1123_v24 = vld [vmem:[%s11521_s1 + $0x2230] sm:$0xff]  ;;  %v1248_v33 = vld [vmem:[%s11521_s1 + $0x2618] sm:$0xff] }
 0x343   :  { %4019 = vmatprep.subr.mxu0 %v1164_v37  ;;  %4090 = vmatprep.subr.mxu1 %v1292_v38  ;;  %v1251_v30 = vld [vmem:[%s11521_s1 + $0x2630] sm:$0xff]  ;;  %v1372_v38 = vld [vmem:[%s11521_s1 + $0x29f8] sm:$0xff] }
 0x344   :  { %4020 = vmatpush2.msra.mxu0 %v1163_v42  ;;  %4091 = vmatpush2.msra.mxu1 %v1291_v44  ;;  %v1119_v34 = vld [vmem:[%s11521_s1 + $0x2210] sm:$0xff]  ;;  %v1500_v42 = vld [vmem:[%s11521_s1 + $0x2df8] sm:$0xff] }
 0x345   :  { %4021 = vmatprep.subr.mxu0 %v1160_v45  ;;  %4092 = vmatprep.subr.mxu1 %v1288_v46  ;;  %v1247_v37 = vld [vmem:[%s11521_s1 + $0x2610] sm:$0xff]  ;;  %v1496_v46 = vld [vmem:[%s11521_s1 + $0x2dd8] sm:$0xff] }
 0x346   :  { %4022 = vmatpush2.msra.mxu0 %v1159_v50  ;;  %4093 = vmatpush2.msra.mxu1 %v1287_v51  ;;  %v1371_v44 = vld [vmem:[%s11521_s1 + $0x29f0] sm:$0xff]  ;;  %v1364_v50 = vld [vmem:[%s11521_s1 + $0x29b8] sm:$0xff] }
 0x347   :  { %4023 = vmatprep.subr.mxu0 %v1156_v26  ;;  %4094 = vmatprep.subr.mxu1 %v1284_v53  ;;  %v1499_v45 = vld [vmem:[%s11521_s1 + $0x2df0] sm:$0xff]  ;;  %v1492_v51 = vld [vmem:[%s11521_s1 + $0x2db8] sm:$0xff] }
 0x348   :  { %4024 = vmatpush2.msra.mxu0 %v1155_v16  ;;  %4095 = vmatpush2.msra.mxu1 %v1283_v29  ;;  %v1491_v26 = vld [vmem:[%s11521_s1 + $0x2db0] sm:$0xff]  ;;  %v1360_v53 = vld [vmem:[%s11521_s1 + $0x2998] sm:$0xff] }
 0x349   :  { %4025 = vmatprep.subr.mxu0 %v1152_v52  ;;  %4096 = vmatprep.subr.mxu1 %v1280_v58  ;;  %v1488_v16 = vld [vmem:[%s11521_s1 + $0x2d98] sm:$0xff]  ;;  %v1359_v29 = vld [vmem:[%s11521_s1 + $0x2990] sm:$0xff] }
 0x34a   :  { %4026 = vmatpush2.msra.mxu0 %v1151_v21  ;;  %4097 = vmatpush2.msra.mxu1 %v1279_v59  ;;  %v1487_v52 = vld [vmem:[%s11521_s1 + $0x2d90] sm:$0xff]  ;;  %v1356_v58 = vld [vmem:[%s11521_s1 + $0x2978] sm:$0xff] }
 0x34b   :  { %4027 = vmatprep.subr.mxu0 %v1148_v61  ;;  %4098 = vmatprep.subr.mxu1 %v1276_v0  ;;  %v1484_v21 = vld [vmem:[%s11521_s1 + $0x2d78] sm:$0xff]  ;;  %v1355_v59 = vld [vmem:[%s11521_s1 + $0x2970] sm:$0xff] }
 0x34c   :  { %4028 = vmatpush2.msra.mxu0 %v1147_v32  ;;  %4099 = vmatpush2.msra.mxu1 %v1275_v1  ;;  %v1483_v61 = vld [vmem:[%s11521_s1 + $0x2d70] sm:$0xff]  ;;  %v1352_v0 = vld [vmem:[%s11521_s1 + $0x2958] sm:$0xff] }
 0x34d   :  { %4029 = vmatprep.subr.mxu0 %v1144_v19  ;;  %4100 = vmatprep.subr.mxu1 %v1272_v35  ;;  %v1480_v32 = vld [vmem:[%s11521_s1 + $0x2d58] sm:$0xff]  ;;  %v1351_v1 = vld [vmem:[%s11521_s1 + $0x2950] sm:$0xff] }
 0x34e   :  { %4030 = vmatpush2.msra.mxu0 %v1143_v54  ;;  %4101 = vmatpush2.msra.mxu1 %v1271_v4  ;;  %v1479_v19 = vld [vmem:[%s11521_s1 + $0x2d50] sm:$0xff]  ;;  %v1348_v35 = vld [vmem:[%s11521_s1 + $0x2938] sm:$0xff] }
 0x34f   :  { %4031 = vmatprep.subr.mxu0 %v1140_v25  ;;  %4102 = vmatprep.subr.mxu1 %v1268_v43  ;;  %v1476_v54 = vld [vmem:[%s11521_s1 + $0x2d38] sm:$0xff]  ;;  %v1347_v4 = vld [vmem:[%s11521_s1 + $0x2930] sm:$0xff] }
 0x350   :  { %4032 = vmatpush2.msra.mxu0 %v1139_v57  ;;  %4103 = vmatpush2.msra.mxu1 %v1267_v5  ;;  %v1475_v25 = vld [vmem:[%s11521_s1 + $0x2d30] sm:$0xff]  ;;  %v1344_v43 = vld [vmem:[%s11521_s1 + $0x2918] sm:$0xff] }
 0x351   :  { %4033 = vmatprep.subr.mxu0 %v1136_v6  ;;  %4104 = vmatprep.subr.mxu1 %v1264_v48  ;;  %v1472_v57 = vld [vmem:[%s11521_s1 + $0x2d18] sm:$0xff]  ;;  %v1343_v5 = vld [vmem:[%s11521_s1 + $0x2910] sm:$0xff] }
 0x352   :  { %4034 = vmatpush2.msra.mxu0 %v1135_v7  ;;  %4105 = vmatpush2.msra.mxu1 %v1263_v10  ;;  %v1471_v6 = vld [vmem:[%s11521_s1 + $0x2d10] sm:$0xff]  ;;  %v1340_v48 = vld [vmem:[%s11521_s1 + $0x28f8] sm:$0xff] }
 0x353   :  { %4035 = vmatprep.subr.mxu0 %v1132_v8  ;;  %4106 = vmatprep.subr.mxu1 %v1260_v12  ;;  %v1468_v7 = vld [vmem:[%s11521_s1 + $0x2cf8] sm:$0xff]  ;;  %v1339_v10 = vld [vmem:[%s11521_s1 + $0x28f0] sm:$0xff] }
 0x354   :  { %4036 = vmatpush2.msra.mxu0 %v1131_v62  ;;  %4107 = vmatpush2.msra.mxu1 %v1259_v11  ;;  %v1467_v8 = vld [vmem:[%s11521_s1 + $0x2cf0] sm:$0xff]  ;;  %v1336_v12 = vld [vmem:[%s11521_s1 + $0x28d8] sm:$0xff] }
 0x355   :  { %4037 = vmatprep.subr.mxu0 %v1128_v13  ;;  %4108 = vmatprep.subr.mxu1 %v1256_v14  ;;  %v1464_v62 = vld [vmem:[%s11521_s1 + $0x2cd8] sm:$0xff]  ;;  %v1335_v11 = vld [vmem:[%s11521_s1 + $0x28d0] sm:$0xff] }
 0x356   :  { %4038 = vmatpush2.msra.mxu0 %v1127_v3  ;;  %4109 = vmatpush2.msra.mxu1 %v1255_v18  ;;  %v1463_v13 = vld [vmem:[%s11521_s1 + $0x2cd0] sm:$0xff]  ;;  %v1332_v14 = vld [vmem:[%s11521_s1 + $0x28b8] sm:$0xff] }
 0x357   :  { %4039 = vmatprep.subr.mxu0 %v1124_v20  ;;  %4110 = vmatprep.subr.mxu1 %v1252_v22  ;;  %v1460_v3 = vld [vmem:[%s11521_s1 + $0x2cb8] sm:$0xff]  ;;  %v1331_v18 = vld [vmem:[%s11521_s1 + $0x28b0] sm:$0xff] }
 0x358   :  { %4040 = vmatpush2.msra.mxu0 %v1123_v24  ;;  %4111 = vmatpush2.msra.mxu1 %v1251_v30  ;;  %v1459_v20 = vld [vmem:[%s11521_s1 + $0x2cb0] sm:$0xff]  ;;  %v1328_v22 = vld [vmem:[%s11521_s1 + $0x2898] sm:$0xff] }
 0x359   :  { %4041 = vmatprep.subr.mxu0 %v1120_v31  ;;  %4112 = vmatprep.subr.mxu1 %v1248_v33  ;;  %v1456_v24 = vld [vmem:[%s11521_s1 + $0x2c98] sm:$0xff]  ;;  %v1327_v30 = vld [vmem:[%s11521_s1 + $0x2890] sm:$0xff] }
 0x35a   :  { %4042 = vmatpush2.msra.mxu0 %v1119_v34  ;;  %4043 = vmatprep.mubr.f32.mxu0 %v6926_v23  ;;  %v1368_v23 = vld [vmem:[%s11521_s1 + $0x29d8] sm:$0xff]  ;;  %v1455_v31 = vld [vmem:[%s11521_s1 + $0x2c90] sm:$0xff] }
 0x35b   :  { %4113 = vmatpush2.msra.mxu1 %v1247_v37  ;;  %4044 = vmatmul.mubr.f32.vlgmr.msra.gmra.mxu0 %v6895_v9  ;;  %v1367_v9 = vld [vmem:[%s11521_s1 + $0x29d0] sm:$0xff]  ;;  %v1324_v33 = vld [vmem:[%s11521_s1 + $0x2878] sm:$0xff] }
 0x35c   :  { %4114 = vmatprep.mubr.f32.mxu1 %v6936_v28  ;;  %4121 = vmatprep.subr.mxu0 %v1372_v38  ;;  %v1495_v28 = vld [vmem:[%s11521_s1 + $0x2dd0] sm:$0xff]  ;;  %v1452_v34 = vld [vmem:[%s11521_s1 + $0x2c78] sm:$0xff] }
 0x35d   :  { %4192 = vmatprep.subr.mxu1 %v1500_v42  ;;  %4115 = vmatmul.mubr.f32.vlgmr.msra.gmra.mxu1 %v6910_v15  ;;  %v1363_v15 = vld [vmem:[%s11521_s1 + $0x29b0] sm:$0xff]  ;;  %v1320_v42 = vld [vmem:[%s11521_s1 + $0x2858] sm:$0xff] }
 0x35e   :  { %4122 = vmatpush1.msra.mxu0 %v1371_v44  ;;  %4193 = vmatpush1.msra.mxu1 %v1499_v45  ;;  %v1323_v37 = vld [vmem:[%s11521_s1 + $0x2870] sm:$0xff]  ;;  %v1448_v44 = vld [vmem:[%s11521_s1 + $0x2c58] sm:$0xff] }
 0x35f   :  { %4123 = vmatprep.subr.mxu0 %v1368_v23  ;;  %4194 = vmatprep.subr.mxu1 %v1496_v46  ;;  %v1451_v38 = vld [vmem:[%s11521_s1 + $0x2c70] sm:$0xff]  ;;  %v1316_v46 = vld [vmem:[%s11521_s1 + $0x2838] sm:$0xff] }
 0x360   :  { %4124 = vmatpush1.msra.mxu0 %v1367_v9  ;;  %4195 = vmatpush1.msra.mxu1 %v1495_v28  ;;  %v1319_v45 = vld [vmem:[%s11521_s1 + $0x2850] sm:$0xff]  ;;  %v1444_v9 = vld [vmem:[%s11521_s1 + $0x2c38] sm:$0xff] }
 0x361   :  { %4125 = vmatprep.subr.mxu0 %v1364_v50  ;;  %4196 = vmatprep.subr.mxu1 %v1492_v51  ;;  %v1447_v23 = vld [vmem:[%s11521_s1 + $0x2c50] sm:$0xff]  ;;  %v1312_v51 = vld [vmem:[%s11521_s1 + $0x2818] sm:$0xff] }
 0x362   :  { %4126 = vmatpush1.msra.mxu0 %v1363_v15  ;;  %4197 = vmatpush1.msra.mxu1 %v1491_v26  ;;  %v1315_v28 = vld [vmem:[%s11521_s1 + $0x2830] sm:$0xff]  ;;  %v1440_v15 = vld [vmem:[%s11521_s1 + $0x2c18] sm:$0xff] }
 0x363   :  { %4127 = vmatprep.subr.mxu0 %v1360_v53  ;;  %4198 = vmatprep.subr.mxu1 %v1488_v16  ;;  %v1443_v50 = vld [vmem:[%s11521_s1 + $0x2c30] sm:$0xff]  ;;  %v1436_v16 = vld [vmem:[%s11521_s1 + $0x2bf8] sm:$0xff] }
 0x364   :  { %4128 = vmatpush1.msra.mxu0 %v1359_v29  ;;  %4199 = vmatpush1.msra.mxu1 %v1487_v52  ;;  %v1311_v26 = vld [vmem:[%s11521_s1 + $0x2810] sm:$0xff]  ;;  %v1564_v29 = vld [vmem:[%s11521_s1 + $0x2ff8] sm:$0xff] }
 0x365   :  { %4129 = vmatprep.subr.mxu0 %v1356_v58  ;;  %4200 = vmatprep.subr.mxu1 %v1484_v21  ;;  %v1439_v53 = vld [vmem:[%s11521_s1 + $0x2c10] sm:$0xff]  ;;  %v1432_v21 = vld [vmem:[%s11521_s1 + $0x2bd8] sm:$0xff] }
 0x366   :  { %4130 = vmatpush1.msra.mxu0 %v1355_v59  ;;  %4201 = vmatpush1.msra.mxu1 %v1483_v61  ;;  %v1435_v52 = vld [vmem:[%s11521_s1 + $0x2bf0] sm:$0xff]  ;;  %v1560_v59 = vld [vmem:[%s11521_s1 + $0x2fd8] sm:$0xff] }
 0x367   :  { %4131 = vmatprep.subr.mxu0 %v1352_v0  ;;  %4202 = vmatprep.subr.mxu1 %v1480_v32  ;;  %v1563_v58 = vld [vmem:[%s11521_s1 + $0x2ff0] sm:$0xff]  ;;  %v1428_v32 = vld [vmem:[%s11521_s1 + $0x2bb8] sm:$0xff] }
 0x368   :  { %4132 = vmatpush1.msra.mxu0 %v1351_v1  ;;  %4203 = vmatpush1.msra.mxu1 %v1479_v19  ;;  %v1431_v61 = vld [vmem:[%s11521_s1 + $0x2bd0] sm:$0xff]  ;;  %v1556_v1 = vld [vmem:[%s11521_s1 + $0x2fb8] sm:$0xff] }
 0x369   :  { %4133 = vmatprep.subr.mxu0 %v1348_v35  ;;  %4204 = vmatprep.subr.mxu1 %v1476_v54  ;;  %v1559_v0 = vld [vmem:[%s11521_s1 + $0x2fd0] sm:$0xff]  ;;  %v1424_v54 = vld [vmem:[%s11521_s1 + $0x2b98] sm:$0xff] }
 0x36a   :  { %4134 = vmatpush1.msra.mxu0 %v1347_v4  ;;  %4205 = vmatpush1.msra.mxu1 %v1475_v25  ;;  %v1427_v19 = vld [vmem:[%s11521_s1 + $0x2bb0] sm:$0xff]  ;;  %v1552_v4 = vld [vmem:[%s11521_s1 + $0x2f98] sm:$0xff] }
 0x36b   :  { %4135 = vmatprep.subr.mxu0 %v1344_v43  ;;  %4206 = vmatprep.subr.mxu1 %v1472_v57  ;;  %v1555_v35 = vld [vmem:[%s11521_s1 + $0x2fb0] sm:$0xff]  ;;  %v1420_v57 = vld [vmem:[%s11521_s1 + $0x2b78] sm:$0xff] }
 0x36c   :  { %4136 = vmatpush1.msra.mxu0 %v1343_v5  ;;  %4207 = vmatpush1.msra.mxu1 %v1471_v6  ;;  %v1423_v25 = vld [vmem:[%s11521_s1 + $0x2b90] sm:$0xff]  ;;  %v1548_v5 = vld [vmem:[%s11521_s1 + $0x2f78] sm:$0xff] }
 0x36d   :  { %4137 = vmatprep.subr.mxu0 %v1340_v48  ;;  %4208 = vmatprep.subr.mxu1 %v1468_v7  ;;  %v1551_v43 = vld [vmem:[%s11521_s1 + $0x2f90] sm:$0xff]  ;;  %v1416_v7 = vld [vmem:[%s11521_s1 + $0x2b58] sm:$0xff] }
 0x36e   :  { %4138 = vmatpush1.msra.mxu0 %v1339_v10  ;;  %4209 = vmatpush1.msra.mxu1 %v1467_v8  ;;  %v1419_v6 = vld [vmem:[%s11521_s1 + $0x2b70] sm:$0xff]  ;;  %v1544_v10 = vld [vmem:[%s11521_s1 + $0x2f58] sm:$0xff] }
 0x36f   :  { %4139 = vmatprep.subr.mxu0 %v1336_v12  ;;  %4210 = vmatprep.subr.mxu1 %v1464_v62  ;;  %v1547_v48 = vld [vmem:[%s11521_s1 + $0x2f70] sm:$0xff]  ;;  %v1412_v62 = vld [vmem:[%s11521_s1 + $0x2b38] sm:$0xff] }
 0x370   :  { %4140 = vmatpush1.msra.mxu0 %v1335_v11  ;;  %4211 = vmatpush1.msra.mxu1 %v1463_v13  ;;  %v1415_v8 = vld [vmem:[%s11521_s1 + $0x2b50] sm:$0xff]  ;;  %v1540_v11 = vld [vmem:[%s11521_s1 + $0x2f38] sm:$0xff] }
 0x371   :  { %4141 = vmatprep.subr.mxu0 %v1332_v14  ;;  %4212 = vmatprep.subr.mxu1 %v1460_v3  ;;  %v1543_v12 = vld [vmem:[%s11521_s1 + $0x2f50] sm:$0xff]  ;;  %v1408_v3 = vld [vmem:[%s11521_s1 + $0x2b18] sm:$0xff] }
 0x372   :  { %4142 = vmatpush1.msra.mxu0 %v1331_v18  ;;  %4213 = vmatpush1.msra.mxu1 %v1459_v20  ;;  %v1411_v13 = vld [vmem:[%s11521_s1 + $0x2b30] sm:$0xff]  ;;  %v1536_v18 = vld [vmem:[%s11521_s1 + $0x2f18] sm:$0xff] }
 0x373   :  { %4143 = vmatprep.subr.mxu0 %v1328_v22  ;;  %4214 = vmatprep.subr.mxu1 %v1456_v24  ;;  %v1539_v14 = vld [vmem:[%s11521_s1 + $0x2f30] sm:$0xff]  ;;  %v1404_v24 = vld [vmem:[%s11521_s1 + $0x2af8] sm:$0xff] }
 0x374   :  { %4144 = vmatpush1.msra.mxu0 %v1327_v30  ;;  %4215 = vmatpush1.msra.mxu1 %v1455_v31  ;;  %v1407_v20 = vld [vmem:[%s11521_s1 + $0x2b10] sm:$0xff]  ;;  %v1532_v30 = vld [vmem:[%s11521_s1 + $0x2ef8] sm:$0xff] }
 0x375   :  { %4145 = vmatprep.subr.mxu0 %v1324_v33  ;;  %4216 = vmatprep.subr.mxu1 %v1452_v34  ;;  %v1535_v22 = vld [vmem:[%s11521_s1 + $0x2f10] sm:$0xff]  ;;  %v1400_v34 = vld [vmem:[%s11521_s1 + $0x2ad8] sm:$0xff] }
 0x376   :  { %4146 = vmatpush1.msra.mxu0 %v1323_v37  ;;  %4217 = vmatpush1.msra.mxu1 %v1451_v38  ;;  %v1403_v31 = vld [vmem:[%s11521_s1 + $0x2af0] sm:$0xff]  ;;  %v1528_v37 = vld [vmem:[%s11521_s1 + $0x2ed8] sm:$0xff] }
 0x377   :  { %4147 = vmatprep.subr.mxu0 %v1320_v42  ;;  %4218 = vmatprep.subr.mxu1 %v1448_v44  ;;  %v1531_v33 = vld [vmem:[%s11521_s1 + $0x2ef0] sm:$0xff]  ;;  %v1396_v44 = vld [vmem:[%s11521_s1 + $0x2ab8] sm:$0xff] }
 0x378   :  { %4148 = vmatpush1.msra.mxu0 %v1319_v45  ;;  %4219 = vmatpush1.msra.mxu1 %v1447_v23  ;;  %v1399_v38 = vld [vmem:[%s11521_s1 + $0x2ad0] sm:$0xff]  ;;  %v1524_v45 = vld [vmem:[%s11521_s1 + $0x2eb8] sm:$0xff] }
 0x379   :  { %4149 = vmatprep.subr.mxu0 %v1316_v46  ;;  %4220 = vmatprep.subr.mxu1 %v1444_v9  ;;  %v1527_v42 = vld [vmem:[%s11521_s1 + $0x2ed0] sm:$0xff]  ;;  %v1392_v9 = vld [vmem:[%s11521_s1 + $0x2a98] sm:$0xff] }
 0x37a   :  { %4150 = vmatpush1.msra.mxu0 %v1315_v28  ;;  %4221 = vmatpush1.msra.mxu1 %v1443_v50  ;;  %v1395_v23 = vld [vmem:[%s11521_s1 + $0x2ab0] sm:$0xff]  ;;  %v1520_v28 = vld [vmem:[%s11521_s1 + $0x2e98] sm:$0xff] }
 0x37b   :  { %4151 = vmatprep.subr.mxu0 %v1312_v51  ;;  %4222 = vmatprep.subr.mxu1 %v1440_v15  ;;  %v1523_v46 = vld [vmem:[%s11521_s1 + $0x2eb0] sm:$0xff]  ;;  %v1388_v15 = vld [vmem:[%s11521_s1 + $0x2a78] sm:$0xff] }
 0x37c   :  { %4152 = vmatpush1.msra.mxu0 %v1311_v26  ;;  %4223 = vmatpush1.msra.mxu1 %v1439_v53  ;;  %v1391_v50 = vld [vmem:[%s11521_s1 + $0x2a90] sm:$0xff]  ;;  %v1516_v26 = vld [vmem:[%s11521_s1 + $0x2e78] sm:$0xff] }
 0x37d   :  { %4153 = vmatprep.subr.mxu0 %v1436_v16  ;;  %4224 = vmatprep.subr.mxu1 %v1564_v29  ;;  %v1519_v51 = vld [vmem:[%s11521_s1 + $0x2e90] sm:$0xff]  ;;  %v1384_v29 = vld [vmem:[%s11521_s1 + $0x2a58] sm:$0xff] }
 0x37e   :  { %4154 = vmatpush2.msra.mxu0 %v1435_v52  ;;  %4225 = vmatpush2.msra.mxu1 %v1563_v58  ;;  %v1387_v53 = vld [vmem:[%s11521_s1 + $0x2a70] sm:$0xff]  ;;  %v1512_v52 = vld [vmem:[%s11521_s1 + $0x2e58] sm:$0xff] }
 0x37f   :  { %4155 = vmatprep.subr.mxu0 %v1432_v21  ;;  %4226 = vmatprep.subr.mxu1 %v1560_v59  ;;  %v1515_v16 = vld [vmem:[%s11521_s1 + $0x2e70] sm:$0xff]  ;;  %v1380_v59 = vld [vmem:[%s11521_s1 + $0x2a38] sm:$0xff] }
 0x380   :  { %4156 = vmatpush2.msra.mxu0 %v1431_v61  ;;  %4227 = vmatpush2.msra.mxu1 %v1559_v0  ;;  %v1383_v58 = vld [vmem:[%s11521_s1 + $0x2a50] sm:$0xff]  ;;  %v1508_v61 = vld [vmem:[%s11521_s1 + $0x2e38] sm:$0xff] }
 0x381   :  { %4157 = vmatprep.subr.mxu0 %v1428_v32  ;;  %4228 = vmatprep.subr.mxu1 %v1556_v1  ;;  %v1511_v21 = vld [vmem:[%s11521_s1 + $0x2e50] sm:$0xff]  ;;  %v1376_v1 = vld [vmem:[%s11521_s1 + $0x2a18] sm:$0xff] }
 0x382   :  { %4158 = vmatpush2.msra.mxu0 %v1427_v19  ;;  %4229 = vmatpush2.msra.mxu1 %v1555_v35  ;;  %v1379_v0 = vld [vmem:[%s11521_s1 + $0x2a30] sm:$0xff]  ;;  %v1504_v19 = vld [vmem:[%s11521_s1 + $0x2e18] sm:$0xff] }
 0x383   :  { %4159 = vmatprep.subr.mxu0 %v1424_v54  ;;  %4230 = vmatprep.subr.mxu1 %v1552_v4  ;;  %v1507_v32 = vld [vmem:[%s11521_s1 + $0x2e30] sm:$0xff]  ;;  %v1628_v4 = vld [vmem:[%s11521_s1 + $0x31f8] sm:$0xff] }
 0x384   :  { %4160 = vmatpush2.msra.mxu0 %v1423_v25  ;;  %4231 = vmatpush2.msra.mxu1 %v1551_v43  ;;  %v1375_v35 = vld [vmem:[%s11521_s1 + $0x2a10] sm:$0xff]  ;;  %v1756_v25 = vld [vmem:[%s11521_s1 + $0x35f8] sm:$0xff] }
 0x385   :  { %4161 = vmatprep.subr.mxu0 %v1420_v57  ;;  %4232 = vmatprep.subr.mxu1 %v1548_v5  ;;  %v1503_v54 = vld [vmem:[%s11521_s1 + $0x2e10] sm:$0xff]  ;;  %v1752_v5 = vld [vmem:[%s11521_s1 + $0x35d8] sm:$0xff] }
 0x386   :  { %4162 = vmatpush2.msra.mxu0 %v1419_v6  ;;  %4233 = vmatpush2.msra.mxu1 %v1547_v48  ;;  %v1627_v43 = vld [vmem:[%s11521_s1 + $0x31f0] sm:$0xff]  ;;  %v1620_v6 = vld [vmem:[%s11521_s1 + $0x31b8] sm:$0xff] }
 0x387   :  { %4163 = vmatprep.subr.mxu0 %v1416_v7  ;;  %4234 = vmatprep.subr.mxu1 %v1544_v10  ;;  %v1755_v57 = vld [vmem:[%s11521_s1 + $0x35f0] sm:$0xff]  ;;  %v1748_v48 = vld [vmem:[%s11521_s1 + $0x35b8] sm:$0xff] }
 0x388   :  { %4164 = vmatpush2.msra.mxu0 %v1415_v8  ;;  %4235 = vmatpush2.msra.mxu1 %v1543_v12  ;;  %v1747_v7 = vld [vmem:[%s11521_s1 + $0x35b0] sm:$0xff]  ;;  %v1616_v10 = vld [vmem:[%s11521_s1 + $0x3198] sm:$0xff] }
 0x389   :  { %4165 = vmatprep.subr.mxu0 %v1412_v62  ;;  %4236 = vmatprep.subr.mxu1 %v1540_v11  ;;  %v1744_v8 = vld [vmem:[%s11521_s1 + $0x3598] sm:$0xff]  ;;  %v1615_v12 = vld [vmem:[%s11521_s1 + $0x3190] sm:$0xff] }
 0x38a   :  { %4166 = vmatpush2.msra.mxu0 %v1411_v13  ;;  %4237 = vmatpush2.msra.mxu1 %v1539_v14  ;;  %v1743_v62 = vld [vmem:[%s11521_s1 + $0x3590] sm:$0xff]  ;;  %v1612_v11 = vld [vmem:[%s11521_s1 + $0x3178] sm:$0xff] }
 0x38b   :  { %4167 = vmatprep.subr.mxu0 %v1408_v3  ;;  %4238 = vmatprep.subr.mxu1 %v1536_v18  ;;  %v1740_v13 = vld [vmem:[%s11521_s1 + $0x3578] sm:$0xff]  ;;  %v1611_v14 = vld [vmem:[%s11521_s1 + $0x3170] sm:$0xff] }
 0x38c   :  { %4168 = vmatpush2.msra.mxu0 %v1407_v20  ;;  %4239 = vmatpush2.msra.mxu1 %v1535_v22  ;;  %v1739_v3 = vld [vmem:[%s11521_s1 + $0x3570] sm:$0xff]  ;;  %v1608_v18 = vld [vmem:[%s11521_s1 + $0x3158] sm:$0xff] }
 0x38d   :  { %4169 = vmatprep.subr.mxu0 %v1404_v24  ;;  %4240 = vmatprep.subr.mxu1 %v1532_v30  ;;  %v1736_v20 = vld [vmem:[%s11521_s1 + $0x3558] sm:$0xff]  ;;  %v1607_v22 = vld [vmem:[%s11521_s1 + $0x3150] sm:$0xff] }
 0x38e   :  { %4170 = vmatpush2.msra.mxu0 %v1403_v31  ;;  %4241 = vmatpush2.msra.mxu1 %v1531_v33  ;;  %v1735_v24 = vld [vmem:[%s11521_s1 + $0x3550] sm:$0xff]  ;;  %v1604_v30 = vld [vmem:[%s11521_s1 + $0x3138] sm:$0xff] }
 0x38f   :  { %4171 = vmatprep.subr.mxu0 %v1400_v34  ;;  %4242 = vmatprep.subr.mxu1 %v1528_v37  ;;  %v1732_v31 = vld [vmem:[%s11521_s1 + $0x3538] sm:$0xff]  ;;  %v1603_v33 = vld [vmem:[%s11521_s1 + $0x3130] sm:$0xff] }
 0x390   :  { %4172 = vmatpush2.msra.mxu0 %v1399_v38  ;;  %4243 = vmatpush2.msra.mxu1 %v1527_v42  ;;  %v1731_v34 = vld [vmem:[%s11521_s1 + $0x3530] sm:$0xff]  ;;  %v1600_v37 = vld [vmem:[%s11521_s1 + $0x3118] sm:$0xff] }
 0x391   :  { %4173 = vmatprep.subr.mxu0 %v1396_v44  ;;  %4244 = vmatprep.subr.mxu1 %v1524_v45  ;;  %v1728_v38 = vld [vmem:[%s11521_s1 + $0x3518] sm:$0xff]  ;;  %v1599_v42 = vld [vmem:[%s11521_s1 + $0x3110] sm:$0xff] }
 0x392   :  { %4174 = vmatpush2.msra.mxu0 %v1395_v23  ;;  %4245 = vmatpush2.msra.mxu1 %v1523_v46  ;;  %v1727_v44 = vld [vmem:[%s11521_s1 + $0x3510] sm:$0xff]  ;;  %v1596_v45 = vld [vmem:[%s11521_s1 + $0x30f8] sm:$0xff] }
 0x393   :  { %4175 = vmatprep.subr.mxu0 %v1392_v9  ;;  %4246 = vmatprep.subr.mxu1 %v1520_v28  ;;  %v1724_v23 = vld [vmem:[%s11521_s1 + $0x34f8] sm:$0xff]  ;;  %v1595_v46 = vld [vmem:[%s11521_s1 + $0x30f0] sm:$0xff] }
 0x394   :  { %4176 = vmatpush2.msra.mxu0 %v1391_v50  ;;  %4247 = vmatpush2.msra.mxu1 %v1519_v51  ;;  %v1723_v9 = vld [vmem:[%s11521_s1 + $0x34f0] sm:$0xff]  ;;  %v1592_v28 = vld [vmem:[%s11521_s1 + $0x30d8] sm:$0xff] }
 0x395   :  { %4177 = vmatprep.subr.mxu0 %v1388_v15  ;;  %4248 = vmatprep.subr.mxu1 %v1516_v26  ;;  %v1720_v50 = vld [vmem:[%s11521_s1 + $0x34d8] sm:$0xff]  ;;  %v1591_v51 = vld [vmem:[%s11521_s1 + $0x30d0] sm:$0xff] }
 0x396   :  { %4178 = vmatpush2.msra.mxu0 %v1387_v53  ;;  %4249 = vmatpush2.msra.mxu1 %v1515_v16  ;;  %v1719_v15 = vld [vmem:[%s11521_s1 + $0x34d0] sm:$0xff]  ;;  %v1588_v26 = vld [vmem:[%s11521_s1 + $0x30b8] sm:$0xff] }
 0x397   :  { %4179 = vmatprep.subr.mxu0 %v1384_v29  ;;  %4250 = vmatprep.subr.mxu1 %v1512_v52  ;;  %v1716_v53 = vld [vmem:[%s11521_s1 + $0x34b8] sm:$0xff]  ;;  %v1587_v16 = vld [vmem:[%s11521_s1 + $0x30b0] sm:$0xff] }
 0x398   :  { %4180 = vmatpush2.msra.mxu0 %v1383_v58  ;;  %4251 = vmatpush2.msra.mxu1 %v1511_v21  ;;  %v1715_v29 = vld [vmem:[%s11521_s1 + $0x34b0] sm:$0xff]  ;;  %v1584_v52 = vld [vmem:[%s11521_s1 + $0x3098] sm:$0xff] }
 0x399   :  { %4181 = vmatprep.subr.mxu0 %v1380_v59  ;;  %4252 = vmatprep.subr.mxu1 %v1508_v61  ;;  %v1712_v58 = vld [vmem:[%s11521_s1 + $0x3498] sm:$0xff]  ;;  %v1583_v21 = vld [vmem:[%s11521_s1 + $0x3090] sm:$0xff] }
 0x39a   :  { %4182 = vmatpush2.msra.mxu0 %v1379_v0  ;;  %4253 = vmatpush2.msra.mxu1 %v1507_v32  ;;  %v1711_v59 = vld [vmem:[%s11521_s1 + $0x3490] sm:$0xff]  ;;  %v1580_v61 = vld [vmem:[%s11521_s1 + $0x3078] sm:$0xff] }
 0x39b   :  { %4183 = vmatprep.subr.mxu0 %v1376_v1  ;;  %4254 = vmatprep.subr.mxu1 %v1504_v19  ;;  %v1708_v0 = vld [vmem:[%s11521_s1 + $0x3478] sm:$0xff]  ;;  %v1579_v32 = vld [vmem:[%s11521_s1 + $0x3070] sm:$0xff] }
 0x39c   :  { %4184 = vmatpush2.msra.mxu0 %v1375_v35  ;;  %4185 = vmatprep.mubr.f32.mxu0 %v7331_v36  ;;  %v1624_v36 = vld [vmem:[%s11521_s1 + $0x31d8] sm:$0xff]  ;;  %v1707_v1 = vld [vmem:[%s11521_s1 + $0x3470] sm:$0xff] }
 0x39d   :  { %4255 = vmatpush2.msra.mxu1 %v1503_v54  ;;  %4186 = vmatmul.mubr.f32.vlgmr.msra.gmra.mxu0 %v7300_v17  ;;  %v1623_v17 = vld [vmem:[%s11521_s1 + $0x31d0] sm:$0xff]  ;;  %v1576_v19 = vld [vmem:[%s11521_s1 + $0x3058] sm:$0xff] }
 0x39e   :  { %4256 = vmatprep.mubr.f32.mxu1 %v7341_v39  ;;  %4263 = vmatprep.subr.mxu0 %v1628_v4  ;;  %v1751_v39 = vld [vmem:[%s11521_s1 + $0x35d0] sm:$0xff]  ;;  %v1704_v35 = vld [vmem:[%s11521_s1 + $0x3458] sm:$0xff] }
 0x39f   :  { %4334 = vmatprep.subr.mxu1 %v1756_v25  ;;  %4257 = vmatmul.mubr.f32.vlgmr.msra.gmra.mxu1 %v7315_v27  ;;  %v1619_v27 = vld [vmem:[%s11521_s1 + $0x31b0] sm:$0xff]  ;;  %v1572_v25 = vld [vmem:[%s11521_s1 + $0x3038] sm:$0xff] }
 0x3a0   :  { %4264 = vmatpush1.msra.mxu0 %v1627_v43  ;;  %4335 = vmatpush1.msra.mxu1 %v1755_v57  ;;  %v1575_v54 = vld [vmem:[%s11521_s1 + $0x3050] sm:$0xff]  ;;  %v1700_v43 = vld [vmem:[%s11521_s1 + $0x3438] sm:$0xff] }
 0x3a1   :  { %4265 = vmatprep.subr.mxu0 %v1624_v36  ;;  %4336 = vmatprep.subr.mxu1 %v1752_v5  ;;  %v1703_v4 = vld [vmem:[%s11521_s1 + $0x3450] sm:$0xff]  ;;  %v1568_v5 = vld [vmem:[%s11521_s1 + $0x3018] sm:$0xff] }
 0x3a2   :  { %4266 = vmatpush1.msra.mxu0 %v1623_v17  ;;  %4337 = vmatpush1.msra.mxu1 %v1751_v39  ;;  %v1571_v57 = vld [vmem:[%s11521_s1 + $0x3030] sm:$0xff]  ;;  %v1696_v17 = vld [vmem:[%s11521_s1 + $0x3418] sm:$0xff] }
 0x3a3   :  { %4267 = vmatprep.subr.mxu0 %v1620_v6  ;;  %4338 = vmatprep.subr.mxu1 %v1748_v48  ;;  %v1699_v36 = vld [vmem:[%s11521_s1 + $0x3430] sm:$0xff]  ;;  %v1692_v48 = vld [vmem:[%s11521_s1 + $0x33f8] sm:$0xff] }
 0x3a4   :  { %4268 = vmatpush1.msra.mxu0 %v1619_v27  ;;  %4339 = vmatpush1.msra.mxu1 %v1747_v7  ;;  %v1567_v39 = vld [vmem:[%s11521_s1 + $0x3010] sm:$0xff]  ;;  %v1820_v27 = vld [vmem:[%s11521_s1 + $0x37f8] sm:$0xff] }
 0x3a5   :  { %4269 = vmatprep.subr.mxu0 %v1616_v10  ;;  %4340 = vmatprep.subr.mxu1 %v1744_v8  ;;  %v1695_v6 = vld [vmem:[%s11521_s1 + $0x3410] sm:$0xff]  ;;  %v1688_v8 = vld [vmem:[%s11521_s1 + $0x33d8] sm:$0xff] }
 0x3a6   :  { %4270 = vmatpush1.msra.mxu0 %v1615_v12  ;;  %4341 = vmatpush1.msra.mxu1 %v1743_v62  ;;  %v1691_v7 = vld [vmem:[%s11521_s1 + $0x33f0] sm:$0xff]  ;;  %v1816_v12 = vld [vmem:[%s11521_s1 + $0x37d8] sm:$0xff] }
 0x3a7   :  { %4271 = vmatprep.subr.mxu0 %v1612_v11  ;;  %4342 = vmatprep.subr.mxu1 %v1740_v13  ;;  %v1819_v10 = vld [vmem:[%s11521_s1 + $0x37f0] sm:$0xff]  ;;  %v1684_v13 = vld [vmem:[%s11521_s1 + $0x33b8] sm:$0xff] }
 0x3a8   :  { %4272 = vmatpush1.msra.mxu0 %v1611_v14  ;;  %4343 = vmatpush1.msra.mxu1 %v1739_v3  ;;  %v1687_v62 = vld [vmem:[%s11521_s1 + $0x33d0] sm:$0xff]  ;;  %v1812_v14 = vld [vmem:[%s11521_s1 + $0x37b8] sm:$0xff] }
 0x3a9   :  { %4273 = vmatprep.subr.mxu0 %v1608_v18  ;;  %4344 = vmatprep.subr.mxu1 %v1736_v20  ;;  %v1815_v11 = vld [vmem:[%s11521_s1 + $0x37d0] sm:$0xff]  ;;  %v1680_v20 = vld [vmem:[%s11521_s1 + $0x3398] sm:$0xff] }
 0x3aa   :  { %4274 = vmatpush1.msra.mxu0 %v1607_v22  ;;  %4345 = vmatpush1.msra.mxu1 %v1735_v24  ;;  %v1683_v3 = vld [vmem:[%s11521_s1 + $0x33b0] sm:$0xff]  ;;  %v1808_v22 = vld [vmem:[%s11521_s1 + $0x3798] sm:$0xff] }
 0x3ab   :  { %4275 = vmatprep.subr.mxu0 %v1604_v30  ;;  %4346 = vmatprep.subr.mxu1 %v1732_v31  ;;  %v1811_v18 = vld [vmem:[%s11521_s1 + $0x37b0] sm:$0xff]  ;;  %v1676_v31 = vld [vmem:[%s11521_s1 + $0x3378] sm:$0xff] }
 0x3ac   :  { %4276 = vmatpush1.msra.mxu0 %v1603_v33  ;;  %4347 = vmatpush1.msra.mxu1 %v1731_v34  ;;  %v1679_v24 = vld [vmem:[%s11521_s1 + $0x3390] sm:$0xff]  ;;  %v1804_v33 = vld [vmem:[%s11521_s1 + $0x3778] sm:$0xff] }
 0x3ad   :  { %4277 = vmatprep.subr.mxu0 %v1600_v37  ;;  %4348 = vmatprep.subr.mxu1 %v1728_v38  ;;  %v1807_v30 = vld [vmem:[%s11521_s1 + $0x3790] sm:$0xff]  ;;  %v1672_v38 = vld [vmem:[%s11521_s1 + $0x3358] sm:$0xff] }
 0x3ae   :  { %4278 = vmatpush1.msra.mxu0 %v1599_v42  ;;  %4349 = vmatpush1.msra.mxu1 %v1727_v44  ;;  %v1675_v34 = vld [vmem:[%s11521_s1 + $0x3370] sm:$0xff]  ;;  %v1800_v42 = vld [vmem:[%s11521_s1 + $0x3758] sm:$0xff] }
 0x3af   :  { %4279 = vmatprep.subr.mxu0 %v1596_v45  ;;  %4350 = vmatprep.subr.mxu1 %v1724_v23  ;;  %v1803_v37 = vld [vmem:[%s11521_s1 + $0x3770] sm:$0xff]  ;;  %v1668_v23 = vld [vmem:[%s11521_s1 + $0x3338] sm:$0xff] }
 0x3b0   :  { %4280 = vmatpush1.msra.mxu0 %v1595_v46  ;;  %4351 = vmatpush1.msra.mxu1 %v1723_v9  ;;  %v1671_v44 = vld [vmem:[%s11521_s1 + $0x3350] sm:$0xff]  ;;  %v1796_v46 = vld [vmem:[%s11521_s1 + $0x3738] sm:$0xff] }
 0x3b1   :  { %4281 = vmatprep.subr.mxu0 %v1592_v28  ;;  %4352 = vmatprep.subr.mxu1 %v1720_v50  ;;  %v1799_v45 = vld [vmem:[%s11521_s1 + $0x3750] sm:$0xff]  ;;  %v1664_v50 = vld [vmem:[%s11521_s1 + $0x3318] sm:$0xff] }
 0x3b2   :  { %4282 = vmatpush1.msra.mxu0 %v1591_v51  ;;  %4353 = vmatpush1.msra.mxu1 %v1719_v15  ;;  %v1667_v9 = vld [vmem:[%s11521_s1 + $0x3330] sm:$0xff]  ;;  %v1792_v51 = vld [vmem:[%s11521_s1 + $0x3718] sm:$0xff] }
 0x3b3   :  { %4283 = vmatprep.subr.mxu0 %v1588_v26  ;;  %4354 = vmatprep.subr.mxu1 %v1716_v53  ;;  %v1795_v28 = vld [vmem:[%s11521_s1 + $0x3730] sm:$0xff]  ;;  %v1660_v53 = vld [vmem:[%s11521_s1 + $0x32f8] sm:$0xff] }
 0x3b4   :  { %4284 = vmatpush1.msra.mxu0 %v1587_v16  ;;  %4355 = vmatpush1.msra.mxu1 %v1715_v29  ;;  %v1663_v15 = vld [vmem:[%s11521_s1 + $0x3310] sm:$0xff]  ;;  %v1788_v16 = vld [vmem:[%s11521_s1 + $0x36f8] sm:$0xff] }
 0x3b5   :  { %4285 = vmatprep.subr.mxu0 %v1584_v52  ;;  %4356 = vmatprep.subr.mxu1 %v1712_v58  ;;  %v1791_v26 = vld [vmem:[%s11521_s1 + $0x3710] sm:$0xff]  ;;  %v1656_v58 = vld [vmem:[%s11521_s1 + $0x32d8] sm:$0xff] }
 0x3b6   :  { %4286 = vmatpush1.msra.mxu0 %v1583_v21  ;;  %4357 = vmatpush1.msra.mxu1 %v1711_v59  ;;  %v1659_v29 = vld [vmem:[%s11521_s1 + $0x32f0] sm:$0xff]  ;;  %v1784_v21 = vld [vmem:[%s11521_s1 + $0x36d8] sm:$0xff] }
 0x3b7   :  { %4287 = vmatprep.subr.mxu0 %v1580_v61  ;;  %4358 = vmatprep.subr.mxu1 %v1708_v0  ;;  %v1787_v52 = vld [vmem:[%s11521_s1 + $0x36f0] sm:$0xff]  ;;  %v1652_v0 = vld [vmem:[%s11521_s1 + $0x32b8] sm:$0xff] }
 0x3b8   :  { %4288 = vmatpush1.msra.mxu0 %v1579_v32  ;;  %4359 = vmatpush1.msra.mxu1 %v1707_v1  ;;  %v1655_v59 = vld [vmem:[%s11521_s1 + $0x32d0] sm:$0xff]  ;;  %v1780_v32 = vld [vmem:[%s11521_s1 + $0x36b8] sm:$0xff] }
 0x3b9   :  { %4289 = vmatprep.subr.mxu0 %v1576_v19  ;;  %4360 = vmatprep.subr.mxu1 %v1704_v35  ;;  %v1783_v61 = vld [vmem:[%s11521_s1 + $0x36d0] sm:$0xff]  ;;  %v1648_v35 = vld [vmem:[%s11521_s1 + $0x3298] sm:$0xff] }
 0x3ba   :  { %4290 = vmatpush1.msra.mxu0 %v1575_v54  ;;  %4361 = vmatpush1.msra.mxu1 %v1703_v4  ;;  %v1651_v1 = vld [vmem:[%s11521_s1 + $0x32b0] sm:$0xff]  ;;  %v1776_v54 = vld [vmem:[%s11521_s1 + $0x3698] sm:$0xff] }
 0x3bb   :  { %4291 = vmatprep.subr.mxu0 %v1572_v25  ;;  %4362 = vmatprep.subr.mxu1 %v1700_v43  ;;  %v1779_v19 = vld [vmem:[%s11521_s1 + $0x36b0] sm:$0xff]  ;;  %v1644_v43 = vld [vmem:[%s11521_s1 + $0x3278] sm:$0xff] }
 0x3bc   :  { %4292 = vmatpush1.msra.mxu0 %v1571_v57  ;;  %4363 = vmatpush1.msra.mxu1 %v1699_v36  ;;  %v1647_v4 = vld [vmem:[%s11521_s1 + $0x3290] sm:$0xff]  ;;  %v1772_v57 = vld [vmem:[%s11521_s1 + $0x3678] sm:$0xff] }
 0x3bd   :  { %4293 = vmatprep.subr.mxu0 %v1568_v5  ;;  %4364 = vmatprep.subr.mxu1 %v1696_v17  ;;  %v1775_v25 = vld [vmem:[%s11521_s1 + $0x3690] sm:$0xff]  ;;  %v1640_v17 = vld [vmem:[%s11521_s1 + $0x3258] sm:$0xff] }
 0x3be   :  { %4294 = vmatpush1.msra.mxu0 %v1567_v39  ;;  %4365 = vmatpush1.msra.mxu1 %v1695_v6  ;;  %v1643_v36 = vld [vmem:[%s11521_s1 + $0x3270] sm:$0xff]  ;;  %v1768_v39 = vld [vmem:[%s11521_s1 + $0x3658] sm:$0xff] }
 0x3bf   :  { %4295 = vmatprep.subr.mxu0 %v1692_v48  ;;  %4366 = vmatprep.subr.mxu1 %v1820_v27  ;;  %v1771_v5 = vld [vmem:[%s11521_s1 + $0x3670] sm:$0xff]  ;;  %v1636_v27 = vld [vmem:[%s11521_s1 + $0x3238] sm:$0xff] }
 0x3c0   :  { %4296 = vmatpush2.msra.mxu0 %v1691_v7  ;;  %4367 = vmatpush2.msra.mxu1 %v1819_v10  ;;  %v1639_v6 = vld [vmem:[%s11521_s1 + $0x3250] sm:$0xff]  ;;  %v1764_v7 = vld [vmem:[%s11521_s1 + $0x3638] sm:$0xff] }
 0x3c1   :  { %4297 = vmatprep.subr.mxu0 %v1688_v8  ;;  %4368 = vmatprep.subr.mxu1 %v1816_v12  ;;  %v1767_v48 = vld [vmem:[%s11521_s1 + $0x3650] sm:$0xff]  ;;  %v1632_v12 = vld [vmem:[%s11521_s1 + $0x3218] sm:$0xff] }
 0x3c2   :  { %4298 = vmatpush2.msra.mxu0 %v1687_v62  ;;  %4369 = vmatpush2.msra.mxu1 %v1815_v11  ;;  %v1635_v10 = vld [vmem:[%s11521_s1 + $0x3230] sm:$0xff]  ;;  %v1760_v62 = vld [vmem:[%s11521_s1 + $0x3618] sm:$0xff] }
 0x3c3   :  { %4299 = vmatprep.subr.mxu0 %v1684_v13  ;;  %4370 = vmatprep.subr.mxu1 %v1812_v14  ;;  %v1763_v8 = vld [vmem:[%s11521_s1 + $0x3630] sm:$0xff]  ;;  %v1884_v14 = vld [vmem:[%s11521_s1 + $0x39f8] sm:$0xff] }
 0x3c4   :  { %4300 = vmatpush2.msra.mxu0 %v1683_v3  ;;  %4371 = vmatpush2.msra.mxu1 %v1811_v18  ;;  %v1631_v11 = vld [vmem:[%s11521_s1 + $0x3210] sm:$0xff]  ;;  %v2012_v3 = vld [vmem:[%s11521_s1 + $0x3df8] sm:$0xff] }
 0x3c5   :  { %4301 = vmatprep.subr.mxu0 %v1680_v20  ;;  %4372 = vmatprep.subr.mxu1 %v1808_v22  ;;  %v1759_v13 = vld [vmem:[%s11521_s1 + $0x3610] sm:$0xff]  ;;  %v2008_v22 = vld [vmem:[%s11521_s1 + $0x3dd8] sm:$0xff] }
 0x3c6   :  { %4302 = vmatpush2.msra.mxu0 %v1679_v24  ;;  %4373 = vmatpush2.msra.mxu1 %v1807_v30  ;;  %v1883_v18 = vld [vmem:[%s11521_s1 + $0x39f0] sm:$0xff]  ;;  %v1876_v24 = vld [vmem:[%s11521_s1 + $0x39b8] sm:$0xff] }
 0x3c7   :  { %4303 = vmatprep.subr.mxu0 %v1676_v31  ;;  %4374 = vmatprep.subr.mxu1 %v1804_v33  ;;  %v2011_v20 = vld [vmem:[%s11521_s1 + $0x3df0] sm:$0xff]  ;;  %v2004_v30 = vld [vmem:[%s11521_s1 + $0x3db8] sm:$0xff] }
 0x3c8   :  { %4304 = vmatpush2.msra.mxu0 %v1675_v34  ;;  %4375 = vmatpush2.msra.mxu1 %v1803_v37  ;;  %v2003_v31 = vld [vmem:[%s11521_s1 + $0x3db0] sm:$0xff]  ;;  %v1872_v33 = vld [vmem:[%s11521_s1 + $0x3998] sm:$0xff] }
 0x3c9   :  { %4305 = vmatprep.subr.mxu0 %v1672_v38  ;;  %4376 = vmatprep.subr.mxu1 %v1800_v42  ;;  %v2000_v34 = vld [vmem:[%s11521_s1 + $0x3d98] sm:$0xff]  ;;  %v1871_v37 = vld [vmem:[%s11521_s1 + $0x3990] sm:$0xff] }
 0x3ca   :  { %4306 = vmatpush2.msra.mxu0 %v1671_v44  ;;  %4377 = vmatpush2.msra.mxu1 %v1799_v45  ;;  %v1999_v38 = vld [vmem:[%s11521_s1 + $0x3d90] sm:$0xff]  ;;  %v1868_v42 = vld [vmem:[%s11521_s1 + $0x3978] sm:$0xff]  ;;  %v2085_v45 = vsub.s32 1, %v5218_v41 }
 0x3cb   :  { %4307 = vmatprep.subr.mxu0 %v1668_v23  ;;  %4378 = vmatprep.subr.mxu1 %v1796_v46  ;;  %v1996_v44 = vld [vmem:[%s11521_s1 + $0x3d78] sm:$0xff]  ;;  %v1867_v23 = vld [vmem:[%s11521_s1 + $0x3970] sm:$0xff] }
 0x3cc   :  { %4308 = vmatpush2.msra.mxu0 %v1667_v9  ;;  %4379 = vmatpush2.msra.mxu1 %v1795_v28  ;;  %v1995_v46 = vld [vmem:[%s11521_s1 + $0x3d70] sm:$0xff]  ;;  %v10937_v9 = vld [vmem:[%s11522_s2] sm:$0xf]  ;;  %v10939_v28 = vpop.f32.mrf.mxu0 }
 0x3cd   :  { %4309 = vmatprep.subr.mxu0 %v1664_v50  ;;  %4380 = vmatprep.subr.mxu1 %v1792_v51  ;;  %v1864_v50 = vld [vmem:[%s11521_s1 + $0x3958] sm:$0xff] }
 0x3ce   :  { %4310 = vmatpush2.msra.mxu0 %v1663_v15  ;;  %4381 = vmatpush2.msra.mxu1 %v1791_v26  ;;  %v1992_v51 = vld [vmem:[%s11521_s1 + $0x3d58] sm:$0xff]  ;;  %v1863_v15 = vld [vmem:[%s11521_s1 + $0x3950] sm:$0xff] }
 0x3cf   :  { %4311 = vmatprep.subr.mxu0 %v1660_v53  ;;  %4382 = vmatprep.subr.mxu1 %v1788_v16  ;;  %v1991_v26 = vld [vmem:[%s11521_s1 + $0x3d50] sm:$0xff]  ;;  %v1860_v53 = vld [vmem:[%s11521_s1 + $0x3938] sm:$0xff] }
 0x3d0   :  { %4312 = vmatpush2.msra.mxu0 %v1659_v29  ;;  %4383 = vmatpush2.msra.mxu1 %v1787_v52  ;;  %v1988_v16 = vld [vmem:[%s11521_s1 + $0x3d38] sm:$0xff]  ;;  %v2086_v29 = vrot.slane %v10937_v9, %v2085_v45  ;;  %v1859_v52 = vld [vmem:[%s11521_s1 + $0x3930] sm:$0xff] }
 0x3d1   :  { %4313 = vmatprep.subr.mxu0 %v1656_v58  ;;  %4384 = vmatprep.subr.mxu1 %v1784_v21  ;;  %v1987_v58 = vld [vmem:[%s11521_s1 + $0x3d30] sm:$0xff]  ;;  %v10966_v21 = vpop.f32.mrf.mxu1 }
 0x3d2   :  { %4314 = vmatpush2.msra.mxu0 %v1655_v59  ;;  %4385 = vmatpush2.msra.mxu1 %v1783_v61  ;;  %v2343_v59 = vpop.f32.mrf.mxu0  ;;  %v1856_v61 = vld [vmem:[%s11521_s1 + $0x3918] sm:$0xff] }
 0x3d3   :  { %4315 = vmatprep.subr.mxu0 %v1652_v0  ;;  %4386 = vmatprep.subr.mxu1 %v1780_v32  ;;  %v1984_v0 = vld [vmem:[%s11521_s1 + $0x3d18] sm:$0xff]  ;;  %v1855_v32 = vld [vmem:[%s11521_s1 + $0x3910] sm:$0xff] }
 0x3d4   :  { %4316 = vmatpush2.msra.mxu0 %v1651_v1  ;;  %4387 = vmatpush2.msra.mxu1 %v1779_v19  ;;  %v1983_v1 = vld [vmem:[%s11521_s1 + $0x3d10] sm:$0xff]  ;;  %v10980_v19 = vpop.f32.mrf.mxu0 }
 0x3d5   :  { %4317 = vmatprep.subr.mxu0 %v1648_v35  ;;  %4388 = vmatprep.subr.mxu1 %v1776_v54  ;;  %v1852_v35 = vld [vmem:[%s11521_s1 + $0x38f8] sm:$0xff] }
 0x3d6   :  { %4318 = vmatpush2.msra.mxu0 %v1647_v4  ;;  %4389 = vmatpush2.msra.mxu1 %v1775_v25  ;;  %v1980_v54 = vld [vmem:[%s11521_s1 + $0x3cf8] sm:$0xff]  ;;  %v2344_v4 = vadd.f32 %v2343_v59, %v2086_v29  ;;  %v1851_v25 = vld [vmem:[%s11521_s1 + $0x38f0] sm:$0xff] }
 0x3d7   :  { %4319 = vmatprep.subr.mxu0 %v1644_v43  ;;  %4390 = vmatprep.subr.mxu1 %v1772_v57  ;;  %v1979_v43 = vld [vmem:[%s11521_s1 + $0x3cf0] sm:$0xff]  ;;  %v2414_v57 = vpop.f32.mrf.mxu1 }
 0x3d8   :  { %4320 = vmatpush2.msra.mxu0 %v1643_v36  ;;  %4391 = vmatpush2.msra.mxu1 %v1771_v5  ;;  %v1848_v36 = vld [vmem:[%s11521_s1 + $0x38d8] sm:$0xff] }
 0x3d9   :  { %4321 = vmatprep.subr.mxu0 %v1640_v17  ;;  %4392 = vmatprep.subr.mxu1 %v1768_v39  ;;  %v1976_v5 = vld [vmem:[%s11521_s1 + $0x3cd8] sm:$0xff]  ;;  %v1847_v17 = vld [vmem:[%s11521_s1 + $0x38d0] sm:$0xff] }
 0x3da   :  { %4322 = vmatpush2.msra.mxu0 %v1639_v6  ;;  %4393 = vmatpush2.msra.mxu1 %v1767_v48  ;;  %v1975_v39 = vld [vmem:[%s11521_s1 + $0x3cd0] sm:$0xff]  ;;  %v11006_v6 = vpop.f32.mrf.mxu1  ;;  %v2485_v48 = vpop.f32.mrf.mxu0 }
 0x3db   :  { %4323 = vmatprep.subr.mxu0 %v1636_v27  ;;  %4394 = vmatprep.subr.mxu1 %v1764_v7  ;;  %v1844_v27 = vld [vmem:[%s11521_s1 + $0x38b8] sm:$0xff] }
 0x3dc   :  { %4324 = vmatpush2.msra.mxu0 %v1635_v10  ;;  %4395 = vmatpush2.msra.mxu1 %v1763_v8  ;;  %v1972_v7 = vld [vmem:[%s11521_s1 + $0x3cb8] sm:$0xff]  ;;  %v2415_v10 = vadd.f32 %v2414_v57, %v2344_v4  ;;  %v1843_v8 = vld [vmem:[%s11521_s1 + $0x38b0] sm:$0xff] }
 0x3dd   :  { %4325 = vmatprep.subr.mxu0 %v1632_v12  ;;  %4396 = vmatprep.subr.mxu1 %v1760_v62  ;;  %v1971_v12 = vld [vmem:[%s11521_s1 + $0x3cb0] sm:$0xff]  ;;  %v11020_v62 = vpop.f32.mrf.mxu0  ;;  %v1940_v57 = vld [vmem:[%s11521_s1 + $0x3bb8] sm:$0xff] }
 0x3de   :  { %4326 = vmatpush2.msra.mxu0 %v1631_v11  ;;  %4327 = vmatprep.mubr.f32.mxu0 %v7736_v63  ;;  %v1880_v63 = vld [vmem:[%s11521_s1 + $0x39d8] sm:$0xff]  ;;  %v1943_v4 = vld [vmem:[%s11521_s1 + $0x3bd0] sm:$0xff] }
 0x3df   :  { %4397 = vmatpush2.msra.mxu1 %v1759_v13  ;;  %4328 = vmatmul.mubr.f32.vlgmr.msra.gmra.mxu0 %v7705_v49  ;;  %v1879_v49 = vld [vmem:[%s11521_s1 + $0x39d0] sm:$0xff]  ;;  %v1840_v11 = vld [vmem:[%s11521_s1 + $0x3898] sm:$0xff] }
 0x3e0   :  { %4398 = vmatprep.mubr.f32.mxu1 %v7746_v2  ;;  %4405 = vmatprep.subr.mxu0 %v1884_v14  ;;  %v2007_v2 = vld [vmem:[%s11521_s1 + $0x3dd0] sm:$0xff]  ;;  %v1968_v13 = vld [vmem:[%s11521_s1 + $0x3c98] sm:$0xff]  ;;  %v2486_v14 = vadd.f32 %v2485_v48, %v2415_v10 }
 0x3e1   :  { %4476 = vmatprep.subr.mxu1 %v2012_v3  ;;  %4399 = vmatmul.mubr.f32.vlgmr.msra.gmra.mxu1 %v7720_v56  ;;  %v1875_v56 = vld [vmem:[%s11521_s1 + $0x39b0] sm:$0xff] }
 0x3e2   :  { %4406 = vmatpush1.msra.mxu0 %v1883_v18  ;;  %4477 = vmatpush1.msra.mxu1 %v2011_v20  ;;  %v1839_v3 = vld [vmem:[%s11521_s1 + $0x3890] sm:$0xff]  ;;  %v2556_v20 = vpop.f32.mrf.mxu1 }
 0x3e3   :  { %4407 = vmatprep.subr.mxu0 %v1880_v63  ;;  %4478 = vmatprep.subr.mxu1 %v2008_v22  ;;  %v1967_v18 = vld [vmem:[%s11521_s1 + $0x3c90] sm:$0xff]  ;;  %v1836_v63 = vld [vmem:[%s11521_s1 + $0x3878] sm:$0xff] }
 0x3e4   :  { %4408 = vmatpush1.msra.mxu0 %v1879_v49  ;;  %4479 = vmatpush1.msra.mxu1 %v2007_v2  ;;  %v1964_v22 = vld [vmem:[%s11521_s1 + $0x3c78] sm:$0xff]  ;;  %v1835_v49 = vld [vmem:[%s11521_s1 + $0x3870] sm:$0xff] }
 0x3e5   :  { %4409 = vmatprep.subr.mxu0 %v1876_v24  ;;  %4480 = vmatprep.subr.mxu1 %v2004_v30  ;;  %v1963_v2 = vld [vmem:[%s11521_s1 + $0x3c70] sm:$0xff]  ;;  %v11046_v24 = vpop.f32.mrf.mxu1  ;;  %v2627_v30 = vpop.f32.mrf.mxu0 }
 0x3e6   :  { %4410 = vmatpush1.msra.mxu0 %v1875_v56  ;;  %4481 = vmatpush1.msra.mxu1 %v2003_v31  ;;  %v1832_v56 = vld [vmem:[%s11521_s1 + $0x3858] sm:$0xff] }
 0x3e7   :  { %4411 = vmatprep.subr.mxu0 %v1872_v33  ;;  %4482 = vmatprep.subr.mxu1 %v2000_v34  ;;  %v1960_v31 = vld [vmem:[%s11521_s1 + $0x3c58] sm:$0xff]  ;;  %v2557_v33 = vadd.f32 %v2556_v20, %v2486_v14  ;;  %v1831_v34 = vld [vmem:[%s11521_s1 + $0x3850] sm:$0xff] }
 0x3e8   :  { %4412 = vmatpush1.msra.mxu0 %v1871_v37  ;;  %4483 = vmatpush1.msra.mxu1 %v1999_v38  ;;  %v1959_v37 = vld [vmem:[%s11521_s1 + $0x3c50] sm:$0xff]  ;;  %v11060_v38 = vpop.f32.mrf.mxu0  ;;  %v2060_v14 = vld [vmem:[%s11521_s1 + $0x3f78] sm:$0xff] }
 0x3e9   :  { %4413 = vmatprep.subr.mxu0 %v1868_v42  ;;  %4484 = vmatprep.subr.mxu1 %v1996_v44  ;;  %v1828_v42 = vld [vmem:[%s11521_s1 + $0x3838] sm:$0xff]  ;;  %v2628_v45 = vadd.f32 %v2627_v30, %v2557_v33  ;;  %v1931_v20 = vld [vmem:[%s11521_s1 + $0x3b70] sm:$0xff] }
 0x3ea   :  { %4414 = vmatpush1.msra.mxu0 %v1867_v23  ;;  %4485 = vmatpush1.msra.mxu1 %v1995_v46  ;;  %v1956_v44 = vld [vmem:[%s11521_s1 + $0x3c38] sm:$0xff]  ;;  %v1827_v23 = vld [vmem:[%s11521_s1 + $0x3830] sm:$0xff]  ;;  %v2769_v29 = vpop.f32.mrf.mxu0 }
 0x3eb   :  { %4415 = vmatprep.subr.mxu0 %v1864_v50  ;;  %4486 = vmatprep.subr.mxu1 %v1992_v51  ;;  %v1955_v46 = vld [vmem:[%s11521_s1 + $0x3c30] sm:$0xff]  ;;  %v2698_v50 = vpop.f32.mrf.mxu1  ;;  %v1824_v51 = vld [vmem:[%s11521_s1 + $0x3818] sm:$0xff] }
 0x3ec   :  { %4416 = vmatpush1.msra.mxu0 %v1863_v15  ;;  %4487 = vmatpush1.msra.mxu1 %v1991_v26  ;;  %v1952_v15 = vld [vmem:[%s11521_s1 + $0x3c18] sm:$0xff]  ;;  %v1823_v26 = vld [vmem:[%s11521_s1 + $0x3810] sm:$0xff]  ;;  %v2699_v59 = vadd.f32 %v2698_v50, %v2628_v45 }
 0x3ed   :  { %4417 = vmatprep.subr.mxu0 %v1860_v53  ;;  %4488 = vmatprep.subr.mxu1 %v1988_v16  ;;  %v1951_v53 = vld [vmem:[%s11521_s1 + $0x3c10] sm:$0xff]  ;;  %v11086_v16 = vpop.f32.mrf.mxu1  ;;  %v1920_v50 = vld [vmem:[%s11521_s1 + $0x3b18] sm:$0xff] }
 0x3ee   :  { %4418 = vmatpush1.msra.mxu0 %v1859_v52  ;;  %4489 = vmatpush1.msra.mxu1 %v1987_v58  ;;  %v1948_v52 = vld [vmem:[%s11521_s1 + $0x3bf8] sm:$0xff]  ;;  %v1927_v30 = vld [vmem:[%s11521_s1 + $0x3b50] sm:$0xff] }
 0x3ef   :  { %4419 = vmatprep.subr.mxu0 %v1856_v61  ;;  %4490 = vmatprep.subr.mxu1 %v1984_v0  ;;  %v2076_v58 = vld [vmem:[%s11521_s1 + $0x3ff8] sm:$0xff]  ;;  %v1947_v61 = vld [vmem:[%s11521_s1 + $0x3bf0] sm:$0xff] }
 0x3f0   :  { %4420 = vmatpush1.msra.mxu0 %v1855_v32  ;;  %4491 = vmatpush1.msra.mxu1 %v1983_v1  ;;  %v2075_v0 = vld [vmem:[%s11521_s1 + $0x3ff0] sm:$0xff]  ;;  %v11100_v32 = vpop.f32.mrf.mxu0  ;;  %v1944_v1 = vld [vmem:[%s11521_s1 + $0x3bd8] sm:$0xff] }
 0x3f1   :  { %4421 = vmatprep.subr.mxu0 %v1852_v35  ;;  %4492 = vmatprep.subr.mxu1 %v1980_v54  ;;  %v2072_v35 = vld [vmem:[%s11521_s1 + $0x3fd8] sm:$0xff]  ;;  %v2770_v54 = vadd.f32 %v2769_v29, %v2699_v59  ;;  %v1923_v45 = vld [vmem:[%s11521_s1 + $0x3b30] sm:$0xff] }
 0x3f2   :  { %4422 = vmatpush1.msra.mxu0 %v1851_v25  ;;  %4493 = vmatpush1.msra.mxu1 %v1979_v43  ;;  %v2071_v25 = vld [vmem:[%s11521_s1 + $0x3fd0] sm:$0xff]  ;;  %v2840_v43 = vpop.f32.mrf.mxu1  ;;  %v2911_v48 = vpop.f32.mrf.mxu0 }
 0x3f3   :  { %4423 = vmatprep.subr.mxu0 %v1848_v36  ;;  %4494 = vmatprep.subr.mxu1 %v1976_v5  ;;  %v2068_v36 = vld [vmem:[%s11521_s1 + $0x3fb8] sm:$0xff]  ;;  %v1939_v5 = vld [vmem:[%s11521_s1 + $0x3bb0] sm:$0xff]  ;;  %v2841_v10 = vadd.f32 %v2840_v43, %v2770_v54 }
 0x3f4   :  { %4424 = vmatpush1.msra.mxu0 %v1847_v17  ;;  %4495 = vmatpush1.msra.mxu1 %v1975_v39  ;;  %v2067_v17 = vld [vmem:[%s11521_s1 + $0x3fb0] sm:$0xff]  ;;  %v11126_v39 = vpop.f32.mrf.mxu1  ;;  %v1912_v54 = vld [vmem:[%s11521_s1 + $0x3ad8] sm:$0xff] }
 0x3f5   :  { %4425 = vmatprep.subr.mxu0 %v1844_v27  ;;  %4496 = vmatprep.subr.mxu1 %v1972_v7  ;;  %v1936_v27 = vld [vmem:[%s11521_s1 + $0x3b98] sm:$0xff]  ;;  %v2039_v43 = vld [vmem:[%s11521_s1 + $0x3ed0] sm:$0xff] }
 0x3f6   :  { %4426 = vmatpush1.msra.mxu0 %v1843_v8  ;;  %4497 = vmatpush1.msra.mxu1 %v1971_v12  ;;  %v2064_v7 = vld [vmem:[%s11521_s1 + $0x3f98] sm:$0xff]  ;;  %v1935_v8 = vld [vmem:[%s11521_s1 + $0x3b90] sm:$0xff] }
 0x3f7   :  { %4427 = vmatprep.subr.mxu0 %v1840_v11  ;;  %4498 = vmatprep.subr.mxu1 %v1968_v13  ;;  %v2063_v12 = vld [vmem:[%s11521_s1 + $0x3f90] sm:$0xff]  ;;  %v11140_v11 = vpop.f32.mrf.mxu0  ;;  %v1932_v13 = vld [vmem:[%s11521_s1 + $0x3b78] sm:$0xff] }
 0x3f8   :  { %4428 = vmatpush1.msra.mxu0 %v1839_v3  ;;  %4499 = vmatpush1.msra.mxu1 %v1967_v18  ;;  %v2081_v3 = vsub.s32 0, %v5218_v41  ;;  %v2912_v18 = vadd.f32 %v2911_v48, %v2841_v10 }
 0x3f9   :  { %4429 = vmatprep.subr.mxu0 %v1836_v63  ;;  %4500 = vmatprep.subr.mxu1 %v1964_v22  ;;  %v2059_v63 = vld [vmem:[%s11521_s1 + $0x3f70] sm:$0xff]  ;;  %v2982_v22 = vpop.f32.mrf.mxu1  ;;  %v3053_v33 = vpop.f32.mrf.mxu0 }
 0x3fa   :  { %4430 = vmatpush1.msra.mxu0 %v1835_v49  ;;  %4501 = vmatpush1.msra.mxu1 %v1963_v2  ;;  %v1928_v49 = vld [vmem:[%s11521_s1 + $0x3b58] sm:$0xff] }
 0x3fb   :  { %4431 = vmatprep.subr.mxu0 %v1832_v56  ;;  %4502 = vmatprep.subr.mxu1 %v1960_v31  ;;  %v2056_v2 = vld [vmem:[%s11521_s1 + $0x3f58] sm:$0xff]  ;;  %v2055_v56 = vld [vmem:[%s11521_s1 + $0x3f50] sm:$0xff]  ;;  %v11167_v31 = vpop.f32.mrf.mxu1 }
 0x3fc   :  { %4432 = vmatpush1.msra.mxu0 %v1831_v34  ;;  %4503 = vmatpush1.msra.mxu1 %v1959_v37  ;;  %v1924_v34 = vld [vmem:[%s11521_s1 + $0x3b38] sm:$0xff] }
 0x3fd   :  { %4433 = vmatprep.subr.mxu0 %v1828_v42  ;;  %4504 = vmatprep.subr.mxu1 %v1956_v44  ;;  %v2052_v37 = vld [vmem:[%s11521_s1 + $0x3f38] sm:$0xff]  ;;  %v2082_v42 = vrot.slane %v10937_v9, %v2081_v3  ;;  %v2983_v44 = vadd.f32 %v2982_v22, %v2912_v18  ;;  %v3124_v29 = vpop.f32.mrf.mxu1  ;;  %v1899_v22 = vld [vmem:[%s11521_s1 + $0x3a70] sm:$0xff] }
 0x3fe   :  { %4434 = vmatpush1.msra.mxu0 %v1827_v23  ;;  %4505 = vmatpush1.msra.mxu1 %v1955_v46  ;;  %v2051_v23 = vld [vmem:[%s11521_s1 + $0x3f30] sm:$0xff]  ;;  %v11182_v46 = vpop.f32.mrf.mxu0 }
 0x3ff   :  { %4435 = vmatprep.subr.mxu0 %v1824_v51  ;;  %4506 = vmatprep.subr.mxu1 %v1952_v15  ;;  %v2048_v51 = vld [vmem:[%s11521_s1 + $0x3f18] sm:$0xff]  ;;  %v3054_v15 = vadd.f32 %v3053_v33, %v2983_v44  ;;  %v2342_v59 = vadd.f32 %v10939_v28, %v2082_v42 }
 0x400   :  { %4436 = vmatpush1.msra.mxu0 %v1823_v26  ;;  %4507 = vmatpush1.msra.mxu1 %v1951_v53  ;;  %v1919_v26 = vld [vmem:[%s11521_s1 + $0x3b10] sm:$0xff]  ;;  %v2040_v28 = vld [vmem:[%s11521_s1 + $0x3ed8] sm:$0xff] }
 0x401   :  { %4437 = vmatprep.subr.mxu0 %v1948_v52  ;;  %4508 = vmatprep.subr.mxu1 %v2076_v58  ;;  %v2047_v53 = vld [vmem:[%s11521_s1 + $0x3f10] sm:$0xff]  ;;  %v1916_v52 = vld [vmem:[%s11521_s1 + $0x3af8] sm:$0xff] }
 0x402   :  { %4438 = vmatpush2.msra.mxu0 %v1947_v61  ;;  %4509 = vmatpush2.msra.mxu1 %v2075_v0  ;;  %v2044_v58 = vld [vmem:[%s11521_s1 + $0x3ef8] sm:$0xff]  ;;  %v1915_v61 = vld [vmem:[%s11521_s1 + $0x3af0] sm:$0xff] }
 0x403   :  { %4439 = vmatprep.subr.mxu0 %v1944_v1  ;;  %4510 = vmatprep.subr.mxu1 %v2072_v35  ;;  %v2043_v0 = vld [vmem:[%s11521_s1 + $0x3ef0] sm:$0xff]  ;;  %v11209_v1 = vpop.f32.mrf.mxu1  ;;  %v3195_v35 = vpop.f32.mrf.mxu0  ;;  %v1892_v44 = vld [vmem:[%s11521_s1 + $0x3a38] sm:$0xff] }
 0x404   :  { %4440 = vmatpush2.msra.mxu0 %v1943_v4  ;;  %4511 = vmatpush2.msra.mxu1 %v2071_v25  ;;  %v3125_v4 = vadd.f32 %v3124_v29, %v3054_v15  ;;  %v1911_v25 = vld [vmem:[%s11521_s1 + $0x3ad0] sm:$0xff] }
 0x405   :  { %4441 = vmatprep.subr.mxu0 %v1940_v57  ;;  %4512 = vmatprep.subr.mxu1 %v2068_v36  ;;  %v11223_v57 = vpop.f32.mrf.mxu0  ;;  %v1908_v36 = vld [vmem:[%s11521_s1 + $0x3ab8] sm:$0xff]  ;;  %v3266_v10 = vpop.f32.mrf.mxu1 }
 0x406   :  { %4442 = vmatpush2.msra.mxu0 %v1939_v5  ;;  %4513 = vmatpush2.msra.mxu1 %v2067_v17  ;;  %v2036_v5 = vld [vmem:[%s11521_s1 + $0x3eb8] sm:$0xff]  ;;  %v2413_v17 = vadd.f32 %v10966_v21, %v2342_v59  ;;  %v3196_v48 = vadd.f32 %v3195_v35, %v3125_v4  ;;  %v4564_v35 = vld [vmem:[%s11523_s3 + $0x68] sm:$0xff] }
 0x407   :  { %4443 = vmatprep.subr.mxu0 %v1936_v27  ;;  %4514 = vmatprep.subr.mxu1 %v2064_v7  ;;  %v1907_v27 = vld [vmem:[%s11521_s1 + $0x3ab0] sm:$0xff]  ;;  %v2032_v21 = vld [vmem:[%s11521_s1 + $0x3e98] sm:$0xff]  ;;  %v11251_v3 = vpop.f32.mrf.mxu1  ;;  %v3337_v18 = vpop.f32.mrf.mxu0 }
 0x408   :  { %4444 = vmatpush2.msra.mxu0 %v1935_v8  ;;  %4515 = vmatpush2.msra.mxu1 %v2063_v12  ;;  %v2035_v7 = vld [vmem:[%s11521_s1 + $0x3eb0] sm:$0xff]  ;;  %v1904_v8 = vld [vmem:[%s11521_s1 + $0x3a98] sm:$0xff]  ;;  %v2484_v12 = vadd.f32 %v10980_v19, %v2413_v17  ;;  %v4595_v17 = vld [vmem:[%s11523_s3 + $0x160] sm:$0xff] }
 0x409   :  { %4445 = vmatprep.subr.mxu0 %v1932_v13  ;;  %4516 = vmatprep.subr.mxu1 %v2060_v14  ;;  %v1903_v13 = vld [vmem:[%s11521_s1 + $0x3a90] sm:$0xff]  ;;  %v2028_v19 = vld [vmem:[%s11521_s1 + $0x3e78] sm:$0xff]  ;;  %v3408_v42 = vpop.f32.mrf.mxu1 }
 0x40a   :  { %4446 = vmatpush2.msra.mxu0 %v1931_v20  ;;  %4517 = vmatpush2.msra.mxu1 %v2059_v63  ;;  %v2031_v14 = vld [vmem:[%s11521_s1 + $0x3e90] sm:$0xff]  ;;  %v1900_v20 = vld [vmem:[%s11521_s1 + $0x3a78] sm:$0xff]  ;;  %v3267_v63 = vadd.f32 %v3266_v10, %v3196_v48 }
 0x40b   :  { %4447 = vmatprep.subr.mxu0 %v1928_v49  ;;  %4518 = vmatprep.subr.mxu1 %v2056_v2  ;;  %v2027_v49 = vld [vmem:[%s11521_s1 + $0x3e70] sm:$0xff]  ;;  %v1896_v2 = vld [vmem:[%s11521_s1 + $0x3a58] sm:$0xff] }
 0x40c   :  { %4448 = vmatpush2.msra.mxu0 %v1927_v30  ;;  %4519 = vmatpush2.msra.mxu1 %v2055_v56  ;;  %v2024_v30 = vld [vmem:[%s11521_s1 + $0x3e58] sm:$0xff]  ;;  %v2555_v56 = vadd.f32 %v11006_v6, %v2484_v12  ;;  %v3338_v33 = vadd.f32 %v3337_v18, %v3267_v63  ;;  %v4577_v48 = vld [vmem:[%s11523_s3 + $0xd0] sm:$0xff]  ;;  %v4575_v18 = vld [vmem:[%s11523_s3 + $0xc0] sm:$0xff] }
 0x40d   :  { %4449 = vmatprep.subr.mxu0 %v1924_v34  ;;  %4520 = vmatprep.subr.mxu1 %v2052_v37  ;;  %v1895_v34 = vld [vmem:[%s11521_s1 + $0x3a50] sm:$0xff]  ;;  %v2020_v6 = vld [vmem:[%s11521_s1 + $0x3e38] sm:$0xff] }
 0x40e   :  { %4450 = vmatpush2.msra.mxu0 %v1923_v45  ;;  %4521 = vmatpush2.msra.mxu1 %v2051_v23  ;;  %v2023_v37 = vld [vmem:[%s11521_s1 + $0x3e50] sm:$0xff]  ;;  %v2626_v45 = vadd.f32 %v11020_v62, %v2555_v56  ;;  %v2016_v62 = vld [vmem:[%s11521_s1 + $0x3e18] sm:$0xff]  ;;  %v3409_v15 = vadd.f32 %v3408_v42, %v3338_v33  ;;  %v4572_v42 = vld [vmem:[%s11523_s3 + $0xa8] sm:$0xff] }
 0x40f   :  { %4451 = vmatprep.subr.mxu0 %v1920_v50  ;;  %4522 = vmatprep.subr.mxu1 %v2048_v51  ;;  %v1891_v23 = vld [vmem:[%s11521_s1 + $0x3a30] sm:$0xff]  ;;  %v1888_v51 = vld [vmem:[%s11521_s1 + $0x3a18] sm:$0xff] }
 0x410   :  { %4452 = vmatpush2.msra.mxu0 %v1919_v26  ;;  %4523 = vmatpush2.msra.mxu1 %v2047_v53  ;;  %v2019_v50 = vld [vmem:[%s11521_s1 + $0x3e30] sm:$0xff]  ;;  %v2697_v29 = vadd.f32 %v11046_v24, %v2626_v45  ;;  %v4548_v59 = vmax.f32 %v3409_v15, 0.0  ;;  %v4574_v63 = vld [vmem:[%s11523_s3 + $0xb8] sm:$0xff]  ;;  %v4571_v45 = vld [vmem:[%s11523_s3 + $0xa0] sm:$0xff] }
 0x411   :  { %4453 = vmatprep.subr.mxu0 %v1916_v52  ;;  %4524 = vmatprep.subr.mxu1 %v2044_v58  ;;  %v1887_v26 = vld [vmem:[%s11521_s1 + $0x3a10] sm:$0xff]  ;;  %v4582_v52 = vld [vmem:[%s11523_s3 + $0xf8] sm:$0xff] }
 0x412   :  { %4454 = vmatpush2.msra.mxu0 %v1915_v61  ;;  %4525 = vmatpush2.msra.mxu1 %v2043_v0  ;;  %v2015_v53 = vld [vmem:[%s11521_s1 + $0x3e10] sm:$0xff]  ;;  %v2768_v58 = vadd.f32 %v11060_v38, %v2697_v29  ;;  %v4566_v61 = vld [vmem:[%s11523_s3 + $0x78] sm:$0xff] }
 0x413   :  { %4455 = vmatprep.subr.mxu0 %v1912_v54  ;;  %4526 = vmatprep.subr.mxu1 %v2040_v28  ;;  %v4565_v24 = vld [vmem:[%s11523_s3 + $0x70] sm:$0xff]  ;;  %v4579_v28 = vld [vmem:[%s11523_s3 + $0xe0] sm:$0xff]  ;;  %v4570_v15 = vld [vmem:[%s11523_s3 + $0x98] sm:$0xff] }
 0x414   :  { %4456 = vmatpush2.msra.mxu0 %v1911_v25  ;;  %4527 = vmatpush2.msra.mxu1 %v2039_v43  ;;  %v4613_v38 = vld [vmem:[%s11523_s3 + $0x1f0] sm:$0xff]  ;;  %v2839_v0 = vadd.f32 %v11086_v16, %v2768_v58  ;;  %v4612_v16 = vld [vmem:[%s11523_s3 + $0x1e8] sm:$0xff]  ;;  %v4563_v25 = vld [vmem:[%s11523_s3 + $0x60] sm:$0xff] }
 0x415   :  { %4457 = vmatprep.subr.mxu0 %v1908_v36  ;;  %4528 = vmatprep.subr.mxu1 %v2036_v5  ;;  %v4597_v54 = vld [vmem:[%s11523_s3 + $0x170] sm:$0xff]  ;;  %v4596_v43 = vld [vmem:[%s11523_s3 + $0x168] sm:$0xff]  ;;  %v4578_v36 = vld [vmem:[%s11523_s3 + $0xd8] sm:$0xff] }
 0x416   :  { %4458 = vmatpush2.msra.mxu0 %v1907_v27  ;;  %4529 = vmatpush2.msra.mxu1 %v2035_v7  ;;  %v2910_v4 = vadd.f32 %v11100_v32, %v2839_v0  ;;  %v4611_v32 = vld [vmem:[%s11523_s3 + $0x1e0] sm:$0xff]  ;;  %v4562_v5 = vld [vmem:[%s11523_s3 + $0x58] sm:$0xff]  ;;  %v4561_v10 = vld [vmem:[%s11523_s3 + $0x50] sm:$0xff] }
 0x417   :  { %4459 = vmatprep.subr.mxu0 %v1904_v8  ;;  %4530 = vmatprep.subr.mxu1 %v2032_v21  ;;  %v4610_v27 = vld [vmem:[%s11523_s3 + $0x1d8] sm:$0xff]  ;;  %v4576_v21 = vld [vmem:[%s11523_s3 + $0xc8] sm:$0xff]  ;;  %v4573_v56 = vld [vmem:[%s11523_s3 + $0xb0] sm:$0xff] }
 0x418   :  { %4460 = vmatpush2.msra.mxu0 %v1903_v13  ;;  %4531 = vmatpush2.msra.mxu1 %v2031_v14  ;;  %v2981_v7 = vadd.f32 %v11126_v39, %v2910_v4  ;;  %v4594_v8 = vld [vmem:[%s11523_s3 + $0x158] sm:$0xff]  ;;  %v4609_v39 = vld [vmem:[%s11523_s3 + $0x1d0] sm:$0xff]  ;;  %v4560_v13 = vld [vmem:[%s11523_s3 + $0x48] sm:$0xff]  ;;  %v2093_v4 = vsub.s32 3, %v5218_v41 }
 0x419   :  { %4461 = vmatprep.subr.mxu0 %v1900_v20  ;;  %4532 = vmatprep.subr.mxu1 %v2028_v19  ;;  %v4593_v14 = vld [vmem:[%s11523_s3 + $0x150] sm:$0xff]  ;;  %v4559_v20 = vld [vmem:[%s11523_s3 + $0x40] sm:$0xff]  ;;  %v4592_v19 = vld [vmem:[%s11523_s3 + $0x148] sm:$0xff] }
 0x41a   :  { %4462 = vmatpush2.msra.mxu0 %v1899_v22  ;;  %4533 = vmatpush2.msra.mxu1 %v2027_v49  ;;  %v3052_v12 = vadd.f32 %v11140_v11, %v2981_v7  ;;  %v4608_v11 = vld [vmem:[%s11523_s3 + $0x1c8] sm:$0xff]  ;;  %v4607_v22 = vld [vmem:[%s11523_s3 + $0x1c0] sm:$0xff]  ;;  %v4553_v29 = vld [vmem:[%s11523_s3 + $0x10] sm:$0xff] }
 0x41b   :  { %4463 = vmatprep.subr.mxu0 %v1896_v2  ;;  %4534 = vmatprep.subr.mxu1 %v2024_v30  ;;  %v4558_v2 = vld [vmem:[%s11523_s3 + $0x38] sm:$0xff]  ;;  %v4591_v30 = vld [vmem:[%s11523_s3 + $0x140] sm:$0xff]  ;;  %v4552_v58 = vld [vmem:[%s11523_s3 + $0x8] sm:$0xff] }
 0x41c   :  { %4464 = vmatpush2.msra.mxu0 %v1895_v34  ;;  %4535 = vmatpush2.msra.mxu1 %v2023_v37  ;;  %v3123_v49 = vadd.f32 %v11167_v31, %v3052_v12  ;;  %v4606_v31 = vld [vmem:[%s11523_s3 + $0x1b8] sm:$0xff]  ;;  %v4557_v34 = vld [vmem:[%s11523_s3 + $0x30] sm:$0xff]  ;;  %v4600_v0 = vld [vmem:[%s11523_s3 + $0x188] sm:$0xff] }
 0x41d   :  { %4465 = vmatprep.subr.mxu0 %v1892_v44  ;;  %4536 = vmatprep.subr.mxu1 %v2020_v6  ;;  %v4590_v37 = vld [vmem:[%s11523_s3 + $0x138] sm:$0xff]  ;;  %v4556_v44 = vld [vmem:[%s11523_s3 + $0x28] sm:$0xff]  ;;  %v4589_v6 = vld [vmem:[%s11523_s3 + $0x130] sm:$0xff] }
 0x41e   :  { %4466 = vmatpush2.msra.mxu0 %v1891_v23  ;;  %4537 = vmatpush2.msra.mxu1 %v2019_v50  ;;  %v3194_v33 = vadd.f32 %v11182_v46, %v3123_v49  ;;  %v4605_v46 = vld [vmem:[%s11523_s3 + $0x1b0] sm:$0xff]  ;;  %v4604_v23 = vld [vmem:[%s11523_s3 + $0x1a8] sm:$0xff] }
 0x41f   :  { %4467 = vmatprep.subr.mxu0 %v1888_v51  ;;  %4538 = vmatprep.subr.mxu1 %v2016_v62  ;;  %v4555_v51 = vld [vmem:[%s11523_s3 + $0x20] sm:$0xff]  ;;  %v4588_v62 = vld [vmem:[%s11523_s3 + $0x128] sm:$0xff] }
 0x420   :  { %4468 = vmatpush2.msra.mxu0 %v1887_v26  ;;  %4469 = vmatprep.mubr.f32.mxu0 %v8141_v55  ;;  %v4581_v55 = vld [vmem:[%s11523_s3 + $0xf0] sm:$0xff]  ;;  %v3265_v50 = vadd.f32 %v11209_v1, %v3194_v33  ;;  %v4554_v1 = vld [vmem:[%s11523_s3 + $0x18] sm:$0xff] }
 0x421   :  { %4539 = vmatpush2.msra.mxu1 %v2015_v53  ;;  %4540 = vmatprep.mubr.f32.mxu1 %v8151_v60  ;;  %v4580_v60 = vld [vmem:[%s11523_s3 + $0xe8] sm:$0xff]  ;;  %v4569_v53 = vld [vmem:[%s11523_s3 + $0x90] sm:$0xff] }
 0x422   :  { %4470 = vmatmul.mubr.f32.vlgmr.msra.gmra.mxu0 %v8110_v40  ;;  %4541 = vmatmul.mubr.f32.vlgmr.msra.gmra.mxu1 %v8125_v47  ;;  %v4614_v40 = vld [vmem:[%s11523_s3 + $0x1f8] sm:$0xff]  ;;  %v3336_v26 = vadd.f32 %v11223_v57, %v3265_v50  ;;  %v4568_v57 = vld [vmem:[%s11523_s3 + $0x88] sm:$0xff] }
 0x423   :  { %4778 = vmatprep.subr.mxu0 %v4582_v52  ;;  %4686 = vmatprep.mubr.f32.mxu0 %v4548_v59  ;;  %v4598_v47 = vld [vmem:[%s11523_s3 + $0x178] sm:$0xff]  ;;  %v4567_v59 = vld [vmem:[%s11523_s3 + $0x80] sm:$0xff] }
 0x424   :  { %4779 = vmatpush3.msra.mxu0 %v4566_v61  ;;  %4813 = vmatprep.subr.mxu1 %v4614_v40  ;;  %v3407_v52 = vadd.f32 %v11251_v3, %v3336_v26  ;;  %v4551_v61 = vld [vmem:[%s11523_s3] sm:$0xff]  ;;  %v4586_v40 = vld [vmem:[%s11523_s3 + $0x118] sm:$0xff] }
 0x425   :  { %4780 = vmatprep.subr.mxu0 %v4581_v55  ;;  %4814 = vmatpush3.msra.mxu1 %v4598_v47  ;;  %v4603_v3 = vld [vmem:[%s11523_s3 + $0x1a0] sm:$0xff]  ;;  %v4601_v47 = vld [vmem:[%s11523_s3 + $0x190] sm:$0xff] }
 0x426   :  { %4781 = vmatpush3.msra.mxu0 %v4565_v24  ;;  %4815 = vmatprep.subr.mxu1 %v4613_v38  ;;  %v4547_v55 = vmax.f32 %v3407_v52, 0.0  ;;  %v4587_v24 = vld [vmem:[%s11523_s3 + $0x120] sm:$0xff]  ;;  %v4585_v38 = vld [vmem:[%s11523_s3 + $0x110] sm:$0xff] }
 0x427   :  { %4782 = vmatprep.subr.mxu0 %v4580_v60  ;;  %4816 = vmatpush3.msra.mxu1 %v4597_v54  ;;  %v4602_v60 = vld [vmem:[%s11523_s3 + $0x198] sm:$0xff]  ;;  %v4599_v54 = vld [vmem:[%s11523_s3 + $0x180] sm:$0xff] }
 0x428   :  { %4783 = vmatpush3.msra.mxu0 %v4564_v35  ;;  %4817 = vmatprep.subr.mxu1 %v4612_v16  ;;  %v4584_v35 = vld [vmem:[%s11523_s3 + $0x108] sm:$0xff]  ;;  %v2089_v16 = vsub.s32 2, %v5218_v41 }
 0x429   :  { %4784 = vmatprep.subr.mxu0 %v4579_v28  ;;  %4818 = vmatpush3.msra.mxu1 %v4596_v43  ;;  %v4583_v28 = vld [vmem:[%s11523_s3 + $0x100] sm:$0xff] }
 0x42a   :  { %4785 = vmatpush3.msra.mxu0 %v4563_v25  ;;  %4819 = vmatprep.subr.mxu1 %v4611_v32  ;;  %v3477_v25 = vpop.f32.mrf.mxu0  ;;  %v2090_v43 = vrot.slane %v10937_v9, %v2089_v16  ;;  %v3548_v32 = vpop.f32.mrf.mxu1 }
 0x42b   :  { %4786 = vmatprep.subr.mxu0 %v4578_v36  ;;  %4820 = vmatpush3.msra.mxu1 %v4595_v17  ;;  %v2094_v36 = vrot.slane %v10937_v9, %v2093_v4 }
 0x42c   :  { %4787 = vmatpush3.msra.mxu0 %v4562_v5  ;;  %4821 = vmatprep.subr.mxu1 %v4610_v27  ;;  %v3479_v5 = vpop.f32.mrf.mxu0  ;;  %v3478_v17 = vadd.f32 %v3477_v25, %v2090_v43  ;;  %v3550_v7 = vpop.f32.mrf.mxu1 }
 0x42d   :  { %4788 = vmatprep.subr.mxu0 %v4577_v48  ;;  %4822 = vmatpush3.msra.mxu1 %v4594_v8  ;;  %v3480_v27 = vadd.f32 %v3479_v5, %v2094_v36 }
 0x42e   :  { %4789 = vmatpush3.msra.mxu0 %v4561_v10  ;;  %4823 = vmatprep.subr.mxu1 %v4609_v39  ;;  %v3619_v48 = vpop.f32.mrf.mxu0  ;;  %v3549_v10 = vadd.f32 %v3548_v32, %v3478_v17  ;;  %v3690_v8 = vpop.f32.mrf.mxu1 }
 0x42f   :  { %4790 = vmatprep.subr.mxu0 %v4576_v21  ;;  %4824 = vmatpush3.msra.mxu1 %v4593_v14  ;;  %v3551_v39 = vadd.f32 %v3550_v7, %v3480_v27  ;;  %v4777_v27 = vld [vmem:[%s11524_s4] ss:$0 sm:$0xff] }
 0x430   :  { %4791 = vmatpush3.msra.mxu0 %v4560_v13  ;;  %4825 = vmatprep.subr.mxu1 %v4608_v11  ;;  %v3621_v21 = vpop.f32.mrf.mxu0  ;;  %v3620_v12 = vadd.f32 %v3619_v48, %v3549_v10 }
 0x431   :  { %4792 = vmatprep.subr.mxu0 %v4575_v18  ;;  %4826 = vmatpush3.msra.mxu1 %v4592_v19  ;;  %v3622_v14 = vadd.f32 %v3621_v21, %v3551_v39  ;;  %v3692_v18 = vpop.f32.mrf.mxu1 }
 0x432   :  { %4793 = vmatpush3.msra.mxu0 %v4559_v20  ;;  %4827 = vmatprep.subr.mxu1 %v4607_v22  ;;  %v3761_v13 = vpop.f32.mrf.mxu0  ;;  %v3691_v41 = vadd.f32 %v3690_v8, %v3620_v12 }
 0x433   :  { %4794 = vmatprep.subr.mxu0 %v4574_v63  ;;  %4828 = vmatpush3.msra.mxu1 %v4591_v30  ;;  %v3832_v11 = vpop.f32.mrf.mxu1  ;;  %v3693_v19 = vadd.f32 %v3692_v18, %v3622_v14 }
 0x434   :  { %4795 = vmatpush3.msra.mxu0 %v4558_v2  ;;  %4829 = vmatprep.subr.mxu1 %v4606_v31  ;;  %v3763_v20 = vpop.f32.mrf.mxu0  ;;  %v3762_v63 = vadd.f32 %v3761_v13, %v3691_v41 }
 0x435   :  { %4796 = vmatprep.subr.mxu0 %v4573_v56  ;;  %4830 = vmatpush3.msra.mxu1 %v4590_v37  ;;  %v3764_v22 = vadd.f32 %v3763_v20, %v3693_v19  ;;  %v3834_v49 = vpop.f32.mrf.mxu1 }
 0x436   :  { %4797 = vmatpush3.msra.mxu0 %v4557_v34  ;;  %4831 = vmatprep.subr.mxu1 %v4605_v46  ;;  %v3903_v9 = vpop.f32.mrf.mxu0  ;;  %v3833_v2 = vadd.f32 %v3832_v11, %v3762_v63 }
 0x437   :  { %4798 = vmatprep.subr.mxu0 %v4572_v42  ;;  %4832 = vmatpush3.msra.mxu1 %v4589_v6  ;;  %v3974_v30 = vpop.f32.mrf.mxu1  ;;  %v3835_v31 = vadd.f32 %v3834_v49, %v3764_v22 }
 0x438   :  { %4799 = vmatpush3.msra.mxu0 %v4556_v44  ;;  %4833 = vmatprep.subr.mxu1 %v4604_v23  ;;  %v3905_v56 = vpop.f32.mrf.mxu0  ;;  %v3904_v33 = vadd.f32 %v3903_v9, %v3833_v2 }
 0x439   :  { %4800 = vmatprep.subr.mxu0 %v4571_v45  ;;  %4834 = vmatpush3.msra.mxu1 %v4588_v62  ;;  %v3906_v37 = vadd.f32 %v3905_v56, %v3835_v31  ;;  %v3976_v42 = vpop.f32.mrf.mxu1 }
 0x43a   :  { %4801 = vmatpush3.msra.mxu0 %v4555_v51  ;;  %4835 = vmatprep.subr.mxu1 %v4603_v3  ;;  %v4045_v34 = vpop.f32.mrf.mxu0  ;;  %v3975_v46 = vadd.f32 %v3974_v30, %v3904_v33 }
 0x43b   :  { %4802 = vmatprep.subr.mxu0 %v4570_v15  ;;  %4836 = vmatpush3.msra.mxu1 %v4587_v24  ;;  %v4116_v44 = vpop.f32.mrf.mxu1  ;;  %v3977_v45 = vadd.f32 %v3976_v42, %v3906_v37 }
 0x43c   :  { %4803 = vmatpush3.msra.mxu0 %v4554_v1  ;;  %4837 = vmatprep.subr.mxu1 %v4602_v60  ;;  %v4047_v6 = vpop.f32.mrf.mxu0  ;;  %v4046_v23 = vadd.f32 %v4045_v34, %v3975_v46 }
 0x43d   :  { %4804 = vmatprep.subr.mxu0 %v4569_v53  ;;  %4838 = vmatpush3.msra.mxu1 %v4586_v40  ;;  %v4048_v51 = vadd.f32 %v4047_v6, %v3977_v45  ;;  %v4118_v62 = vpop.f32.mrf.mxu1 }
 0x43e   :  { %4805 = vmatpush3.msra.mxu0 %v4553_v29  ;;  %4839 = vmatprep.subr.mxu1 %v4601_v47  ;;  %v4117_v15 = vadd.f32 %v4116_v44, %v4046_v23 }
 0x43f   :  { %4806 = vmatprep.subr.mxu0 %v4568_v57  ;;  %4840 = vmatpush3.msra.mxu1 %v4585_v38  ;;  %v4119_v53 = vadd.f32 %v4118_v62, %v4048_v51 }
 0x440   :  { %4807 = vmatpush3.msra.mxu0 %v4552_v58  ;;  %4841 = vmatprep.subr.mxu1 %v4600_v0 }
 0x441   :  { %4808 = vmatprep.subr.mxu0 %v4567_v59  ;;  %4842 = vmatpush3.msra.mxu1 %v4584_v35 }
 0x442   :  { %4809 = vmatpush3.msra.mxu0 %v4551_v61  ;;  %4843 = vmatprep.subr.mxu1 %v4599_v54 }
 0x443   :  { %4687 = vmatmul.mubr.f32.vlgmr.msra.gmra.mxu0 %v4547_v55  ;;  %4844 = vmatpush3.msra.mxu1 %v4583_v28 }
 0x45d   :  { %v4187_v50 = vpop.f32.mrf.mxu0 }
 0x45e   :  { %v4188_v29 = vadd.f32 %v4187_v50, %v4117_v15 }
 0x45f   :  { %v4258_v26 = vpop.f32.mrf.mxu1  ;;  %v4189_v1 = vpop.f32.mrf.mxu0 }
 0x460   :  { %v4190_v52 = vadd.f32 %v4189_v1, %v4119_v53  ;;  %v4259_v59 = vadd.f32 %v4258_v26, %v4188_v29 }
 0x461   :  { %v4260_v58 = vpop.f32.mrf.mxu1 }
 0x462   :  { %v4261_v3 = vadd.f32 %v4260_v58, %v4190_v52 }
 0x49f   :  { %v4329_v57 = vpop.f32.mrf.mxu0 }
 0x4a0   :  { %v4330_v24 = vadd.f32 %v4329_v57, %v4259_v59 }
 0x4a1   :  { %v4400_v61 = vpop.f32.mrf.mxu1  ;;  %v4331_v55 = vpop.f32.mrf.mxu0 }
 0x4a2   :  { %v4332_v60 = vadd.f32 %v4331_v55, %v4261_v3  ;;  %v4401_v47 = vadd.f32 %v4400_v61, %v4330_v24 }
 0x4a3   :  { %v4402_v40 = vpop.f32.mrf.mxu1 }
 0x4a4   :  { %v4403_v35 = vadd.f32 %v4402_v40, %v4332_v60 }
 0x4e2   :  { %v4471_v38 = vpop.f32.mrf.mxu0  ;;  %v4542_v0 = vpop.f32.mrf.mxu1 }
 0x4e3   :  { %v4472_v54 = vadd.f32 %v4471_v38, %v4401_v47 }
 0x4e4   :  { %v4473_v28 = vpop.f32.mrf.mxu0  ;;  %v4544_v25 = vpop.f32.mrf.mxu1 }
 0x4e5   :  { %v4474_v16 = vadd.f32 %v4473_v28, %v4403_v35  ;;  %v4543_v4 = vadd.f32 %v4542_v0, %v4472_v54 }
 0x4e7   :  { %v4545_v43 = vadd.f32 %v4544_v25, %v4474_v16  ;;  %v4549_v32 = vmax.f32 %v4543_v4, 0.0 }
 0x4e9   :  { %v4550_v36 = vmax.f32 %v4545_v43, 0.0 }
 0x4eb   :  { %4756 = vmatprep.mubr.f32.mxu1 %v4550_v36 }
 0x4ec   :  { %4757 = vmatmul.mubr.f32.vlgmr.msra.gmra.mxu1 %v4549_v32 }
 0x503   :  { %v4810_v5 = vpop.f32.mrf.mxu0 }
 0x505   :  { %v4811_v17 = vpop.f32.mrf.mxu0 }
 0x506   :  { %v4812_v48 = vadd.f32 %v4811_v17, %v4810_v5 }
 0x508   :  { %v4689_v8 = vadd.f32 %v4812_v48, %v4777_v27 }
 0x5ac   :  { %v4845_v7 = vpop.f32.mrf.mxu1 }
 0x5ae   :  { %v4846_v10 = vpop.f32.mrf.mxu1 }
 0x5af   :  { %v4847_v21 = vadd.f32 %v4846_v10, %v4845_v7 }
 0x5b1   :  { %v4759_v39 = vadd.f32 %v4847_v21, %v4689_v8 }
 0x5b3   :  { %4762 = vst [vmem:[#allocation2] sm:$0x3] %v4759_v39 }
 0x5b4   :  { %4869 = shalt.err (!%p4866_p4)
}
 0x5b5   :  { %4772 = dma.vmem_to_hbm [thread:$0]  %s4770_s9, 32, %s11525_s5, [#allocation3]  }
 0x5b6   :  { %4878 = dma.done.wait [#allocation3], 32  }
 0x5b7   :  { %4879 = vsyncadd [#allocation3], 4294967264 }
 0x5b8   :  { %4776 = vsyncpa [#allocation3], 1 }

</bundles_post_ra>
